<compile_context>
chip_gen: v7x
topology: tpu7x:2x2x1
jax: 0.10.0
libtpu: 0.0.40
codegen_flags: <defaults>
</compile_context>

<pallas_src>
import jax
import jax.numpy as jnp
from jax.experimental import pallas as pl
from jax.experimental.pallas import tpu as pltpu

N_IN = 116                       # SPDTransform input size
N_OUT = 64                       # SPDTransform output size
NP = 128                         # N_IN zero-padded to the 128-lane tile edge
FEAT = N_OUT * (N_OUT + 1) // 2  # 64*65//2 = 2080 (upper-triangular vectorization)
TB = 8                           # batch tile: matrices processed per grid step
EPS_RECT = 1e-4                  # SPDRectified eigenvalue clamp
EPS_NORM_SQ = 1e-24              # clamp on squared L2 norm (== F.normalize eps=1e-12)


# ---------------------------------------------------------------------------
# Kernel 1: SPDTransform bilinear map  Y_b = W^T X_b W   (batched, 128-padded)
# ---------------------------------------------------------------------------
def _bilinear_kernel(x_ref, w_ref, o_ref):
    # x_ref: (TB*128, 128)  -- TB row-stacked zero-padded SPD matrices
    # w_ref: (128, 64)      -- zero-padded Stiefel weight
    # o_ref: (TB, 64, 64)
    w = w_ref[...]
    # One big flat MXU matmul for the X@W stage of all TB matrices.
    xw = jnp.dot(x_ref[...], w, preferred_element_type=jnp.float32)  # (TB*128, 64)
    tb = o_ref.shape[0]
    for b in range(tb):                                               # static unroll
        xw_b = xw[b * NP:(b + 1) * NP, :]                             # (128,64) = X_b W
        # Y_b = W^T (X_b W): contraction over the padded row dim (dim 0 of both);
        # zero rows of W make the padding irrelevant.
        o_ref[b] = jax.lax.dot_general(
            w, xw_b, (((0,), (0,)), ((), ())),
            preferred_element_type=jnp.float32)                       # (64, 64)


def spd_transform(x, w):
    """x: (B,116,116) f32, w: (116,64) f32 -> (B,64,64) f32 with Y = W^T X W."""
    B = x.shape[0]
    b_pad = ((B + TB - 1) // TB) * TB
    x_p = jnp.pad(x.astype(jnp.float32),
                  ((0, b_pad - B), (0, NP - N_IN), (0, NP - N_IN)))
    w_p = jnp.pad(w.astype(jnp.float32), ((0, NP - N_IN), (0, 0)))
    x_flat = x_p.reshape(b_pad * NP, NP)          # free HBM metadata reshape
    y = pl.pallas_call(
        _bilinear_kernel,
        out_shape=jax.ShapeDtypeStruct((b_pad, N_OUT, N_OUT), jnp.float32),
        grid=(b_pad // TB,),
        in_specs=[
            pl.BlockSpec((TB * NP, NP), lambda i: (i, 0)),
            pl.BlockSpec((NP, N_OUT), lambda i: (0, 0)),
        ],
        out_specs=pl.BlockSpec((TB, N_OUT, N_OUT), lambda i: (i, 0, 0)),
        compiler_params=pltpu.CompilerParams(dimension_semantics=("parallel",)),
    )(x_flat, w_p)
    return y[:B]


# ---------------------------------------------------------------------------
# Kernel 2 (fused): ReEig + LogEig reconstruction + triu vectorize + Normalize
#                   + Linear classifier.
# The triu selection is folded into symmetric per-class weight matrices W3
# (off-diagonals halved), so for symmetric M:
#   triu(M) . w_cls[:,c] == sum_ij M[i,j] * W3[c,i,j]
#   ||triu(M)||^2        == (||M||_F^2 + ||diag(M)||^2) / 2
# ---------------------------------------------------------------------------
def _head_kernel(u_ref, s_ref, w3_ref, b_ref, o_ref):
    # u_ref: (TB,64,64) eigenvectors, s_ref: (TB,64) eigenvalues
    # w3_ref: (C,64,64) folded classifier weights, b_ref: (1,C), o_ref: (TB,C)
    u = u_ref[...]
    f = jnp.log(jnp.maximum(s_ref[...], EPS_RECT))            # ReEig clamp, then log
    a = u * f[:, None, :]                                     # U @ diag(f)
    m = jnp.einsum('bik,bjk->bij', a, u,
                   preferred_element_type=jnp.float32)        # (TB,64,64), symmetric

    # triu L2 norm via Frobenius + diagonal
    diag = jnp.sum(a * u, axis=2)                             # (TB,64) = diag(M)
    fro2 = jnp.sum(jnp.sum(m * m, axis=2), axis=1, keepdims=True)   # (TB,1)
    d2 = jnp.sum(diag * diag, axis=1, keepdims=True)                # (TB,1)
    inv_norm = jax.lax.rsqrt(jnp.maximum(0.5 * (fro2 + d2), EPS_NORM_SQ))

    # classifier as a VPU reduction (C is tiny; avoids a sub-128-lane MXU matmul
    # and any in-kernel reshape of the (64,64) tiles to a 4096-lane row)
    ncls = w3_ref.shape[0]
    cols = []
    for c in range(ncls):                                     # static unroll, C small
        wc = w3_ref[c]                                        # (64,64)
        t = jnp.sum(m * wc[None, :, :], axis=2)               # (TB,64)
        cols.append(jnp.sum(t, axis=1, keepdims=True))        # (TB,1)
    logits = jnp.concatenate(cols, axis=1)                    # (TB,C)
    # linearity: W @ (v/||v||) + b == (W @ v) * (1/||v||) + b
    o_ref[...] = logits * inv_norm + b_ref[...]


def logeig_normalize_classify(u, s, w3, bias):
    """u: (B,64,64), s: (B,64), w3: (C,64,64), bias: (C,) -> logits (B,C)."""
    B = u.shape[0]
    C = w3.shape[0]
    b_pad = ((B + TB - 1) // TB) * TB
    u_p = jnp.pad(u.astype(jnp.float32), ((0, b_pad - B), (0, 0), (0, 0)))
    s_p = jnp.pad(s.astype(jnp.float32), ((0, b_pad - B), (0, 0)))
    b2d = bias.reshape(1, C).astype(jnp.float32)
    logits = pl.pallas_call(
        _head_kernel,
        out_shape=jax.ShapeDtypeStruct((b_pad, C), jnp.float32),
        grid=(b_pad // TB,),
        in_specs=[
            pl.BlockSpec((TB, N_OUT, N_OUT), lambda i: (i, 0, 0)),
            pl.BlockSpec((TB, N_OUT), lambda i: (i, 0)),
            pl.BlockSpec((C, N_OUT, N_OUT), lambda i: (0, 0, 0)),
            pl.BlockSpec((1, C), lambda i: (0, 0)),
        ],
        out_specs=pl.BlockSpec((TB, C), lambda i: (i, 0)),
        compiler_params=pltpu.CompilerParams(dimension_semantics=("parallel",)),
    )(u_p, s_p, w3, b2d)
    return logits[:B]


def fold_classifier_weights(w_cls):
    """(FEAT, C) triu-vectorized Linear weight -> (C, 64, 64) symmetric weights
    with halved off-diagonals (exact triu-fold for symmetric M)."""
    C = w_cls.shape[1]
    iu0, iu1 = jnp.triu_indices(N_OUT)
    w3 = jnp.zeros((C, N_OUT, N_OUT), jnp.float32).at[:, iu0, iu1].set(
        w_cls.T.astype(jnp.float32))
    return 0.5 * (w3 + jnp.transpose(w3, (0, 2, 1)))


# ---------------------------------------------------------------------------
# Full forward pass
# ---------------------------------------------------------------------------
def finetune_model_forward(x, params):
    w_spd = params["w_spd"]          # (116, 64), semi-orthogonal (Stiefel)
    w_cls = params["w_cls"]          # (2080, C)
    b_cls = params["b_cls"]          # (C,)

    # SPDTransform: bilinear map (Pallas, batch-tiled, 128-padded)
    y = spd_transform(x, w_spd)                          # (B, 64, 64)

    # TODO(synk): symmetric eigendecomposition has no clean Pallas TPU
    # equivalent; done with jnp.linalg.eigh in plain JAX (ReEig preserves the
    # eigenbasis, so ReEig + LogEig share a single eigh).
    y = 0.5 * (y + jnp.transpose(y, (0, 2, 1)))          # enforce symmetry
    s, u = jnp.linalg.eigh(y)                            # s: (B,64), u: (B,64,64)

    # ReEig + LogEig + triu vectorize + Normalize + Linear (one fused Pallas kernel)
    w3 = fold_classifier_weights(w_cls)                  # (C, 64, 64)
    return logeig_normalize_classify(u, s, w3, b_cls)    # (B, num_classes)


def init_params(key, num_classes):
    k1, k2, k3 = jax.random.split(key, 3)
    # SPDTransform weight: orthonormal columns, like StiefelParameter
    a = jax.random.normal(k1, (N_IN, N_OUT), dtype=jnp.float32)
    q, _ = jnp.linalg.qr(a)
    w_spd = q[:, :N_OUT].astype(jnp.float32)             # (116, 64)
    # nn.Linear default init: U(-1/sqrt(fan_in), 1/sqrt(fan_in))
    bound = 1.0 / jnp.sqrt(jnp.float32(FEAT))
    w_cls = jax.random.uniform(k2, (FEAT, num_classes), jnp.float32, -bound, bound)
    b_cls = jax.random.uniform(k3, (num_classes,), jnp.float32, -bound, bound)
    return {"w_spd": w_spd, "w_cls": w_cls, "b_cls": b_cls}


if __name__ == "__main__":
    key = jax.random.PRNGKey(0)
    kx, kp = jax.random.split(key)

    batch = 2
    num_classes = 2

    # Deterministic SPD input: X = A A^T + I (well-conditioned, positive definite)
    a = 0.1 * jax.random.normal(kx, (batch, N_IN, N_IN), dtype=jnp.float32)
    x = jnp.einsum("bij,bkj->bik", a, a) + jnp.eye(N_IN, dtype=jnp.float32)[None]

    params = init_params(kp, num_classes)

    logits = jax.jit(finetune_model_forward)(x, params)
    logits = jax.block_until_ready(logits)

    assert logits.shape == (batch, num_classes)
    assert bool(jnp.all(jnp.isfinite(logits)))
    print("KERNEL_OK")
</pallas_src>

<mosaic_0001>
module attributes {stable_mosaic.version = 11 : i64} {
  func.func private @main(%arg0: i32) attributes {dimension_semantics = [#tpu.dimension_semantics<core_parallel>], iteration_bounds = array<i64: 2>, tpu.core_type = #tpu.core_type<sc_scalar_subcore>, window_params = []} {
    return
  }
}

module attributes {stable_mosaic.version = 11 : i64} {
  func.func private @main(%arg0: i32) attributes {dimension_semantics = [#tpu.dimension_semantics<core_parallel>], iteration_bounds = array<i64: 2>, tpu.core_type = #tpu.core_type<sc_scalar_subcore>, window_params = []} {
    return
  }
}

module attributes {stable_mosaic.version = 11 : i64} {
  func.func @_bilinear_kernel(%arg0: i32, %arg1: memref<1024x128xf32, #tpu.memory_space<vmem>>, %arg2: memref<128x64xf32, #tpu.memory_space<vmem>>, %arg3: memref<8x64x64xf32, #tpu.memory_space<vmem>>) attributes {dimension_semantics = [#tpu.dimension_semantics<parallel>], iteration_bounds = array<i64: 1>, scalar_prefetch = 0 : i64, scratch_operands = 0 : i64, tpu.core_type = #tpu.core_type<tc>, window_params = [{transform_indices = @transform_0, window_bounds = array<i64: 1024, 128>}, {pipeline_mode = #tpu.pipeline_mode<synchronous>, transform_indices = @transform_1, window_bounds = array<i64: 128, 64>}, {transform_indices = @transform_2, window_bounds = array<i64: 8, 64, 64>}]} {
    %c0 = arith.constant 0 : index
    %c0_0 = arith.constant 0 : index
    %0 = vector.load %arg2[%c0, %c0_0] : memref<128x64xf32, #tpu.memory_space<vmem>>, vector<128x64xf32>
    %c0_1 = arith.constant 0 : index
    %c0_2 = arith.constant 0 : index
    %1 = vector.load %arg1[%c0_1, %c0_2] : memref<1024x128xf32, #tpu.memory_space<vmem>>, vector<1024x128xf32>
    %cst = arith.constant dense<0.000000e+00> : vector<1024x64xf32>
    %2 = tpu.matmul %1, %0, %cst {dimension_numbers = #tpu.dot_dimension_numbers<[1], [0], [0], [1], [0, 0, 1, 1], [], []>} : vector<1024x128xf32>, vector<128x64xf32>, vector<1024x64xf32> -> vector<1024x64xf32>
    %3 = vector.extract_strided_slice %2 {offsets = [0, 0], sizes = [128, 64], strides = [1, 1]} : vector<1024x64xf32> to vector<128x64xf32>
    %cst_3 = arith.constant dense<0.000000e+00> : vector<64x64xf32>
    %4 = tpu.matmul %0, %3, %cst_3 {dimension_numbers = #tpu.dot_dimension_numbers<[0], [0], [1], [1], [0, 1, 1, 1], [], []>} : vector<128x64xf32>, vector<128x64xf32>, vector<64x64xf32> -> vector<64x64xf32>
    %c0_4 = arith.constant 0 : index
    %c0_5 = arith.constant 0 : index
    %c0_6 = arith.constant 0 : index
    %5 = vector.load %arg3[%c0_4, %c0_5, %c0_6] : memref<8x64x64xf32, #tpu.memory_space<vmem>>, vector<1x64x64xf32>
    %6 = vector.shape_cast %5 : vector<1x64x64xf32> to vector<64x64xf32>
    %7 = vector.shape_cast %4 : vector<64x64xf32> to vector<1x64x64xf32>
    tpu.vector_store %arg3[%c0_4, %c0_5, %c0_6], %7 {strides = array<i32>} : memref<8x64x64xf32, #tpu.memory_space<vmem>>, vector<1x64x64xf32>,
    %8 = vector.extract_strided_slice %2 {offsets = [128, 0], sizes = [128, 64], strides = [1, 1]} : vector<1024x64xf32> to vector<128x64xf32>
    %cst_7 = arith.constant dense<0.000000e+00> : vector<64x64xf32>
    %9 = tpu.matmul %0, %8, %cst_7 {dimension_numbers = #tpu.dot_dimension_numbers<[0], [0], [1], [1], [0, 1, 1, 1], [], []>} : vector<128x64xf32>, vector<128x64xf32>, vector<64x64xf32> -> vector<64x64xf32>
    %c1 = arith.constant 1 : index
    %c0_8 = arith.constant 0 : index
    %c0_9 = arith.constant 0 : index
    %10 = vector.load %arg3[%c1, %c0_8, %c0_9] : memref<8x64x64xf32, #tpu.memory_space<vmem>>, vector<1x64x64xf32>
    %11 = vector.shape_cast %10 : vector<1x64x64xf32> to vector<64x64xf32>
    %12 = vector.shape_cast %9 : vector<64x64xf32> to vector<1x64x64xf32>
    tpu.vector_store %arg3[%c1, %c0_8, %c0_9], %12 {strides = array<i32>} : memref<8x64x64xf32, #tpu.memory_space<vmem>>, vector<1x64x64xf32>,
    %13 = vector.extract_strided_slice %2 {offsets = [256, 0], sizes = [128, 64], strides = [1, 1]} : vector<1024x64xf32> to vector<128x64xf32>
    %cst_10 = arith.constant dense<0.000000e+00> : vector<64x64xf32>
    %14 = tpu.matmul %0, %13, %cst_10 {dimension_numbers = #tpu.dot_dimension_numbers<[0], [0], [1], [1], [0, 1, 1, 1], [], []>} : vector<128x64xf32>, vector<128x64xf32>, vector<64x64xf32> -> vector<64x64xf32>
    %c2 = arith.constant 2 : index
    %c0_11 = arith.constant 0 : index
    %c0_12 = arith.constant 0 : index
    %15 = vector.load %arg3[%c2, %c0_11, %c0_12] : memref<8x64x64xf32, #tpu.memory_space<vmem>>, vector<1x64x64xf32>
    %16 = vector.shape_cast %15 : vector<1x64x64xf32> to vector<64x64xf32>
    %17 = vector.shape_cast %14 : vector<64x64xf32> to vector<1x64x64xf32>
    tpu.vector_store %arg3[%c2, %c0_11, %c0_12], %17 {strides = array<i32>} : memref<8x64x64xf32, #tpu.memory_space<vmem>>, vector<1x64x64xf32>,
    %18 = vector.extract_strided_slice %2 {offsets = [384, 0], sizes = [128, 64], strides = [1, 1]} : vector<1024x64xf32> to vector<128x64xf32>
    %cst_13 = arith.constant dense<0.000000e+00> : vector<64x64xf32>
    %19 = tpu.matmul %0, %18, %cst_13 {dimension_numbers = #tpu.dot_dimension_numbers<[0], [0], [1], [1], [0, 1, 1, 1], [], []>} : vector<128x64xf32>, vector<128x64xf32>, vector<64x64xf32> -> vector<64x64xf32>
    %c3 = arith.constant 3 : index
    %c0_14 = arith.constant 0 : index
    %c0_15 = arith.constant 0 : index
    %20 = vector.load %arg3[%c3, %c0_14, %c0_15] : memref<8x64x64xf32, #tpu.memory_space<vmem>>, vector<1x64x64xf32>
    %21 = vector.shape_cast %20 : vector<1x64x64xf32> to vector<64x64xf32>
    %22 = vector.shape_cast %19 : vector<64x64xf32> to vector<1x64x64xf32>
    tpu.vector_store %arg3[%c3, %c0_14, %c0_15], %22 {strides = array<i32>} : memref<8x64x64xf32, #tpu.memory_space<vmem>>, vector<1x64x64xf32>,
    %23 = vector.extract_strided_slice %2 {offsets = [512, 0], sizes = [128, 64], strides = [1, 1]} : vector<1024x64xf32> to vector<128x64xf32>
    %cst_16 = arith.constant dense<0.000000e+00> : vector<64x64xf32>
    %24 = tpu.matmul %0, %23, %cst_16 {dimension_numbers = #tpu.dot_dimension_numbers<[0], [0], [1], [1], [0, 1, 1, 1], [], []>} : vector<128x64xf32>, vector<128x64xf32>, vector<64x64xf32> -> vector<64x64xf32>
    %c4 = arith.constant 4 : index
    %c0_17 = arith.constant 0 : index
    %c0_18 = arith.constant 0 : index
    %25 = vector.load %arg3[%c4, %c0_17, %c0_18] : memref<8x64x64xf32, #tpu.memory_space<vmem>>, vector<1x64x64xf32>
    %26 = vector.shape_cast %25 : vector<1x64x64xf32> to vector<64x64xf32>
    %27 = vector.shape_cast %24 : vector<64x64xf32> to vector<1x64x64xf32>
    tpu.vector_store %arg3[%c4, %c0_17, %c0_18], %27 {strides = array<i32>} : memref<8x64x64xf32, #tpu.memory_space<vmem>>, vector<1x64x64xf32>,
    %28 = vector.extract_strided_slice %2 {offsets = [640, 0], sizes = [128, 64], strides = [1, 1]} : vector<1024x64xf32> to vector<128x64xf32>
    %cst_19 = arith.constant dense<0.000000e+00> : vector<64x64xf32>
    %29 = tpu.matmul %0, %28, %cst_19 {dimension_numbers = #tpu.dot_dimension_numbers<[0], [0], [1], [1], [0, 1, 1, 1], [], []>} : vector<128x64xf32>, vector<128x64xf32>, vector<64x64xf32> -> vector<64x64xf32>
    %c5 = arith.constant 5 : index
    %c0_20 = arith.constant 0 : index
    %c0_21 = arith.constant 0 : index
    %30 = vector.load %arg3[%c5, %c0_20, %c0_21] : memref<8x64x64xf32, #tpu.memory_space<vmem>>, vector<1x64x64xf32>
    %31 = vector.shape_cast %30 : vector<1x64x64xf32> to vector<64x64xf32>
    %32 = vector.shape_cast %29 : vector<64x64xf32> to vector<1x64x64xf32>
    tpu.vector_store %arg3[%c5, %c0_20, %c0_21], %32 {strides = array<i32>} : memref<8x64x64xf32, #tpu.memory_space<vmem>>, vector<1x64x64xf32>,
    %33 = vector.extract_strided_slice %2 {offsets = [768, 0], sizes = [128, 64], strides = [1, 1]} : vector<1024x64xf32> to vector<128x64xf32>
    %cst_22 = arith.constant dense<0.000000e+00> : vector<64x64xf32>
    %34 = tpu.matmul %0, %33, %cst_22 {dimension_numbers = #tpu.dot_dimension_numbers<[0], [0], [1], [1], [0, 1, 1, 1], [], []>} : vector<128x64xf32>, vector<128x64xf32>, vector<64x64xf32> -> vector<64x64xf32>
    %c6 = arith.constant 6 : index
    %c0_23 = arith.constant 0 : index
    %c0_24 = arith.constant 0 : index
    %35 = vector.load %arg3[%c6, %c0_23, %c0_24] : memref<8x64x64xf32, #tpu.memory_space<vmem>>, vector<1x64x64xf32>
    %36 = vector.shape_cast %35 : vector<1x64x64xf32> to vector<64x64xf32>
    %37 = vector.shape_cast %34 : vector<64x64xf32> to vector<1x64x64xf32>
    tpu.vector_store %arg3[%c6, %c0_23, %c0_24], %37 {strides = array<i32>} : memref<8x64x64xf32, #tpu.memory_space<vmem>>, vector<1x64x64xf32>,
    %38 = vector.extract_strided_slice %2 {offsets = [896, 0], sizes = [128, 64], strides = [1, 1]} : vector<1024x64xf32> to vector<128x64xf32>
    %cst_25 = arith.constant dense<0.000000e+00> : vector<64x64xf32>
    %39 = tpu.matmul %0, %38, %cst_25 {dimension_numbers = #tpu.dot_dimension_numbers<[0], [0], [1], [1], [0, 1, 1, 1], [], []>} : vector<128x64xf32>, vector<128x64xf32>, vector<64x64xf32> -> vector<64x64xf32>
    %c7 = arith.constant 7 : index
    %c0_26 = arith.constant 0 : index
    %c0_27 = arith.constant 0 : index
    %40 = vector.load %arg3[%c7, %c0_26, %c0_27] : memref<8x64x64xf32, #tpu.memory_space<vmem>>, vector<1x64x64xf32>
    %41 = vector.shape_cast %40 : vector<1x64x64xf32> to vector<64x64xf32>
    %42 = vector.shape_cast %39 : vector<64x64xf32> to vector<1x64x64xf32>
    tpu.vector_store %arg3[%c7, %c0_26, %c0_27], %42 {strides = array<i32>} : memref<8x64x64xf32, #tpu.memory_space<vmem>>, vector<1x64x64xf32>,
    return
  }
  func.func @transform_0(%arg0: i32) -> (i32, i32) {
    %c0_i32 = arith.constant 0 : i32
    %c0_i32_0 = arith.constant 0 : i32
    return %arg0, %c0_i32 : i32, i32
  }
  func.func @transform_1(%arg0: i32) -> (i32, i32) {
    %c0_i32 = arith.constant 0 : i32
    %c0_i32_0 = arith.constant 0 : i32
    %c0_i32_1 = arith.constant 0 : i32
    return %c0_i32, %c0_i32_0 : i32, i32
  }
  func.func @transform_2(%arg0: i32) -> (i32, i32, i32) {
    %c0_i32 = arith.constant 0 : i32
    %c0_i32_0 = arith.constant 0 : i32
    %c0_i32_1 = arith.constant 0 : i32
    return %arg0, %c0_i32, %c0_i32_0 : i32, i32, i32
  }
}

module attributes {stable_mosaic.version = 11 : i64} {
  func.func @_head_kernel(%arg0: i32, %arg1: memref<8x64x64xf32, #tpu.memory_space<vmem>>, %arg2: memref<8x64xf32, #tpu.memory_space<vmem>>, %arg3: memref<2x64x64xf32, #tpu.memory_space<vmem>>, %arg4: memref<1x2xf32, #tpu.memory_space<vmem>>, %arg5: memref<8x2xf32, #tpu.memory_space<vmem>>) attributes {dimension_semantics = [#tpu.dimension_semantics<parallel>], iteration_bounds = array<i64: 1>, scalar_prefetch = 0 : i64, scratch_operands = 0 : i64, tpu.core_type = #tpu.core_type<tc>, window_params = [{transform_indices = @transform_0, window_bounds = array<i64: 8, 64, 64>}, {transform_indices = @transform_1, window_bounds = array<i64: 8, 64>}, {pipeline_mode = #tpu.pipeline_mode<synchronous>, transform_indices = @transform_2, window_bounds = array<i64: 2, 64, 64>}, {pipeline_mode = #tpu.pipeline_mode<synchronous>, transform_indices = @transform_3, window_bounds = array<i64: 1, 2>}, {transform_indices = @transform_4, window_bounds = array<i64: 8, 2>}]} {
    %c0 = arith.constant 0 : index
    %c0_0 = arith.constant 0 : index
    %c0_1 = arith.constant 0 : index
    %0 = vector.load %arg1[%c0, %c0_0, %c0_1] : memref<8x64x64xf32, #tpu.memory_space<vmem>>, vector<8x64x64xf32>
    %c0_2 = arith.constant 0 : index
    %c0_3 = arith.constant 0 : index
    %1 = vector.load %arg2[%c0_2, %c0_3] : memref<8x64xf32, #tpu.memory_space<vmem>>, vector<8x64xf32>
    %cst = arith.constant 9.99999974E-5 : f32
    %2 = vector.broadcast %cst : f32 to vector<8x64xf32>
    %3 = arith.maximumf %1, %2 : vector<8x64xf32>
    %4 = math.log %3 : vector<8x64xf32>
    %5 = vector.shape_cast %4 : vector<8x64xf32> to vector<8x1x64xf32>
    %6 = vector.broadcast %5 : vector<8x1x64xf32> to vector<8x64x64xf32>
    %7 = arith.mulf %0, %6 : vector<8x64x64xf32>
    "tpu.trace_start"() <{level = 10 : i32, message = "bik,bjk->bij"}> : () -> ()
    %cst_4 = arith.constant dense<0.000000e+00> : vector<8x64x64xf32>
    %8 = tpu.matmul %7, %0, %cst_4 {dimension_numbers = #tpu.dot_dimension_numbers<[2], [2], [1], [1], [0, 0, 0, 1, 1, 1], [0], [0]>} : vector<8x64x64xf32>, vector<8x64x64xf32>, vector<8x64x64xf32> -> vector<8x64x64xf32>
    "tpu.trace_stop"() : () -> ()
    %9 = arith.mulf %7, %0 : vector<8x64x64xf32>
    %cst_5 = arith.constant dense<0.000000e+00> : vector<8x64xf32>
    %10 = vector.multi_reduction <add>, %9, %cst_5 [2] : vector<8x64x64xf32> to vector<8x64xf32>
    %11 = arith.mulf %8, %8 : vector<8x64x64xf32>
    %cst_6 = arith.constant dense<0.000000e+00> : vector<8x64xf32>
    %12 = vector.multi_reduction <add>, %11, %cst_6 [2] : vector<8x64x64xf32> to vector<8x64xf32>
    %cst_7 = arith.constant dense<0.000000e+00> : vector<8xf32>
    %13 = vector.multi_reduction <add>, %12, %cst_7 [1] : vector<8x64xf32> to vector<8xf32>
    %14 = vector.shape_cast %13 : vector<8xf32> to vector<8x1xf32>
    %15 = arith.mulf %10, %10 : vector<8x64xf32>
    %cst_8 = arith.constant dense<0.000000e+00> : vector<8xf32>
    %16 = vector.multi_reduction <add>, %15, %cst_8 [1] : vector<8x64xf32> to vector<8xf32>
    %17 = vector.shape_cast %16 : vector<8xf32> to vector<8x1xf32>
    %18 = arith.addf %14, %17 : vector<8x1xf32>
    %cst_9 = arith.constant 5.000000e-01 : f32
    %19 = vector.broadcast %cst_9 : f32 to vector<8x1xf32>
    %20 = arith.mulf %19, %18 : vector<8x1xf32>
    %cst_10 = arith.constant 1.000000e-24 : f32
    %21 = vector.broadcast %cst_10 : f32 to vector<8x1xf32>
    %22 = arith.maximumf %20, %21 : vector<8x1xf32>
    %23 = math.rsqrt %22 : vector<8x1xf32>
    %c0_11 = arith.constant 0 : index
    %c0_12 = arith.constant 0 : index
    %c0_13 = arith.constant 0 : index
    %24 = vector.load %arg3[%c0_11, %c0_12, %c0_13] : memref<2x64x64xf32, #tpu.memory_space<vmem>>, vector<1x64x64xf32>
    %25 = vector.shape_cast %24 : vector<1x64x64xf32> to vector<64x64xf32>
    %26 = vector.shape_cast %25 : vector<64x64xf32> to vector<1x64x64xf32>
    %27 = vector.broadcast %26 : vector<1x64x64xf32> to vector<8x64x64xf32>
    %28 = arith.mulf %8, %27 : vector<8x64x64xf32>
    %cst_14 = arith.constant dense<0.000000e+00> : vector<8x64xf32>
    %29 = vector.multi_reduction <add>, %28, %cst_14 [2] : vector<8x64x64xf32> to vector<8x64xf32>
    %cst_15 = arith.constant dense<0.000000e+00> : vector<8xf32>
    %30 = vector.multi_reduction <add>, %29, %cst_15 [1] : vector<8x64xf32> to vector<8xf32>
    %31 = vector.shape_cast %30 : vector<8xf32> to vector<8x1xf32>
    %c1 = arith.constant 1 : index
    %c0_16 = arith.constant 0 : index
    %c0_17 = arith.constant 0 : index
    %32 = vector.load %arg3[%c1, %c0_16, %c0_17] : memref<2x64x64xf32, #tpu.memory_space<vmem>>, vector<1x64x64xf32>
    %33 = vector.shape_cast %32 : vector<1x64x64xf32> to vector<64x64xf32>
    %34 = vector.shape_cast %33 : vector<64x64xf32> to vector<1x64x64xf32>
    %35 = vector.broadcast %34 : vector<1x64x64xf32> to vector<8x64x64xf32>
    %36 = arith.mulf %8, %35 : vector<8x64x64xf32>
    %cst_18 = arith.constant dense<0.000000e+00> : vector<8x64xf32>
    %37 = vector.multi_reduction <add>, %36, %cst_18 [2] : vector<8x64x64xf32> to vector<8x64xf32>
    %cst_19 = arith.constant dense<0.000000e+00> : vector<8xf32>
    %38 = vector.multi_reduction <add>, %37, %cst_19 [1] : vector<8x64xf32> to vector<8xf32>
    %39 = vector.shape_cast %38 : vector<8xf32> to vector<8x1xf32>
    %40 = tpu.concatenate %31, %39 in 1 : vector<8x1xf32>, vector<8x1xf32> -> vector<8x2xf32>
    %41 = vector.broadcast %23 : vector<8x1xf32> to vector<8x2xf32>
    %42 = arith.mulf %40, %41 : vector<8x2xf32>
    %c0_20 = arith.constant 0 : index
    %c0_21 = arith.constant 0 : index
    %43 = vector.load %arg4[%c0_20, %c0_21] : memref<1x2xf32, #tpu.memory_space<vmem>>, vector<1x2xf32>
    %44 = vector.broadcast %43 : vector<1x2xf32> to vector<8x2xf32>
    %45 = arith.addf %42, %44 : vector<8x2xf32>
    %c0_22 = arith.constant 0 : index
    %c0_23 = arith.constant 0 : index
    %46 = vector.load %arg5[%c0_22, %c0_23] : memref<8x2xf32, #tpu.memory_space<vmem>>, vector<8x2xf32>
    tpu.vector_store %arg5[%c0_22, %c0_23], %45 {strides = array<i32>} : memref<8x2xf32, #tpu.memory_space<vmem>>, vector<8x2xf32>,
    return
  }
  func.func @transform_0(%arg0: i32) -> (i32, i32, i32) {
    %c0_i32 = arith.constant 0 : i32
    %c0_i32_0 = arith.constant 0 : i32
    %c0_i32_1 = arith.constant 0 : i32
    return %arg0, %c0_i32, %c0_i32_0 : i32, i32, i32
  }
  func.func @transform_1(%arg0: i32) -> (i32, i32) {
    %c0_i32 = arith.constant 0 : i32
    %c0_i32_0 = arith.constant 0 : i32
    return %arg0, %c0_i32 : i32, i32
  }
  func.func @transform_2(%arg0: i32) -> (i32, i32, i32) {
    %c0_i32 = arith.constant 0 : i32
    %c0_i32_0 = arith.constant 0 : i32
    %c0_i32_1 = arith.constant 0 : i32
    %c0_i32_2 = arith.constant 0 : i32
    return %c0_i32, %c0_i32_0, %c0_i32_1 : i32, i32, i32
  }
  func.func @transform_3(%arg0: i32) -> (i32, i32) {
    %c0_i32 = arith.constant 0 : i32
    %c0_i32_0 = arith.constant 0 : i32
    %c0_i32_1 = arith.constant 0 : i32
    return %c0_i32, %c0_i32_0 : i32, i32
  }
  func.func @transform_4(%arg0: i32) -> (i32, i32) {
    %c0_i32 = arith.constant 0 : i32
    %c0_i32_0 = arith.constant 0 : i32
    return %arg0, %c0_i32 : i32, i32
  }
}

</mosaic_0001>

<bundles_post_ra>
// kernel: custom-call.2
= control target key start
LH: loop header
LB: loop body
LE: loop exit
PB: predicated region body
PF: predicated region fallthrough
CT: control target
= control target key end

     0   :  { %s4272_s0 = inlined_call_operand.vmem [shape: f32[2,32,32], index: 0, kind: input, shape index: {}]   ;;  %s4273_s1 = inlined_call_operand.vmem [shape: f32[2,32,32], index: 1, kind: input, shape index: {}]   ;;  %s4274_s2 = inlined_call_operand.vmem [shape: f32[2,32,32], index: 2, kind: input, shape index: {}]   ;;  %s4275_s3 = inlined_call_operand.vmem [shape: f32[2,32,32], index: 3, kind: input, shape index: {}]   ;;  %s4276_s4 = inlined_call_operand.vmem [shape: f32[2,32], index: 4, kind: output, shape index: {0}]   ;;  %s4277_s5 = inlined_call_operand.vmem [shape: f32[2,32], index: 5, kind: output, shape index: {1}]   ;;  %s4278_s6 = inlined_call_operand.vmem [shape: f32[2,32,32], index: 6, kind: output, shape index: {2}]   ;;  %s4279_s7 = inlined_call_operand.vmem [shape: f32[2,32,32], index: 7, kind: output, shape index: {3}]   ;;  %s4280_s8 = inlined_call_operand.vmem [shape: f32[2,32,32], index: 8, kind: output, shape index: {4}]   ;;  %s4281_s9 = inlined_call_operand.vmem [shape: f32[2,32,32], index: 9, kind: output, shape index: {5}]  }
   0x1   :  { %4288 = sst [smem:[#allocation28_spill]] %s4272_s0 }
   0x2   :  { %4289 = sst [smem:[#allocation29_spill]] %s4273_s1 }
   0x3   :  { %4290 = sst [smem:[#allocation30_spill]] %s4274_s2 }
   0x4   :  { %4291 = sst [smem:[#allocation31_spill]] %s4275_s3 }
   0x5   :  { %4292 = sst [smem:[#allocation32_spill]] %s4280_s8 }
   0x6   :  { %4293 = sst [smem:[#allocation33_spill]] %s4281_s9 }
   0x7   :  { %s3253_s30 = smov 0   ;;  %s3255_s10 = smov 0  }
   0x8   :  { %s3257_s11 = smov 0  }
   0x9 LB: > { %4294 = sst [smem:[#allocation25_spill]] %s3186_s10  ;;  %s3269_s12 = sadd.s32 4294967295, %s3190_s11   ;;  %s3190_s11 = sphi %s3257_s11, %s4318_s11   ;;  %s3186_s10 = sphi %s3255_s10, %s4320_s10   ;;  %s3182_s30 = sphi %s3253_s30, %s4319_s30  }
   0xa   : > { %s3272_s13 = sadd.s32 1, %s3190_s11   ;;  %s20_s14 = sshrl.u32 %s3190_s11, 3 }
   0xb   : > { %4295 = sst [smem:[#allocation26_spill]] %s3272_s13  ;;  %s21_s15 = sshrl.u32 %s3272_s13, 3 }
   0xc   : > { %s22_s16 = ssub.s32 %s20_s14, %s21_s15  ;;  %s25_s17 = sadd.s32 1, %s3186_s10 }
   0xd   : > { %p23_p0 = scmp.eq.s32.totalorder %s22_s16, 0  ;;  %p35_p1 = scmp.ne.s32.totalorder %s3186_s10, %s3182_s30 }
   0xe   : > { %p36_p2 = scmp.eq.s32.totalorder %s3269_s12, 1  ;;  %p2742_p4 = scmp.ge.s32.totalorder %s3190_s11, 2 }
   0xf   : > { %s3281_s18 = scalar_select %p23_p0, %s3186_s10, %s25_s17  }
  0x10   : > { %p3283_p3 = por %p36_p2, %p35_p1  ;;  %86 = sbr.rel (%p2742_p4) target bundleno = 35 (0x23), region = 16 }
  0x11   : > { %4296 = sst [smem:[#allocation27_spill]] %s3281_s18  ;;  %s88_s20 = sand.u32 (!%p2742_p4), 1, %s3190_s11  }
  0x12   : > { %s2744_s21 = sshll.u32 (!%p2742_p4), %s3190_s11, 5  ;;  %s3290_s22 = sshll.u32 (!%p2742_p4), %s88_s20, 5 }
  0x13   : > { %s4298_s0 = sld [smem:[#allocation28_spill]] (!%p2742_p4)  ;;  %s90_s26 = scalar_lea.vmem (!%p2742_p4), [#allocation0], %s3290_s22 }
  0x14   : > { %s4299_s1 = sld [smem:[#allocation29_spill]] (!%p2742_p4)  ;;  %s4300_s2 = sld [smem:[#allocation30_spill]] (!%p2742_p4) }
  0x15   : > { %s119_s17 = scalar_lea.vmem (!%p2742_p4), [#allocation1], %s3290_s22  ;;  %s4301_s3 = sld [smem:[#allocation31_spill]] (!%p2742_p4) }
  0x19   : > { %s92_s25 = scalar_lea.vmem %s4298_s0, %s2744_s21 }
  0x1a   : > { %v105_v0 = vld [vmem:[%s92_s25] sm:$0xff]  ;;  %v107_v1 = vld [vmem:[%s92_s25 + $0x8] sm:$0xff]  ;;  %v109_v2 = vld [vmem:[%s92_s25 + $0x10] sm:$0xff]  ;;  %s121_s29 = scalar_lea.vmem %s4299_s1, %s2744_s21  ;;  %s150_s16 = scalar_lea.vmem %s4300_s2, %s2744_s21 }
  0x1b   : > { %106 = vst [vmem:[%s90_s26] sm:$0xff] %v105_v0  ;;  %108 = vst [vmem:[%s90_s26 + $0x8] sm:$0xff] %v107_v1  ;;  %v111_v3 = vld [vmem:[%s92_s25 + $0x18] sm:$0xff]  ;;  %v134_v4 = vld [vmem:[%s121_s29] sm:$0xff]  ;;  %s179_s24 = scalar_lea.vmem %s4301_s3, %s2744_s21  ;;  %s148_s25 = scalar_lea.vmem [#allocation2], %s3290_s22 }
  0x1c   : > { %110 = vst [vmem:[%s90_s26 + $0x10] sm:$0xff] %v109_v2  ;;  %112 = vst [vmem:[%s90_s26 + $0x18] sm:$0xff] %v111_v3  ;;  %v136_v5 = vld [vmem:[%s121_s29 + $0x8] sm:$0xff]  ;;  %v138_v6 = vld [vmem:[%s121_s29 + $0x10] sm:$0xff]  ;;  %s177_s26 = scalar_lea.vmem [#allocation3], %s3290_s22 }
  0x1d   : > { %135 = vst [vmem:[%s119_s17] sm:$0xff] %v134_v4  ;;  %137 = vst [vmem:[%s119_s17 + $0x8] sm:$0xff] %v136_v5  ;;  %v140_v7 = vld [vmem:[%s121_s29 + $0x18] sm:$0xff]  ;;  %v163_v8 = vld [vmem:[%s150_s16] sm:$0xff] }
  0x1e   : > { %139 = vst [vmem:[%s119_s17 + $0x10] sm:$0xff] %v138_v6  ;;  %v165_v9 = vld [vmem:[%s150_s16 + $0x8] sm:$0xff]  ;;  %141 = vst [vmem:[%s119_s17 + $0x18] sm:$0xff] %v140_v7  ;;  %v167_v10 = vld [vmem:[%s150_s16 + $0x10] sm:$0xff] }
  0x1f   : > { %164 = vst [vmem:[%s148_s25] sm:$0xff] %v163_v8  ;;  %166 = vst [vmem:[%s148_s25 + $0x8] sm:$0xff] %v165_v9  ;;  %v169_v11 = vld [vmem:[%s150_s16 + $0x18] sm:$0xff]  ;;  %v192_v12 = vld [vmem:[%s179_s24] sm:$0xff] }
  0x20   : > { %168 = vst [vmem:[%s148_s25 + $0x10] sm:$0xff] %v167_v10  ;;  %170 = vst [vmem:[%s148_s25 + $0x18] sm:$0xff] %v169_v11  ;;  %v194_v13 = vld [vmem:[%s179_s24 + $0x8] sm:$0xff]  ;;  %v196_v14 = vld [vmem:[%s179_s24 + $0x10] sm:$0xff] }
  0x21   : > { %193 = vst [vmem:[%s177_s26] sm:$0xff] %v192_v12  ;;  %v198_v15 = vld [vmem:[%s179_s24 + $0x18] sm:$0xff]  ;;  %195 = vst [vmem:[%s177_s26 + $0x8] sm:$0xff] %v194_v13 }
  0x22   : > { %197 = vst [vmem:[%s177_s26 + $0x10] sm:$0xff] %v196_v14  ;;  %199 = vst [vmem:[%s177_s26 + $0x18] sm:$0xff] %v198_v15 }
  0x23 PF: > { %p2751_p5 = scmp.ge.s32.totalorder %s3190_s11, 1  ;;  %p204_p6 = scmp.lt.s32.totalorder %s3190_s11, 3 }
  0x25   : > { %p205_p7 = pnand %p2751_p5, %p204_p6 }
  0x27   : > { %208 = sbr.rel (%p205_p7) target bundleno = 1200 (0x4b0), region = 96 }
  0x2e   : > { %s211_s21 = sand.u32 1, %s3269_s12   ;;  %s245_s27 = sand.u32 1, %s3182_s30   ;;  %v361_v16 = vlaneseq  ;;  %v3200_v31 = vmov 0.0  }
  0x2f   : > { %s3312_s22 = sshll.u32 %s211_s21, 5  ;;  %s3314_s28 = sshll.u32 %s245_s27, 1 }
  0x30   : > { %v3316_v17 = vshrl.u32 %v361_v16, 7  ;;  %s213_s29 = scalar_lea.vmem [#allocation0], %s3312_s22  ;;  %s217_s11 = scalar_lea.vmem [#allocation1], %s3312_s22  ;;  %v3320_v24 = vand.u32 127, %v361_v16 }
  0x31   : > { %v273_v18 = vld [vmem:[%s213_s29] sm:$0xff]  ;;  %v2762_v19 = vld [vmem:[%s213_s29 + $0x8] sm:$0xff]  ;;  %v2764_v20 = vld [vmem:[%s213_s29 + $0x10] sm:$0xff]  ;;  %s221_s30 = scalar_lea.vmem [#allocation2], %s3312_s22  ;;  %s3330_s14 = scalar_lea.vmem [#allocation8], %s3312_s22 }
  0x32   : > { %v2766_v21 = vld [vmem:[%s213_s29 + $0x18] sm:$0xff]  ;;  %v288_v22 = vld [vmem:[%s217_s11] sm:$0xff]  ;;  %v2768_v23 = vld [vmem:[%s217_s11 + $0x8] sm:$0xff]  ;;  %v3323_v17 = vmov %v3316_v17  ;;  %332 = vst [vmem:[%s3330_s14] sm:$0xff] %v3200_v31  ;;  %s3337_s15 = scalar_lea.vmem [#allocation9], %s3312_s22  ;;  %s272_s16 = smov [#allocation12]  ;;  %v363_v24 = vmov %v3320_v24  ;;  %vm2541_vm8 = vcmp.lt.s32.totalorder %v3320_v24, 32 }
  0x33   : > { %v2770_v25 = vld [vmem:[%s217_s11 + $0x10] sm:$0xff]  ;;  %v2772_v26 = vld [vmem:[%s217_s11 + $0x18] sm:$0xff]  ;;  %v303_v27 = vld [vmem:[%s221_s30] sm:$0xff]  ;;  %v3327_v17 = vmov %v3316_v17  ;;  %2786 = vst [vmem:[%s3330_s14 + $0x8] sm:$0xff] %v3200_v31  ;;  %v376_v32 = vadd.s32 8, %v3323_v17  ;;  %s287_s17 = smov [#allocation13]  ;;  %v397_v24 = vmov %v3320_v24  ;;  %vm370_vm0 = vcmp.eq.s32.totalorder %v3323_v17, %v363_v24 }
  0x34   : > { %v2774_v28 = vld [vmem:[%s221_s30 + $0x8] sm:$0xff]  ;;  %v2776_v29 = vld [vmem:[%s221_s30 + $0x10] sm:$0xff]  ;;  %v2778_v30 = vld [vmem:[%s221_s30 + $0x18] sm:$0xff]  ;;  %2787 = vst [vmem:[%s3330_s14 + $0x10] sm:$0xff] %v3200_v31  ;;  %s225_s20 = scalar_lea.vmem [#allocation3], %s3312_s22  ;;  %s3346_s23 = scalar_lea.vmem [#allocation10], %s3312_s22  ;;  %vm404_vm4 = vcmp.eq.s32.totalorder %v3327_v17, %v397_v24 }
  0x35   : > { %2788 = vst [vmem:[%s3330_s14 + $0x18] sm:$0xff] %v3200_v31  ;;  %339 = vst [vmem:[%s3337_s15] sm:$0xff] %v3200_v31  ;;  %v318_v33 = vld [vmem:[%s225_s20] sm:$0xff]  ;;  %v2780_v34 = vld [vmem:[%s225_s20 + $0x8] sm:$0xff]  ;;  %s3353_s24 = scalar_lea.vmem [#allocation11], %s3312_s22  ;;  %v383_v36 = vadd.s32 16, %v3323_v17  ;;  %s302_s25 = smov [#allocation14]  ;;  %vm377_vm1 = vcmp.eq.s32.totalorder %v376_v32, %v363_v24 }
  0x36   : > { %2789 = vst [vmem:[%s3337_s15 + $0x8] sm:$0xff] %v3200_v31  ;;  %2790 = vst [vmem:[%s3337_s15 + $0x10] sm:$0xff] %v3200_v31  ;;  %v2782_v35 = vld [vmem:[%s225_s20 + $0x10] sm:$0xff]  ;;  %s317_s26 = smov [#allocation15]  ;;  %v2784_v37 = vld [vmem:[%s225_s20 + $0x18] sm:$0xff]  ;;  %v390_v38 = vadd.s32 24, %v3323_v17  ;;  %s360_s14 = smov %s3330_s14 }
  0x37   : > { %2791 = vst [vmem:[%s3337_s15 + $0x18] sm:$0xff] %v3200_v31  ;;  %346 = vst [vmem:[%s3346_s23] sm:$0xff] %v3200_v31  ;;  %v410_v39 = vadd.s32 8, %v3327_v17  ;;  %v417_v40 = vadd.s32 16, %v3327_v17  ;;  %v424_v41 = vadd.s32 24, %v3327_v17  ;;  %vm384_vm2 = vcmp.eq.s32.totalorder %v383_v36, %v363_v24  ;;  %s2537_s22 = smov [#allocation12]  ;;  %s2581_s29 = smov [#allocation13] }
  0x38   : > { %2792 = vst [vmem:[%s3346_s23 + $0x8] sm:$0xff] %v3200_v31  ;;  %2793 = vst [vmem:[%s3346_s23 + $0x10] sm:$0xff] %v3200_v31  ;;  %vm391_vm3 = vcmp.eq.s32.totalorder %v390_v38, %v363_v24  ;;  %v2536_v17 = vmov %v3316_v17  ;;  %s3394_s11 = smov [#allocation14]  ;;  %s2651_s30 = smov [#allocation15] }
  0x39   : > { %2794 = vst [vmem:[%s3346_s23 + $0x18] sm:$0xff] %v3200_v31  ;;  %353 = vst [vmem:[%s3353_s24] sm:$0xff] %v3200_v31  ;;  %vm411_vm5 = vcmp.eq.s32.totalorder %v410_v39, %v397_v24  ;;  %vm418_vm6 = vcmp.eq.s32.totalorder %v417_v40, %v397_v24  ;;  %vm425_vm7 = vcmp.eq.s32.totalorder %v424_v41, %v397_v24  ;;  %v2577_v24 = vmov %v3320_v24 }
  0x3a   : > { %2795 = vst [vmem:[%s3353_s24 + $0x8] sm:$0xff] %v3200_v31  ;;  %2796 = vst [vmem:[%s3353_s24 + $0x10] sm:$0xff] %v3200_v31  ;;  %v2533_v24 = vmov %v3320_v24  ;;  %v2552_v12 = vadd.s32 8, %v2536_v17 }
  0x3b   : > { %2797 = vst [vmem:[%s3353_s24 + $0x18] sm:$0xff] %v3200_v31  ;;  %274 = vst [vmem:[%s272_s16] sm:$0xff] %v273_v18  ;;  %s394_s24 = smov %s3353_s24  ;;  %vm2546_vm9 = vcmp.eq.s32.totalorder %v2536_v17, %v2533_v24  ;;  %v2570_v31 = vadd.s32 24, %v2536_v17 }
  0x3c   : > { %2763 = vst [vmem:[%s272_s16 + $0x8] sm:$0xff] %v2762_v19  ;;  %2765 = vst [vmem:[%s272_s16 + $0x10] sm:$0xff] %v2764_v20  ;;  %v367_v42 = vld [vmem:[%s360_s14] sm:$0xff]  ;;  %v2798_v43 = vld [vmem:[%s360_s14 + $0x8] sm:$0xff]  ;;  %vm2553_vm10 = vcmp.eq.s32.totalorder %v2552_v12, %v2533_v24 }
  0x3d   : > { %2767 = vst [vmem:[%s272_s16 + $0x18] sm:$0xff] %v2766_v21  ;;  %289 = vst [vmem:[%s287_s17] sm:$0xff] %v288_v22  ;;  %v2800_v44 = vld [vmem:[%s360_s14 + $0x10] sm:$0xff]  ;;  %v371_v45 = vsel %vm370_vm0, 1.0, %v367_v42  ;;  %v378_v46 = vsel %vm377_vm1, 1.0, %v2798_v43  ;;  %v2802_v48 = vld [vmem:[%s360_s14 + $0x18] sm:$0xff]  ;;  %vm2571_vm12 = vcmp.eq.s32.totalorder %v2570_v31, %v2533_v24 }
  0x3e   : > { %2769 = vst [vmem:[%s287_s17 + $0x8] sm:$0xff] %v2768_v23  ;;  %2771 = vst [vmem:[%s287_s17 + $0x10] sm:$0xff] %v2770_v25  ;;  %v385_v47 = vsel %vm384_vm2, 1.0, %v2800_v44  ;;  %v392_v51 = vsel %vm391_vm3, 1.0, %v2802_v48 }
  0x3f   : > { %2773 = vst [vmem:[%s287_s17 + $0x18] sm:$0xff] %v2772_v26  ;;  %304 = vst [vmem:[%s302_s25] sm:$0xff] %v303_v27 }
  0x40   : > { %2775 = vst [vmem:[%s302_s25 + $0x8] sm:$0xff] %v2774_v28  ;;  %2777 = vst [vmem:[%s302_s25 + $0x10] sm:$0xff] %v2776_v29 }
  0x41   : > { %2779 = vst [vmem:[%s302_s25 + $0x18] sm:$0xff] %v2778_v30  ;;  %319 = vst [vmem:[%s317_s26] sm:$0xff] %v318_v33  ;;  %v2561_v30 = vadd.s32 16, %v2536_v17  ;;  %v2580_v17 = vmov %v3316_v17 }
  0x42   : > { %2781 = vst [vmem:[%s317_s26 + $0x8] sm:$0xff] %v2780_v34  ;;  %2783 = vst [vmem:[%s317_s26 + $0x10] sm:$0xff] %v2782_v35  ;;  %v401_v49 = vld [vmem:[%s394_s24] sm:$0xff]  ;;  %v2804_v50 = vld [vmem:[%s394_s24 + $0x8] sm:$0xff]  ;;  %v2615_v17 = vmov %v3316_v17 }
  0x43   : > { %2785 = vst [vmem:[%s317_s26 + $0x18] sm:$0xff] %v2784_v37  ;;  %372 = vst [vmem:[%s360_s14] sm:$0xff] %v371_v45  ;;  %v405_v52 = vsel %vm404_vm4, 1.0, %v401_v49  ;;  %v412_v53 = vsel %vm411_vm5, 1.0, %v2804_v50  ;;  %v2806_v54 = vld [vmem:[%s394_s24 + $0x10] sm:$0xff]  ;;  %v2808_v55 = vld [vmem:[%s394_s24 + $0x18] sm:$0xff]  ;;  %vm2562_vm11 = vcmp.eq.s32.totalorder %v2561_v30, %v2533_v24  ;;  %v2612_v24 = vmov %v3320_v24 }
  0x44   : > { %2799 = vst [vmem:[%s360_s14 + $0x8] sm:$0xff] %v378_v46  ;;  %2801 = vst [vmem:[%s360_s14 + $0x10] sm:$0xff] %v385_v47  ;;  %v419_v56 = vsel %vm418_vm6, 1.0, %v2806_v54  ;;  %v426_v57 = vsel %vm425_vm7, 1.0, %v2808_v55  ;;  %v2543_v58 = vld [vmem:[%s2537_s22] sm:$0xff]  ;;  %v2810_v59 = vld [vmem:[%s2537_s22 + $0x8] sm:$0xff]  ;;  %v2650_v17 = vmov %v3316_v17  ;;  %v2647_v24 = vmov %v3320_v24 }
  0x45   : > { %2803 = vst [vmem:[%s360_s14 + $0x18] sm:$0xff] %v392_v51  ;;  %406 = vst [vmem:[%s394_s24] sm:$0xff] %v405_v52  ;;  %v2811_v60 = vld [vmem:[%s2537_s22 + $0x10] sm:$0xff]  ;;  %v2544_v61 = vsel %vm2541_vm8, %v2543_v58, 0.0  ;;  %v2550_v62 = vsel %vm2541_vm8, %v2810_v59, 0.0  ;;  %v2812_v0 = vld [vmem:[%s2537_s22 + $0x18] sm:$0xff]  ;;  %vm2660_vm13 = vcmp.eq.s32.totalorder %v2650_v17, %v2647_v24 }
  0x46   : > { %2805 = vst [vmem:[%s394_s24 + $0x8] sm:$0xff] %v412_v53  ;;  %2807 = vst [vmem:[%s394_s24 + $0x10] sm:$0xff] %v419_v56  ;;  %v2559_v63 = vsel %vm2541_vm8, %v2811_v60, 0.0  ;;  %v2587_v1 = vld [vmem:[%s2581_s29] sm:$0xff]  ;;  %v2545_v2 = vmul.f32 %v2544_v61, %v2544_v61  ;;  %v2551_v3 = vmul.f32 %v2550_v62, %v2550_v62  ;;  %v2568_v5 = vsel %vm2541_vm8, %v2812_v0, 0.0  ;;  %v2813_v6 = vld [vmem:[%s2581_s29 + $0x8] sm:$0xff] }
  0x47   : > { %2809 = vst [vmem:[%s394_s24 + $0x18] sm:$0xff] %v426_v57  ;;  %v2560_v4 = vmul.f32 %v2559_v63, %v2559_v63  ;;  %v2588_v7 = vsel %vm2541_vm8, %v2587_v1, 0.0  ;;  %v2569_v9 = vmul.f32 %v2568_v5, %v2568_v5  ;;  %v2814_v10 = vld [vmem:[%s2581_s29 + $0x10] sm:$0xff]  ;;  %v2594_v11 = vsel %vm2541_vm8, %v2813_v6, 0.0  ;;  %v2815_v15 = vld [vmem:[%s2581_s29 + $0x18] sm:$0xff] }
  0x48   : > { %v2556_v8 = vadd.f32 %v2551_v3, %v2545_v2  ;;  %v2589_v14 = vmul.f32 %v2588_v7, %v2588_v7  ;;  %v2600_v16 = vsel %vm2541_vm8, %v2814_v10, 0.0  ;;  %v2595_v19 = vmul.f32 %v2594_v11, %v2594_v11  ;;  %v2622_v20 = vld [vmem:[%s3394_s11] sm:$0xff]  ;;  %v2816_v22 = vld [vmem:[%s3394_s11 + $0x8] sm:$0xff]  ;;  %v2817_v35 = vld [vmem:[%s3394_s11 + $0x10] sm:$0xff] }
  0x49   : > { %v2606_v21 = vsel %vm2541_vm8, %v2815_v15, 0.0  ;;  %v2547_v23 = vsel %vm2546_vm9, 0.0, %v2545_v2  ;;  %v2601_v26 = vmul.f32 %v2600_v16, %v2600_v16  ;;  %v2554_v27 = vsel %vm2553_vm10, 0.0, %v2551_v3  ;;  %v2818_v38 = vld [vmem:[%s3394_s11 + $0x18] sm:$0xff] }
  0x4a   : > { %v2565_v13 = vadd.f32 %v2560_v4, %v2556_v8  ;;  %v2623_v28 = vsel %vm2541_vm8, %v2622_v20, 0.0  ;;  %v2555_v29 = vadd.f32 %v2554_v27, %v2547_v23  ;;  %v2607_v33 = vmul.f32 %v2606_v21, %v2606_v21  ;;  %v2657_v45 = vld [vmem:[%s2651_s30] sm:$0xff]  ;;  %v2819_v50 = vld [vmem:[%s2651_s30 + $0x8] sm:$0xff]  ;;  %v2820_v55 = vld [vmem:[%s2651_s30 + $0x10] sm:$0xff] }
  0x4b   : > { %v2629_v34 = vsel %vm2541_vm8, %v2816_v22, 0.0  ;;  %v2624_v37 = vmul.f32 %v2623_v28, %v2623_v28  ;;  %v2563_v39 = vsel %vm2562_vm11, 0.0, %v2560_v4  ;;  %v2572_v40 = vsel %vm2571_vm12, 0.0, %v2569_v9  ;;  %v2821_v60 = vld [vmem:[%s2651_s30 + $0x18] sm:$0xff] }
  0x4c   : > { %v2574_v18 = vadd.f32 %v2569_v9, %v2565_v13  ;;  %v2635_v41 = vsel %vm2541_vm8, %v2817_v35, 0.0  ;;  %v2564_v42 = vadd.f32 %v2563_v39, %v2555_v29  ;;  %v2630_v44 = vmul.f32 %v2629_v34, %v2629_v34 }
  0x4d   : > { %v2641_v46 = vsel %vm2541_vm8, %v2818_v38, 0.0  ;;  %v2636_v49 = vmul.f32 %v2635_v41, %v2635_v41  ;;  %v2658_v51 = vsel %vm2541_vm8, %v2657_v45, 0.0  ;;  %v2666_v56 = vsel %vm2541_vm8, %v2819_v50, 0.0 }
  0x4e   : > { %v2591_v25 = vadd.f32 %v2589_v14, %v2574_v18  ;;  %v2573_v47 = vadd.f32 %v2572_v40, %v2564_v42  ;;  %v2642_v54 = vmul.f32 %v2641_v46, %v2641_v46  ;;  %v2659_v59 = vmul.f32 %v2658_v51, %v2658_v51 }
  0x4f   : > { %v2675_v61 = vsel %vm2541_vm8, %v2820_v55, 0.0  ;;  %v2667_v0 = vmul.f32 %v2666_v56, %v2666_v56  ;;  %v2684_v1 = vsel %vm2541_vm8, %v2821_v60, 0.0  ;;  %v2668_v6 = vadd.s32 8, %v2650_v17 }
  0x50   : > { %v2597_v32 = vadd.f32 %v2595_v19, %v2591_v25  ;;  %v2590_v52 = vadd.f32 %v2589_v14, %v2573_v47  ;;  %v2676_v4 = vmul.f32 %v2675_v61, %v2675_v61  ;;  %v2685_v8 = vmul.f32 %v2684_v1, %v2684_v1 }
  0x51   : > { %v2677_v10 = vadd.s32 16, %v2650_v17  ;;  %vm2669_vm14 = vcmp.eq.s32.totalorder %v2668_v6, %v2647_v24  ;;  %v2686_v13 = vadd.s32 24, %v2650_v17  ;;  %v2661_v15 = vsel %vm2660_vm13, 0.0, %v2659_v59 }
  0x52   : > { %v2603_v36 = vadd.f32 %v2601_v26, %v2597_v32  ;;  %v2596_v57 = vadd.f32 %v2595_v19, %v2590_v52  ;;  %v2670_v18 = vsel %vm2669_vm14, 0.0, %v2667_v0 }
  0x53   : > { %vm2678_vm15 = vcmp.eq.s32.totalorder %v2677_v10, %v2647_v24  ;;  %vm2687_vm0 = vcmp.eq.s32.totalorder %v2686_v13, %v2647_v24 }
  0x54   : > { %v2609_v43 = vadd.f32 %v2607_v33, %v2603_v36  ;;  %v2602_v62 = vadd.f32 %v2601_v26, %v2596_v57  ;;  %v2679_v20 = vsel %vm2678_vm15, 0.0, %v2676_v4  ;;  %v2688_v22 = vsel %vm2687_vm0, 0.0, %v2685_v8 }
  0x56   : > { %v2626_v48 = vadd.f32 %v2624_v37, %v2609_v43  ;;  %v2608_v2 = vadd.f32 %v2607_v33, %v2602_v62 }
  0x58   : > { %v2632_v53 = vadd.f32 %v2630_v44, %v2626_v48  ;;  %v2625_v5 = vadd.f32 %v2624_v37, %v2608_v2 }
  0x5a   : > { %v2638_v58 = vadd.f32 %v2636_v49, %v2632_v53  ;;  %v2631_v9 = vadd.f32 %v2630_v44, %v2625_v5 }
  0x5c   : > { %v2644_v63 = vadd.f32 %v2642_v54, %v2638_v58  ;;  %v2637_v12 = vadd.f32 %v2636_v49, %v2631_v9 }
  0x5e   : > { %v2663_v3 = vadd.f32 %v2659_v59, %v2644_v63  ;;  %v2643_v16 = vadd.f32 %v2642_v54, %v2637_v12 }
  0x60   : > { %v2672_v7 = vadd.f32 %v2667_v0, %v2663_v3  ;;  %v2662_v19 = vadd.f32 %v2661_v15, %v2643_v16 }
  0x62   : > { %v2681_v11 = vadd.f32 %v2676_v4, %v2672_v7  ;;  %v2671_v21 = vadd.f32 %v2670_v18, %v2662_v19 }
  0x64   : > { %v2690_v14 = vadd.f32 %v2685_v8, %v2681_v11  ;;  %v2680_v23 = vadd.f32 %v2679_v20, %v2671_v21 }
  0x66   : > { %2691 = vadd.xlane.f32.xlu0 %v2690_v14  ;;  %v2689_v25 = vadd.f32 %v2688_v22, %v2680_v23 }
  0x6a   : > { %2699 = vadd.xlane.f32.xlu0 %v2689_v25 }
  0xf3   : > { %v2692_v26 = vpop.xlane.xlu0 %2691 }
  0xf4   : > { %v2693_v27 = vrot.slane %v2692_v26, 4 }
  0xf6   : > { %v2694_v28 = vadd.f32 %v2693_v27, %v2692_v26 }
  0xf7   : > { %v2700_v30 = vpop.xlane.xlu0 %2699 }
  0xf8   : > { %v2695_v29 = vrot.slane %v2694_v28, 2  ;;  %v2701_v31 = vrot.slane %v2700_v30, 4 }
  0xfa   : > { %v2702_v32 = vadd.f32 %v2701_v31, %v2700_v30  ;;  %v2696_v33 = vadd.f32 %v2695_v29, %v2694_v28 }
  0xfc   : > { %v2703_v34 = vrot.slane %v2702_v32, 2  ;;  %v2697_v36 = vrot.slane %v2696_v33, 1 }
  0xfe   : > { %v2704_v35 = vadd.f32 %v2703_v34, %v2702_v32  ;;  %v2698_v39 = vadd.f32 %v2697_v36, %v2696_v33 }
 0x100   : > { %v2705_v37 = vrot.slane %v2704_v35, 1 }
 0x102   : > { %v2706_v38 = vadd.f32 %v2705_v37, %v2704_v35 }
 0x104   : > { %3101 = vpush %v2706_v38 }
 0x105   : > { %3103 = vpush %v2698_v39 }
 0x135   : > { %s3102_s16 = spop %3101 }
 0x136   : > { %s3104_s17 = spop %3103 }
 0x137   : > { %s2709_s20 = smul.f32 1e-10, %s3104_s17 }
 0x139   : > { %p2710_p8 = scmp.le.f32.partialorder %s3102_s16, %s2709_s20 }
 0x13a   : > { %s3425_s25 = smov (!%p2710_p8), 0  }
 0x13b   : > { %2713 = sbr.rel (%p2710_p8) target bundleno = 1145 (0x479), region = 586 }
 0x142 LB: >> { %s3430_s26 = smov 0   ;;  %s3194_s25 = sphi %s3425_s25, %s4311_s25  }
 0x143 LB: >>> { %s628_s22 = smov [#allocation12]  ;;  %v632_v24 = vmov %v3320_v24  ;;  %v635_v17 = vmov %v3316_v17  ;;  %s666_s29 = smov [#allocation13]  ;;  %s3198_s26 = sphi %s3430_s26, %s627_s26  }
 0x144   : >>> { %v670_v24 = vmov %v3320_v24  ;;  %v673_v17 = vmov %v3316_v17  ;;  %v636_v40 = vld [vmem:[%s628_s22] sm:$0xff]  ;;  %vm639_vm1 = vcmp.eq.s32.totalorder %v635_v17, %v632_v24  ;;  %v2822_v41 = vld [vmem:[%s628_s22 + $0x8] sm:$0xff]  ;;  %v644_v42 = vadd.s32 8, %v635_v17  ;;  %v2823_v46 = vld [vmem:[%s628_s22 + $0x10] sm:$0xff]  ;;  %s704_s11 = smov [#allocation15]  ;;  %s629_s30 = smov [#allocation16] }
 0x145   : >>> { %v650_v43 = vadd.s32 16, %v635_v17  ;;  %v656_v44 = vadd.s32 24, %v635_v17  ;;  %v640_v45 = vsel %vm639_vm1, %v636_v40, 0.0  ;;  %v2824_v47 = vld [vmem:[%s628_s22 + $0x18] sm:$0xff]  ;;  %vm677_vm2 = vcmp.eq.s32.totalorder %v673_v17, %v670_v24  ;;  %v674_v50 = vld [vmem:[%s666_s29] sm:$0xff]  ;;  %v2825_v51 = vld [vmem:[%s666_s29 + $0x8] sm:$0xff]  ;;  %s3469_s14 = smov %s3330_s14  ;;  %s3472_s15 = smov %s3337_s15 }
 0x146   : >>> { %v682_v48 = vadd.s32 8, %v673_v17  ;;  %v688_v49 = vadd.s32 16, %v673_v17  ;;  %vm645_vm3 = vcmp.eq.s32.totalorder %v644_v42, %v632_v24  ;;  %v2826_v52 = vld [vmem:[%s666_s29 + $0x10] sm:$0xff]  ;;  %v694_v53 = vadd.s32 24, %v673_v17  ;;  %v2827_v56 = vld [vmem:[%s666_s29 + $0x18] sm:$0xff]  ;;  %v712_v59 = vld [vmem:[%s704_s11] sm:$0xff]  ;;  %s3478_s23 = smov %s3346_s23  ;;  %s3481_s24 = smov %s3353_s24 }
 0x147   : >>> { %vm651_vm4 = vcmp.eq.s32.totalorder %v650_v43, %v632_v24  ;;  %vm657_vm5 = vcmp.eq.s32.totalorder %v656_v44, %v632_v24  ;;  %v646_v54 = vsel %vm645_vm3, %v2822_v41, %v640_v45  ;;  %v678_v55 = vsel %vm677_vm2, %v674_v50, 0.0  ;;  %v2828_v0 = vld [vmem:[%s704_s11 + $0x8] sm:$0xff]  ;;  %v2829_v4 = vld [vmem:[%s704_s11 + $0x10] sm:$0xff]  ;;  %v2830_v8 = vld [vmem:[%s704_s11 + $0x18] sm:$0xff]  ;;  %s667_s16 = smov [#allocation17]  ;;  %s705_s17 = smov [#allocation18] }
 0x148   : >>> { %vm683_vm6 = vcmp.eq.s32.totalorder %v682_v48, %v670_v24  ;;  %vm689_vm7 = vcmp.eq.s32.totalorder %v688_v49, %v670_v24  ;;  %v652_v57 = vsel %vm651_vm4, %v2823_v46, %v646_v54  ;;  %vm695_vm9 = vcmp.eq.s32.totalorder %v694_v53, %v670_v24  ;;  %s746_s20 = smov [#allocation17]  ;;  %s744_s22 = smov [#allocation16] }
 0x149   : >>> { %v684_v58 = vsel %vm683_vm6, %v2825_v51, %v678_v55  ;;  %v708_v24 = vmov %v3320_v24  ;;  %v658_v60 = vsel %vm657_vm5, %v2824_v47, %v652_v57  ;;  %v711_v17 = vmov %v3316_v17  ;;  %s748_s29 = smov [#allocation18]  ;;  %s783_s11 = smov [#allocation19] }
 0x14a   : >>> { %v690_v61 = vsel %vm689_vm7, %v2826_v52, %v684_v58  ;;  %v659_v62 = vrot.slane %v658_v60, 4  ;;  %vm715_vm10 = vcmp.eq.s32.totalorder %v711_v17, %v708_v24  ;;  %v720_v1 = vadd.s32 8, %v711_v17  ;;  %s851_s27 = smov [#allocation23]  ;;  %s3913_s21 = smov [#allocation14] }
 0x14b   : >>> { %v696_v63 = vsel %vm695_vm9, %v2827_v56, %v690_v61  ;;  %v716_v3 = vsel %vm715_vm10, %v712_v59, 0.0  ;;  %v726_v5 = vadd.s32 16, %v711_v17  ;;  %v732_v6 = vadd.s32 24, %v711_v17  ;;  %s3924_s0 = smov [#allocation13]  ;;  %s4302_s1 = smov 127  }
 0x14c   : >>> { %v697_v2 = vrot.slane %v696_v63, 4  ;;  %v660_v7 = vadd.f32 %v659_v62, %v658_v60  ;;  %vm721_vm11 = vcmp.eq.s32.totalorder %v720_v1, %v708_v24  ;;  %v813_v17 = vmov %v3316_v17  ;;  %s3931_s2 = smov [#allocation12]  ;;  %s3934_s3 = smov [#allocation14] }
 0x14d   : >>> { %v722_v10 = vsel %vm721_vm11, %v2828_v0, %v716_v3  ;;  %vm727_vm12 = vcmp.eq.s32.totalorder %v726_v5, %v708_v24  ;;  %vm733_vm13 = vcmp.eq.s32.totalorder %v732_v6, %v708_v24  ;;  %v829_v17 = vmov %v3316_v17  ;;  %s3944_s18 = smov [#allocation15]  ;;  %s3948_s10 = smov [#allocation13] }
 0x14e   : >>> { %v698_v9 = vadd.f32 %v697_v2, %v696_v63  ;;  %v661_v11 = vrot.slane %v660_v7, 2  ;;  %v728_v12 = vsel %vm727_vm12, %v2829_v4, %v722_v10  ;;  %v876_v17 = vmov %v3316_v17  ;;  %s3954_s13 = smov [#allocation15]  ;;  %s3960_s9 = smov [#allocation14] }
 0x14f   : >>> { %v734_v14 = vsel %vm733_vm13, %v2830_v8, %v728_v12  ;;  %v814_v60 = vadd.s32 8, %v813_v17  ;;  %v810_v24 = vmov %v3320_v24  ;;  %v798_v17 = vmov %v3316_v17  ;;  %s3963_s8 = smov [#allocation15]  ;;  %s627_s26 = sadd.s32 1, %s3198_s26  }
 0x150   : >>> { %v699_v13 = vrot.slane %v698_v9, 2  ;;  %v662_v15 = vadd.f32 %v661_v11, %v660_v7  ;;  %v735_v16 = vrot.slane %v734_v14, 4  ;;  %v795_v24 = vmov %v3320_v24  ;;  %p624_p9 = scmp.ge.s32.totalorder %s627_s26, 63  }
 0x151   : >>> { %v830_v61 = vadd.s32 16, %v829_v17  ;;  %v826_v24 = vmov %v3320_v24  ;;  %v877_v62 = vadd.s32 8, %v876_v17  ;;  %v892_v17 = vmov %v3316_v17 }
 0x152   : >>> { %v700_v18 = vadd.f32 %v699_v13, %v698_v9  ;;  %v663_v19 = vrot.slane %v662_v15, 1  ;;  %v736_v20 = vadd.f32 %v735_v16, %v734_v14  ;;  %v873_v24 = vmov %v3320_v24 }
 0x153   : >>> { %vm815_vm2 = vcmp.eq.s32.totalorder %v814_v60, %v810_v24  ;;  %vm800_vm3 = vcmp.eq.s32.totalorder %v798_v17, %v795_v24  ;;  %vm831_vm4 = vcmp.eq.s32.totalorder %v830_v61, %v826_v24  ;;  %v889_v24 = vmov %v3320_v24 }
 0x154   : >>> { %v701_v21 = vrot.slane %v700_v18, 1  ;;  %v664_v22 = vadd.f32 %v663_v19, %v662_v15  ;;  %v737_v23 = vrot.slane %v736_v20, 2  ;;  %vm878_vm5 = vcmp.eq.s32.totalorder %v877_v62, %v873_v24 }
 0x155   : >>> { %v893_v1 = vadd.s32 16, %v892_v17  ;;  %v858_v24 = vmov %v3320_v24  ;;  %v861_v17 = vmov %v3316_v17  ;;  %vm1581_vm11 = vcmp.eq.s32.totalorder %v3316_v17, 0 }
 0x156   : >>> { %v702_v25 = vadd.f32 %v701_v21, %v700_v18  ;;  %665 = vst [vmem:[%s629_s30] sm:$0x1] %v664_v22  ;;  %v738_v26 = vadd.f32 %v737_v23, %v736_v20  ;;  %s785_s30 = smov [#allocation20]  ;;  %v908_v17 = vmov %v3316_v17  ;;  %vm863_vm7 = vcmp.eq.s32.totalorder %v861_v17, %v858_v24 }
 0x157   : >>> { %v845_v17 = vmov %v3316_v17  ;;  %vm894_vm6 = vcmp.eq.s32.totalorder %v893_v1, %v889_v24  ;;  %v909_v10 = vadd.s32 24, %v908_v17  ;;  %v905_v24 = vmov %v3320_v24 }
 0x158   : >>> { %703 = vst [vmem:[%s667_s16] sm:$0x1] %v702_v25  ;;  %v739_v27 = vrot.slane %v738_v26, 1  ;;  %s742_s16 = smov [#allocation21]  ;;  %v846_v11 = vadd.s32 24, %v845_v17  ;;  %v842_v24 = vmov %v3320_v24  ;;  %vm4282_vm12 = vcmp.eq.s32.totalorder %v3316_v17, 7 }
 0x159   : >>> { %s787_s16 = smov %s742_s16  ;;  %vm910_vm9 = vcmp.eq.s32.totalorder %v909_v10, %v905_v24  ;;  %v3762_v17 = vmov %v3316_v17 }
 0x15a   : >>> { %v740_v28 = vadd.f32 %v739_v27, %v738_v26  ;;  %vm847_vm10 = vcmp.eq.s32.totalorder %v846_v11, %v842_v24  ;;  %v1166_v17 = vmov %v3316_v17  ;;  %v1201_v24 = vmov %v3320_v24 }
 0x15b   : >>> { %vm1208_vm13 = vcmp.eq.s32.totalorder %v3762_v17, %v1201_v24  ;;  %v1163_v24 = vmov %v3320_v24 }
 0x15c   : >>> { %741 = vst [vmem:[%s705_s17] sm:$0x1] %v740_v28  ;;  %s743_s17 = smov [#allocation22]  ;;  %v3786_v24 = vmov %v3320_v24 }
 0x15d   : >>> { %v745_v31 = vld [vmem:[%s744_s22] sm:$0xff]  ;;  %s789_s17 = smov %s743_s17  ;;  %s791_s22 = smov [#allocation21] }
 0x15e   : >>> { %v768_v44 = vand.u32 2147483647, %v745_v31 }
 0x15f   : >>> { %v747_v29 = vld [vmem:[%s746_s20] sm:$0xff]  ;;  %s806_s20 = smov [#allocation21] }
 0x160   : >>> { %v751_v30 = vmul.f32 2.0, %v747_v29  ;;  %v769_v49 = vand.u32 2147483647, %v747_v29 }
 0x162   : >>> { %3152 = vrcp.f32 %v751_v30 }
 0x163   : >>> { %v749_v32 = vld [vmem:[%s748_s29] sm:$0xff]  ;;  %s822_s29 = smov [#allocation21] }
 0x164   : >>> { %v750_v33 = vsub.f32 %v749_v32, %v745_v31  ;;  %v770_v45 = vand.u32 2147483647, %v749_v32 }
 0x166   : >>> { %v771_v48 = vmin.f32 %v768_v44, %v770_v45 }
 0x168   : >>> { %v772_v50 = vmul.f32 1.1920929e-08, %v771_v48 }
 0x16a   : >>> { %vm773_vm1 = vcmp.le.f32.partialorder %v769_v49, %v772_v50 }
 0x16c   : >>> { %v3153_v34 = vpop.eup %3152 }
 0x16d   : >>> { %v753_v35 = vmul.f32 %v3153_v34, %v750_v33  ;;  %v1750_v33 = vld [vmem:[%s3472_s15] sm:$0xff] }
 0x16f   : >>> { %v755_v36 = vmul.f32 %v753_v35, %v753_v35  ;;  %vm754_vm0 = vcmp.ge.f32.partialorder %v753_v35, 0.0 }
 0x171   : >>> { %v756_v37 = vadd.f32 1.0, %v755_v36  ;;  %v1752_v36 = vld [vmem:[%s3481_s24] sm:$0xff] }
 0x173   : >>> { %3154 = vrsqrt.f32 %v756_v37  ;;  %vm759_vm14 = vcmp.eq.f32.partialorder %v756_v37, inf  ;;  %v762_v39 = vand.u32 2147483648, %v756_v37  ;;  %vm761_vm15 = vcmp.eq.f32.partialorder %v756_v37, 0.0 }
 0x17d   : >>> { %v3155_v38 = vpop.eup %3154 }
 0x17e   : >>> { %v758_v40 = vmul.f32 %v3155_v38, %v756_v37 }
 0x180   : >>> { %v760_v41 = vsel %vm759_vm14, %v756_v37, %v758_v40 }
 0x181   : >>> { %v763_v42 = vsel %vm761_vm15, %v762_v39, %v760_v41 }
 0x182   : >>> { %v764_v43 = vxor.u32 2147483648, %v763_v42 }
 0x184   : >>> { %v765_v46 = vsel %vm754_vm0, %v763_v42, %v764_v43 }
 0x185   : >>> { %v766_v47 = vadd.f32 %v765_v46, %v753_v35  ;;  %v1751_v35 = vld [vmem:[%s3478_s23] sm:$0xff] }
 0x187   : >>> { %3156 = vrcp.f32 %v766_v47 }
 0x191   : >>> { %v3157_v51 = vpop.eup %3156 }
 0x192   : >>> { %v774_v52 = vsel %vm773_vm1, 0.0, %v3157_v51  ;;  %vm1171_vm1 = vcmp.eq.s32.totalorder %v1166_v17, %v1163_v24 }
 0x193   : >>> { %v775_v53 = vmul.f32 %v774_v52, %v774_v52  ;;  %v779_v54 = vmul.f32 %v774_v52, %v747_v29 }
 0x195   : >>> { %v776_v55 = vadd.f32 1.0, %v775_v53  ;;  %v780_v56 = vsub.f32 %v745_v31, %v779_v54  ;;  %v782_v57 = vadd.f32 %v779_v54, %v749_v32  ;;  %v1749_v32 = vld [vmem:[%s3469_s14] sm:$0xff] }
 0x197   : >>> { %3158 = vrsqrt.f32 %v776_v55  ;;  %784 = vst [vmem:[%s783_s11] sm:$0xff] %v780_v56  ;;  %786 = vst [vmem:[%s785_s30] sm:$0xff] %v782_v57  ;;  %s869_s11 = smov [#allocation22]  ;;  %s885_s30 = smov [#allocation22] }
 0x1a1   : >>> { %v3159_v58 = vpop.eup %3158 }
 0x1a2   : >>> { %788 = vst [vmem:[%s787_s16] sm:$0xff] %v3159_v58  ;;  %v778_v59 = vmul.f32 %v3159_v58, %v774_v52  ;;  %s854_s16 = smov [#allocation22] }
 0x1a4   : >>> { %790 = vst [vmem:[%s789_s17] sm:$0xff] %v778_v59  ;;  %s901_s17 = smov [#allocation22] }
 0x1a9   : >>> { %v807_v63 = vld [vmem:[%s806_s20] ss:$0 sm:$0xff]  ;;  %s838_s20 = smov [#allocation21] }
 0x1aa   : >>> { %v792_v0 = vld [vmem:[%s791_s22] ss:$0 sm:$0xff]  ;;  %v816_v2 = vsel %vm815_vm2, %v807_v63, 0.0  ;;  %s804_s22 = smov [#allocation23] }
 0x1ab   : >>> { %v801_v3 = vsel %vm800_vm3, %v792_v0, 0.0  ;;  %v823_v4 = vld [vmem:[%s822_s29] ss:$0 sm:$0xff]  ;;  %817 = vadd.xlane.f32.xlu1 %v816_v2  ;;  %s819_s29 = smov [#allocation23] }
 0x1ac   : >>> { %802 = vadd.xlane.f32.xlu0 %v801_v3  ;;  %v870_v5 = vld [vmem:[%s869_s11] ss:$0 sm:$0xff]  ;;  %v832_v6 = vsel %vm831_vm4, %v823_v4, 0.0  ;;  %s835_s11 = smov [#allocation23] }
 0x1ad   : >>> { %v879_v7 = vsel %vm878_vm5, %v870_v5, 0.0  ;;  %v886_v8 = vld [vmem:[%s885_s30] ss:$0 sm:$0xff]  ;;  %s867_s30 = smov [#allocation24] }
 0x1ae   : >>> { %v855_v9 = vld [vmem:[%s854_s16] ss:$0 sm:$0xff]  ;;  %v895_v12 = vsel %vm894_vm6, %v886_v8, 0.0  ;;  %s882_s16 = smov [#allocation24] }
 0x1af   : >>> { %880 = vadd.xlane.f32.xlu1 %v879_v7  ;;  %v864_v13 = vsel %vm863_vm7, %v855_v9, 0.0  ;;  %v902_v14 = vld [vmem:[%s901_s17] ss:$0 sm:$0xff]  ;;  %s898_s17 = smov [#allocation24] }
 0x1b0   : >>> { %833 = vadd.xlane.f32.xlu0 %v832_v6  ;;  %v839_v15 = vld [vmem:[%s838_s20] ss:$0 sm:$0xff]  ;;  %v911_v16 = vsel %vm910_vm9, %v902_v14, 0.0  ;;  %s914_s20 = smov [#allocation24] }
 0x1b1   : >>> { %v848_v18 = vsel %vm847_vm10, %v839_v15, 0.0 }
 0x1b3   : >>> { %896 = vadd.xlane.f32.xlu1 %v895_v12 }
 0x1b4   : >>> { %865 = vadd.xlane.f32.xlu0 %v864_v13 }
 0x1b7   : >>> { %912 = vadd.xlane.f32.xlu1 %v911_v16 }
 0x1b8   : >>> { %849 = vadd.xlane.f32.xlu0 %v848_v18 }
 0x238   : >>> { %v818_v19 = vpop.xlane.xlu1 %817 }
 0x239   : >>> { %v803_v20 = vpop.xlane.xlu0 %802 }
 0x23a   : >>> { %805 = vst [vmem:[%s804_s22] sm:$0xff] %v803_v20  ;;  %s3459_s22 = smov [#allocation12] }
 0x23b   : >>> { %2831 = vst [vmem:[%s819_s29 + $0x8] sm:$0xff] %v818_v19  ;;  %s3461_s29 = smov [#allocation13]  ;;  %v925_v28 = vld [vmem:[%s3459_s22] sm:$0xff] }
 0x23c   : >>> { %v881_v22 = vpop.xlane.xlu1 %880  ;;  %v926_v29 = vld [vmem:[%s3461_s29] sm:$0xff] }
 0x23d   : >>> { %v834_v21 = vpop.xlane.xlu0 %833 }
 0x23e   : >>> { %2832 = vst [vmem:[%s835_s11 + $0x10] sm:$0xff] %v834_v21  ;;  %s3463_s11 = smov [#allocation14] }
 0x23f   : >>> { %v927_v30 = vld [vmem:[%s3463_s11] sm:$0xff] }
 0x240   : >>> { %v897_v23 = vpop.xlane.xlu1 %896 }
 0x241   : >>> { %v866_v25 = vpop.xlane.xlu0 %865 }
 0x242   : >>> { %868 = vst [vmem:[%s867_s30] sm:$0xff] %v866_v25  ;;  %s3465_s30 = smov [#allocation15] }
 0x243   : >>> { %2834 = vst [vmem:[%s882_s16 + $0x8] sm:$0xff] %v881_v22  ;;  %s919_s16 = smov [#allocation24]  ;;  %v928_v31 = vld [vmem:[%s3465_s30] sm:$0xff] }
 0x244   : >>> { %2835 = vst [vmem:[%s898_s17 + $0x10] sm:$0xff] %v897_v23  ;;  %v913_v26 = vpop.xlane.xlu1 %912  ;;  %s1743_s17 = smov [#allocation24] }
 0x245   : >>> { %v850_v27 = vpop.xlane.xlu0 %849  ;;  %2836 = vst [vmem:[%s914_s20 + $0x18] sm:$0xff] %v913_v26  ;;  %s1741_s20 = smov [#allocation23] }
 0x246   : >>> { %2833 = vst [vmem:[%s851_s27 + $0x18] sm:$0xff] %v850_v27  ;;  %s917_s27 = smov [#allocation23] }
 0x24c   : >>> { %v920_v34 = vld [vmem:[%s919_s16] sm:$0xff]  ;;  %s948_s16 = smov [#allocation24] }
 0x24d   : >>> { %v930_v37 = vmul.f32 %v927_v30, %v920_v34  ;;  %v933_v38 = vmul.f32 %v928_v31, %v920_v34  ;;  %v935_v39 = vmul.f32 %v925_v28, %v920_v34  ;;  %v938_v40 = vmul.f32 %v926_v29, %v920_v34  ;;  %v1744_v41 = vld [vmem:[%s1743_s17] sm:$0xff]  ;;  %s945_s17 = smov [#allocation23]  ;;  %v2838_v0 = vld [vmem:[%s948_s16 + $0x8] sm:$0xff]  ;;  %s982_s16 = smov [#allocation24] }
 0x24e   : >>> { %v918_v42 = vld [vmem:[%s917_s27] sm:$0xff]  ;;  %v1754_v47 = vmul.f32 %v1751_v35, %v1744_v41  ;;  %v1757_v48 = vmul.f32 %v1752_v36, %v1744_v41  ;;  %v1759_v49 = vmul.f32 %v1749_v32, %v1744_v41  ;;  %v1762_v50 = vmul.f32 %v1750_v33, %v1744_v41  ;;  %s3491_s27 = smov [#allocation12]  ;;  %v2837_v1 = vld [vmem:[%s945_s17 + $0x8] sm:$0xff]  ;;  %s979_s17 = smov [#allocation23] }
 0x24f   : >>> { %v929_v43 = vmul.f32 %v925_v28, %v918_v42  ;;  %v932_v44 = vmul.f32 %v926_v29, %v918_v42  ;;  %v936_v45 = vmul.f32 %v927_v30, %v918_v42  ;;  %v939_v46 = vmul.f32 %v928_v31, %v918_v42  ;;  %v1742_v51 = vld [vmem:[%s1741_s20] sm:$0xff]  ;;  %s1772_s20 = smov [#allocation24] }
 0x250   : >>> { %v1753_v56 = vmul.f32 %v1749_v32, %v1742_v51  ;;  %v1756_v57 = vmul.f32 %v1750_v33, %v1742_v51  ;;  %v1760_v58 = vmul.f32 %v1751_v35, %v1742_v51  ;;  %v1763_v59 = vmul.f32 %v1752_v36, %v1742_v51  ;;  %v2996_v20 = vld [vmem:[%s1772_s20 + $0x8] sm:$0xff]  ;;  %s1803_s20 = smov [#allocation23] }
 0x251   : >>> { %v931_v52 = vsub.f32 %v929_v43, %v930_v37  ;;  %v934_v53 = vsub.f32 %v932_v44, %v933_v38  ;;  %v937_v54 = vadd.f32 %v936_v45, %v935_v39  ;;  %v940_v55 = vadd.f32 %v939_v46, %v938_v40  ;;  %v2848_v38 = vld [vmem:[%s982_s16 + $0x10] sm:$0xff]  ;;  %s1016_s16 = smov [#allocation24] }
 0x252   : >>> { %v1755_v60 = vsub.f32 %v1753_v56, %v1754_v47  ;;  %v1758_v61 = vsub.f32 %v1756_v57, %v1757_v48  ;;  %v1761_v62 = vadd.f32 %v1760_v58, %v1759_v49  ;;  %v1764_v63 = vadd.f32 %v1763_v59, %v1762_v50  ;;  %v2847_v39 = vld [vmem:[%s979_s17 + $0x10] sm:$0xff]  ;;  %s1013_s17 = smov [#allocation23] }
 0x253   : >>> { %941 = vst [vmem:[%s3459_s22] sm:$0xff] %v931_v52  ;;  %942 = vst [vmem:[%s3461_s29] sm:$0xff] %v934_v53  ;;  %s3497_s22 = smov [#allocation13]  ;;  %s3499_s29 = smov [#allocation14]  ;;  %v3005_v56 = vld [vmem:[%s1803_s20 + $0x10] sm:$0xff] }
 0x254   : >>> { %943 = vst [vmem:[%s3463_s11] sm:$0xff] %v937_v54  ;;  %944 = vst [vmem:[%s3465_s30] sm:$0xff] %v940_v55  ;;  %s3501_s11 = smov [#allocation15]  ;;  %s1769_s30 = smov [#allocation23] }
 0x255   : >>> { %1765 = vst [vmem:[%s3469_s14] sm:$0xff] %v1755_v60  ;;  %1766 = vst [vmem:[%s3472_s15] sm:$0xff] %v1758_v61  ;;  %s3504_s14 = smov %s3330_s14  ;;  %s3507_s15 = smov %s3337_s15  ;;  %v2995_v14 = vld [vmem:[%s1769_s30 + $0x8] sm:$0xff] }
 0x256   : >>> { %1767 = vst [vmem:[%s3478_s23] sm:$0xff] %v1761_v62  ;;  %1768 = vst [vmem:[%s3481_s24] sm:$0xff] %v1764_v63  ;;  %s3510_s23 = smov %s3346_s23  ;;  %s3516_s24 = smov %s3353_s24 }
 0x257   : >>> { %s3529_s30 = smov [#allocation13]  ;;  %s1837_s20 = smov [#allocation23] }
 0x25a   : >>> { %v2839_v2 = vld [vmem:[%s3491_s27 + $0x8] sm:$0xff] }
 0x25b   : >>> { %v2840_v3 = vld [vmem:[%s3497_s22 + $0x8] sm:$0xff]  ;;  %v963_v6 = vmul.f32 %v2839_v2, %v2837_v1  ;;  %v969_v9 = vmul.f32 %v2839_v2, %v2838_v0 }
 0x25c   : >>> { %v2841_v4 = vld [vmem:[%s3499_s29 + $0x8] sm:$0xff]  ;;  %v966_v8 = vmul.f32 %v2840_v3, %v2837_v1  ;;  %v972_v12 = vmul.f32 %v2840_v3, %v2838_v0 }
 0x25d   : >>> { %v2842_v5 = vld [vmem:[%s3501_s11 + $0x8] sm:$0xff]  ;;  %v964_v7 = vmul.f32 %v2841_v4, %v2838_v0  ;;  %v970_v11 = vmul.f32 %v2841_v4, %v2837_v1 }
 0x25e   : >>> { %v967_v10 = vmul.f32 %v2842_v5, %v2838_v0  ;;  %v973_v13 = vmul.f32 %v2842_v5, %v2837_v1  ;;  %v2997_v16 = vld [vmem:[%s3504_s14 + $0x8] sm:$0xff] }
 0x25f   : >>> { %v965_v15 = vsub.f32 %v963_v6, %v964_v7  ;;  %v2998_v18 = vld [vmem:[%s3507_s15 + $0x8] sm:$0xff]  ;;  %v971_v22 = vadd.f32 %v970_v11, %v969_v9  ;;  %v1787_v26 = vmul.f32 %v2997_v16, %v2995_v14  ;;  %v1793_v30 = vmul.f32 %v2997_v16, %v2996_v20  ;;  %v2857_v11 = vld [vmem:[%s1013_s17 + $0x18] sm:$0xff]  ;;  %s1049_s17 = smov [#allocation22] }
 0x260   : >>> { %v2999_v19 = vld [vmem:[%s3510_s23 + $0x8] sm:$0xff]  ;;  %v968_v21 = vsub.f32 %v966_v8, %v967_v10  ;;  %v974_v23 = vadd.f32 %v973_v13, %v972_v12  ;;  %v1790_v28 = vmul.f32 %v2998_v18, %v2995_v14  ;;  %v1796_v32 = vmul.f32 %v2998_v18, %v2996_v20  ;;  %v2858_v10 = vld [vmem:[%s1016_s16 + $0x18] sm:$0xff]  ;;  %s1047_s16 = smov [#allocation21] }
 0x261   : >>> { %v3000_v25 = vld [vmem:[%s3516_s24 + $0x8] sm:$0xff]  ;;  %2843 = vst [vmem:[%s3491_s27 + $0x8] sm:$0xff] %v965_v15  ;;  %v1788_v27 = vmul.f32 %v2999_v19, %v2996_v20  ;;  %2845 = vst [vmem:[%s3499_s29 + $0x8] sm:$0xff] %v971_v22  ;;  %v1794_v31 = vmul.f32 %v2999_v19, %v2995_v14  ;;  %s3527_s27 = smov [#allocation12]  ;;  %s3535_s29 = smov [#allocation15] }
 0x262   : >>> { %v1791_v29 = vmul.f32 %v3000_v25, %v2996_v20  ;;  %2844 = vst [vmem:[%s3497_s22 + $0x8] sm:$0xff] %v968_v21  ;;  %2846 = vst [vmem:[%s3501_s11 + $0x8] sm:$0xff] %v974_v23  ;;  %v1797_v33 = vmul.f32 %v3000_v25, %v2995_v14  ;;  %s3533_s22 = smov [#allocation14]  ;;  %s1806_s11 = smov [#allocation24] }
 0x263   : >>> { %v1789_v34 = vsub.f32 %v1787_v26, %v1788_v27  ;;  %v1795_v36 = vadd.f32 %v1794_v31, %v1793_v30  ;;  %v3006_v50 = vld [vmem:[%s1806_s11 + $0x10] sm:$0xff]  ;;  %s3563_s11 = smov [#allocation12] }
 0x264   : >>> { %v1792_v35 = vsub.f32 %v1790_v28, %v1791_v29  ;;  %v1798_v37 = vadd.f32 %v1797_v33, %v1796_v32  ;;  %v3015_v29 = vld [vmem:[%s1837_s20 + $0x18] sm:$0xff]  ;;  %s3631_s20 = smov [#allocation13] }
 0x265   : >>> { %3001 = vst [vmem:[%s3504_s14 + $0x8] sm:$0xff] %v1789_v34  ;;  %3003 = vst [vmem:[%s3510_s23 + $0x8] sm:$0xff] %v1795_v36  ;;  %s3541_s14 = smov %s3330_s14  ;;  %s3550_s23 = smov %s3346_s23 }
 0x266   : >>> { %3002 = vst [vmem:[%s3507_s15 + $0x8] sm:$0xff] %v1792_v35  ;;  %3004 = vst [vmem:[%s3516_s24 + $0x8] sm:$0xff] %v1798_v37  ;;  %s3544_s15 = smov %s3337_s15  ;;  %s3553_s24 = smov %s3353_s24 }
 0x268   : >>> { %v2849_v40 = vld [vmem:[%s3527_s27 + $0x10] sm:$0xff] }
 0x269   : >>> { %v2850_v41 = vld [vmem:[%s3529_s30 + $0x10] sm:$0xff]  ;;  %v997_v44 = vmul.f32 %v2849_v40, %v2847_v39  ;;  %v1003_v45 = vmul.f32 %v2849_v40, %v2848_v38 }
 0x26a   : >>> { %v2851_v42 = vld [vmem:[%s3533_s22 + $0x10] sm:$0xff]  ;;  %v1000_v47 = vmul.f32 %v2850_v41, %v2847_v39  ;;  %v1006_v51 = vmul.f32 %v2850_v41, %v2848_v38 }
 0x26b   : >>> { %v2852_v43 = vld [vmem:[%s3535_s29 + $0x10] sm:$0xff]  ;;  %v998_v46 = vmul.f32 %v2851_v42, %v2848_v38  ;;  %v1004_v49 = vmul.f32 %v2851_v42, %v2847_v39 }
 0x26c   : >>> { %v1001_v48 = vmul.f32 %v2852_v43, %v2848_v38  ;;  %v1007_v52 = vmul.f32 %v2852_v43, %v2847_v39  ;;  %v3007_v57 = vld [vmem:[%s3541_s14 + $0x10] sm:$0xff] }
 0x26d   : >>> { %v999_v53 = vsub.f32 %v997_v44, %v998_v46  ;;  %v1005_v55 = vadd.f32 %v1004_v49, %v1003_v45  ;;  %v3008_v58 = vld [vmem:[%s3544_s15 + $0x10] sm:$0xff]  ;;  %v1821_v62 = vmul.f32 %v3007_v57, %v3005_v56  ;;  %v1827_v0 = vmul.f32 %v3007_v57, %v3006_v50  ;;  %v3606_v49 = vld [vmem:[%s1049_s17] ss:$0 sm:$0xff]  ;;  %s3638_s17 = smov [#allocation15] }
 0x26e   : >>> { %v1002_v54 = vsub.f32 %v1000_v47, %v1001_v48  ;;  %v1008_v59 = vadd.f32 %v1007_v52, %v1006_v51  ;;  %v3009_v60 = vld [vmem:[%s3550_s23 + $0x10] sm:$0xff]  ;;  %v1824_v63 = vmul.f32 %v3008_v58, %v3005_v56  ;;  %v1830_v4 = vmul.f32 %v3008_v58, %v3006_v50  ;;  %v3604_v48 = vld [vmem:[%s1047_s16] ss:$0 sm:$0xff]  ;;  %s3636_s16 = smov [#allocation14] }
 0x26f   : >>> { %v3010_v61 = vld [vmem:[%s3553_s24 + $0x10] sm:$0xff]  ;;  %2853 = vst [vmem:[%s3527_s27 + $0x10] sm:$0xff] %v999_v53  ;;  %2855 = vst [vmem:[%s3533_s22 + $0x10] sm:$0xff] %v1005_v55  ;;  %v1822_v1 = vmul.f32 %v3009_v60, %v3006_v50  ;;  %v1828_v3 = vmul.f32 %v3009_v60, %v3005_v56  ;;  %s3565_s27 = smov [#allocation14]  ;;  %s3572_s22 = smov [#allocation15] }
 0x270   : >>> { %v1825_v2 = vmul.f32 %v3010_v61, %v3006_v50  ;;  %2854 = vst [vmem:[%s3529_s30 + $0x10] sm:$0xff] %v1002_v54  ;;  %2856 = vst [vmem:[%s3535_s29 + $0x10] sm:$0xff] %v1008_v59  ;;  %v1831_v5 = vmul.f32 %v3010_v61, %v3005_v56  ;;  %s3570_s30 = smov [#allocation13]  ;;  %s1840_s29 = smov [#allocation24] }
 0x271   : >>> { %v1823_v6 = vsub.f32 %v1821_v62, %v1822_v1  ;;  %v1829_v8 = vadd.f32 %v1828_v3, %v1827_v0  ;;  %v3016_v26 = vld [vmem:[%s1840_s29 + $0x18] sm:$0xff]  ;;  %s3629_s29 = smov [#allocation12] }
 0x272   : >>> { %v1826_v7 = vsub.f32 %v1824_v63, %v1825_v2  ;;  %v1832_v9 = vadd.f32 %v1831_v5, %v1830_v4 }
 0x273   : >>> { %3011 = vst [vmem:[%s3541_s14 + $0x10] sm:$0xff] %v1823_v6  ;;  %3013 = vst [vmem:[%s3550_s23 + $0x10] sm:$0xff] %v1829_v8  ;;  %s3576_s14 = smov %s3330_s14  ;;  %s3585_s23 = smov %s3346_s23 }
 0x274   : >>> { %3012 = vst [vmem:[%s3544_s15 + $0x10] sm:$0xff] %v1826_v7  ;;  %3014 = vst [vmem:[%s3553_s24 + $0x10] sm:$0xff] %v1832_v9  ;;  %s3582_s15 = smov %s3337_s15  ;;  %s3589_s24 = smov %s3353_s24 }
 0x276   : >>> { %v2859_v12 = vld [vmem:[%s3563_s11 + $0x18] sm:$0xff] }
 0x277   : >>> { %v2861_v13 = vld [vmem:[%s3565_s27 + $0x18] sm:$0xff]  ;;  %v1031_v16 = vmul.f32 %v2859_v12, %v2857_v11  ;;  %v1037_v19 = vmul.f32 %v2859_v12, %v2858_v10 }
 0x278   : >>> { %v2860_v14 = vld [vmem:[%s3570_s30 + $0x18] sm:$0xff]  ;;  %v1032_v18 = vmul.f32 %v2861_v13, %v2858_v10  ;;  %v1038_v20 = vmul.f32 %v2861_v13, %v2857_v11 }
 0x279   : >>> { %v2862_v15 = vld [vmem:[%s3572_s22 + $0x18] sm:$0xff]  ;;  %v1034_v23 = vmul.f32 %v2860_v14, %v2857_v11  ;;  %v1040_v25 = vmul.f32 %v2860_v14, %v2858_v10 }
 0x27a   : >>> { %v1035_v21 = vmul.f32 %v2862_v15, %v2858_v10  ;;  %v1041_v22 = vmul.f32 %v2862_v15, %v2857_v11  ;;  %v1033_v27 = vsub.f32 %v1031_v16, %v1032_v18  ;;  %v1039_v28 = vadd.f32 %v1038_v20, %v1037_v19  ;;  %v3017_v30 = vld [vmem:[%s3576_s14 + $0x18] sm:$0xff] }
 0x27b   : >>> { %v3018_v31 = vld [vmem:[%s3582_s15 + $0x18] sm:$0xff]  ;;  %v1855_v36 = vmul.f32 %v3017_v30, %v3015_v29  ;;  %v1861_v39 = vmul.f32 %v3017_v30, %v3016_v26 }
 0x27c   : >>> { %v3019_v32 = vld [vmem:[%s3585_s23 + $0x18] sm:$0xff]  ;;  %v1036_v33 = vsub.f32 %v1034_v23, %v1035_v21  ;;  %v1042_v34 = vadd.f32 %v1041_v22, %v1040_v25  ;;  %2863 = vst [vmem:[%s3563_s11 + $0x18] sm:$0xff] %v1033_v27  ;;  %v1858_v38 = vmul.f32 %v3018_v31, %v3015_v29  ;;  %2865 = vst [vmem:[%s3565_s27 + $0x18] sm:$0xff] %v1039_v28  ;;  %s3600_s11 = smov [#allocation12]  ;;  %s3602_s27 = smov [#allocation14] }
 0x27d   : >>> { %v3020_v35 = vld [vmem:[%s3589_s24 + $0x18] sm:$0xff]  ;;  %v1856_v37 = vmul.f32 %v3019_v32, %v3016_v26  ;;  %v1862_v41 = vmul.f32 %v3019_v32, %v3015_v29  ;;  %v1864_v42 = vmul.f32 %v3018_v31, %v3016_v26 }
 0x27e   : >>> { %v1859_v40 = vmul.f32 %v3020_v35, %v3016_v26  ;;  %v1865_v43 = vmul.f32 %v3020_v35, %v3015_v29  ;;  %2864 = vst [vmem:[%s3570_s30 + $0x18] sm:$0xff] %v1036_v33  ;;  %2866 = vst [vmem:[%s3572_s22 + $0x18] sm:$0xff] %v1042_v34  ;;  %s3611_s30 = smov [#allocation13]  ;;  %s3613_s22 = smov [#allocation15] }
 0x27f   : >>> { %v1857_v44 = vsub.f32 %v1855_v36, %v1856_v37  ;;  %v1863_v46 = vadd.f32 %v1862_v41, %v1861_v39 }
 0x280   : >>> { %v1860_v45 = vsub.f32 %v1858_v38, %v1859_v40  ;;  %v1866_v47 = vadd.f32 %v1865_v43, %v1864_v42 }
 0x281   : >>> { %3021 = vst [vmem:[%s3576_s14 + $0x18] sm:$0xff] %v1857_v44  ;;  %3023 = vst [vmem:[%s3585_s23 + $0x18] sm:$0xff] %v1863_v46  ;;  %s3619_s14 = smov %s3330_s14  ;;  %s3641_s23 = smov %s3346_s23 }
 0x282   : >>> { %3022 = vst [vmem:[%s3582_s15 + $0x18] sm:$0xff] %v1860_v45  ;;  %3024 = vst [vmem:[%s3589_s24 + $0x18] sm:$0xff] %v1866_v47  ;;  %s3652_s15 = smov %s3337_s15  ;;  %s3681_s24 = smov %s3353_s24 }
 0x283   : >>> { %v1055_v50 = vld [vmem:[%s3600_s11] sm:$0xff] }
 0x284   : >>> { %v1057_v51 = vld [vmem:[%s3602_s27] sm:$0xff]  ;;  %v1059_v53 = vmul.f32 %v1055_v50, %v3604_v48  ;;  %v1062_v54 = vmul.f32 %v1055_v50, %v3606_v49 }
 0x285   : >>> { %v1056_v52 = vld [vmem:[%s3611_s30] sm:$0xff]  ;;  %v1065_v56 = vmul.f32 %v1057_v51, %v3604_v48  ;;  %v1068_v57 = vmul.f32 %v1057_v51, %v3606_v49 }
 0x286   : >>> { %v1058_v55 = vld [vmem:[%s3613_s22] sm:$0xff]  ;;  %v1060_v58 = vmul.f32 %v1056_v52, %v3606_v49  ;;  %v1063_v59 = vmul.f32 %v1056_v52, %v3604_v48 }
 0x287   : >>> { %v1066_v60 = vmul.f32 %v1058_v55, %v3606_v49  ;;  %v1069_v61 = vmul.f32 %v1058_v55, %v3604_v48 }
 0x288   : >>> { %v1873_v62 = vld [vmem:[%s3619_s14] ss:$0 sm:$0xff]  ;;  %v3026_v0 = vld [vmem:[%s3619_s14 + $0x7] ss:$0 sm:$0xff]  ;;  %v1061_v1 = vsub.f32 %v1059_v53, %v1060_v58  ;;  %v1064_v2 = vadd.f32 %v1063_v59, %v1062_v54  ;;  %v3027_v6 = vld [vmem:[%s3619_s14 + $0x7] sm:$0xfe] }
 0x289   : >>> { %v3025_v63 = vld [vmem:[%s3619_s14 - $0x1] sm:$0xfe]  ;;  %v1067_v3 = vsub.f32 %v1065_v56, %v1066_v60  ;;  %v1070_v4 = vadd.f32 %v1069_v61, %v1068_v57  ;;  %v3028_v7 = vld [vmem:[%s3619_s14 + $0xf] ss:$0 sm:$0xff]  ;;  %v3030_v8 = vld [vmem:[%s3619_s14 + $0xf] sm:$0xfe]  ;;  %v1891_v9 = vsel %vm1581_vm11, %v3026_v0, %v3027_v6 }
 0x28a   : >>> { %v1880_v5 = vsel %vm1581_vm11, %v1873_v62, %v3025_v63  ;;  %v1902_v10 = vsel %vm1581_vm11, %v3028_v7, %v3030_v8  ;;  %v3031_v11 = vld [vmem:[%s3619_s14 + $0x17] ss:$0 sm:$0xff]  ;;  %v3033_v12 = vld [vmem:[%s3619_s14 + $0x17] sm:$0xfe]  ;;  %v3034_v13 = vld [vmem:[%s3619_s14 + $0x1f] ss:$0 sm:$0xff]  ;;  %1071 = vst [vmem:[%s3600_s11] sm:$0xff] %v1061_v1 }
 0x28b   : >>> { %1883 = vst [vmem:[%s3619_s14] sm:$0xff] %v1880_v5  ;;  %1072 = vst [vmem:[%s3611_s30] sm:$0xff] %v1064_v2  ;;  %v1913_v14 = vsel %vm1581_vm11, %v3031_v11, %v3033_v12  ;;  %v1917_v15 = vld [vmem:[%s3641_s23] ss:$0 sm:$0xff]  ;;  %v3037_v16 = vld [vmem:[%s3641_s23 + $0x19] sm:$0x7f]  ;;  %s1103_s11 = smov [#allocation12]  ;;  %s1107_s30 = smov [#allocation14] }
 0x28c   : >>> { %1073 = vst [vmem:[%s3602_s27] sm:$0xff] %v1067_v3  ;;  %1074 = vst [vmem:[%s3613_s22] sm:$0xff] %v1070_v4  ;;  %v3038_v18 = vld [vmem:[%s3641_s23 + $0x18] ss:$0 sm:$0xff]  ;;  %v1926_v19 = vsel %vm4282_vm12, %v3034_v13, %v3037_v16  ;;  %v3040_v20 = vld [vmem:[%s3641_s23 + $0x11] sm:$0x7f]  ;;  %s1105_s27 = smov [#allocation13]  ;;  %s1109_s22 = smov [#allocation15] }
 0x28d   : >>> { %3029 = vst [vmem:[%s3619_s14 + $0x8] sm:$0xff] %v1891_v9  ;;  %3032 = vst [vmem:[%s3619_s14 + $0x10] sm:$0xff] %v1902_v10  ;;  %v3041_v21 = vld [vmem:[%s3641_s23 + $0x10] ss:$0 sm:$0xff]  ;;  %v3043_v22 = vld [vmem:[%s3641_s23 + $0x9] sm:$0x7f]  ;;  %v1935_v23 = vsel %vm4282_vm12, %v3038_v18, %v3040_v20 }
 0x28e   : >>> { %3035 = vst [vmem:[%s3619_s14 + $0x18] sm:$0xff] %v1913_v14  ;;  %3036 = vst [vmem:[%s3619_s14 + $0x1] sm:$0x1] %v1917_v15  ;;  %v1944_v25 = vsel %vm4282_vm12, %v3041_v21, %v3043_v22  ;;  %v3044_v26 = vld [vmem:[%s3641_s23 + $0x8] ss:$0 sm:$0xff] }
 0x28f   : >>> { %3039 = vst [vmem:[%s3641_s23 + $0x18] sm:$0xff] %v1926_v19  ;;  %v3046_v27 = vld [vmem:[%s3641_s23 + $0x1] sm:$0x7f]  ;;  %v1957_v28 = vld [vmem:[%s3652_s15] ss:$0 sm:$0xff]  ;;  %3042 = vst [vmem:[%s3641_s23 + $0x10] sm:$0xff] %v1935_v23 }
 0x290   : >>> { %3045 = vst [vmem:[%s3641_s23 + $0x8] sm:$0xff] %v1944_v25  ;;  %v1952_v29 = vsel %vm4282_vm12, %v3044_v26, %v3046_v27  ;;  %v3047_v30 = vld [vmem:[%s3652_s15 - $0x1] sm:$0xfe]  ;;  %v3048_v31 = vld [vmem:[%s3652_s15 + $0x7] ss:$0 sm:$0xff] }
 0x291   : >>> { %v3049_v32 = vld [vmem:[%s3652_s15 + $0x7] sm:$0xfe]  ;;  %1954 = vst [vmem:[%s3641_s23] sm:$0xff] %v1952_v29  ;;  %v1964_v33 = vsel %vm1581_vm11, %v1957_v28, %v3047_v30  ;;  %v3050_v35 = vld [vmem:[%s3652_s15 + $0xf] ss:$0 sm:$0xff]  ;;  %v3052_v36 = vld [vmem:[%s3652_s15 + $0xf] sm:$0xfe] }
 0x292   : >>> { %v1975_v34 = vsel %vm1581_vm11, %v3048_v31, %v3049_v32  ;;  %v3053_v37 = vld [vmem:[%s3652_s15 + $0x17] ss:$0 sm:$0xff]  ;;  %1967 = vst [vmem:[%s3652_s15] sm:$0xff] %v1964_v33  ;;  %v1986_v38 = vsel %vm1581_vm11, %v3050_v35, %v3052_v36  ;;  %v3055_v39 = vld [vmem:[%s3652_s15 + $0x17] sm:$0xfe]  ;;  %v3056_v40 = vld [vmem:[%s3652_s15 + $0x1f] ss:$0 sm:$0xff] }
 0x293   : >>> { %3051 = vst [vmem:[%s3652_s15 + $0x8] sm:$0xff] %v1975_v34  ;;  %v2001_v41 = vld [vmem:[%s3681_s24] ss:$0 sm:$0xff]  ;;  %3054 = vst [vmem:[%s3652_s15 + $0x10] sm:$0xff] %v1986_v38  ;;  %v1997_v42 = vsel %vm1581_vm11, %v3053_v37, %v3055_v39  ;;  %v3059_v43 = vld [vmem:[%s3681_s24 + $0x19] sm:$0x7f] }
 0x294   : >>> { %3058 = vst [vmem:[%s3652_s15 + $0x1] sm:$0x1] %v2001_v41  ;;  %v3060_v44 = vld [vmem:[%s3681_s24 + $0x18] ss:$0 sm:$0xff]  ;;  %v3062_v45 = vld [vmem:[%s3681_s24 + $0x11] sm:$0x7f]  ;;  %v2010_v46 = vsel %vm4282_vm12, %v3056_v40, %v3059_v43 }
 0x295   : >>> { %3057 = vst [vmem:[%s3652_s15 + $0x18] sm:$0xff] %v1997_v42  ;;  %v2019_v47 = vsel %vm4282_vm12, %v3060_v44, %v3062_v45  ;;  %v3063_v50 = vld [vmem:[%s3681_s24 + $0x10] ss:$0 sm:$0xff]  ;;  %v3065_v51 = vld [vmem:[%s3681_s24 + $0x9] sm:$0x7f]  ;;  %3061 = vst [vmem:[%s3681_s24 + $0x18] sm:$0xff] %v2010_v46 }
 0x296   : >>> { %v3066_v52 = vld [vmem:[%s3681_s24 + $0x8] ss:$0 sm:$0xff]  ;;  %3064 = vst [vmem:[%s3681_s24 + $0x10] sm:$0xff] %v2019_v47  ;;  %v2028_v53 = vsel %vm4282_vm12, %v3063_v50, %v3065_v51  ;;  %v3068_v54 = vld [vmem:[%s3681_s24 + $0x1] sm:$0x7f]  ;;  %v1214_v42 = vadd.s32 8, %v3762_v17 }
 0x297   : >>> { %v2867_v55 = vld [vmem:[%s3629_s29 + $0x8] sm:$0xff]  ;;  %3067 = vst [vmem:[%s3681_s24 + $0x8] sm:$0xff] %v2028_v53  ;;  %v2036_v57 = vsel %vm4282_vm12, %v3066_v52, %v3068_v54  ;;  %v1221_v43 = vadd.s32 16, %v3762_v17  ;;  %v3777_v17 = vmov %v3316_v17  ;;  %v1186_v44 = vadd.s32 16, %v1166_v17 }
 0x298   : >>> { %v2868_v56 = vld [vmem:[%s3631_s20 + $0x8] sm:$0xff]  ;;  %v1087_v58 = vmul.f32 %v2867_v55, %v3604_v48  ;;  %v1090_v60 = vmul.f32 %v2867_v55, %v3606_v49  ;;  %2038 = vst [vmem:[%s3681_s24] sm:$0xff] %v2036_v57  ;;  %v1194_v45 = vadd.s32 24, %v1166_v17  ;;  %v1248_v46 = vadd.s32 8, %v3777_v17 }
 0x299   : >>> { %v1088_v59 = vmul.f32 %v2868_v56, %v3606_v49  ;;  %v2869_v61 = vld [vmem:[%s3636_s16 + $0x8] sm:$0xff]  ;;  %v1091_v63 = vmul.f32 %v2868_v56, %v3604_v48  ;;  %v1255_v47 = vadd.s32 16, %v3777_v17  ;;  %v1262_v50 = vadd.s32 24, %v3777_v17 }
 0x29a   : >>> { %v2870_v62 = vld [vmem:[%s3638_s17 + $0x8] sm:$0xff]  ;;  %v1093_v0 = vmul.f32 %v2869_v61, %v3604_v48  ;;  %v1096_v2 = vmul.f32 %v2869_v61, %v3606_v49  ;;  %vm1215_vm14 = vcmp.eq.s32.totalorder %v1214_v42, %v1201_v24  ;;  %vm1222_vm15 = vcmp.eq.s32.totalorder %v1221_v43, %v1201_v24 }
 0x29b   : >>> { %v1094_v1 = vmul.f32 %v2870_v62, %v3606_v49  ;;  %v1089_v3 = vsub.f32 %v1087_v58, %v1088_v59  ;;  %v1097_v4 = vmul.f32 %v2870_v62, %v3604_v48  ;;  %v1092_v5 = vadd.f32 %v1091_v63, %v1090_v60 }
 0x29c   : >>> { %v3794_v24 = vmov %v3320_v24  ;;  %vm1187_vm3 = vcmp.eq.s32.totalorder %v1186_v44, %v1163_v24  ;;  %vm1195_vm4 = vcmp.eq.s32.totalorder %v1194_v45, %v1163_v24  ;;  %vm1242_vm5 = vcmp.eq.s32.totalorder %v3777_v17, %v3786_v24 }
 0x29d   : >>> { %v1095_v6 = vsub.f32 %v1093_v0, %v1094_v1  ;;  %2871 = vst [vmem:[%s3629_s29 + $0x8] sm:$0xff] %v1089_v3  ;;  %v1098_v7 = vadd.f32 %v1097_v4, %v1096_v2  ;;  %2872 = vst [vmem:[%s3631_s20 + $0x8] sm:$0xff] %v1092_v5  ;;  %s1131_s29 = smov [#allocation12]  ;;  %s1133_s20 = smov [#allocation13]  ;;  %vm1249_vm6 = vcmp.eq.s32.totalorder %v1248_v46, %v3786_v24 }
 0x29e   : >>> { %vm1256_vm7 = vcmp.eq.s32.totalorder %v1255_v47, %v3786_v24  ;;  %vm1263_vm9 = vcmp.eq.s32.totalorder %v1262_v50, %v3786_v24 }
 0x29f   : >>> { %2873 = vst [vmem:[%s3636_s16 + $0x8] sm:$0xff] %v1095_v6  ;;  %2874 = vst [vmem:[%s3638_s17 + $0x8] sm:$0xff] %v1098_v7  ;;  %s1135_s16 = smov [#allocation14]  ;;  %s1137_s17 = smov [#allocation15] }
 0x2a4   : >>> { %v2875_v8 = vld [vmem:[%s1103_s11 + $0x10] sm:$0xff] }
 0x2a5   : >>> { %v2876_v9 = vld [vmem:[%s1105_s27 + $0x10] sm:$0xff]  ;;  %v1115_v10 = vmul.f32 %v2875_v8, %v3604_v48  ;;  %v1118_v11 = vmul.f32 %v2875_v8, %v3606_v49 }
 0x2a6   : >>> { %v2877_v12 = vld [vmem:[%s1107_s30 + $0x10] sm:$0xff]  ;;  %v1116_v13 = vmul.f32 %v2876_v9, %v3606_v49  ;;  %v1119_v14 = vmul.f32 %v2876_v9, %v3604_v48 }
 0x2a7   : >>> { %v2878_v15 = vld [vmem:[%s1109_s22 + $0x10] sm:$0xff]  ;;  %v1121_v16 = vmul.f32 %v2877_v12, %v3604_v48  ;;  %v1124_v18 = vmul.f32 %v2877_v12, %v3606_v49 }
 0x2a8   : >>> { %v1122_v19 = vmul.f32 %v2878_v15, %v3606_v49  ;;  %v1125_v20 = vmul.f32 %v2878_v15, %v3604_v48  ;;  %v1117_v21 = vsub.f32 %v1115_v10, %v1116_v13  ;;  %v1120_v22 = vadd.f32 %v1119_v14, %v1118_v11 }
 0x2aa   : >>> { %v1123_v23 = vsub.f32 %v1121_v16, %v1122_v19  ;;  %v1126_v25 = vadd.f32 %v1125_v20, %v1124_v18  ;;  %2879 = vst [vmem:[%s1103_s11 + $0x10] sm:$0xff] %v1117_v21  ;;  %2880 = vst [vmem:[%s1105_s27 + $0x10] sm:$0xff] %v1120_v22  ;;  %s1160_s11 = smov [#allocation19]  ;;  %s3791_s27 = smov [#allocation13] }
 0x2ab   : >>> { %v1167_v53 = vld [vmem:[%s1160_s11] ss:$0 sm:$0xff]  ;;  %s3201_s11 = smov 1  }
 0x2ac   : >>> { %2881 = vst [vmem:[%s1107_s30 + $0x10] sm:$0xff] %v1123_v23  ;;  %2882 = vst [vmem:[%s1109_s22 + $0x10] sm:$0xff] %v1126_v25  ;;  %s1267_s30 = smov [#allocation20]  ;;  %s3799_s22 = smov [#allocation12] }
 0x2ad   : >>> { %v1274_v58 = vld [vmem:[%s1267_s30] ss:$0 sm:$0xff]  ;;  %s3896_s30 = smov [#allocation14] }
 0x2b1   : >>> { %v2883_v26 = vld [vmem:[%s1131_s29 + $0x18] sm:$0xff] }
 0x2b2   : >>> { %v2884_v27 = vld [vmem:[%s1133_s20 + $0x18] sm:$0xff]  ;;  %v1146_v29 = vmul.f32 %v2883_v26, %v3606_v49  ;;  %v1143_v31 = vmul.f32 %v2883_v26, %v3604_v48 }
 0x2b3   : >>> { %v1144_v28 = vmul.f32 %v2884_v27, %v3606_v49  ;;  %v1147_v30 = vmul.f32 %v2884_v27, %v3604_v48  ;;  %v2885_v32 = vld [vmem:[%s1135_s16 + $0x18] sm:$0xff] }
 0x2b4   : >>> { %v2886_v33 = vld [vmem:[%s1137_s17 + $0x18] sm:$0xff]  ;;  %v1149_v34 = vmul.f32 %v2885_v32, %v3604_v48  ;;  %v1152_v36 = vmul.f32 %v2885_v32, %v3606_v49 }
 0x2b5   : >>> { %v1150_v35 = vmul.f32 %v2886_v33, %v3606_v49  ;;  %v1153_v37 = vmul.f32 %v2886_v33, %v3604_v48  ;;  %v1148_v38 = vadd.f32 %v1147_v30, %v1146_v29  ;;  %v1145_v39 = vsub.f32 %v1143_v31, %v1144_v28 }
 0x2b6   : >>> { %v1228_v49 = vadd.s32 24, %v3762_v17  ;;  %v1178_v48 = vadd.s32 8, %v1166_v17  ;;  %v3781_v17 = vmov %v3316_v17 }
 0x2b7   : >>> { %v1151_v40 = vsub.f32 %v1149_v34, %v1150_v35  ;;  %v1154_v41 = vadd.f32 %v1153_v37, %v1152_v36  ;;  %2888 = vst [vmem:[%s1133_s20 + $0x18] sm:$0xff] %v1148_v38  ;;  %2887 = vst [vmem:[%s1131_s29 + $0x18] sm:$0xff] %v1145_v39  ;;  %v3797_v51 = vadd.s32 8, %v3781_v17  ;;  %v1293_v52 = vadd.s32 16, %v3781_v17  ;;  %s3802_s29 = smov [#allocation14]  ;;  %s3813_s20 = smov [#allocation15] }
 0x2b8   : >>> { %vm1229_vm0 = vcmp.eq.s32.totalorder %v1228_v49, %v1201_v24  ;;  %vm1179_vm2 = vcmp.eq.s32.totalorder %v1178_v48, %v1163_v24  ;;  %v1301_v54 = vadd.s32 24, %v3781_v17  ;;  %vm1278_vm10 = vcmp.eq.s32.totalorder %v3781_v17, %v3794_v24 }
 0x2b9   : >>> { %2889 = vst [vmem:[%s1135_s16 + $0x18] sm:$0xff] %v1151_v40  ;;  %2890 = vst [vmem:[%s1137_s17 + $0x18] sm:$0xff] %v1154_v41  ;;  %vm1286_vm12 = vcmp.eq.s32.totalorder %v3797_v51, %v3794_v24  ;;  %s3877_s16 = smov [#allocation13]  ;;  %s3880_s17 = smov [#allocation12] }
 0x2be   : >>> { %v1205_v55 = vld [vmem:[%s3791_s27] sm:$0xff]  ;;  %v2897_v56 = vld [vmem:[%s3791_s27 + $0x8] sm:$0xff]  ;;  %v2899_v57 = vld [vmem:[%s3791_s27 + $0x10] sm:$0xff] }
 0x2bf   : >>> { %v1209_v59 = vsel %vm1208_vm13, 0.0, %v1205_v55  ;;  %v1216_v60 = vsel %vm1215_vm14, 0.0, %v2897_v56  ;;  %v1223_v61 = vsel %vm1222_vm15, 0.0, %v2899_v57  ;;  %v2901_v62 = vld [vmem:[%s3791_s27 + $0x18] sm:$0xff]  ;;  %v1168_v63 = vld [vmem:[%s3799_s22] sm:$0xff]  ;;  %v2891_v0 = vld [vmem:[%s3799_s22 + $0x8] sm:$0xff]  ;;  %vm1294_vm13 = vcmp.eq.s32.totalorder %v1293_v52, %v3794_v24 }
 0x2c0   : >>> { %1210 = vst [vmem:[%s3791_s27] sm:$0xff] %v1209_v59  ;;  %2898 = vst [vmem:[%s3791_s27 + $0x8] sm:$0xff] %v1216_v60  ;;  %v1230_v1 = vsel %vm1229_vm0, 0.0, %v2901_v62  ;;  %v1172_v2 = vsel %vm1171_vm1, %v1167_v53, %v1168_v63  ;;  %v1180_v3 = vsel %vm1179_vm2, %v1167_v53, %v2891_v0  ;;  %v2893_v4 = vld [vmem:[%s3799_s22 + $0x10] sm:$0xff]  ;;  %v2895_v5 = vld [vmem:[%s3799_s22 + $0x18] sm:$0xff]  ;;  %vm1302_vm14 = vcmp.eq.s32.totalorder %v1301_v54, %v3794_v24 }
 0x2c1   : >>> { %2900 = vst [vmem:[%s3791_s27 + $0x10] sm:$0xff] %v1223_v61  ;;  %v1239_v6 = vld [vmem:[%s3802_s29] sm:$0xff]  ;;  %2902 = vst [vmem:[%s3791_s27 + $0x18] sm:$0xff] %v1230_v1  ;;  %v1188_v7 = vsel %vm1187_vm3, %v1167_v53, %v2893_v4  ;;  %v1196_v8 = vsel %vm1195_vm4, %v1167_v53, %v2895_v5  ;;  %v2903_v10 = vld [vmem:[%s3802_s29 + $0x8] sm:$0xff]  ;;  %s3887_s27 = smov [#allocation12]  ;;  %vm1320_vm15 = vcmp.eq.s32.totalorder %v3320_v24, 1 }
 0x2c2   : >>> { %1173 = vst [vmem:[%s3799_s22] sm:$0xff] %v1172_v2  ;;  %2892 = vst [vmem:[%s3799_s22 + $0x8] sm:$0xff] %v1180_v3  ;;  %v1243_v9 = vsel %vm1242_vm5, 0.0, %v1239_v6  ;;  %v2905_v11 = vld [vmem:[%s3802_s29 + $0x10] sm:$0xff]  ;;  %v2907_v12 = vld [vmem:[%s3802_s29 + $0x18] sm:$0xff]  ;;  %v1250_v13 = vsel %vm1249_vm6, 0.0, %v2903_v10  ;;  %vm1333_vm0 = vcmp.eq.s32.totalorder %v3320_v24, 31 }
 0x2c3   : >>> { %2894 = vst [vmem:[%s3799_s22 + $0x10] sm:$0xff] %v1188_v7  ;;  %2896 = vst [vmem:[%s3799_s22 + $0x18] sm:$0xff] %v1196_v8  ;;  %v1257_v14 = vsel %vm1256_vm7, 0.0, %v2905_v11  ;;  %v1264_v15 = vsel %vm1263_vm9, 0.0, %v2907_v12  ;;  %v1275_v16 = vld [vmem:[%s3813_s20] sm:$0xff]  ;;  %v2909_v18 = vld [vmem:[%s3813_s20 + $0x8] sm:$0xff] }
 0x2c4   : >>> { %1244 = vst [vmem:[%s3802_s29] sm:$0xff] %v1243_v9  ;;  %v2911_v19 = vld [vmem:[%s3813_s20 + $0x10] sm:$0xff]  ;;  %2904 = vst [vmem:[%s3802_s29 + $0x8] sm:$0xff] %v1250_v13  ;;  %v1279_v20 = vsel %vm1278_vm10, %v1274_v58, %v1275_v16  ;;  %v1287_v21 = vsel %vm1286_vm12, %v1274_v58, %v2909_v18  ;;  %v2913_v23 = vld [vmem:[%s3813_s20 + $0x18] sm:$0xff]  ;;  %s4283_s22 = smov 127   ;;  %vm1316_vm12 = vcmp.eq.s32.totalorder %v3320_v24, 0  ;;  %vm4303_vm1 = vcmp.eq.s32.totalorder %v3316_v17, 7 }
 0x2c5   : >>> { %2906 = vst [vmem:[%s3802_s29 + $0x10] sm:$0xff] %v1257_v14  ;;  %2908 = vst [vmem:[%s3802_s29 + $0x18] sm:$0xff] %v1264_v15  ;;  %v1295_v22 = vsel %vm1294_vm13, %v1274_v58, %v2911_v19  ;;  %v1303_v25 = vsel %vm1302_vm14, %v1274_v58, %v2913_v23  ;;  %s3899_s29 = smov [#allocation12]  ;;  %v435_v17 = vmov (%p624_p9), %v3316_v17  ;;  %v481_v24 = vmov (%p624_p9), %v3320_v24 }
 0x2c6   : >>> { %1280 = vst [vmem:[%s3813_s20] sm:$0xff] %v1279_v20  ;;  %2910 = vst [vmem:[%s3813_s20 + $0x8] sm:$0xff] %v1287_v21  ;;  %v484_v17 = vmov (%p624_p9), %v3316_v17  ;;  %v432_v24 = vmov (%p624_p9), %v3320_v24 }
 0x2c7   : >>> { %2912 = vst [vmem:[%s3813_s20 + $0x10] sm:$0xff] %v1295_v22  ;;  %2914 = vst [vmem:[%s3813_s20 + $0x18] sm:$0xff] %v1303_v25  ;;  %s3909_s20 = smov [#allocation13]  ;;  %vm447_vm9 = vcmp.eq.s32.totalorder (%p624_p9), %v435_v17, %v432_v24 }
 0x2c8   : >>> { %v1307_v26 = vld [vmem:[%s3877_s16] sm:$0xff]  ;;  %v2915_v31 = vld [vmem:[%s3909_s20 + $0x8] sm:$0xff]  ;;  %v2919_v34 = vld [vmem:[%s3924_s0 + $0x10] sm:$0xff] }
 0x2c9   : >>> { %1308 = vrot.lane.b32.xlu1 %v1307_v26, %s3201_s11  ;;  %v2923_v38 = vld [vmem:[%s3948_s10 + $0x18] sm:$0xff]  ;;  %vm4305_vm2 = vmmov %vm4303_vm1 }
 0x2ca   : >>> { %v3885_v27 = vld [vmem:[%s3880_s17] sm:$0xff]  ;;  %v3892_v28 = vld [vmem:[%s3887_s27 + $0x8] sm:$0xff]  ;;  %v3907_v30 = vld [vmem:[%s3899_s29 + $0x10] sm:$0xff] }
 0x2cb   : >>> { %1312 = vrot.lane.b32.xlu0 %v3885_v27, %s3201_s11  ;;  %v3937_v35 = vld [vmem:[%s3931_s2 + $0x18] sm:$0xff]  ;;  %vm4306_vm3 = vmmov %vm4303_vm1 }
 0x2cc   : >>> { %v3902_v29 = vld [vmem:[%s3896_s30] sm:$0xff]  ;;  %v3918_v32 = vld [vmem:[%s3913_s21 + $0x8] sm:$0xff]  ;;  %v3942_v36 = vld [vmem:[%s3934_s3 + $0x10] sm:$0xff] }
 0x2cd   : >>> { %1344 = vrot.lane.b32.xlu1 %v3892_v28, %s3201_s11  ;;  %v3966_v40 = vld [vmem:[%s3960_s9 + $0x18] sm:$0xff]  ;;  %vm4307_vm4 = vmmov %vm4303_vm1 }
 0x2ce   : >>> { %v2933_v37 = vld [vmem:[%s3944_s18 + $0x8] sm:$0xff]  ;;  %v2937_v39 = vld [vmem:[%s3954_s13 + $0x10] sm:$0xff]  ;;  %v2941_v41 = vld [vmem:[%s3963_s8 + $0x18] sm:$0xff] }
 0x2cf   : >>> { %1329 = vrot.lane.b32.xlu0 %v1307_v26, %s4283_s22  ;;  %s3920_s22 = smov [#allocation15]  ;;  %vm4308_vm5 = vmmov %vm4303_vm1 }
 0x2d0   : >>> { %v1441_v33 = vld [vmem:[%s3920_s22] sm:$0xff]  ;;  %vm4309_vm6 = vmmov %vm4303_vm1 }
 0x2d1   : >>> { %1446 = vrot.lane.b32.xlu1 %v3902_v29, %s3201_s11  ;;  %vm4310_vm7 = vmmov %vm4303_vm1 }
 0x2d3   : >>> { %1376 = vrot.lane.b32.xlu0 %v3907_v30, %s3201_s11 }
 0x2d5   : >>> { %1340 = vrot.lane.b32.xlu1 %v2915_v31, %s3201_s11 }
 0x2d7   : >>> { %1478 = vrot.lane.b32.xlu0 %v3918_v32, %s3201_s11 }
 0x2d9   : >>> { %1442 = vrot.lane.b32.xlu1 %v1441_v33, %s3201_s11 }
 0x2db   : >>> { %1372 = vrot.lane.b32.xlu0 %v2919_v34, %s3201_s11 }
 0x2dd   : >>> { %1361 = vrot.lane.b32.xlu1 %v2915_v31, %s4302_s1 }
 0x2df   : >>> { %1463 = vrot.lane.b32.xlu0 %v1441_v33, %s4302_s1 }
 0x2e1   : >>> { %1408 = vrot.lane.b32.xlu1 %v3937_v35, %s3201_s11 }
 0x2e3   : >>> { %1510 = vrot.lane.b32.xlu0 %v3942_v36, %s3201_s11 }
 0x2e5   : >>> { %1474 = vrot.lane.b32.xlu1 %v2933_v37, %s3201_s11 }
 0x2e7   : >>> { %1404 = vrot.lane.b32.xlu0 %v2923_v38, %s3201_s11 }
 0x2e9   : >>> { %1393 = vrot.lane.b32.xlu1 %v2919_v34, %s4302_s1 }
 0x2eb   : >>> { %1506 = vrot.lane.b32.xlu0 %v2937_v39, %s3201_s11 }
 0x2ed   : >>> { %1495 = vrot.lane.b32.xlu1 %v2933_v37, %s4302_s1 }
 0x2ef   : >>> { %1425 = vrot.lane.b32.xlu0 %v2923_v38, %s4302_s1 }
 0x2f1   : >>> { %1542 = vrot.lane.b32.xlu1 %v3966_v40, %s3201_s11 }
 0x2f3   : >>> { %1538 = vrot.lane.b32.xlu0 %v2941_v41, %s3201_s11 }
 0x2f5   : >>> { %1527 = vrot.lane.b32.xlu1 %v2937_v39, %s4302_s1 }
 0x2f9   : >>> { %1559 = vrot.lane.b32.xlu1 %v2941_v41, %s4302_s1  ;;  %s4048_s1 = smov [#allocation12] }
 0x33b   : >>> { %v1309_v42 = vpop.permute.xlu1 %1308 }
 0x33d   : >>> { %v1313_v43 = vpop.permute.xlu0 %1312 }
 0x33e   : >>> { %v1317_v49 = vsel %vm1316_vm12, %v3885_v27, %v1313_v43 }
 0x33f   : >>> { %v1321_v48 = vsel %vm1320_vm15, %v1309_v42, %v1317_v49  ;;  %v1345_v45 = vpop.permute.xlu1 %1344 }
 0x340   : >>> { %v1327_v44 = vsel %vm2541_vm8, %v1321_v48, 0.0  ;;  %v1349_v52 = vsel %vm1316_vm12, %v3892_v28, %v1345_v45 }
 0x341   : >>> { %v1330_v46 = vpop.permute.xlu0 %1329  ;;  %1431 = vst [vmem:[%s3880_s17] sm:$0xff] %v1327_v44 }
 0x342   : >>> { %v1334_v47 = vsel %vm1333_vm0, %v3885_v27, %v1330_v46 }
 0x343   : >>> { %1432 = vst [vmem:[%s3877_s16] sm:$0xff] %v1334_v47  ;;  %v1447_v50 = vpop.permute.xlu1 %1446 }
 0x344   : >>> { %v1451_v57 = vsel %vm1316_vm12, %v3902_v29, %v1447_v50 }
 0x345   : >>> { %v1377_v51 = vpop.permute.xlu0 %1376 }
 0x346   : >>> { %v1381_v59 = vsel %vm1316_vm12, %v3907_v30, %v1377_v51 }
 0x347   : >>> { %v1341_v53 = vpop.permute.xlu1 %1340 }
 0x348   : >>> { %v1353_v54 = vsel %vm1320_vm15, %v1341_v53, %v1349_v52 }
 0x349   : >>> { %v1479_v55 = vpop.permute.xlu0 %1478  ;;  %v1359_v56 = vsel %vm2541_vm8, %v1353_v54, 0.0 }
 0x34a   : >>> { %2927 = vst [vmem:[%s3887_s27 + $0x8] sm:$0xff] %v1359_v56  ;;  %v1483_v7 = vsel %vm1316_vm12, %v3918_v32, %v1479_v55 }
 0x34b   : >>> { %v1443_v58 = vpop.permute.xlu1 %1442 }
 0x34c   : >>> { %v1455_v60 = vsel %vm1320_vm15, %v1443_v58, %v1451_v57 }
 0x34d   : >>> { %v1373_v61 = vpop.permute.xlu0 %1372  ;;  %v1461_v62 = vsel %vm2541_vm8, %v1455_v60, 0.0 }
 0x34e   : >>> { %v1385_v63 = vsel %vm1320_vm15, %v1373_v61, %v1381_v59  ;;  %1565 = vst [vmem:[%s3896_s30] sm:$0xff] %v1461_v62 }
 0x34f   : >>> { %v1391_v0 = vsel %vm2541_vm8, %v1385_v63, 0.0  ;;  %v1362_v1 = vpop.permute.xlu1 %1361 }
 0x350   : >>> { %2929 = vst [vmem:[%s3899_s29 + $0x10] sm:$0xff] %v1391_v0  ;;  %v1366_v2 = vsel %vm1333_vm0, %v3892_v28, %v1362_v1 }
 0x351   : >>> { %v1464_v3 = vpop.permute.xlu0 %1463  ;;  %2928 = vst [vmem:[%s3909_s20 + $0x8] sm:$0xff] %v1366_v2 }
 0x352   : >>> { %v1468_v4 = vsel %vm1333_vm0, %v3902_v29, %v1464_v3 }
 0x353   : >>> { %1566 = vst [vmem:[%s3920_s22] sm:$0xff] %v1468_v4  ;;  %v1409_v5 = vpop.permute.xlu1 %1408 }
 0x354   : >>> { %v1413_v9 = vsel %vm1316_vm12, %v3937_v35, %v1409_v5 }
 0x355   : >>> { %v1511_v6 = vpop.permute.xlu0 %1510 }
 0x356   : >>> { %v1515_v16 = vsel %vm1316_vm12, %v3942_v36, %v1511_v6 }
 0x357   : >>> { %v1475_v8 = vpop.permute.xlu1 %1474 }
 0x358   : >>> { %v1487_v10 = vsel %vm1320_vm15, %v1475_v8, %v1483_v7 }
 0x359   : >>> { %v1405_v11 = vpop.permute.xlu0 %1404  ;;  %v1493_v12 = vsel %vm2541_vm8, %v1487_v10, 0.0 }
 0x35a   : >>> { %v1417_v13 = vsel %vm1320_vm15, %v1405_v11, %v1413_v9  ;;  %2945 = vst [vmem:[%s3913_s21 + $0x8] sm:$0xff] %v1493_v12 }
 0x35b   : >>> { %v1423_v14 = vsel %vm2541_vm8, %v1417_v13, 0.0  ;;  %v1394_v15 = vpop.permute.xlu1 %1393 }
 0x35c   : >>> { %2931 = vst [vmem:[%s3931_s2 + $0x18] sm:$0xff] %v1423_v14  ;;  %v1398_v18 = vsel %vm1333_vm0, %v3907_v30, %v1394_v15  ;;  %s4093_s2 = smov [#allocation14] }
 0x35d   : >>> { %v1507_v19 = vpop.permute.xlu0 %1506  ;;  %2930 = vst [vmem:[%s3924_s0 + $0x10] sm:$0xff] %v1398_v18  ;;  %s4084_s0 = smov [#allocation13] }
 0x35e   : >>> { %v1519_v20 = vsel %vm1320_vm15, %v1507_v19, %v1515_v16 }
 0x35f   : >>> { %v1525_v21 = vsel %vm2541_vm8, %v1519_v20, 0.0  ;;  %v1496_v22 = vpop.permute.xlu1 %1495 }
 0x360   : >>> { %2947 = vst [vmem:[%s3934_s3 + $0x10] sm:$0xff] %v1525_v21  ;;  %v1500_v23 = vsel %vm1333_vm0, %v3918_v32, %v1496_v22  ;;  %s1658_s3 = smov [#allocation15] }
 0x361   : >>> { %v1426_v25 = vpop.permute.xlu0 %1425  ;;  %2946 = vst [vmem:[%s3944_s18 + $0x8] sm:$0xff] %v1500_v23  ;;  %s555_s18 = smov (%p624_p9), [#allocation15] }
 0x362   : >>> { %v1430_v26 = vsel %vm1333_vm0, %v3937_v35, %v1426_v25 }
 0x363   : >>> { %2932 = vst [vmem:[%s3948_s10 + $0x18] sm:$0xff] %v1430_v26  ;;  %v1575_v27 = vld [vmem:[%s4048_s1] ss:$0 sm:$0xff]  ;;  %v2952_v29 = vld [vmem:[%s4048_s1 + $0x7] ss:$0 sm:$0xff]  ;;  %v1543_v34 = vpop.permute.xlu1 %1542  ;;  %s485_s10 = smov (%p624_p9), [#allocation13] }
 0x364   : >>> { %v2951_v28 = vld [vmem:[%s4048_s1 - $0x1] sm:$0xfe]  ;;  %v2953_v31 = vld [vmem:[%s4048_s1 + $0x7] sm:$0xfe]  ;;  %v2954_v32 = vld [vmem:[%s4048_s1 + $0xf] ss:$0 sm:$0xff]  ;;  %v1547_v42 = vsel %vm1316_vm12, %v3966_v40, %v1543_v34 }
 0x365   : >>> { %v1582_v30 = vsel %vm1581_vm11, %v1575_v27, %v2951_v28  ;;  %v2956_v33 = vld [vmem:[%s4048_s1 + $0xf] sm:$0xfe]  ;;  %v1593_v37 = vsel %vm1581_vm11, %v2952_v29, %v2953_v31  ;;  %v2957_v38 = vld [vmem:[%s4048_s1 + $0x17] ss:$0 sm:$0xff]  ;;  %v2959_v39 = vld [vmem:[%s4048_s1 + $0x17] sm:$0xfe]  ;;  %v1539_v43 = vpop.permute.xlu0 %1538 }
 0x366   : >>> { %1585 = vst [vmem:[%s4048_s1] sm:$0xff] %v1582_v30  ;;  %v1604_v35 = vsel %vm1581_vm11, %v2954_v32, %v2956_v33  ;;  %v2960_v41 = vld [vmem:[%s4048_s1 + $0x1f] ss:$0 sm:$0xff]  ;;  %2955 = vst [vmem:[%s4048_s1 + $0x8] sm:$0xff] %v1593_v37  ;;  %v1615_v49 = vsel %vm1581_vm11, %v2957_v38, %v2959_v39  ;;  %v1551_v48 = vsel %vm1320_vm15, %v1539_v43, %v1547_v42 }
 0x367   : >>> { %2958 = vst [vmem:[%s4048_s1 + $0x10] sm:$0xff] %v1604_v35  ;;  %2961 = vst [vmem:[%s4048_s1 + $0x18] sm:$0xff] %v1615_v49  ;;  %v1557_v44 = vsel %vm2541_vm8, %v1551_v48, 0.0  ;;  %v1528_v45 = vpop.permute.xlu1 %1527  ;;  %v454_v49 = vadd.s32 (%p624_p9), 8, %v435_v17 }
 0x368   : >>> { %2949 = vst [vmem:[%s3960_s9 + $0x18] sm:$0xff] %v1557_v44  ;;  %v1532_v46 = vsel %vm1333_vm0, %v3942_v36, %v1528_v45  ;;  %s436_s9 = smov (%p624_p9), [#allocation12] }
 0x369   : >>> { %2948 = vst [vmem:[%s3954_s13 + $0x10] sm:$0xff] %v1532_v46  ;;  %s4171_s13 = smov (%p624_p9), [#allocation14]  ;;  %vm455_vm10 = vcmp.eq.s32.totalorder (%p624_p9), %v454_v49, %v432_v24 }
 0x36a   : >>> { %v1659_v47 = vld [vmem:[%s4084_s0] ss:$0 sm:$0xff]  ;;  %v2974_v51 = vld [vmem:[%s4084_s0 + $0x7] ss:$0 sm:$0xff]  ;;  %v2975_v53 = vld [vmem:[%s4084_s0 + $0x7] sm:$0xfe] }
 0x36b   : >>> { %v2973_v50 = vld [vmem:[%s4084_s0 - $0x1] sm:$0xfe]  ;;  %v2976_v54 = vld [vmem:[%s4084_s0 + $0xf] ss:$0 sm:$0xff]  ;;  %v2978_v55 = vld [vmem:[%s4084_s0 + $0xf] sm:$0xfe]  ;;  %v1677_v36 = vsel %vm1581_vm11, %v2974_v51, %v2975_v53  ;;  %v1560_v60 = vpop.permute.xlu1 %1559 }
 0x36c   : >>> { %v1666_v52 = vsel %vm1581_vm11, %v1659_v47, %v2973_v50  ;;  %v1688_v56 = vsel %vm1581_vm11, %v2976_v54, %v2978_v55  ;;  %v2979_v57 = vld [vmem:[%s4084_s0 + $0x17] ss:$0 sm:$0xff]  ;;  %v2981_v58 = vld [vmem:[%s4084_s0 + $0x17] sm:$0xfe]  ;;  %v2982_v59 = vld [vmem:[%s4084_s0 + $0x1f] ss:$0 sm:$0xff]  ;;  %v1564_v62 = vsel %vm1333_vm0, %v3966_v40, %v1560_v60 }
 0x36d   : >>> { %1669 = vst [vmem:[%s4084_s0] sm:$0xff] %v1666_v52  ;;  %2977 = vst [vmem:[%s4084_s0 + $0x8] sm:$0xff] %v1677_v36  ;;  %v1699_v61 = vsel %vm1581_vm11, %v2979_v57, %v2981_v58  ;;  %v474_v60 = vadd.s32 (%p624_p9), 24, %v435_v17 }
 0x36e   : >>> { %2980 = vst [vmem:[%s4084_s0 + $0x10] sm:$0xff] %v1688_v56  ;;  %2983 = vst [vmem:[%s4084_s0 + $0x18] sm:$0xff] %v1699_v61 }
 0x36f   : >>> { %2950 = vst [vmem:[%s3963_s8 + $0x18] sm:$0xff] %v1564_v62  ;;  %v1619_v63 = vld [vmem:[%s4093_s2] ss:$0 sm:$0xff]  ;;  %v2963_v0 = vld [vmem:[%s4093_s2 + $0x19] sm:$0x7f]  ;;  %vm4304_vm11 = vmmov %vm4303_vm1  ;;  %s2039_s8 = sadd.s32 (%p624_p9), 1, %s3194_s25   ;;  %vm475_vm14 = vcmp.eq.s32.totalorder (%p624_p9), %v474_v60, %v432_v24 }
 0x370   : >>> { %v2964_v1 = vld [vmem:[%s4093_s2 + $0x18] ss:$0 sm:$0xff]  ;;  %2962 = vst [vmem:[%s4048_s1 + $0x1] sm:$0x1] %v1619_v63  ;;  %v1628_v2 = vsel %vm4303_vm1, %v2960_v41, %v2963_v0  ;;  %v2966_v3 = vld [vmem:[%s4093_s2 + $0x11] sm:$0x7f]  ;;  %s4311_s25 = smov (%p624_p9), %s2039_s8 }
 0x371   : >>> { %v2967_v4 = vld [vmem:[%s4093_s2 + $0x10] ss:$0 sm:$0xff]  ;;  %v2969_v5 = vld [vmem:[%s4093_s2 + $0x9] sm:$0x7f]  ;;  %2965 = vst [vmem:[%s4093_s2 + $0x18] sm:$0xff] %v1628_v2  ;;  %v1637_v40 = vsel %vm4304_vm11, %v2964_v1, %v2966_v3  ;;  %p620_p10 = scmp.ge.s32.totalorder (%p624_p9), %s2039_s8, 15 }
 0x372   : >>> { %v1646_v6 = vsel %vm4305_vm2, %v2967_v4, %v2969_v5  ;;  %v2970_v7 = vld [vmem:[%s4093_s2 + $0x8] ss:$0 sm:$0xff]  ;;  %v2972_v8 = vld [vmem:[%s4093_s2 + $0x1] sm:$0x7f]  ;;  %2968 = vst [vmem:[%s4093_s2 + $0x10] sm:$0xff] %v1637_v40 }
 0x373   : >>> { %2971 = vst [vmem:[%s4093_s2 + $0x8] sm:$0xff] %v1646_v6  ;;  %v1654_v9 = vsel %vm4306_vm3, %v2970_v7, %v2972_v8 }
 0x374   : >>> { %1656 = vst [vmem:[%s4093_s2] sm:$0xff] %v1654_v9 }
 0x375   : >> { %626 = sbr.rel (!%p624_p9) target bundleno = 323 (0x143), region = 581 }
 0x376   : >>> { %v1703_v10 = vld [vmem:[%s1658_s3] ss:$0 sm:$0xff]  ;;  %v2985_v11 = vld [vmem:[%s1658_s3 + $0x19] sm:$0x7f]  ;;  %v2986_v12 = vld [vmem:[%s1658_s3 + $0x18] ss:$0 sm:$0xff] }
 0x377   : >>> { %2984 = vst [vmem:[%s4084_s0 + $0x1] sm:$0x1] %v1703_v10  ;;  %v1712_v13 = vsel %vm4307_vm4, %v2982_v59, %v2985_v11  ;;  %v2988_v14 = vld [vmem:[%s1658_s3 + $0x11] sm:$0x7f]  ;;  %v2989_v15 = vld [vmem:[%s1658_s3 + $0x10] ss:$0 sm:$0xff] }
 0x378   : >>> { %v2991_v16 = vld [vmem:[%s1658_s3 + $0x9] sm:$0x7f]  ;;  %2987 = vst [vmem:[%s1658_s3 + $0x18] sm:$0xff] %v1712_v13  ;;  %v1721_v18 = vsel %vm4308_vm5, %v2986_v12, %v2988_v14  ;;  %v2992_v20 = vld [vmem:[%s1658_s3 + $0x8] ss:$0 sm:$0xff]  ;;  %v442_v23 = vld [vmem:[%s436_s9] sm:$0xff] (%p624_p9) }
 0x379   : >>> { %v1730_v19 = vsel %vm4309_vm6, %v2989_v15, %v2991_v16  ;;  %v2994_v21 = vld [vmem:[%s1658_s3 + $0x1] sm:$0x7f]  ;;  %2990 = vst [vmem:[%s1658_s3 + $0x10] sm:$0xff] %v1721_v18  ;;  %v3069_v25 = vld [vmem:[%s436_s9 + $0x8] sm:$0xff] (%p624_p9)  ;;  %v3070_v26 = vld [vmem:[%s436_s9 + $0x10] sm:$0xff] (%p624_p9)  ;;  %v443_v27 = vsel (%p624_p9), %vm2541_vm8, %v442_v23, 0.0 }
 0x37a   : >>> { %2993 = vst [vmem:[%s1658_s3 + $0x8] sm:$0xff] %v1730_v19  ;;  %v1738_v22 = vsel %vm4310_vm7, %v2992_v20, %v2994_v21  ;;  %v451_v28 = vsel (%p624_p9), %vm2541_vm8, %v3069_v25, 0.0  ;;  %v461_v29 = vsel (%p624_p9), %vm2541_vm8, %v3070_v26, 0.0  ;;  %v3071_v30 = vld [vmem:[%s436_s9 + $0x18] sm:$0xff] (%p624_p9)  ;;  %v444_v32 = vmul.f32 (%p624_p9), %v443_v27, %v443_v27 }
 0x37b   : >>> { %1740 = vst [vmem:[%s1658_s3] sm:$0xff] %v1738_v22  ;;  %v452_v33 = vmul.f32 (%p624_p9), %v451_v28, %v451_v28  ;;  %v462_v34 = vmul.f32 (%p624_p9), %v461_v29, %v461_v29  ;;  %v471_v37 = vsel (%p624_p9), %vm2541_vm8, %v3071_v30, 0.0  ;;  %v526_v51 = vld [vmem:[%s4171_s13] sm:$0xff] (%p624_p9)  ;;  %v3075_v53 = vld [vmem:[%s4171_s13 + $0x8] sm:$0xff] (%p624_p9)  ;;  %v464_v59 = vadd.s32 (%p624_p9), 16, %v435_v17  ;;  %v3076_v0 = vld [vmem:[%s4171_s13 + $0x10] sm:$0xff] (%p624_p9) }
 0x37c   : >> { %v472_v41 = vmul.f32 %v471_v37, %v471_v37  ;;  %v448_v54 = vsel %vm447_vm9, 0.0, %v444_v32  ;;  %v527_v57 = vsel %vm2541_vm8, %v526_v51, 0.0  ;;  %v533_v63 = vsel %vm2541_vm8, %v3075_v53, 0.0  ;;  %v3077_v3 = vld [vmem:[%s4171_s13 + $0x18] sm:$0xff] }
 0x37d   : >> { %v458_v39 = vadd.f32 %v452_v33, %v444_v32  ;;  %v456_v56 = vsel %vm455_vm10, 0.0, %v452_v33  ;;  %vm465_vm13 = vcmp.eq.s32.totalorder %v464_v59, %v432_v24  ;;  %v516_v24 = vmov %v3320_v24 }
 0x37e   : >> { %v491_v31 = vld [vmem:[%s485_s10] sm:$0xff]  ;;  %v3072_v35 = vld [vmem:[%s485_s10 + $0x8] sm:$0xff]  ;;  %v3073_v42 = vld [vmem:[%s485_s10 + $0x10] sm:$0xff]  ;;  %v457_v58 = vadd.f32 %v456_v56, %v448_v54  ;;  %v519_v17 = vmov %v3316_v17  ;;  %v528_v2 = vmul.f32 %v527_v57, %v527_v57  ;;  %v466_v4 = vsel %vm465_vm13, 0.0, %v462_v34 }
 0x37f   : >> { %v492_v38 = vsel %vm2541_vm8, %v491_v31, 0.0  ;;  %v498_v43 = vsel %vm2541_vm8, %v3072_v35, 0.0  ;;  %v468_v48 = vadd.f32 %v462_v34, %v458_v39  ;;  %v3074_v45 = vld [vmem:[%s485_s10 + $0x18] sm:$0xff]  ;;  %v504_v46 = vsel %vm2541_vm8, %v3073_v42, 0.0 }
 0x380   : >> { %v493_v44 = vmul.f32 %v492_v38, %v492_v38  ;;  %v499_v50 = vmul.f32 %v498_v43, %v498_v43  ;;  %v510_v52 = vsel %vm2541_vm8, %v3074_v45, 0.0  ;;  %v505_v36 = vmul.f32 %v504_v46, %v504_v46 }
 0x381   : >> { %v478_v47 = vadd.f32 %v472_v41, %v468_v48  ;;  %v511_v62 = vmul.f32 %v510_v52, %v510_v52  ;;  %v476_v5 = vsel %vm475_vm14, 0.0, %v472_v41  ;;  %v539_v40 = vsel %vm2541_vm8, %v3076_v0, 0.0 }
 0x382   : >> { %v467_v6 = vadd.f32 %v466_v4, %v457_v58  ;;  %v534_v8 = vmul.f32 %v533_v63, %v533_v63  ;;  %v561_v9 = vld [vmem:[%s555_s18] sm:$0xff]  ;;  %v545_v10 = vsel %vm2541_vm8, %v3077_v3, 0.0  ;;  %v540_v13 = vmul.f32 %v539_v40, %v539_v40  ;;  %v3078_v14 = vld [vmem:[%s555_s18 + $0x8] sm:$0xff]  ;;  %v3079_v20 = vld [vmem:[%s555_s18 + $0x10] sm:$0xff] }
 0x383   : >> { %v495_v55 = vadd.f32 %v493_v44, %v478_v47  ;;  %v562_v15 = vsel %vm2541_vm8, %v561_v9, 0.0  ;;  %v546_v19 = vmul.f32 %v545_v10, %v545_v10  ;;  %v572_v21 = vsel %vm2541_vm8, %v3078_v14, 0.0  ;;  %v3080_v26 = vld [vmem:[%s555_s18 + $0x18] sm:$0xff] }
 0x384   : >> { %v477_v11 = vadd.f32 %v476_v5, %v467_v6  ;;  %v563_v25 = vmul.f32 %v562_v15, %v562_v15  ;;  %v582_v27 = vsel %vm2541_vm8, %v3079_v20, 0.0  ;;  %v573_v30 = vmul.f32 %v572_v21, %v572_v21 }
 0x385   : >> { %v501_v61 = vadd.f32 %v499_v50, %v495_v55  ;;  %v554_v17 = vmov %v3316_v17  ;;  %v592_v31 = vsel %vm2541_vm8, %v3080_v26, 0.0  ;;  %v583_v34 = vmul.f32 %v582_v27, %v582_v27 }
 0x386   : >> { %v494_v16 = vadd.f32 %v493_v44, %v477_v11  ;;  %v551_v24 = vmov %v3320_v24  ;;  %v575_v35 = vadd.s32 8, %v554_v17  ;;  %v593_v39 = vmul.f32 %v592_v31, %v592_v31 }
 0x387   : >> { %v507_v1 = vadd.f32 %v505_v36, %v501_v61  ;;  %vm566_vm12 = vcmp.eq.s32.totalorder %v554_v17, %v551_v24  ;;  %v585_v42 = vadd.s32 16, %v554_v17  ;;  %v595_v48 = vadd.s32 24, %v554_v17 }
 0x388   : >> { %v500_v22 = vadd.f32 %v499_v50, %v494_v16  ;;  %vm576_vm15 = vcmp.eq.s32.totalorder %v575_v35, %v551_v24  ;;  %v567_v45 = vsel %vm566_vm12, 0.0, %v563_v25 }
 0x389   : >> { %v513_v7 = vadd.f32 %v511_v62, %v507_v1  ;;  %vm586_vm0 = vcmp.eq.s32.totalorder %v585_v42, %v551_v24  ;;  %v577_v47 = vsel %vm576_vm15, 0.0, %v573_v30  ;;  %vm596_vm1 = vcmp.eq.s32.totalorder %v595_v48, %v551_v24 }
 0x38a   : >> { %v506_v28 = vadd.f32 %v505_v36, %v500_v22  ;;  %v587_v51 = vsel %vm586_vm0, 0.0, %v583_v34  ;;  %v597_v53 = vsel %vm596_vm1, 0.0, %v593_v39 }
 0x38b   : >> { %v530_v12 = vadd.f32 %v528_v2, %v513_v7 }
 0x38c   : >> { %v512_v32 = vadd.f32 %v511_v62, %v506_v28 }
 0x38d   : >> { %v536_v18 = vadd.f32 %v534_v8, %v530_v12 }
 0x38e   : >> { %v529_v37 = vadd.f32 %v528_v2, %v512_v32 }
 0x38f   : >> { %v542_v23 = vadd.f32 %v540_v13, %v536_v18 }
 0x390   : >> { %v535_v41 = vadd.f32 %v534_v8, %v529_v37 }
 0x391   : >> { %v548_v29 = vadd.f32 %v546_v19, %v542_v23 }
 0x392   : >> { %v541_v49 = vadd.f32 %v540_v13, %v535_v41 }
 0x393   : >> { %v569_v33 = vadd.f32 %v563_v25, %v548_v29 }
 0x394   : >> { %v547_v46 = vadd.f32 %v546_v19, %v541_v49 }
 0x395   : >> { %v579_v38 = vadd.f32 %v573_v30, %v569_v33 }
 0x396   : >> { %v568_v50 = vadd.f32 %v567_v45, %v547_v46 }
 0x397   : >> { %v589_v43 = vadd.f32 %v583_v34, %v579_v38 }
 0x398   : >> { %v578_v52 = vadd.f32 %v577_v47, %v568_v50 }
 0x399   : >> { %v599_v44 = vadd.f32 %v593_v39, %v589_v43 }
 0x39a   : >> { %v588_v54 = vadd.f32 %v587_v51, %v578_v52 }
 0x39b   : >> { %600 = vadd.xlane.f32.xlu0 %v599_v44 }
 0x39c   : >> { %v598_v55 = vadd.f32 %v597_v53, %v588_v54 }
 0x39f   : >> { %608 = vadd.xlane.f32.xlu0 %v598_v55 }
 0x428   : >> { %v601_v36 = vpop.xlane.xlu0 %600 }
 0x429   : >> { %v602_v56 = vrot.slane %v601_v36, 4 }
 0x42b   : >> { %v603_v57 = vadd.f32 %v602_v56, %v601_v36 }
 0x42c   : >> { %v609_v59 = vpop.xlane.xlu0 %608 }
 0x42d   : >> { %v604_v58 = vrot.slane %v603_v57, 2  ;;  %v610_v60 = vrot.slane %v609_v59, 4 }
 0x42f   : >> { %v611_v61 = vadd.f32 %v610_v60, %v609_v59  ;;  %v605_v62 = vadd.f32 %v604_v58, %v603_v57 }
 0x431   : >> { %v612_v63 = vrot.slane %v611_v61, 2  ;;  %v606_v1 = vrot.slane %v605_v62, 1 }
 0x433   : >> { %v613_v0 = vadd.f32 %v612_v63, %v611_v61  ;;  %v607_v4 = vadd.f32 %v606_v1, %v605_v62 }
 0x435   : >> { %v614_v2 = vrot.slane %v613_v0, 1 }
 0x437   : >> { %v615_v3 = vadd.f32 %v614_v2, %v613_v0 }
 0x439   : >> { %3105 = vpush %v615_v3 }
 0x43a   : >> { %3107 = vpush %v607_v4 }
 0x46a   : >> { %s3106_s21 = spop %3105 }
 0x46b   : >> { %s3108_s26 = spop %3107 }
 0x46c   : >> { %s618_s16 = smul.f32 1e-10, %s3108_s26 }
 0x46e   : >> { %p619_p11 = scmp.le.f32.partialorder %s3106_s21, %s618_s16 }
 0x470   : >> { %p621_p12 = por %p620_p10, %p619_p11 }
 0x472   : > { %2041 = sbr.rel (!%p621_p12) target bundleno = 322 (0x142), region = 592 }
 0x479 PF: > { %s2046_s17 = smov [#allocation12]  ;;  %v2050_v24 = vmov %v3320_v24  ;;  %v2053_v17 = vmov %v3316_v17  ;;  %s2084_s25 = smov [#allocation15] }
 0x47a   : > { %v2088_v24 = vmov %v3320_v24  ;;  %v2091_v17 = vmov %v3316_v17  ;;  %v2054_v5 = vld [vmem:[%s2046_s17] sm:$0xff]  ;;  %vm2057_vm11 = vcmp.eq.s32.totalorder %v2053_v17, %v2050_v24  ;;  %v3081_v40 = vld [vmem:[%s2046_s17 + $0x8] sm:$0xff]  ;;  %v2062_v6 = vadd.s32 8, %v2053_v17  ;;  %v3082_v8 = vld [vmem:[%s2046_s17 + $0x10] sm:$0xff]  ;;  %s2042_s11 = sand.u32 7, %s3269_s12   ;;  %s4312_s22 = scalar_lea.vmem [#allocation5], %s3314_s28 }
 0x47b   : > { %vm2095_vm2 = vcmp.eq.s32.totalorder %v2091_v17, %v2088_v24  ;;  %v2058_v7 = vsel %vm2057_vm11, %v2054_v5, 0.0  ;;  %v2068_v9 = vadd.s32 16, %v2053_v17  ;;  %v2074_v10 = vadd.s32 24, %v2053_v17  ;;  %v3083_v12 = vld [vmem:[%s2046_s17 + $0x18] sm:$0xff]  ;;  %v2092_v13 = vld [vmem:[%s2084_s25] sm:$0xff]  ;;  %v3084_v14 = vld [vmem:[%s2084_s25 + $0x8] sm:$0xff] }
 0x47c   : > { %v2100_v11 = vadd.s32 8, %v2091_v17  ;;  %vm2063_vm8 = vcmp.eq.s32.totalorder %v2062_v6, %v2050_v24  ;;  %v2106_v15 = vadd.s32 16, %v2091_v17  ;;  %v2112_v16 = vadd.s32 24, %v2091_v17  ;;  %v3085_v20 = vld [vmem:[%s2084_s25 + $0x10] sm:$0xff]  ;;  %v3086_v22 = vld [vmem:[%s2084_s25 + $0x18] sm:$0xff]  ;;  %s2043_s27 = scalar_lea.vmem [#allocation4], %s2042_s11 }
 0x47d   : > { %v2064_v18 = vsel %vm2063_vm8, %v3081_v40, %v2058_v7  ;;  %vm2069_vm3 = vcmp.eq.s32.totalorder %v2068_v9, %v2050_v24  ;;  %vm2075_vm4 = vcmp.eq.s32.totalorder %v2074_v10, %v2050_v24  ;;  %v2096_v19 = vsel %vm2095_vm2, %v2092_v13, 0.0  ;;  %s2047_s27 = smov %s2043_s27  ;;  %s2045_s30 = scalar_lea.vmem [#allocation6], %s2042_s11 }
 0x47e   : > { %v2070_v21 = vsel %vm2069_vm3, %v3082_v8, %v2064_v18  ;;  %vm2101_vm5 = vcmp.eq.s32.totalorder %v2100_v11, %v2088_v24  ;;  %vm2107_vm6 = vcmp.eq.s32.totalorder %v2106_v15, %v2088_v24  ;;  %vm2113_vm7 = vcmp.eq.s32.totalorder %v2112_v16, %v2088_v24  ;;  %s2085_s30 = smov %s2045_s30  ;;  %s4313_s29 = scalar_lea.vmem [#allocation7], %s3314_s28 }
 0x47f   : > { %v2076_v23 = vsel %vm2075_vm4, %v3083_v12, %v2070_v21  ;;  %v2102_v25 = vsel %vm2101_vm5, %v3084_v14, %v2096_v19  ;;  %s2161_s20 = sshrl.u32 (%p3283_p3), %s3269_s12, 3  ;;  %s4314_s1 = scalar_lea.vmem (%p3283_p3), [#allocation5], %s3314_s28 }
 0x480   : > { %v2077_v26 = vrot.slane %v2076_v23, 4  ;;  %v2108_v27 = vsel %vm2107_vm6, %v3085_v20, %v2102_v25  ;;  %s3093_s0 = sshll.u32 (%p3283_p3), %s2161_s20, 1 }
 0x481   : > { %v2114_v28 = vsel %vm2113_vm7, %v3086_v22, %v2108_v27  ;;  %s2163_s8 = scalar_lea.vmem (%p3283_p3), %s4276_s4, %s3093_s0 }
 0x482   : > { %v2078_v29 = vadd.f32 %v2077_v26, %v2076_v23  ;;  %v2115_v30 = vrot.slane %v2114_v28, 4 }
 0x484   : > { %v2079_v31 = vrot.slane %v2078_v29, 2  ;;  %v2116_v32 = vadd.f32 %v2115_v30, %v2114_v28 }
 0x486   : > { %v2080_v33 = vadd.f32 %v2079_v31, %v2078_v29  ;;  %v2117_v17 = vrot.slane %v2116_v32, 2 }
 0x488   : > { %v2081_v34 = vrot.slane %v2080_v33, 1  ;;  %v2118_v37 = vadd.f32 %v2117_v17, %v2116_v32 }
 0x48a   : > { %v2082_v35 = vadd.f32 %v2081_v34, %v2080_v33  ;;  %v2119_v24 = vrot.slane %v2118_v37, 1 }
 0x48c   : > { %2083 = vst [vmem:[%s2047_s27] sm:$0x1] %v2082_v35  ;;  %v2120_v38 = vadd.f32 %v2119_v24, %v2118_v37 }
 0x48e   : > { %2121 = vst [vmem:[%s2085_s30] sm:$0x1] %v2120_v38 }
 0x490   : > { %2160 = sbr.rel (!%p3283_p3) target bundleno = 1181 (0x49d), region = 114 }
 0x493   : > { %v2125_v39 = vld [vmem:[#allocation4] sm:$0x3] }
 0x494   : > { %2127 = vst [vmem:[%s4312_s22] sm:$0x3] %v2125_v39 }
 0x495   : > { %v2131_v41 = vld [vmem:[#allocation6] sm:$0x3] }
 0x496   : > { %2133 = vst [vmem:[%s4313_s29] sm:$0x3] %v2131_v41 }
 0x49b   : > { %v2179_v42 = vld [vmem:[%s4314_s1] sm:$0x3] }
 0x49c   : > { %2180 = vst [vmem:[%s2163_s8] sm:$0x3] %v2179_v42 }
 0x49d PF: > { %2197 = sbr.rel (!%p3283_p3) target bundleno = 1189 (0x4a5), region = 148  ;;  %s2198_s9 = sshrl.u32 (%p3283_p3), %s3269_s12, 3 }
 0x49e   : > { %s4315_s10 = scalar_lea.vmem (%p3283_p3), [#allocation7], %s3314_s28  ;;  %s3094_s13 = sshll.u32 (%p3283_p3), %s2198_s9, 1 }
 0x49f   : > { %s2200_s26 = scalar_lea.vmem (%p3283_p3), %s4277_s5, %s3094_s13 }
 0x4a3   : > { %v2216_v43 = vld [vmem:[%s4315_s10] sm:$0x3] (%p3283_p3) }
 0x4a4   : > { %2217 = vst [vmem:[%s2200_s26] sm:$0x3] %v2216_v43 }
 0x4a5 PF: > { %s3095_s19 = sshll.u32 %s3269_s12, 5  ;;  %v2246_v49 = vld [vmem:[%s3330_s14] sm:$0xff]  ;;  %v2248_v48 = vld [vmem:[%s3330_s14 + $0x8] sm:$0xff]  ;;  %v2250_v44 = vld [vmem:[%s3330_s14 + $0x10] sm:$0xff]  ;;  %s4316_s30 = sld [smem:[#allocation32_spill]] }
 0x4a6   : > { %s2233_s17 = scalar_lea.vmem %s4278_s6, %s3095_s19  ;;  %v2252_v45 = vld [vmem:[%s3330_s14 + $0x18] sm:$0xff]  ;;  %s2258_s27 = scalar_lea.vmem %s4279_s7, %s3095_s19  ;;  %v2271_v46 = vld [vmem:[%s3337_s15] sm:$0xff]  ;;  %v2273_v47 = vld [vmem:[%s3337_s15 + $0x8] sm:$0xff] }
 0x4a7   : > { %2247 = vst [vmem:[%s2233_s17] sm:$0xff] %v2246_v49  ;;  %2249 = vst [vmem:[%s2233_s17 + $0x8] sm:$0xff] %v2248_v48  ;;  %v2275_v50 = vld [vmem:[%s3337_s15 + $0x10] sm:$0xff]  ;;  %v2277_v51 = vld [vmem:[%s3337_s15 + $0x18] sm:$0xff]  ;;  %s4317_s1 = sld [smem:[#allocation33_spill]] }
 0x4a8   : > { %2251 = vst [vmem:[%s2233_s17 + $0x10] sm:$0xff] %v2250_v44  ;;  %2253 = vst [vmem:[%s2233_s17 + $0x18] sm:$0xff] %v2252_v45  ;;  %v2296_v52 = vld [vmem:[%s3346_s23] sm:$0xff]  ;;  %v2298_v53 = vld [vmem:[%s3346_s23 + $0x8] sm:$0xff] }
 0x4a9   : > { %2272 = vst [vmem:[%s2258_s27] sm:$0xff] %v2271_v46  ;;  %2274 = vst [vmem:[%s2258_s27 + $0x8] sm:$0xff] %v2273_v47  ;;  %v2300_v54 = vld [vmem:[%s3346_s23 + $0x10] sm:$0xff]  ;;  %v2302_v55 = vld [vmem:[%s3346_s23 + $0x18] sm:$0xff] }
 0x4aa   : > { %2276 = vst [vmem:[%s2258_s27 + $0x10] sm:$0xff] %v2275_v50  ;;  %2278 = vst [vmem:[%s2258_s27 + $0x18] sm:$0xff] %v2277_v51  ;;  %v2321_v36 = vld [vmem:[%s3353_s24] sm:$0xff]  ;;  %v2323_v56 = vld [vmem:[%s3353_s24 + $0x8] sm:$0xff] }
 0x4ab   : > { %s2283_s22 = scalar_lea.vmem %s4316_s30, %s3095_s19  ;;  %v2325_v57 = vld [vmem:[%s3353_s24 + $0x10] sm:$0xff]  ;;  %v2327_v58 = vld [vmem:[%s3353_s24 + $0x18] sm:$0xff] }
 0x4ac   : > { %2297 = vst [vmem:[%s2283_s22] sm:$0xff] %v2296_v52  ;;  %2299 = vst [vmem:[%s2283_s22 + $0x8] sm:$0xff] %v2298_v53 }
 0x4ad   : > { %s2308_s0 = scalar_lea.vmem %s4317_s1, %s3095_s19  ;;  %2301 = vst [vmem:[%s2283_s22 + $0x10] sm:$0xff] %v2300_v54  ;;  %2303 = vst [vmem:[%s2283_s22 + $0x18] sm:$0xff] %v2302_v55 }
 0x4ae   : > { %2322 = vst [vmem:[%s2308_s0] sm:$0xff] %v2321_v36  ;;  %2324 = vst [vmem:[%s2308_s0 + $0x8] sm:$0xff] %v2323_v56 }
 0x4af   : > { %2326 = vst [vmem:[%s2308_s0 + $0x10] sm:$0xff] %v2325_v57  ;;  %2328 = vst [vmem:[%s2308_s0 + $0x18] sm:$0xff] %v2327_v58 }
 0x4b0 PF: > { %s4318_s11 = sld [smem:[#allocation26_spill]]  ;;  %s4319_s30 = sld [smem:[#allocation25_spill]] }
 0x4b1   : > { %s4320_s10 = sld [smem:[#allocation27_spill]] }
 0x4b6   : > { %p13_p13 = scmp.ge.s32.totalorder %s4318_s11, 4  }
 0x4b8   :  { %15 = sbr.rel (!%p13_p13) target bundleno = 9 (0x9), region = 603 }

// kernel: finetune_model_forward.2
= control target key start
LH: loop header
LB: loop body
LE: loop exit
PB: predicated region body
PF: predicated region fallthrough
CT: control target
= control target key end

     0   :  { %vm997_vm0 = vcmask 523264   ;;  %s3847_s1 = inlined_call_operand.vmem [shape: f32[128,64], index: 1, kind: input, shape index: {}]   ;;  %s3848_s0 = inlined_call_operand.vmem [shape: f32[1024,128], index: 0, kind: input, shape index: {}]   ;;  %s3849_s2 = inlined_call_operand.vmem [shape: f32[8,64,64], index: 2, kind: output, shape index: {}]  }
   0x1   :  { %v11_v0 = vld [vmem:[%s3847_s1] sm:$0xff]  ;;  %v12_v1 = vld [vmem:[%s3847_s1 + $0x8] sm:$0xff]  ;;  %v13_v2 = vld [vmem:[%s3847_s1 + $0x10] sm:$0xff] }
   0x2   :  { %v2776_v3 = vpack.c.bf16 %v12_v1, %v11_v0  ;;  %v14_v4 = vld [vmem:[%s3847_s1 + $0x18] sm:$0xff]  ;;  %860 = vxpose.xlu0.b32.start [1/16] (narrow) %v11_v0, 64  ;;  %v15_v6 = vld [vmem:[%s3847_s1 + $0x20] sm:$0xff]  ;;  %v16_v7 = vld [vmem:[%s3847_s1 + $0x28] sm:$0xff] }
   0x3   :  { %v2780_v5 = vpack.c.bf16 %v14_v4, %v13_v2  ;;  %v2784_v8 = vpack.c.bf16 %v16_v7, %v15_v6  ;;  %v27_v9 = vld [vmem:[%s3848_s0] sm:$0xff]  ;;  %v17_v10 = vld [vmem:[%s3847_s1 + $0x30] sm:$0xff]  ;;  %v18_v11 = vld [vmem:[%s3847_s1 + $0x38] sm:$0xff] }
   0x4   :  { %2777 = vmatprep.subr.bf16.mxu0 %v2776_v3  ;;  %2232 = vmatprep.mubr.f32.mxu0 %v27_v9  ;;  %v2788_v12 = vpack.c.bf16 %v18_v11, %v17_v10  ;;  %v19_v13 = vld [vmem:[%s3847_s1 + $0x40] sm:$0xff]  ;;  %v20_v14 = vld [vmem:[%s3847_s1 + $0x48] sm:$0xff]  ;;  %v21_v16 = vld [vmem:[%s3847_s1 + $0x50] sm:$0xff] }
   0x5   :  { %2779 = vmatpush3.bf16.msra.mxu0 %v2776_v3  ;;  %v2792_v15 = vpack.c.bf16 %v20_v14, %v19_v13  ;;  %v22_v17 = vld [vmem:[%s3847_s1 + $0x58] sm:$0xff]  ;;  %v23_v19 = vld [vmem:[%s3847_s1 + $0x60] sm:$0xff]  ;;  %v24_v20 = vld [vmem:[%s3847_s1 + $0x68] sm:$0xff] }
   0x6   :  { %2781 = vmatprep.subr.bf16.mxu0 %v2780_v5  ;;  %861 = vxpose.xlu0.b32.cont [2/16] (narrow) %v12_v1, 64  ;;  %v2796_v18 = vpack.c.bf16 %v22_v17, %v21_v16  ;;  %v2800_v21 = vpack.c.bf16 %v24_v20, %v23_v19  ;;  %v25_v22 = vld [vmem:[%s3847_s1 + $0x70] sm:$0xff]  ;;  %v26_v23 = vld [vmem:[%s3847_s1 + $0x78] sm:$0xff]  ;;  %v28_v25 = vld [vmem:[%s3848_s0 + $0x8] sm:$0xff] }
   0x7   :  { %v2804_v24 = vpack.c.bf16 %v26_v23, %v25_v22  ;;  %v29_v26 = vld [vmem:[%s3848_s0 + $0x10] sm:$0xff]  ;;  %v30_v27 = vld [vmem:[%s3848_s0 + $0x18] sm:$0xff]  ;;  %v31_v28 = vld [vmem:[%s3848_s0 + $0x20] sm:$0xff] }
   0x8   :  { %v32_v29 = vld [vmem:[%s3848_s0 + $0x28] sm:$0xff]  ;;  %v33_v30 = vld [vmem:[%s3848_s0 + $0x30] sm:$0xff]  ;;  %v34_v31 = vld [vmem:[%s3848_s0 + $0x38] sm:$0xff] }
   0x9   :  { %2783 = vmatpush3.bf16.msra.mxu0 %v2780_v5  ;;  %v35_v32 = vld [vmem:[%s3848_s0 + $0x40] sm:$0xff]  ;;  %v36_v33 = vld [vmem:[%s3848_s0 + $0x48] sm:$0xff]  ;;  %v37_v34 = vld [vmem:[%s3848_s0 + $0x50] sm:$0xff] }
   0xa   :  { %2785 = vmatprep.subr.bf16.mxu0 %v2784_v8  ;;  %862 = vxpose.xlu0.b32.cont [3/16] (narrow) %v13_v2, 64  ;;  %v38_v35 = vld [vmem:[%s3848_s0 + $0x58] sm:$0xff]  ;;  %v39_v36 = vld [vmem:[%s3848_s0 + $0x60] sm:$0xff]  ;;  %v40_v37 = vld [vmem:[%s3848_s0 + $0x68] sm:$0xff] }
   0xb   :  { %v41_v38 = vld [vmem:[%s3848_s0 + $0x70] sm:$0xff]  ;;  %v42_v39 = vld [vmem:[%s3848_s0 + $0x78] sm:$0xff]  ;;  %v43_v40 = vld [vmem:[%s3848_s0 + $0x80] sm:$0xff] }
   0xc   :  { %v44_v41 = vld [vmem:[%s3848_s0 + $0x88] sm:$0xff]  ;;  %v45_v42 = vld [vmem:[%s3848_s0 + $0x90] sm:$0xff]  ;;  %v46_v43 = vld [vmem:[%s3848_s0 + $0x98] sm:$0xff] }
   0xd   :  { %2787 = vmatpush3.bf16.msra.mxu0 %v2784_v8  ;;  %v47_v44 = vld [vmem:[%s3848_s0 + $0xa0] sm:$0xff]  ;;  %v48_v45 = vld [vmem:[%s3848_s0 + $0xa8] sm:$0xff]  ;;  %v49_v46 = vld [vmem:[%s3848_s0 + $0xb0] sm:$0xff] }
   0xe   :  { %2789 = vmatprep.subr.bf16.mxu0 %v2788_v12  ;;  %863 = vxpose.xlu0.b32.cont [4/16] (narrow) %v14_v4, 64  ;;  %v50_v47 = vld [vmem:[%s3848_s0 + $0xb8] sm:$0xff]  ;;  %v51_v48 = vld [vmem:[%s3848_s0 + $0xc0] sm:$0xff]  ;;  %v52_v49 = vld [vmem:[%s3848_s0 + $0xc8] sm:$0xff] }
   0xf   :  { %v53_v50 = vld [vmem:[%s3848_s0 + $0xd0] sm:$0xff]  ;;  %v54_v51 = vld [vmem:[%s3848_s0 + $0xd8] sm:$0xff]  ;;  %v55_v52 = vld [vmem:[%s3848_s0 + $0xe0] sm:$0xff] }
  0x10   :  { %v56_v53 = vld [vmem:[%s3848_s0 + $0xe8] sm:$0xff]  ;;  %v57_v54 = vld [vmem:[%s3848_s0 + $0xf0] sm:$0xff]  ;;  %v58_v55 = vld [vmem:[%s3848_s0 + $0xf8] sm:$0xff] }
  0x11   :  { %2791 = vmatpush3.bf16.msra.mxu0 %v2788_v12  ;;  %v59_v56 = vld [vmem:[%s3848_s0 + $0x100] sm:$0xff]  ;;  %v60_v57 = vld [vmem:[%s3848_s0 + $0x108] sm:$0xff]  ;;  %v61_v58 = vld [vmem:[%s3848_s0 + $0x110] sm:$0xff] }
  0x12   :  { %2793 = vmatprep.subr.bf16.mxu0 %v2792_v15  ;;  %864 = vxpose.xlu0.b32.cont [5/16] (narrow) %v15_v6, 64  ;;  %v62_v59 = vld [vmem:[%s3848_s0 + $0x118] sm:$0xff]  ;;  %v63_v60 = vld [vmem:[%s3848_s0 + $0x120] sm:$0xff]  ;;  %v64_v61 = vld [vmem:[%s3848_s0 + $0x128] sm:$0xff] }
  0x13   :  { %v65_v62 = vld [vmem:[%s3848_s0 + $0x130] sm:$0xff]  ;;  %v66_v63 = vld [vmem:[%s3848_s0 + $0x138] sm:$0xff]  ;;  %v67_v0 = vld [vmem:[%s3848_s0 + $0x140] sm:$0xff] }
  0x14   :  { %v68_v1 = vld [vmem:[%s3848_s0 + $0x148] sm:$0xff]  ;;  %v69_v2 = vld [vmem:[%s3848_s0 + $0x150] sm:$0xff]  ;;  %v70_v3 = vld [vmem:[%s3848_s0 + $0x158] sm:$0xff] }
  0x15   :  { %2795 = vmatpush3.bf16.msra.mxu0 %v2792_v15  ;;  %v71_v4 = vld [vmem:[%s3848_s0 + $0x160] sm:$0xff]  ;;  %v72_v5 = vld [vmem:[%s3848_s0 + $0x168] sm:$0xff]  ;;  %v73_v6 = vld [vmem:[%s3848_s0 + $0x170] sm:$0xff] }
  0x16   :  { %2797 = vmatprep.subr.bf16.mxu0 %v2796_v18  ;;  %865 = vxpose.xlu0.b32.cont [6/16] (narrow) %v16_v7, 64  ;;  %v74_v7 = vld [vmem:[%s3848_s0 + $0x178] sm:$0xff]  ;;  %v75_v8 = vld [vmem:[%s3848_s0 + $0x180] sm:$0xff]  ;;  %v76_v9 = vld [vmem:[%s3848_s0 + $0x188] sm:$0xff] }
  0x17   :  { %v79_v12 = vld [vmem:[%s3848_s0 + $0x1a0] sm:$0xff]  ;;  %v81_v15 = vld [vmem:[%s3848_s0 + $0x1b0] sm:$0xff] }
  0x19   :  { %2799 = vmatpush3.bf16.msra.mxu0 %v2796_v18  ;;  %v84_v18 = vld [vmem:[%s3848_s0 + $0x1c8] sm:$0xff] }
  0x1a   :  { %2801 = vmatprep.subr.bf16.mxu0 %v2800_v21  ;;  %866 = vxpose.xlu0.b32.cont [7/16] (narrow) %v17_v10, 64  ;;  %v77_v10 = vld [vmem:[%s3848_s0 + $0x190] sm:$0xff] }
  0x1d   :  { %2803 = vmatpush3.bf16.msra.mxu0 %v2800_v21  ;;  %v87_v21 = vld [vmem:[%s3848_s0 + $0x1e0] sm:$0xff] }
  0x1e   :  { %2805 = vmatprep.subr.bf16.mxu0 %v2804_v24  ;;  %867 = vxpose.xlu0.b32.cont [8/16] (narrow) %v18_v11, 64  ;;  %v78_v11 = vld [vmem:[%s3848_s0 + $0x198] sm:$0xff] }
  0x21   :  { %2807 = vmatpush3.bf16.msra.mxu0 %v2804_v24  ;;  %v90_v24 = vld [vmem:[%s3848_s0 + $0x1f8] sm:$0xff] }
  0x22   :  { %868 = vxpose.xlu0.b32.cont [9/16] (narrow) %v19_v13, 64  ;;  %v80_v13 = vld [vmem:[%s3848_s0 + $0x1a8] sm:$0xff] }
  0x24   :  { %2233 = vmatmul.mubr.f32.vlgmr.msra.gmra.mrb[0].mxu0 %v28_v25  ;;  %v91_v25 = vld [vmem:[%s3848_s0 + $0x200] sm:$0xff] }
  0x25   :  { %2235 = vmatprep.mubr.f32.mxu0 %v29_v26  ;;  %v92_v26 = vld [vmem:[%s3848_s0 + $0x208] sm:$0xff] }
  0x26   :  { %869 = vxpose.xlu0.b32.cont [10/16] (narrow) %v20_v14, 64 }
  0x28   :  { %2236 = vmatmul.mubr.f32.gmra.mrb[2].mxu0 %v30_v27  ;;  %v93_v27 = vld [vmem:[%s3848_s0 + $0x210] sm:$0xff] }
  0x29   :  { %2238 = vmatprep.mubr.f32.mxu0 %v31_v28  ;;  %v94_v28 = vld [vmem:[%s3848_s0 + $0x218] sm:$0xff] }
  0x2a   :  { %870 = vxpose.xlu0.b32.cont [11/16] (narrow) %v21_v16, 64  ;;  %v82_v16 = vld [vmem:[%s3848_s0 + $0x1b8] sm:$0xff] }
  0x2c   :  { %2239 = vmatmul.mubr.f32.gmra.mrb[4].mxu0 %v32_v29  ;;  %v95_v29 = vld [vmem:[%s3848_s0 + $0x220] sm:$0xff] }
  0x2d   :  { %2241 = vmatprep.mubr.f32.mxu0 %v33_v30  ;;  %v96_v30 = vld [vmem:[%s3848_s0 + $0x228] sm:$0xff] }
  0x2e   :  { %871 = vxpose.xlu0.b32.cont [12/16] (narrow) %v22_v17, 64  ;;  %v83_v17 = vld [vmem:[%s3848_s0 + $0x1c0] sm:$0xff] }
  0x30   :  { %2242 = vmatmul.mubr.f32.gmra.mrb[6].mxu0 %v34_v31  ;;  %v97_v31 = vld [vmem:[%s3848_s0 + $0x230] sm:$0xff] }
  0x31   :  { %2244 = vmatprep.mubr.f32.mxu0 %v35_v32  ;;  %v98_v32 = vld [vmem:[%s3848_s0 + $0x238] sm:$0xff] }
  0x32   :  { %872 = vxpose.xlu0.b32.cont [13/16] (narrow) %v23_v19, 64  ;;  %v85_v19 = vld [vmem:[%s3848_s0 + $0x1d0] sm:$0xff] }
  0x34   :  { %2245 = vmatmul.mubr.f32.gmra.mrb[8].mxu0 %v36_v33  ;;  %v99_v33 = vld [vmem:[%s3848_s0 + $0x240] sm:$0xff] }
  0x35   :  { %2247 = vmatprep.mubr.f32.mxu0 %v37_v34  ;;  %v100_v34 = vld [vmem:[%s3848_s0 + $0x248] sm:$0xff] }
  0x36   :  { %873 = vxpose.xlu0.b32.cont [14/16] (narrow) %v24_v20, 64  ;;  %v86_v20 = vld [vmem:[%s3848_s0 + $0x1d8] sm:$0xff] }
  0x38   :  { %2248 = vmatmul.mubr.f32.gmra.mrb[10].mxu0 %v38_v35  ;;  %v101_v35 = vld [vmem:[%s3848_s0 + $0x250] sm:$0xff] }
  0x39   :  { %2250 = vmatprep.mubr.f32.mxu0 %v39_v36  ;;  %v102_v36 = vld [vmem:[%s3848_s0 + $0x258] sm:$0xff] }
  0x3a   :  { %874 = vxpose.xlu0.b32.cont [15/16] (narrow) %v25_v22, 64  ;;  %v88_v22 = vld [vmem:[%s3848_s0 + $0x1e8] sm:$0xff] }
  0x3c   :  { %2251 = vmatmul.mubr.f32.gmra.mrb[12].mxu0 %v40_v37  ;;  %v103_v37 = vld [vmem:[%s3848_s0 + $0x260] sm:$0xff] }
  0x3d   :  { %2253 = vmatprep.mubr.f32.mxu0 %v41_v38  ;;  %v104_v38 = vld [vmem:[%s3848_s0 + $0x268] sm:$0xff] }
  0x3e   :  { %875 = vxpose.xlu0.b32.end [16/16] (narrow) %v26_v23, 64  ;;  %v89_v23 = vld [vmem:[%s3848_s0 + $0x1f0] sm:$0xff] }
  0x40   :  { %2254 = vmatmul.mubr.f32.gmra.mrb[14].mxu0 %v42_v39  ;;  %v105_v39 = vld [vmem:[%s3848_s0 + $0x270] sm:$0xff] }
  0x41   :  { %2256 = vmatprep.mubr.f32.mxu0 %v43_v40  ;;  %v106_v40 = vld [vmem:[%s3848_s0 + $0x278] sm:$0xff] }
  0x44   :  { %2257 = vmatmul.mubr.f32.gmra.mrb[16].mxu0 %v44_v41  ;;  %v107_v41 = vld [vmem:[%s3848_s0 + $0x280] sm:$0xff] }
  0x45   :  { %2259 = vmatprep.mubr.f32.mxu0 %v45_v42  ;;  %v108_v42 = vld [vmem:[%s3848_s0 + $0x288] sm:$0xff] }
  0x48   :  { %2260 = vmatmul.mubr.f32.gmra.mrb[18].mxu0 %v46_v43  ;;  %v109_v43 = vld [vmem:[%s3848_s0 + $0x290] sm:$0xff] }
  0x49   :  { %2262 = vmatprep.mubr.f32.mxu0 %v47_v44  ;;  %v110_v44 = vld [vmem:[%s3848_s0 + $0x298] sm:$0xff] }
  0x4c   :  { %2263 = vmatmul.mubr.f32.gmra.mrb[20].mxu0 %v48_v45  ;;  %v111_v45 = vld [vmem:[%s3848_s0 + $0x2a0] sm:$0xff] }
  0x4d   :  { %2265 = vmatprep.mubr.f32.mxu0 %v49_v46  ;;  %v112_v46 = vld [vmem:[%s3848_s0 + $0x2a8] sm:$0xff] }
  0x50   :  { %2266 = vmatmul.mubr.f32.gmra.mrb[22].mxu0 %v50_v47  ;;  %v113_v47 = vld [vmem:[%s3848_s0 + $0x2b0] sm:$0xff] }
  0x51   :  { %2268 = vmatprep.mubr.f32.mxu0 %v51_v48  ;;  %v114_v48 = vld [vmem:[%s3848_s0 + $0x2b8] sm:$0xff] }
  0x54   :  { %2269 = vmatmul.mubr.f32.gmra.mrb[24].mxu0 %v52_v49  ;;  %v115_v49 = vld [vmem:[%s3848_s0 + $0x2c0] sm:$0xff] }
  0x55   :  { %2271 = vmatprep.mubr.f32.mxu0 %v53_v50  ;;  %v116_v50 = vld [vmem:[%s3848_s0 + $0x2c8] sm:$0xff] }
  0x58   :  { %2272 = vmatmul.mubr.f32.gmra.mrb[26].mxu0 %v54_v51  ;;  %v117_v51 = vld [vmem:[%s3848_s0 + $0x2d0] sm:$0xff] }
  0x59   :  { %2274 = vmatprep.mubr.f32.mxu0 %v55_v52  ;;  %v118_v52 = vld [vmem:[%s3848_s0 + $0x2d8] sm:$0xff] }
  0x5c   :  { %2275 = vmatmul.mubr.f32.gmra.mrb[28].mxu0 %v56_v53  ;;  %v119_v53 = vld [vmem:[%s3848_s0 + $0x2e0] sm:$0xff] }
  0x5d   :  { %2277 = vmatprep.mubr.f32.mxu0 %v57_v54  ;;  %v120_v54 = vld [vmem:[%s3848_s0 + $0x2e8] sm:$0xff] }
  0x60   :  { %2278 = vmatmul.mubr.f32.gmra.mrb[30].mxu0 %v58_v55  ;;  %v121_v55 = vld [vmem:[%s3848_s0 + $0x2f0] sm:$0xff] }
  0x61   :  { %2280 = vmatprep.mubr.f32.mxu0 %v59_v56  ;;  %v122_v56 = vld [vmem:[%s3848_s0 + $0x2f8] sm:$0xff] }
  0x64   :  { %2281 = vmatmul.mubr.f32.gmra.mrb[32].mxu0 %v60_v57  ;;  %v123_v57 = vld [vmem:[%s3848_s0 + $0x300] sm:$0xff] }
  0x65   :  { %2283 = vmatprep.mubr.f32.mxu0 %v61_v58  ;;  %v124_v58 = vld [vmem:[%s3848_s0 + $0x308] sm:$0xff] }
  0x68   :  { %2284 = vmatmul.mubr.f32.gmra.mrb[34].mxu0 %v62_v59  ;;  %v125_v59 = vld [vmem:[%s3848_s0 + $0x310] sm:$0xff] }
  0x69   :  { %2286 = vmatprep.mubr.f32.mxu0 %v63_v60  ;;  %v126_v60 = vld [vmem:[%s3848_s0 + $0x318] sm:$0xff] }
  0x6c   :  { %2287 = vmatmul.mubr.f32.gmra.mrb[36].mxu0 %v64_v61  ;;  %v127_v61 = vld [vmem:[%s3848_s0 + $0x320] sm:$0xff] }
  0x6d   :  { %2289 = vmatprep.mubr.f32.mxu0 %v65_v62  ;;  %v128_v62 = vld [vmem:[%s3848_s0 + $0x328] sm:$0xff] }
  0x70   :  { %2290 = vmatmul.mubr.f32.gmra.mrb[38].mxu0 %v66_v63  ;;  %v129_v63 = vld [vmem:[%s3848_s0 + $0x330] sm:$0xff] }
  0x71   :  { %2292 = vmatprep.mubr.f32.mxu0 %v67_v0  ;;  %v130_v0 = vld [vmem:[%s3848_s0 + $0x338] sm:$0xff] }
  0x74   :  { %2293 = vmatmul.mubr.f32.gmra.mrb[40].mxu0 %v68_v1  ;;  %v131_v1 = vld [vmem:[%s3848_s0 + $0x340] sm:$0xff] }
  0x75   :  { %2295 = vmatprep.mubr.f32.mxu0 %v69_v2  ;;  %v132_v2 = vld [vmem:[%s3848_s0 + $0x348] sm:$0xff] }
  0x78   :  { %2296 = vmatmul.mubr.f32.gmra.mrb[42].mxu0 %v70_v3  ;;  %v133_v3 = vld [vmem:[%s3848_s0 + $0x350] sm:$0xff] }
  0x79   :  { %2298 = vmatprep.mubr.f32.mxu0 %v71_v4  ;;  %v134_v4 = vld [vmem:[%s3848_s0 + $0x358] sm:$0xff] }
  0x7c   :  { %2299 = vmatmul.mubr.f32.gmra.mrb[44].mxu0 %v72_v5  ;;  %v135_v5 = vld [vmem:[%s3848_s0 + $0x360] sm:$0xff] }
  0x7d   :  { %2301 = vmatprep.mubr.f32.mxu0 %v73_v6 }
  0x80   :  { %2302 = vmatmul.mubr.f32.gmra.mrb[46].mxu0 %v74_v7 }
  0x81   :  { %2304 = vmatprep.mubr.f32.mxu0 %v75_v8 }
  0x82   :  { %v3289_v14 = vpop.trf.xlu0 }
  0x83   :  { %2456 = vmatprep.mubr.f32.mxu1 %v3289_v14 }
  0x84   :  { %2305 = vmatmul.mubr.f32.gmra.mrb[48].mxu0 %v76_v9  ;;  %v136_v9 = vld [vmem:[%s3848_s0 + $0x368] sm:$0xff] }
  0x85   :  { %2307 = vmatprep.mubr.f32.mxu0 %v77_v10  ;;  %v137_v10 = vld [vmem:[%s3848_s0 + $0x370] sm:$0xff] }
  0x88   :  { %2308 = vmatmul.mubr.f32.gmra.mrb[50].mxu0 %v78_v11 }
  0x89   :  { %2310 = vmatprep.mubr.f32.mxu0 %v79_v12 }
  0x8c   :  { %2311 = vmatmul.mubr.f32.gmra.mrb[52].mxu0 %v80_v13 }
  0x8d   :  { %2313 = vmatprep.mubr.f32.mxu0 %v81_v15  ;;  %v138_v15 = vld [vmem:[%s3848_s0 + $0x378] sm:$0xff] }
  0x90   :  { %2314 = vmatmul.mubr.f32.gmra.mrb[54].mxu0 %v82_v16  ;;  %v139_v16 = vld [vmem:[%s3848_s0 + $0x380] sm:$0xff] }
  0x91   :  { %2316 = vmatprep.mubr.f32.mxu0 %v83_v17 }
  0x94   :  { %2317 = vmatmul.mubr.f32.gmra.mrb[56].mxu0 %v84_v18 }
  0x95   :  { %2319 = vmatprep.mubr.f32.mxu0 %v85_v19  ;;  %v3469_v19 = vpop.trf.xlu0 }
  0x98   :  { %2320 = vmatmul.mubr.f32.gmra.mrb[58].mxu0 %v86_v20 }
  0x99   :  { %2322 = vmatprep.mubr.f32.mxu0 %v87_v21  ;;  %v140_v21 = vld [vmem:[%s3848_s0 + $0x388] sm:$0xff] }
  0x9c   :  { %2323 = vmatmul.mubr.f32.gmra.mrb[60].mxu0 %v88_v22  ;;  %v141_v22 = vld [vmem:[%s3848_s0 + $0x390] sm:$0xff] }
  0x9d   :  { %2325 = vmatprep.mubr.f32.mxu0 %v89_v23 }
  0xa0   :  { %2326 = vmatmul.mubr.f32.gmra.mrb[62].mxu0 %v90_v24 }
  0xa1   :  { %2328 = vmatprep.mubr.f32.mxu0 %v91_v25 }
  0xa4   :  { %2329 = vmatmul.mubr.f32.gmra.mrb[64].mxu0 %v92_v26  ;;  %v142_v26 = vld [vmem:[%s3848_s0 + $0x398] sm:$0xff] }
  0xa5   :  { %2331 = vmatprep.mubr.f32.mxu0 %v93_v27  ;;  %v143_v27 = vld [vmem:[%s3848_s0 + $0x3a0] sm:$0xff] }
  0xa8   :  { %2332 = vmatmul.mubr.f32.gmra.mrb[66].mxu0 %v94_v28  ;;  %v3483_v28 = vpop.trf.xlu0 }
  0xa9   :  { %2334 = vmatprep.mubr.f32.mxu0 %v95_v29 }
  0xac   :  { %2335 = vmatmul.mubr.f32.gmra.mrb[68].mxu0 %v96_v30 }
  0xad   :  { %2337 = vmatprep.mubr.f32.mxu0 %v97_v31 }
  0xb0   :  { %2338 = vmatmul.mubr.f32.gmra.mrb[70].mxu0 %v98_v32  ;;  %v144_v32 = vld [vmem:[%s3848_s0 + $0x3a8] sm:$0xff] }
  0xb1   :  { %2340 = vmatprep.mubr.f32.mxu0 %v99_v33  ;;  %v145_v33 = vld [vmem:[%s3848_s0 + $0x3b0] sm:$0xff] }
  0xb4   :  { %2341 = vmatmul.mubr.f32.gmra.mrb[72].mxu0 %v100_v34 }
  0xb5   :  { %2343 = vmatprep.mubr.f32.mxu0 %v101_v35 }
  0xb8   :  { %2344 = vmatmul.mubr.f32.gmra.mrb[74].mxu0 %v102_v36  ;;  %v3491_v36 = vpop.trf.xlu0 }
  0xb9   :  { %2346 = vmatprep.mubr.f32.mxu0 %v103_v37 }
  0xbc   :  { %2347 = vmatmul.mubr.f32.gmra.mrb[76].mxu0 %v104_v38  ;;  %v146_v38 = vld [vmem:[%s3848_s0 + $0x3b8] sm:$0xff] }
  0xbd   :  { %2349 = vmatprep.mubr.f32.mxu0 %v105_v39  ;;  %v147_v39 = vld [vmem:[%s3848_s0 + $0x3c0] sm:$0xff] }
  0xc0   :  { %2350 = vmatmul.mubr.f32.gmra.mrb[78].mxu0 %v106_v40 }
  0xc1   :  { %2352 = vmatprep.mubr.f32.mxu0 %v107_v41 }
  0xc4   :  { %2353 = vmatmul.mubr.f32.gmra.mrb[80].mxu0 %v108_v42 }
  0xc5   :  { %2355 = vmatprep.mubr.f32.mxu0 %v109_v43  ;;  %v148_v43 = vld [vmem:[%s3848_s0 + $0x3c8] sm:$0xff] }
  0xc8   :  { %2356 = vmatmul.mubr.f32.gmra.mrb[82].mxu0 %v110_v44  ;;  %v149_v44 = vld [vmem:[%s3848_s0 + $0x3d0] sm:$0xff] }
  0xc9   :  { %2358 = vmatprep.mubr.f32.mxu0 %v111_v45  ;;  %v3505_v45 = vpop.trf.xlu0 }
  0xcc   :  { %2359 = vmatmul.mubr.f32.gmra.mrb[84].mxu0 %v112_v46 }
  0xcd   :  { %2361 = vmatprep.mubr.f32.mxu0 %v113_v47 }
  0xd0   :  { %2362 = vmatmul.mubr.f32.gmra.mrb[86].mxu0 %v114_v48 }
  0xd1   :  { %2364 = vmatprep.mubr.f32.mxu0 %v115_v49  ;;  %v150_v49 = vld [vmem:[%s3848_s0 + $0x3d8] sm:$0xff] }
  0xd4   :  { %2365 = vmatmul.mubr.f32.gmra.mrb[88].mxu0 %v116_v50  ;;  %v151_v50 = vld [vmem:[%s3848_s0 + $0x3e0] sm:$0xff] }
  0xd5   :  { %2367 = vmatprep.mubr.f32.mxu0 %v117_v51 }
  0xd8   :  { %2368 = vmatmul.mubr.f32.gmra.mrb[90].mxu0 %v118_v52 }
  0xd9   :  { %2370 = vmatprep.mubr.f32.mxu0 %v119_v53  ;;  %v3513_v53 = vpop.trf.xlu0 }
  0xdc   :  { %2371 = vmatmul.mubr.f32.gmra.mrb[92].mxu0 %v120_v54 }
  0xdd   :  { %2373 = vmatprep.mubr.f32.mxu0 %v121_v55  ;;  %v152_v55 = vld [vmem:[%s3848_s0 + $0x3e8] sm:$0xff] }
  0xe0   :  { %2374 = vmatmul.mubr.f32.gmra.mrb[94].mxu0 %v122_v56  ;;  %v153_v56 = vld [vmem:[%s3848_s0 + $0x3f0] sm:$0xff] }
  0xe1   :  { %2376 = vmatprep.mubr.f32.mxu0 %v123_v57 }
  0xe4   :  { %2377 = vmatmul.mubr.f32.gmra.mrb[96].mxu0 %v124_v58 }
  0xe5   :  { %2379 = vmatprep.mubr.f32.mxu0 %v125_v59 }
  0xe8   :  { %2380 = vmatmul.mubr.f32.gmra.mrb[98].mxu0 %v126_v60  ;;  %v154_v60 = vld [vmem:[%s3848_s0 + $0x3f8] sm:$0xff] }
  0xe9   :  { %2382 = vmatprep.mubr.f32.mxu0 %v127_v61  ;;  %v3526_v61 = vpop.trf.xlu0 }
  0xec   :  { %2383 = vmatmul.mubr.f32.gmra.mrb[100].mxu0 %v128_v62 }
  0xed   :  { %2385 = vmatprep.mubr.f32.mxu0 %v129_v63 }
  0xf0   :  { %2386 = vmatmul.mubr.f32.gmra.mrb[102].mxu0 %v130_v0 }
  0xf1   :  { %2388 = vmatprep.mubr.f32.mxu0 %v131_v1 }
  0xf4   :  { %2389 = vmatmul.mubr.f32.gmra.mrb[104].mxu0 %v132_v2 }
  0xf5   :  { %2391 = vmatprep.mubr.f32.mxu0 %v133_v3  ;;  %v3531_v3 = vpop.trf.xlu0 }
  0xf7   :  { %v2234_v6 = vpop.f32.mrb[0].mxu0 }
  0xf8   :  { %v221_v7 = vpop.f32.mrb[1].mxu0  ;;  %2392 = vmatmul.mubr.f32.gmra.mrb[106].mxu0 %v134_v4 }
  0xf9   :  { %v2808_v8 = vpack.c.bf16 %v2234_v6, %v221_v7  ;;  %2394 = vmatprep.mubr.f32.mxu0 %v135_v5 }
  0xfb   :  { %v2237_v11 = vpop.f32.mrb[2].mxu0  ;;  %2809 = vmatprep.subr.bf16.mxu1 %v2808_v8 }
  0xfc   :  { %v231_v12 = vpop.f32.mrb[3].mxu0  ;;  %2395 = vmatmul.mubr.f32.gmra.mrb[108].mxu0 %v136_v9  ;;  %2811 = vmatpush3.bf16.msra.mxu1 %v2808_v8 }
  0xfd   :  { %v2812_v13 = vpack.c.bf16 %v2237_v11, %v231_v12  ;;  %2397 = vmatprep.mubr.f32.mxu0 %v137_v10 }
  0xff   :  { %v2240_v17 = vpop.f32.mrb[4].mxu0  ;;  %2813 = vmatprep.subr.bf16.mxu1 %v2812_v13 }
 0x100   :  { %v241_v18 = vpop.f32.mrb[5].mxu0  ;;  %2398 = vmatmul.mubr.f32.gmra.mrb[110].mxu0 %v138_v15  ;;  %2815 = vmatpush3.bf16.msra.mxu1 %v2812_v13 }
 0x101   :  { %v2816_v20 = vpack.c.bf16 %v2240_v17, %v241_v18  ;;  %2400 = vmatprep.mubr.f32.mxu0 %v139_v16 }
 0x103   :  { %v2243_v23 = vpop.f32.mrb[6].mxu0  ;;  %2817 = vmatprep.subr.bf16.mxu1 %v2816_v20 }
 0x104   :  { %v251_v24 = vpop.f32.mrb[7].mxu0  ;;  %2401 = vmatmul.mubr.f32.gmra.mrb[112].mxu0 %v140_v21  ;;  %2819 = vmatpush3.bf16.msra.mxu1 %v2816_v20 }
 0x105   :  { %v2820_v25 = vpack.c.bf16 %v2243_v23, %v251_v24  ;;  %2403 = vmatprep.mubr.f32.mxu0 %v141_v22 }
 0x107   :  { %v2246_v29 = vpop.f32.mrb[8].mxu0  ;;  %2821 = vmatprep.subr.bf16.mxu1 %v2820_v25 }
 0x108   :  { %v261_v30 = vpop.f32.mrb[9].mxu0  ;;  %2404 = vmatmul.mubr.f32.gmra.mrb[114].mxu0 %v142_v26  ;;  %2823 = vmatpush3.bf16.msra.mxu1 %v2820_v25 }
 0x109   :  { %v2824_v31 = vpack.c.bf16 %v2246_v29, %v261_v30  ;;  %2406 = vmatprep.mubr.f32.mxu0 %v143_v27 }
 0x10b   :  { %v2249_v34 = vpop.f32.mrb[10].mxu0  ;;  %2825 = vmatprep.subr.bf16.mxu1 %v2824_v31 }
 0x10c   :  { %v271_v35 = vpop.f32.mrb[11].mxu0  ;;  %2407 = vmatmul.mubr.f32.gmra.mrb[116].mxu0 %v144_v32  ;;  %2827 = vmatpush3.bf16.msra.mxu1 %v2824_v31 }
 0x10d   :  { %v2828_v37 = vpack.c.bf16 %v2249_v34, %v271_v35  ;;  %2409 = vmatprep.mubr.f32.mxu0 %v145_v33 }
 0x10f   :  { %v2252_v40 = vpop.f32.mrb[12].mxu0  ;;  %2829 = vmatprep.subr.bf16.mxu1 %v2828_v37 }
 0x110   :  { %v281_v41 = vpop.f32.mrb[13].mxu0  ;;  %2410 = vmatmul.mubr.f32.gmra.mrb[118].mxu0 %v146_v38  ;;  %2831 = vmatpush3.bf16.msra.mxu1 %v2828_v37 }
 0x111   :  { %v2832_v42 = vpack.c.bf16 %v2252_v40, %v281_v41  ;;  %2412 = vmatprep.mubr.f32.mxu0 %v147_v39 }
 0x113   :  { %v2255_v46 = vpop.f32.mrb[14].mxu0  ;;  %2833 = vmatprep.subr.bf16.mxu1 %v2832_v42 }
 0x114   :  { %v291_v47 = vpop.f32.mrb[15].mxu0  ;;  %2413 = vmatmul.mubr.f32.gmra.mrb[120].mxu0 %v148_v43  ;;  %2835 = vmatpush3.bf16.msra.mxu1 %v2832_v42 }
 0x115   :  { %v2836_v48 = vpack.c.bf16 %v2255_v46, %v291_v47  ;;  %2415 = vmatprep.mubr.f32.mxu0 %v149_v44 }
 0x117   :  { %v2258_v51 = vpop.f32.mrb[16].mxu0  ;;  %2837 = vmatprep.subr.bf16.mxu1 %v2836_v48 }
 0x118   :  { %v301_v52 = vpop.f32.mrb[17].mxu0  ;;  %2416 = vmatmul.mubr.f32.gmra.mrb[122].mxu0 %v150_v49  ;;  %2839 = vmatpush3.bf16.msra.mxu1 %v2836_v48 }
 0x119   :  { %v2840_v54 = vpack.c.bf16 %v2258_v51, %v301_v52  ;;  %2418 = vmatprep.mubr.f32.mxu0 %v151_v50 }
 0x11b   :  { %v2261_v57 = vpop.f32.mrb[18].mxu0  ;;  %2457 = vmatmul.mubr.f32.vlgmr.msra.gmra.mrb[0].mxu1 %v3469_v19  ;;  %2841 = vmatprep.subr.bf16.mxu1 %v2840_v54 }
 0x11c   :  { %v311_v58 = vpop.f32.mrb[19].mxu0  ;;  %2419 = vmatmul.mubr.f32.gmra.mrb[124].mxu0 %v152_v55  ;;  %2843 = vmatpush3.bf16.msra.mxu1 %v2840_v54 }
 0x11d   :  { %v2844_v59 = vpack.c.bf16 %v2261_v57, %v311_v58  ;;  %2459 = vmatprep.mubr.f32.mxu1 %v3483_v28  ;;  %2421 = vmatprep.mubr.f32.mxu0 %v153_v56 }
 0x11f   :  { %v2264_v62 = vpop.f32.mrb[20].mxu0  ;;  %2460 = vmatmul.mubr.f32.gmra.mrb[2].mxu1 %v3491_v36  ;;  %2845 = vmatprep.subr.bf16.mxu1 %v2844_v59 }
 0x120   :  { %v321_v63 = vpop.f32.mrb[21].mxu0  ;;  %2422 = vmatmul.mubr.f32.gmra.mrb[126].mxu0 %v154_v60  ;;  %2847 = vmatpush3.bf16.msra.mxu1 %v2844_v59 }
 0x121   :  { %v2848_v0 = vpack.c.bf16 %v2264_v62, %v321_v63  ;;  %2462 = vmatprep.mubr.f32.mxu1 %v3505_v45 }
 0x123   :  { %v2267_v1 = vpop.f32.mrb[22].mxu0  ;;  %2463 = vmatmul.mubr.f32.gmra.mrb[4].mxu1 %v3513_v53  ;;  %2849 = vmatprep.subr.bf16.mxu1 %v2848_v0 }
 0x124   :  { %v331_v2 = vpop.f32.mrb[23].mxu0  ;;  %2851 = vmatpush3.bf16.msra.mxu1 %v2848_v0  ;;  %2465 = vmatprep.mubr.f32.mxu1 %v3526_v61 }
 0x125   :  { %v2852_v4 = vpack.c.bf16 %v2267_v1, %v331_v2 }
 0x127   :  { %v2270_v5 = vpop.f32.mrb[24].mxu0  ;;  %2466 = vmatmul.mubr.f32.gmra.mrb[6].mxu1 %v3531_v3  ;;  %2853 = vmatprep.subr.bf16.mxu1 %v2852_v4 }
 0x128   :  { %v341_v6 = vpop.f32.mrb[25].mxu0  ;;  %2855 = vmatpush3.bf16.msra.mxu1 %v2852_v4  ;;  %2500 = vmatprep.mubr.f32.mxu1 %v3289_v14 }
 0x129   :  { %v2856_v7 = vpack.c.bf16 %v2270_v5, %v341_v6 }
 0x12b   :  { %v2273_v8 = vpop.f32.mrb[26].mxu0  ;;  %2857 = vmatprep.subr.bf16.mxu1 %v2856_v7 }
 0x12c   :  { %v351_v9 = vpop.f32.mrb[27].mxu0  ;;  %2859 = vmatpush3.bf16.msra.mxu1 %v2856_v7 }
 0x12d   :  { %v2860_v10 = vpack.c.bf16 %v2273_v8, %v351_v9 }
 0x12f   :  { %v2276_v11 = vpop.f32.mrb[28].mxu0  ;;  %2861 = vmatprep.subr.bf16.mxu1 %v2860_v10 }
 0x130   :  { %v361_v12 = vpop.f32.mrb[29].mxu0  ;;  %2863 = vmatpush3.bf16.msra.mxu1 %v2860_v10 }
 0x131   :  { %v2864_v13 = vpack.c.bf16 %v2276_v11, %v361_v12 }
 0x133   :  { %v2279_v15 = vpop.f32.mrb[30].mxu0  ;;  %2865 = vmatprep.subr.bf16.mxu1 %v2864_v13 }
 0x134   :  { %v371_v16 = vpop.f32.mrb[31].mxu0  ;;  %2867 = vmatpush3.bf16.msra.mxu1 %v2864_v13 }
 0x135   :  { %v2868_v17 = vpack.c.bf16 %v2279_v15, %v371_v16 }
 0x137   :  { %v2282_v18 = vpop.f32.mrb[32].mxu0  ;;  %2869 = vmatprep.subr.bf16.mxu1 %v2868_v17 }
 0x138   :  { %v381_v20 = vpop.f32.mrb[33].mxu0  ;;  %2871 = vmatpush3.bf16.msra.mxu1 %v2868_v17 }
 0x139   :  { %v2872_v21 = vpack.c.bf16 %v2282_v18, %v381_v20 }
 0x13b   :  { %v2285_v22 = vpop.f32.mrb[34].mxu0  ;;  %2501 = vmatmul.mubr.f32.vlgmr.msra.gmra.mrb[8].mxu1 %v3469_v19  ;;  %2873 = vmatprep.subr.bf16.mxu1 %v2872_v21 }
 0x13c   :  { %v391_v23 = vpop.f32.mrb[35].mxu0  ;;  %2503 = vmatprep.mubr.f32.mxu1 %v3483_v28  ;;  %2875 = vmatpush3.bf16.msra.mxu1 %v2872_v21 }
 0x13d   :  { %v2876_v24 = vpack.c.bf16 %v2285_v22, %v391_v23 }
 0x13f   :  { %v2288_v25 = vpop.f32.mrb[36].mxu0  ;;  %2504 = vmatmul.mubr.f32.gmra.mrb[10].mxu1 %v3491_v36  ;;  %2877 = vmatprep.subr.bf16.mxu1 %v2876_v24 }
 0x140   :  { %v401_v26 = vpop.f32.mrb[37].mxu0  ;;  %2506 = vmatprep.mubr.f32.mxu1 %v3505_v45  ;;  %2879 = vmatpush3.bf16.msra.mxu1 %v2876_v24 }
 0x141   :  { %v2880_v27 = vpack.c.bf16 %v2288_v25, %v401_v26 }
 0x143   :  { %v2291_v29 = vpop.f32.mrb[38].mxu0  ;;  %2507 = vmatmul.mubr.f32.gmra.mrb[12].mxu1 %v3513_v53  ;;  %2881 = vmatprep.subr.bf16.mxu1 %v2880_v27 }
 0x144   :  { %v411_v30 = vpop.f32.mrb[39].mxu0  ;;  %2509 = vmatprep.mubr.f32.mxu1 %v3526_v61  ;;  %2883 = vmatpush3.bf16.msra.mxu1 %v2880_v27 }
 0x145   :  { %v2884_v31 = vpack.c.bf16 %v2291_v29, %v411_v30 }
 0x147   :  { %v2294_v32 = vpop.f32.mrb[40].mxu0  ;;  %2510 = vmatmul.mubr.f32.gmra.mrb[14].mxu1 %v3531_v3  ;;  %2885 = vmatprep.subr.bf16.mxu1 %v2884_v31 }
 0x148   :  { %v421_v33 = vpop.f32.mrb[41].mxu0  ;;  %2887 = vmatpush3.bf16.msra.mxu1 %v2884_v31  ;;  %2544 = vmatprep.mubr.f32.mxu1 %v3289_v14 }
 0x149   :  { %v2888_v34 = vpack.c.bf16 %v2294_v32, %v421_v33 }
 0x14b   :  { %v2297_v35 = vpop.f32.mrb[42].mxu0  ;;  %2889 = vmatprep.subr.bf16.mxu1 %v2888_v34 }
 0x14c   :  { %v431_v37 = vpop.f32.mrb[43].mxu0  ;;  %2891 = vmatpush3.bf16.msra.mxu1 %v2888_v34 }
 0x14d   :  { %v2892_v38 = vpack.c.bf16 %v2297_v35, %v431_v37 }
 0x14f   :  { %v2300_v39 = vpop.f32.mrb[44].mxu0  ;;  %2893 = vmatprep.subr.bf16.mxu1 %v2892_v38 }
 0x150   :  { %v441_v40 = vpop.f32.mrb[45].mxu0  ;;  %2895 = vmatpush3.bf16.msra.mxu1 %v2892_v38 }
 0x151   :  { %v2896_v41 = vpack.c.bf16 %v2300_v39, %v441_v40 }
 0x153   :  { %v2303_v42 = vpop.f32.mrb[46].mxu0  ;;  %2897 = vmatprep.subr.bf16.mxu1 %v2896_v41 }
 0x154   :  { %v451_v43 = vpop.f32.mrb[47].mxu0  ;;  %2899 = vmatpush3.bf16.msra.mxu1 %v2896_v41 }
 0x155   :  { %v2900_v44 = vpack.c.bf16 %v2303_v42, %v451_v43 }
 0x157   :  { %v2306_v46 = vpop.f32.mrb[48].mxu0  ;;  %2901 = vmatprep.subr.bf16.mxu1 %v2900_v44 }
 0x158   :  { %v461_v47 = vpop.f32.mrb[49].mxu0  ;;  %2903 = vmatpush3.bf16.msra.mxu1 %v2900_v44 }
 0x159   :  { %v2904_v48 = vpack.c.bf16 %v2306_v46, %v461_v47 }
 0x15b   :  { %v2309_v49 = vpop.f32.mrb[50].mxu0  ;;  %2545 = vmatmul.mubr.f32.vlgmr.msra.gmra.mrb[16].mxu1 %v3469_v19  ;;  %2905 = vmatprep.subr.bf16.mxu1 %v2904_v48 }
 0x15c   :  { %v471_v50 = vpop.f32.mrb[51].mxu0  ;;  %2547 = vmatprep.mubr.f32.mxu1 %v3483_v28  ;;  %2907 = vmatpush3.bf16.msra.mxu1 %v2904_v48 }
 0x15d   :  { %v2908_v51 = vpack.c.bf16 %v2309_v49, %v471_v50 }
 0x15f   :  { %v2312_v52 = vpop.f32.mrb[52].mxu0  ;;  %2548 = vmatmul.mubr.f32.gmra.mrb[18].mxu1 %v3491_v36  ;;  %2909 = vmatprep.subr.bf16.mxu1 %v2908_v51 }
 0x160   :  { %v481_v54 = vpop.f32.mrb[53].mxu0  ;;  %2550 = vmatprep.mubr.f32.mxu1 %v3505_v45  ;;  %2911 = vmatpush3.bf16.msra.mxu1 %v2908_v51 }
 0x161   :  { %v2912_v55 = vpack.c.bf16 %v2312_v52, %v481_v54 }
 0x163   :  { %v2315_v56 = vpop.f32.mrb[54].mxu0  ;;  %2551 = vmatmul.mubr.f32.gmra.mrb[20].mxu1 %v3513_v53  ;;  %2913 = vmatprep.subr.bf16.mxu1 %v2912_v55 }
 0x164   :  { %v491_v57 = vpop.f32.mrb[55].mxu0  ;;  %2553 = vmatprep.mubr.f32.mxu1 %v3526_v61  ;;  %2915 = vmatpush3.bf16.msra.mxu1 %v2912_v55 }
 0x165   :  { %v2916_v58 = vpack.c.bf16 %v2315_v56, %v491_v57 }
 0x167   :  { %v2318_v59 = vpop.f32.mrb[56].mxu0  ;;  %2554 = vmatmul.mubr.f32.gmra.mrb[22].mxu1 %v3531_v3  ;;  %2917 = vmatprep.subr.bf16.mxu1 %v2916_v58 }
 0x168   :  { %v501_v60 = vpop.f32.mrb[57].mxu0  ;;  %2919 = vmatpush3.bf16.msra.mxu1 %v2916_v58  ;;  %2588 = vmatprep.mubr.f32.mxu1 %v3289_v14 }
 0x169   :  { %v2920_v62 = vpack.c.bf16 %v2318_v59, %v501_v60 }
 0x16b   :  { %v2321_v63 = vpop.f32.mrb[58].mxu0  ;;  %2921 = vmatprep.subr.bf16.mxu1 %v2920_v62 }
 0x16c   :  { %v511_v0 = vpop.f32.mrb[59].mxu0  ;;  %2923 = vmatpush3.bf16.msra.mxu1 %v2920_v62 }
 0x16d   :  { %v2924_v1 = vpack.c.bf16 %v2321_v63, %v511_v0 }
 0x16f   :  { %v2324_v2 = vpop.f32.mrb[60].mxu0  ;;  %2925 = vmatprep.subr.bf16.mxu1 %v2924_v1 }
 0x170   :  { %v521_v4 = vpop.f32.mrb[61].mxu0  ;;  %2927 = vmatpush3.bf16.msra.mxu1 %v2924_v1 }
 0x171   :  { %v2928_v5 = vpack.c.bf16 %v2324_v2, %v521_v4 }
 0x173   :  { %v2327_v6 = vpop.f32.mrb[62].mxu0  ;;  %2929 = vmatprep.subr.bf16.mxu1 %v2928_v5 }
 0x174   :  { %v531_v7 = vpop.f32.mrb[63].mxu0  ;;  %2931 = vmatpush3.bf16.msra.mxu1 %v2928_v5 }
 0x175   :  { %v2932_v8 = vpack.c.bf16 %v2327_v6, %v531_v7 }
 0x177   :  { %v2330_v9 = vpop.f32.mrb[64].mxu0  ;;  %2933 = vmatprep.subr.bf16.mxu1 %v2932_v8 }
 0x178   :  { %v541_v10 = vpop.f32.mrb[65].mxu0  ;;  %2935 = vmatpush3.bf16.msra.mxu1 %v2932_v8 }
 0x179   :  { %v2936_v11 = vpack.c.bf16 %v2330_v9, %v541_v10 }
 0x17b   :  { %v2333_v12 = vpop.f32.mrb[66].mxu0  ;;  %2589 = vmatmul.mubr.f32.vlgmr.msra.gmra.mrb[24].mxu1 %v3469_v19  ;;  %2937 = vmatprep.subr.bf16.mxu1 %v2936_v11 }
 0x17c   :  { %v551_v13 = vpop.f32.mrb[67].mxu0  ;;  %2591 = vmatprep.mubr.f32.mxu1 %v3483_v28  ;;  %2939 = vmatpush3.bf16.msra.mxu1 %v2936_v11 }
 0x17d   :  { %v2940_v15 = vpack.c.bf16 %v2333_v12, %v551_v13 }
 0x17f   :  { %v2336_v16 = vpop.f32.mrb[68].mxu0  ;;  %2592 = vmatmul.mubr.f32.gmra.mrb[26].mxu1 %v3491_v36  ;;  %2941 = vmatprep.subr.bf16.mxu1 %v2940_v15 }
 0x180   :  { %v561_v17 = vpop.f32.mrb[69].mxu0  ;;  %2594 = vmatprep.mubr.f32.mxu1 %v3505_v45  ;;  %2943 = vmatpush3.bf16.msra.mxu1 %v2940_v15 }
 0x181   :  { %v2944_v18 = vpack.c.bf16 %v2336_v16, %v561_v17 }
 0x183   :  { %v2339_v20 = vpop.f32.mrb[70].mxu0  ;;  %2595 = vmatmul.mubr.f32.gmra.mrb[28].mxu1 %v3513_v53  ;;  %2945 = vmatprep.subr.bf16.mxu1 %v2944_v18 }
 0x184   :  { %v571_v21 = vpop.f32.mrb[71].mxu0  ;;  %2597 = vmatprep.mubr.f32.mxu1 %v3526_v61  ;;  %2947 = vmatpush3.bf16.msra.mxu1 %v2944_v18 }
 0x185   :  { %v2948_v22 = vpack.c.bf16 %v2339_v20, %v571_v21 }
 0x187   :  { %v2342_v23 = vpop.f32.mrb[72].mxu0  ;;  %2598 = vmatmul.mubr.f32.gmra.mrb[30].mxu1 %v3531_v3  ;;  %2949 = vmatprep.subr.bf16.mxu1 %v2948_v22 }
 0x188   :  { %v581_v24 = vpop.f32.mrb[73].mxu0  ;;  %2951 = vmatpush3.bf16.msra.mxu1 %v2948_v22  ;;  %2632 = vmatprep.mubr.f32.mxu1 %v3289_v14 }
 0x189   :  { %v2952_v25 = vpack.c.bf16 %v2342_v23, %v581_v24 }
 0x18b   :  { %v2345_v26 = vpop.f32.mrb[74].mxu0  ;;  %2953 = vmatprep.subr.bf16.mxu1 %v2952_v25 }
 0x18c   :  { %v591_v27 = vpop.f32.mrb[75].mxu0  ;;  %2955 = vmatpush3.bf16.msra.mxu1 %v2952_v25 }
 0x18d   :  { %v2956_v29 = vpack.c.bf16 %v2345_v26, %v591_v27 }
 0x18f   :  { %v2348_v30 = vpop.f32.mrb[76].mxu0  ;;  %2957 = vmatprep.subr.bf16.mxu1 %v2956_v29 }
 0x190   :  { %v601_v31 = vpop.f32.mrb[77].mxu0  ;;  %2959 = vmatpush3.bf16.msra.mxu1 %v2956_v29 }
 0x191   :  { %v2960_v32 = vpack.c.bf16 %v2348_v30, %v601_v31 }
 0x193   :  { %v2351_v33 = vpop.f32.mrb[78].mxu0  ;;  %2961 = vmatprep.subr.bf16.mxu1 %v2960_v32 }
 0x194   :  { %v611_v34 = vpop.f32.mrb[79].mxu0  ;;  %2963 = vmatpush3.bf16.msra.mxu1 %v2960_v32 }
 0x195   :  { %v2964_v35 = vpack.c.bf16 %v2351_v33, %v611_v34 }
 0x197   :  { %v2354_v37 = vpop.f32.mrb[80].mxu0  ;;  %2965 = vmatprep.subr.bf16.mxu1 %v2964_v35 }
 0x198   :  { %v621_v38 = vpop.f32.mrb[81].mxu0  ;;  %2967 = vmatpush3.bf16.msra.mxu1 %v2964_v35 }
 0x199   :  { %v2968_v39 = vpack.c.bf16 %v2354_v37, %v621_v38 }
 0x19b   :  { %v2357_v40 = vpop.f32.mrb[82].mxu0  ;;  %2633 = vmatmul.mubr.f32.vlgmr.msra.gmra.mrb[32].mxu1 %v3469_v19  ;;  %2969 = vmatprep.subr.bf16.mxu1 %v2968_v39 }
 0x19c   :  { %v631_v41 = vpop.f32.mrb[83].mxu0  ;;  %2635 = vmatprep.mubr.f32.mxu1 %v3483_v28  ;;  %2971 = vmatpush3.bf16.msra.mxu1 %v2968_v39 }
 0x19d   :  { %v2972_v42 = vpack.c.bf16 %v2357_v40, %v631_v41 }
 0x19f   :  { %v2360_v43 = vpop.f32.mrb[84].mxu0  ;;  %2636 = vmatmul.mubr.f32.gmra.mrb[34].mxu1 %v3491_v36  ;;  %2973 = vmatprep.subr.bf16.mxu1 %v2972_v42 }
 0x1a0   :  { %v641_v44 = vpop.f32.mrb[85].mxu0  ;;  %2638 = vmatprep.mubr.f32.mxu1 %v3505_v45  ;;  %2975 = vmatpush3.bf16.msra.mxu1 %v2972_v42 }
 0x1a1   :  { %v2976_v46 = vpack.c.bf16 %v2360_v43, %v641_v44 }
 0x1a3   :  { %v2363_v47 = vpop.f32.mrb[86].mxu0  ;;  %2639 = vmatmul.mubr.f32.gmra.mrb[36].mxu1 %v3513_v53  ;;  %2977 = vmatprep.subr.bf16.mxu1 %v2976_v46 }
 0x1a4   :  { %v651_v48 = vpop.f32.mrb[87].mxu0  ;;  %2641 = vmatprep.mubr.f32.mxu1 %v3526_v61  ;;  %2979 = vmatpush3.bf16.msra.mxu1 %v2976_v46 }
 0x1a5   :  { %v2980_v49 = vpack.c.bf16 %v2363_v47, %v651_v48 }
 0x1a7   :  { %v2366_v50 = vpop.f32.mrb[88].mxu0  ;;  %2642 = vmatmul.mubr.f32.gmra.mrb[38].mxu1 %v3531_v3  ;;  %2981 = vmatprep.subr.bf16.mxu1 %v2980_v49 }
 0x1a8   :  { %v661_v51 = vpop.f32.mrb[89].mxu0  ;;  %2983 = vmatpush3.bf16.msra.mxu1 %v2980_v49  ;;  %2676 = vmatprep.mubr.f32.mxu1 %v3289_v14 }
 0x1a9   :  { %v2984_v52 = vpack.c.bf16 %v2366_v50, %v661_v51 }
 0x1ab   :  { %v2369_v54 = vpop.f32.mrb[90].mxu0  ;;  %2985 = vmatprep.subr.bf16.mxu1 %v2984_v52 }
 0x1ac   :  { %v671_v55 = vpop.f32.mrb[91].mxu0  ;;  %2987 = vmatpush3.bf16.msra.mxu1 %v2984_v52 }
 0x1ad   :  { %v2988_v56 = vpack.c.bf16 %v2369_v54, %v671_v55 }
 0x1af   :  { %v2372_v57 = vpop.f32.mrb[92].mxu0  ;;  %2989 = vmatprep.subr.bf16.mxu1 %v2988_v56 }
 0x1b0   :  { %v681_v58 = vpop.f32.mrb[93].mxu0  ;;  %2991 = vmatpush3.bf16.msra.mxu1 %v2988_v56 }
 0x1b1   :  { %v2992_v59 = vpack.c.bf16 %v2372_v57, %v681_v58 }
 0x1b3   :  { %v2375_v60 = vpop.f32.mrb[94].mxu0  ;;  %2993 = vmatprep.subr.bf16.mxu1 %v2992_v59 }
 0x1b4   :  { %v691_v62 = vpop.f32.mrb[95].mxu0  ;;  %2995 = vmatpush3.bf16.msra.mxu1 %v2992_v59 }
 0x1b5   :  { %v2996_v63 = vpack.c.bf16 %v2375_v60, %v691_v62 }
 0x1b7   :  { %v2378_v0 = vpop.f32.mrb[96].mxu0  ;;  %2997 = vmatprep.subr.bf16.mxu1 %v2996_v63 }
 0x1b8   :  { %v701_v1 = vpop.f32.mrb[97].mxu0  ;;  %2999 = vmatpush3.bf16.msra.mxu1 %v2996_v63 }
 0x1b9   :  { %v3000_v2 = vpack.c.bf16 %v2378_v0, %v701_v1 }
 0x1bb   :  { %v2381_v4 = vpop.f32.mrb[98].mxu0  ;;  %2677 = vmatmul.mubr.f32.vlgmr.msra.gmra.mrb[40].mxu1 %v3469_v19  ;;  %3001 = vmatprep.subr.bf16.mxu1 %v3000_v2 }
 0x1bc   :  { %v711_v5 = vpop.f32.mrb[99].mxu0  ;;  %2679 = vmatprep.mubr.f32.mxu1 %v3483_v28  ;;  %3003 = vmatpush3.bf16.msra.mxu1 %v3000_v2 }
 0x1bd   :  { %v3004_v6 = vpack.c.bf16 %v2381_v4, %v711_v5 }
 0x1bf   :  { %v2384_v7 = vpop.f32.mrb[100].mxu0  ;;  %2680 = vmatmul.mubr.f32.gmra.mrb[42].mxu1 %v3491_v36  ;;  %3005 = vmatprep.subr.bf16.mxu1 %v3004_v6 }
 0x1c0   :  { %v721_v8 = vpop.f32.mrb[101].mxu0  ;;  %2682 = vmatprep.mubr.f32.mxu1 %v3505_v45  ;;  %3007 = vmatpush3.bf16.msra.mxu1 %v3004_v6 }
 0x1c1   :  { %v3008_v9 = vpack.c.bf16 %v2384_v7, %v721_v8 }
 0x1c3   :  { %v2387_v10 = vpop.f32.mrb[102].mxu0  ;;  %2683 = vmatmul.mubr.f32.gmra.mrb[44].mxu1 %v3513_v53  ;;  %3009 = vmatprep.subr.bf16.mxu1 %v3008_v9 }
 0x1c4   :  { %v731_v11 = vpop.f32.mrb[103].mxu0  ;;  %2685 = vmatprep.mubr.f32.mxu1 %v3526_v61  ;;  %3011 = vmatpush3.bf16.msra.mxu1 %v3008_v9 }
 0x1c5   :  { %v3012_v12 = vpack.c.bf16 %v2387_v10, %v731_v11 }
 0x1c7   :  { %v2390_v13 = vpop.f32.mrb[104].mxu0  ;;  %2686 = vmatmul.mubr.f32.gmra.mrb[46].mxu1 %v3531_v3  ;;  %3013 = vmatprep.subr.bf16.mxu1 %v3012_v12 }
 0x1c8   :  { %v741_v15 = vpop.f32.mrb[105].mxu0  ;;  %3015 = vmatpush3.bf16.msra.mxu1 %v3012_v12  ;;  %2720 = vmatprep.mubr.f32.mxu1 %v3289_v14 }
 0x1c9   :  { %v3016_v16 = vpack.c.bf16 %v2390_v13, %v741_v15 }
 0x1cb   :  { %v2393_v17 = vpop.f32.mrb[106].mxu0  ;;  %3017 = vmatprep.subr.bf16.mxu1 %v3016_v16 }
 0x1cc   :  { %v751_v18 = vpop.f32.mrb[107].mxu0  ;;  %3019 = vmatpush3.bf16.msra.mxu1 %v3016_v16 }
 0x1cd   :  { %v3020_v20 = vpack.c.bf16 %v2393_v17, %v751_v18 }
 0x1cf   :  { %v2396_v21 = vpop.f32.mrb[108].mxu0  ;;  %3021 = vmatprep.subr.bf16.mxu1 %v3020_v20 }
 0x1d0   :  { %v761_v22 = vpop.f32.mrb[109].mxu0  ;;  %3023 = vmatpush3.bf16.msra.mxu1 %v3020_v20 }
 0x1d1   :  { %v3024_v23 = vpack.c.bf16 %v2396_v21, %v761_v22 }
 0x1d3   :  { %v2399_v24 = vpop.f32.mrb[110].mxu0  ;;  %3025 = vmatprep.subr.bf16.mxu1 %v3024_v23 }
 0x1d4   :  { %v771_v25 = vpop.f32.mrb[111].mxu0  ;;  %3027 = vmatpush3.bf16.msra.mxu1 %v3024_v23 }
 0x1d5   :  { %v3028_v26 = vpack.c.bf16 %v2399_v24, %v771_v25 }
 0x1d7   :  { %v2402_v27 = vpop.f32.mrb[112].mxu0  ;;  %3029 = vmatprep.subr.bf16.mxu1 %v3028_v26 }
 0x1d8   :  { %v781_v29 = vpop.f32.mrb[113].mxu0  ;;  %3031 = vmatpush3.bf16.msra.mxu1 %v3028_v26 }
 0x1d9   :  { %v3032_v30 = vpack.c.bf16 %v2402_v27, %v781_v29 }
 0x1db   :  { %v2405_v31 = vpop.f32.mrb[114].mxu0  ;;  %2721 = vmatmul.mubr.f32.vlgmr.msra.gmra.mrb[48].mxu1 %v3469_v19  ;;  %3033 = vmatprep.subr.bf16.mxu1 %v3032_v30 }
 0x1dc   :  { %v791_v32 = vpop.f32.mrb[115].mxu0  ;;  %2723 = vmatprep.mubr.f32.mxu1 %v3483_v28  ;;  %3035 = vmatpush3.bf16.msra.mxu1 %v3032_v30 }
 0x1dd   :  { %v3036_v33 = vpack.c.bf16 %v2405_v31, %v791_v32 }
 0x1df   :  { %v2408_v34 = vpop.f32.mrb[116].mxu0  ;;  %2724 = vmatmul.mubr.f32.gmra.mrb[50].mxu1 %v3491_v36  ;;  %3037 = vmatprep.subr.bf16.mxu1 %v3036_v33 }
 0x1e0   :  { %v801_v35 = vpop.f32.mrb[117].mxu0  ;;  %2726 = vmatprep.mubr.f32.mxu1 %v3505_v45  ;;  %3039 = vmatpush3.bf16.msra.mxu1 %v3036_v33 }
 0x1e1   :  { %v3040_v37 = vpack.c.bf16 %v2408_v34, %v801_v35 }
 0x1e3   :  { %v2411_v38 = vpop.f32.mrb[118].mxu0  ;;  %2727 = vmatmul.mubr.f32.gmra.mrb[52].mxu1 %v3513_v53  ;;  %3041 = vmatprep.subr.bf16.mxu1 %v3040_v37 }
 0x1e4   :  { %v811_v39 = vpop.f32.mrb[119].mxu0  ;;  %2729 = vmatprep.mubr.f32.mxu1 %v3526_v61  ;;  %3043 = vmatpush3.bf16.msra.mxu1 %v3040_v37 }
 0x1e5   :  { %v3044_v40 = vpack.c.bf16 %v2411_v38, %v811_v39 }
 0x1e7   :  { %v2414_v41 = vpop.f32.mrb[120].mxu0  ;;  %2730 = vmatmul.mubr.f32.gmra.mrb[54].mxu1 %v3531_v3  ;;  %3045 = vmatprep.subr.bf16.mxu1 %v3044_v40 }
 0x1e8   :  { %v821_v42 = vpop.f32.mrb[121].mxu0  ;;  %3047 = vmatpush3.bf16.msra.mxu1 %v3044_v40  ;;  %2764 = vmatprep.mubr.f32.mxu1 %v3289_v14 }
 0x1e9   :  { %v3048_v43 = vpack.c.bf16 %v2414_v41, %v821_v42 }
 0x1eb   :  { %v2417_v44 = vpop.f32.mrb[122].mxu0  ;;  %3049 = vmatprep.subr.bf16.mxu1 %v3048_v43 }
 0x1ec   :  { %v831_v46 = vpop.f32.mrb[123].mxu0  ;;  %3051 = vmatpush3.bf16.msra.mxu1 %v3048_v43 }
 0x1ed   :  { %v3052_v47 = vpack.c.bf16 %v2417_v44, %v831_v46 }
 0x1ee   :  { %v2458_v48 = vpop.f32.mrb[0].mxu1 }
 0x1ef   :  { %999 = vst.msk [vmem:[%s3849_s2 + $0x8] sm:$0xff] %vm997_vm0, %v2458_v48  ;;  %v2420_v49 = vpop.f32.mrb[124].mxu0  ;;  %v958_v50 = vpop.f32.mrb[1].mxu1  ;;  %3053 = vmatprep.subr.bf16.mxu1 %v3052_v47 }
 0x1f0   :  { %998 = vst.msk [vmem:[%s3849_s2] sm:$0xff] %vm997_vm0, %v958_v50  ;;  %v841_v14 = vpop.f32.mrb[125].mxu0  ;;  %3055 = vmatpush3.bf16.msra.mxu1 %v3052_v47 }
 0x1f1   :  { %v3056_v51 = vpack.c.bf16 %v2420_v49, %v841_v14 }
 0x1f2   :  { %v2461_v52 = vpop.f32.mrb[2].mxu1 }
 0x1f3   :  { %v2423_v54 = vpop.f32.mrb[126].mxu0  ;;  %3057 = vmatprep.subr.bf16.mxu1 %v3056_v51  ;;  %1001 = vst.msk [vmem:[%s3849_s2 + $0x18] sm:$0xff] %vm997_vm0, %v2461_v52  ;;  %v968_v55 = vpop.f32.mrb[3].mxu1 }
 0x1f4   :  { %v851_v56 = vpop.f32.mrb[127].mxu0  ;;  %3059 = vmatpush3.bf16.msra.mxu1 %v3056_v51  ;;  %1000 = vst.msk [vmem:[%s3849_s2 + $0x10] sm:$0xff] %vm997_vm0, %v968_v55 }
 0x1f5   :  { %v3060_v57 = vpack.c.bf16 %v2423_v54, %v851_v56 }
 0x1f6   :  { %v2464_v58 = vpop.f32.mrb[4].mxu1 }
 0x1f7   :  { %3061 = vmatprep.subr.bf16.mxu1 %v3060_v57  ;;  %1003 = vst.msk [vmem:[%s3849_s2 + $0x28] sm:$0xff] %vm997_vm0, %v2464_v58  ;;  %v978_v59 = vpop.f32.mrb[5].mxu1 }
 0x1f8   :  { %3063 = vmatpush3.bf16.msra.mxu1 %v3060_v57  ;;  %1002 = vst.msk [vmem:[%s3849_s2 + $0x20] sm:$0xff] %vm997_vm0, %v978_v59 }
 0x1fa   :  { %v2467_v60 = vpop.f32.mrb[6].mxu1 }
 0x1fb   :  { %2765 = vmatmul.mubr.f32.vlgmr.msra.gmra.mrb[56].mxu1 %v3469_v19  ;;  %1005 = vst.msk [vmem:[%s3849_s2 + $0x38] sm:$0xff] %vm997_vm0, %v2467_v60  ;;  %v988_v62 = vpop.f32.mrb[7].mxu1 }
 0x1fc   :  { %2767 = vmatprep.mubr.f32.mxu1 %v3483_v28  ;;  %1004 = vst.msk [vmem:[%s3849_s2 + $0x30] sm:$0xff] %vm997_vm0, %v988_v62 }
 0x1ff   :  { %2768 = vmatmul.mubr.f32.gmra.mrb[58].mxu1 %v3491_v36 }
 0x200   :  { %2770 = vmatprep.mubr.f32.mxu1 %v3505_v45 }
 0x203   :  { %2771 = vmatmul.mubr.f32.gmra.mrb[60].mxu1 %v3513_v53 }
 0x204   :  { %2773 = vmatprep.mubr.f32.mxu1 %v3526_v61 }
 0x207   :  { %2774 = vmatmul.mubr.f32.gmra.mrb[62].mxu1 %v3531_v3 }
 0x20e   :  { %v2502_v19 = vpop.f32.mrb[8].mxu1 }
 0x20f   :  { %1809 = vst.msk [vmem:[%s3849_s2 + $0x48] sm:$0xff] %vm997_vm0, %v2502_v19  ;;  %v1072_v28 = vpop.f32.mrb[9].mxu1 }
 0x210   :  { %1808 = vst.msk [vmem:[%s3849_s2 + $0x40] sm:$0xff] %vm997_vm0, %v1072_v28 }
 0x212   :  { %v2505_v36 = vpop.f32.mrb[10].mxu1 }
 0x213   :  { %1811 = vst.msk [vmem:[%s3849_s2 + $0x58] sm:$0xff] %vm997_vm0, %v2505_v36  ;;  %v1082_v45 = vpop.f32.mrb[11].mxu1 }
 0x214   :  { %1810 = vst.msk [vmem:[%s3849_s2 + $0x50] sm:$0xff] %vm997_vm0, %v1082_v45 }
 0x216   :  { %v2508_v53 = vpop.f32.mrb[12].mxu1 }
 0x217   :  { %1813 = vst.msk [vmem:[%s3849_s2 + $0x68] sm:$0xff] %vm997_vm0, %v2508_v53  ;;  %v1092_v61 = vpop.f32.mrb[13].mxu1 }
 0x218   :  { %1812 = vst.msk [vmem:[%s3849_s2 + $0x60] sm:$0xff] %vm997_vm0, %v1092_v61 }
 0x21a   :  { %v2511_v3 = vpop.f32.mrb[14].mxu1 }
 0x21b   :  { %1815 = vst.msk [vmem:[%s3849_s2 + $0x78] sm:$0xff] %vm997_vm0, %v2511_v3  ;;  %v1102_v63 = vpop.f32.mrb[15].mxu1 }
 0x21c   :  { %1814 = vst.msk [vmem:[%s3849_s2 + $0x70] sm:$0xff] %vm997_vm0, %v1102_v63 }
 0x22e   :  { %v2546_v0 = vpop.f32.mrb[16].mxu1 }
 0x22f   :  { %1817 = vst.msk [vmem:[%s3849_s2 + $0x88] sm:$0xff] %vm997_vm0, %v2546_v0  ;;  %v1186_v1 = vpop.f32.mrb[17].mxu1 }
 0x230   :  { %1816 = vst.msk [vmem:[%s3849_s2 + $0x80] sm:$0xff] %vm997_vm0, %v1186_v1 }
 0x232   :  { %v2549_v2 = vpop.f32.mrb[18].mxu1 }
 0x233   :  { %1819 = vst.msk [vmem:[%s3849_s2 + $0x98] sm:$0xff] %vm997_vm0, %v2549_v2  ;;  %v1196_v4 = vpop.f32.mrb[19].mxu1 }
 0x234   :  { %1818 = vst.msk [vmem:[%s3849_s2 + $0x90] sm:$0xff] %vm997_vm0, %v1196_v4 }
 0x236   :  { %v2552_v5 = vpop.f32.mrb[20].mxu1 }
 0x237   :  { %1821 = vst.msk [vmem:[%s3849_s2 + $0xa8] sm:$0xff] %vm997_vm0, %v2552_v5  ;;  %v1206_v6 = vpop.f32.mrb[21].mxu1 }
 0x238   :  { %1820 = vst.msk [vmem:[%s3849_s2 + $0xa0] sm:$0xff] %vm997_vm0, %v1206_v6 }
 0x23a   :  { %v2555_v7 = vpop.f32.mrb[22].mxu1 }
 0x23b   :  { %1823 = vst.msk [vmem:[%s3849_s2 + $0xb8] sm:$0xff] %vm997_vm0, %v2555_v7  ;;  %v1216_v8 = vpop.f32.mrb[23].mxu1 }
 0x23c   :  { %1822 = vst.msk [vmem:[%s3849_s2 + $0xb0] sm:$0xff] %vm997_vm0, %v1216_v8 }
 0x24e   :  { %v2590_v9 = vpop.f32.mrb[24].mxu1 }
 0x24f   :  { %1825 = vst.msk [vmem:[%s3849_s2 + $0xc8] sm:$0xff] %vm997_vm0, %v2590_v9  ;;  %v1300_v10 = vpop.f32.mrb[25].mxu1 }
 0x250   :  { %1824 = vst.msk [vmem:[%s3849_s2 + $0xc0] sm:$0xff] %vm997_vm0, %v1300_v10 }
 0x252   :  { %v2593_v11 = vpop.f32.mrb[26].mxu1 }
 0x253   :  { %1827 = vst.msk [vmem:[%s3849_s2 + $0xd8] sm:$0xff] %vm997_vm0, %v2593_v11  ;;  %v1310_v12 = vpop.f32.mrb[27].mxu1 }
 0x254   :  { %1826 = vst.msk [vmem:[%s3849_s2 + $0xd0] sm:$0xff] %vm997_vm0, %v1310_v12 }
 0x256   :  { %v2596_v13 = vpop.f32.mrb[28].mxu1 }
 0x257   :  { %1829 = vst.msk [vmem:[%s3849_s2 + $0xe8] sm:$0xff] %vm997_vm0, %v2596_v13  ;;  %v1320_v15 = vpop.f32.mrb[29].mxu1 }
 0x258   :  { %1828 = vst.msk [vmem:[%s3849_s2 + $0xe0] sm:$0xff] %vm997_vm0, %v1320_v15 }
 0x25a   :  { %v2599_v16 = vpop.f32.mrb[30].mxu1 }
 0x25b   :  { %1831 = vst.msk [vmem:[%s3849_s2 + $0xf8] sm:$0xff] %vm997_vm0, %v2599_v16  ;;  %v1330_v17 = vpop.f32.mrb[31].mxu1 }
 0x25c   :  { %1830 = vst.msk [vmem:[%s3849_s2 + $0xf0] sm:$0xff] %vm997_vm0, %v1330_v17 }
 0x26e   :  { %v2634_v18 = vpop.f32.mrb[32].mxu1 }
 0x26f   :  { %1833 = vst.msk [vmem:[%s3849_s2 + $0x108] sm:$0xff] %vm997_vm0, %v2634_v18  ;;  %v1414_v20 = vpop.f32.mrb[33].mxu1 }
 0x270   :  { %1832 = vst.msk [vmem:[%s3849_s2 + $0x100] sm:$0xff] %vm997_vm0, %v1414_v20 }
 0x272   :  { %v2637_v21 = vpop.f32.mrb[34].mxu1 }
 0x273   :  { %1835 = vst.msk [vmem:[%s3849_s2 + $0x118] sm:$0xff] %vm997_vm0, %v2637_v21  ;;  %v1424_v22 = vpop.f32.mrb[35].mxu1 }
 0x274   :  { %1834 = vst.msk [vmem:[%s3849_s2 + $0x110] sm:$0xff] %vm997_vm0, %v1424_v22 }
 0x276   :  { %v2640_v23 = vpop.f32.mrb[36].mxu1 }
 0x277   :  { %1837 = vst.msk [vmem:[%s3849_s2 + $0x128] sm:$0xff] %vm997_vm0, %v2640_v23  ;;  %v1434_v24 = vpop.f32.mrb[37].mxu1 }
 0x278   :  { %1836 = vst.msk [vmem:[%s3849_s2 + $0x120] sm:$0xff] %vm997_vm0, %v1434_v24 }
 0x27a   :  { %v2643_v25 = vpop.f32.mrb[38].mxu1 }
 0x27b   :  { %1839 = vst.msk [vmem:[%s3849_s2 + $0x138] sm:$0xff] %vm997_vm0, %v2643_v25  ;;  %v1444_v26 = vpop.f32.mrb[39].mxu1 }
 0x27c   :  { %1838 = vst.msk [vmem:[%s3849_s2 + $0x130] sm:$0xff] %vm997_vm0, %v1444_v26 }
 0x28e   :  { %v2678_v27 = vpop.f32.mrb[40].mxu1 }
 0x28f   :  { %1841 = vst.msk [vmem:[%s3849_s2 + $0x148] sm:$0xff] %vm997_vm0, %v2678_v27  ;;  %v1528_v29 = vpop.f32.mrb[41].mxu1 }
 0x290   :  { %1840 = vst.msk [vmem:[%s3849_s2 + $0x140] sm:$0xff] %vm997_vm0, %v1528_v29 }
 0x292   :  { %v2681_v30 = vpop.f32.mrb[42].mxu1 }
 0x293   :  { %1843 = vst.msk [vmem:[%s3849_s2 + $0x158] sm:$0xff] %vm997_vm0, %v2681_v30  ;;  %v1538_v31 = vpop.f32.mrb[43].mxu1 }
 0x294   :  { %1842 = vst.msk [vmem:[%s3849_s2 + $0x150] sm:$0xff] %vm997_vm0, %v1538_v31 }
 0x296   :  { %v2684_v32 = vpop.f32.mrb[44].mxu1 }
 0x297   :  { %1845 = vst.msk [vmem:[%s3849_s2 + $0x168] sm:$0xff] %vm997_vm0, %v2684_v32  ;;  %v1548_v33 = vpop.f32.mrb[45].mxu1 }
 0x298   :  { %1844 = vst.msk [vmem:[%s3849_s2 + $0x160] sm:$0xff] %vm997_vm0, %v1548_v33 }
 0x29a   :  { %v2687_v34 = vpop.f32.mrb[46].mxu1 }
 0x29b   :  { %1847 = vst.msk [vmem:[%s3849_s2 + $0x178] sm:$0xff] %vm997_vm0, %v2687_v34  ;;  %v1558_v35 = vpop.f32.mrb[47].mxu1 }
 0x29c   :  { %1846 = vst.msk [vmem:[%s3849_s2 + $0x170] sm:$0xff] %vm997_vm0, %v1558_v35 }
 0x2ae   :  { %v2722_v37 = vpop.f32.mrb[48].mxu1 }
 0x2af   :  { %1849 = vst.msk [vmem:[%s3849_s2 + $0x188] sm:$0xff] %vm997_vm0, %v2722_v37  ;;  %v1642_v38 = vpop.f32.mrb[49].mxu1 }
 0x2b0   :  { %1848 = vst.msk [vmem:[%s3849_s2 + $0x180] sm:$0xff] %vm997_vm0, %v1642_v38 }
 0x2b2   :  { %v2725_v39 = vpop.f32.mrb[50].mxu1 }
 0x2b3   :  { %1851 = vst.msk [vmem:[%s3849_s2 + $0x198] sm:$0xff] %vm997_vm0, %v2725_v39  ;;  %v1652_v40 = vpop.f32.mrb[51].mxu1 }
 0x2b4   :  { %1850 = vst.msk [vmem:[%s3849_s2 + $0x190] sm:$0xff] %vm997_vm0, %v1652_v40 }
 0x2b6   :  { %v2728_v41 = vpop.f32.mrb[52].mxu1 }
 0x2b7   :  { %1853 = vst.msk [vmem:[%s3849_s2 + $0x1a8] sm:$0xff] %vm997_vm0, %v2728_v41  ;;  %v1662_v42 = vpop.f32.mrb[53].mxu1 }
 0x2b8   :  { %1852 = vst.msk [vmem:[%s3849_s2 + $0x1a0] sm:$0xff] %vm997_vm0, %v1662_v42 }
 0x2ba   :  { %v2731_v43 = vpop.f32.mrb[54].mxu1 }
 0x2bb   :  { %1855 = vst.msk [vmem:[%s3849_s2 + $0x1b8] sm:$0xff] %vm997_vm0, %v2731_v43  ;;  %v1672_v44 = vpop.f32.mrb[55].mxu1 }
 0x2bc   :  { %1854 = vst.msk [vmem:[%s3849_s2 + $0x1b0] sm:$0xff] %vm997_vm0, %v1672_v44 }
 0x2ce   :  { %v2766_v46 = vpop.f32.mrb[56].mxu1 }
 0x2cf   :  { %1857 = vst.msk [vmem:[%s3849_s2 + $0x1c8] sm:$0xff] %vm997_vm0, %v2766_v46  ;;  %v1756_v47 = vpop.f32.mrb[57].mxu1 }
 0x2d0   :  { %1856 = vst.msk [vmem:[%s3849_s2 + $0x1c0] sm:$0xff] %vm997_vm0, %v1756_v47 }
 0x2d2   :  { %v2769_v48 = vpop.f32.mrb[58].mxu1 }
 0x2d3   :  { %1859 = vst.msk [vmem:[%s3849_s2 + $0x1d8] sm:$0xff] %vm997_vm0, %v2769_v48  ;;  %v1766_v49 = vpop.f32.mrb[59].mxu1 }
 0x2d4   :  { %1858 = vst.msk [vmem:[%s3849_s2 + $0x1d0] sm:$0xff] %vm997_vm0, %v1766_v49 }
 0x2d6   :  { %v2772_v50 = vpop.f32.mrb[60].mxu1 }
 0x2d7   :  { %1861 = vst.msk [vmem:[%s3849_s2 + $0x1e8] sm:$0xff] %vm997_vm0, %v2772_v50  ;;  %v1776_v14 = vpop.f32.mrb[61].mxu1 }
 0x2d8   :  { %1860 = vst.msk [vmem:[%s3849_s2 + $0x1e0] sm:$0xff] %vm997_vm0, %v1776_v14 }
 0x2da   :  { %v2775_v51 = vpop.f32.mrb[62].mxu1 }
 0x2db   :  { %1863 = vst.msk [vmem:[%s3849_s2 + $0x1f8] sm:$0xff] %vm997_vm0, %v2775_v51  ;;  %v1786_v52 = vpop.f32.mrb[63].mxu1 }
 0x2dc   :  { %1862 = vst.msk [vmem:[%s3849_s2 + $0x1f0] sm:$0xff] %vm997_vm0, %v1786_v52 }

// kernel: finetune_model_forward.3
= control target key start
LH: loop header
LB: loop body
LE: loop exit
PB: predicated region body
PF: predicated region fallthrough
CT: control target
= control target key end

     0   :  { %vm239_vm0 = vcmask 523264   ;;  %v90_v0 = vlaneseq  ;;  %v4857_v17 = vmov 1966171168   ;;  %vm2051_vm2 = vcmask 130112   ;;  %s7734_s0 = inlined_call_operand.vmem [shape: f32[8,64,64], index: 0, kind: input, shape index: {}]   ;;  %s7735_s1 = inlined_call_operand.vmem [shape: f32[8,64], index: 1, kind: input, shape index: {}]   ;;  %s7736_s2 = inlined_call_operand.vmem [shape: f32[2,64,64], index: 2, kind: input, shape index: {}]   ;;  %s7737_s3 = inlined_call_operand.vmem [shape: f32[1,2], index: 3, kind: input, shape index: {}]   ;;  %s7738_s4 = inlined_call_operand.vmem [shape: f32[8,2], index: 4, kind: output, shape index: {}]  }
   0x1   :  { %v4886_v1 = vld [vmem:[%s7734_s0] sm:$0xff]  ;;  %v4891_v2 = vld [vmem:[%s7734_s0 + $0x8] sm:$0xff]  ;;  %vm4895_vm1 = vmpackc.low %vm239_vm0, %vm239_vm0  ;;  %v88_v18 = vunpack.c.l.s4 %v4857_v17  ;;  %vm2058_vm3 = vcmask 195712   ;;  %vm2065_vm4 = vcmask 261312   ;;  %vm2072_vm5 = vcmask 326912  }
   0x2   :  { %v4650_v4 = vpack.c.bf16 %v4891_v2, %v4886_v1  ;;  %v4904_v5 = vld [vmem:[%s7734_s0 + $0x40] sm:$0xff]  ;;  %v4909_v6 = vld [vmem:[%s7734_s0 + $0x48] sm:$0xff]  ;;  %v91_v8 = vshrl.u32 %v90_v0, 7  ;;  %v2041_v9 = vand.u32 127, %v90_v0  ;;  %v19_v15 = vld [vmem:[%s7734_s0 + $0x10] sm:$0xff]  ;;  %vm2079_vm6 = vcmask 392512  }
   0x3   :  { %v81_v7 = vld [vmem:[%s7735_s1] sm:$0xff]  ;;  %v4674_v11 = vpack.c.bf16 %v4909_v6, %v4904_v5  ;;  %v4926_v16 = vld [vmem:[%s7734_s0 + $0x18] sm:$0xff]  ;;  %v4935_v21 = vld [vmem:[%s7734_s0 + $0x50] sm:$0xff]  ;;  %v89_v39 = vunpack.c.0.s8 %v88_v18  ;;  %vm2086_vm7 = vcmask 458112   ;;  %vm2093_vm8 = vcmask 523712  }
   0x4   :  { %v82_v10 = vmax.f32 %v81_v7, 0.0001  ;;  %4652 = vmatprep.subr.msk.bf16.mxu0 %vm4895_vm1, %v4650_v4  ;;  %v4918_v12 = vsub.s32 %v2041_v9, %v91_v8  ;;  %v2046_v13 = vadd.s32 4294967288, %v2041_v9  ;;  %v2053_v14 = vadd.s32 4294967280, %v2041_v9  ;;  %v4940_v22 = vld [vmem:[%s7734_s0 + $0x58] sm:$0xff]  ;;  %v4956_v31 = vld [vmem:[%s7734_s0 + $0x20] sm:$0xff] }
   0x5   :  { %4655 = vmatpush3.bf16.xpose.msk.msra.mxu0 %vm4895_vm1, %v4650_v4  ;;  %4676 = vmatprep.subr.msk.bf16.mxu1 %vm4895_vm1, %v4674_v11  ;;  %v2060_v19 = vadd.s32 4294967272, %v2041_v9  ;;  %v2067_v20 = vadd.s32 4294967264, %v2041_v9  ;;  %v2074_v25 = vadd.s32 4294967256, %v2041_v9  ;;  %v2081_v26 = vadd.s32 4294967248, %v2041_v9  ;;  %v22_v32 = vld [vmem:[%s7734_s0 + $0x28] sm:$0xff]  ;;  %v4970_v36 = vld [vmem:[%s7734_s0 + $0x60] sm:$0xff] }
   0x6   :  { %7808 = vst [vmem:[#allocation2_spill] sm:$0xff] %v4918_v12  ;;  %4843 = vlog2.f32 %v82_v10  ;;  %v4942_v23 = vsub.s32 %v2046_v13, %v91_v8  ;;  %v4944_v24 = vsub.s32 %v2053_v14, %v91_v8  ;;  %4679 = vmatpush3.bf16.xpose.msk.msra.mxu1 %vm4895_vm1, %v4674_v11  ;;  %v2088_v29 = vadd.s32 4294967240, %v2041_v9  ;;  %v4975_v37 = vld [vmem:[%s7734_s0 + $0x68] sm:$0xff]  ;;  %v23_v44 = vld [vmem:[%s7734_s0 + $0x30] sm:$0xff]  ;;  %v24_v45 = vld [vmem:[%s7734_s0 + $0x38] sm:$0xff] }
   0x7   :  { %v4948_v27 = vsub.s32 %v2060_v19, %v91_v8  ;;  %v4950_v28 = vsub.s32 %v2067_v20, %v91_v8  ;;  %v4656_v30 = vpack.c.bf16 %v4926_v16, %v19_v15  ;;  %v4961_v33 = vsub.s32 %v2074_v25, %v91_v8  ;;  %v5007_v47 = vld [vmem:[%s7734_s0 + $0x70] sm:$0xff]  ;;  %v5012_v48 = vld [vmem:[%s7734_s0 + $0x78] sm:$0xff]  ;;  %v5070_v11 = vld [vmem:[%s7734_s0 + $0xc8] sm:$0xff] }
   0x8   :  { %7809 = vst [vmem:[#allocation3_spill] sm:$0xff] %v4942_v23  ;;  %7810 = vst [vmem:[#allocation4_spill] sm:$0xff] %v4944_v24  ;;  %v4963_v34 = vsub.s32 %v2081_v26, %v91_v8  ;;  %v4680_v35 = vpack.c.bf16 %v4940_v22, %v4935_v21  ;;  %v4977_v38 = vsub.s32 %v2088_v29, %v91_v8  ;;  %v5016_v50 = vsub.s32 0, %v91_v8  ;;  %v5075_v13 = vld [vmem:[%s7734_s0 + $0xc0] sm:$0xff] }
   0x9   :  { %7811 = vst [vmem:[#allocation5_spill] sm:$0xff] %v4948_v27  ;;  %7812 = vst [vmem:[#allocation6_spill] sm:$0xff] %v4950_v28  ;;  %4658 = vmatprep.subr.msk.bf16.mxu0 %vm4895_vm1, %v4656_v30  ;;  %v4662_v40 = vpack.c.bf16 %v22_v32, %v4956_v31  ;;  %v4686_v41 = vpack.c.bf16 %v4975_v37, %v4970_v36  ;;  %v4988_v42 = vsub.s32 %v89_v39, %v91_v8  ;;  %v5057_v8 = vld [vmem:[%s7734_s0 + $0x88] sm:$0xff]  ;;  %vm2368_vm9 = vcmask 1041409  }
   0xa   :  { %7813 = vst [vmem:[#allocation7_spill] sm:$0xff] %v4961_v33  ;;  %7814 = vst [vmem:[#allocation8_spill] sm:$0xff] %v4963_v34  ;;  %4682 = vmatprep.subr.msk.bf16.mxu1 %vm4895_vm1, %v4680_v35  ;;  %v4668_v51 = vpack.c.bf16 %v24_v45, %v23_v44  ;;  %v4692_v52 = vpack.c.bf16 %v5012_v48, %v5007_v47  ;;  %vm2370_vm10 = vcmask 1042434   ;;  %vm2372_vm11 = vcmask 1043459  }
   0xb   :  { %7815 = vst [vmem:[#allocation9_spill] sm:$0xff] %v4977_v38  ;;  %v5450_v38 = vld [vmem:[%s7734_s0 + $0x150] sm:$0xff]  ;;  %vm2374_vm12 = vcmask 1044484   ;;  %vm2376_vm13 = vcmask 1045509   ;;  %vm2378_vm14 = vcmask 1046534   ;;  %vm2380_vm15 = vcmask 1047559  }
   0xd   :  { %4661 = vmatpush3.bf16.xpose.msk.msra.mxu0 %vm4895_vm1, %v4656_v30 }
   0xe   :  { %4685 = vmatpush3.bf16.xpose.msk.msra.mxu1 %vm4895_vm1, %v4680_v35  ;;  %4664 = vmatprep.subr.msk.bf16.mxu0 %vm4895_vm1, %v4662_v40 }
   0xf   :  { %4688 = vmatprep.subr.msk.bf16.mxu1 %vm4895_vm1, %v4686_v41 }
  0x10   :  { %v4844_v43 = vpop.eup %4843 }
  0x11   :  { %v5002_v46 = vmul.f32 0.6931472, %v4844_v43 }
  0x13   :  { %v93_v49 = vrot.slane %v5002_v46, %v4988_v42 }
  0x15   :  { %v101_v53 = vcombine.high %v93_v49, %v93_v49  ;;  %v5021_v54 = vrot.slane %v93_v49, %v4988_v42  ;;  %4667 = vmatpush3.bf16.xpose.msk.msra.mxu0 %vm4895_vm1, %v4662_v40  ;;  %v5120_v49 = vld [vmem:[%s7734_s0 + $0x98] sm:$0xff] }
  0x16   :  { %4691 = vmatpush3.bf16.xpose.msk.msra.mxu1 %vm4895_vm1, %v4686_v41  ;;  %4670 = vmatprep.subr.msk.bf16.mxu0 %vm4895_vm1, %v4668_v51 }
  0x17   :  { %v5026_v55 = vrot.slane %v101_v53, %v4988_v42  ;;  %v138_v56 = vrot.slane %v5021_v54, %v5016_v50  ;;  %4694 = vmatprep.subr.msk.bf16.mxu1 %vm4895_vm1, %v4692_v52 }
  0x19   :  { %v5038_v57 = vrot.slane %v5026_v55, %v5016_v50  ;;  %v177_v58 = vmul.f32 %v138_v56, %v19_v15  ;;  %v175_v59 = vmul.f32 %v138_v56, %v4886_v1  ;;  %v5042_v60 = vmul.f32 %v138_v56, %v4926_v16 }
  0x1a   :  { %v176_v61 = vmul.f32 %v138_v56, %v4891_v2  ;;  %v5045_v62 = vmul.f32 %v138_v56, %v22_v32  ;;  %v5052_v7 = vmul.f32 %v138_v56, %v4956_v31  ;;  %v5084_v18 = vmul.f32 %v138_v56, %v24_v45 }
  0x1b   :  { %v1466_v63 = vmul.f32 %v177_v58, %v19_v15  ;;  %v1464_v0 = vmul.f32 %v175_v59, %v4886_v1  ;;  %v1467_v4 = vmul.f32 %v5042_v60, %v4926_v16  ;;  %4442 = vmatprep.mubr.msk.f32.mxu0 %vm239_vm0, %v175_v59  ;;  %v183_v10 = vmul.f32 %v5038_v57, %v4904_v5  ;;  %v5065_v1 = vld [vmem:[%s7734_s0 + $0x80] sm:$0xff] }
  0x1c   :  { %v1465_v9 = vmul.f32 %v176_v61, %v4891_v2  ;;  %v4698_v15 = vpack.c.bf16 %v5057_v8, %v5065_v1  ;;  %v4722_v16 = vpack.c.bf16 %v5070_v11, %v5075_v13  ;;  %v1469_v17 = vmul.f32 %v5045_v62, %v22_v32 }
  0x1d   :  { %v1534_v2 = vsel %vm239_vm0, %v1466_v63, 0.0  ;;  %v1528_v14 = vsel %vm239_vm0, %v1464_v0, 0.0  ;;  %4673 = vmatpush3.bf16.xpose.msk.msra.mxu0 %vm4895_vm1, %v4668_v51  ;;  %v1537_v19 = vsel %vm239_vm0, %v1467_v4, 0.0  ;;  %v1468_v25 = vmul.f32 %v5052_v7, %v4956_v31  ;;  %4470 = vmatprep.mubr.msk.f32.mxu1 %vm239_vm0, %v183_v10  ;;  %v5127_v51 = vld [vmem:[%s7734_s0 + $0x90] sm:$0xff] }
  0x1e   :  { %1535 = vadd.xlane.f32.xlu1 %v1534_v2  ;;  %1529 = vadd.xlane.f32.xlu0 %v1528_v14  ;;  %v1531_v20 = vsel %vm239_vm0, %v1465_v9, 0.0  ;;  %v5094_v26 = vmul.f32 %v138_v56, %v23_v44  ;;  %v1471_v29 = vmul.f32 %v5084_v18, %v24_v45  ;;  %v184_v30 = vmul.f32 %v5038_v57, %v4909_v6  ;;  %v5163_v9 = vld [vmem:[%s7734_s0 + $0xa8] sm:$0xff] }
  0x1f   :  { %4697 = vmatpush3.bf16.xpose.msk.msra.mxu1 %vm4895_vm1, %v4692_v52  ;;  %4700 = vmatprep.subr.msk.bf16.mxu0 %vm4895_vm1, %v4698_v15  ;;  %v1543_v32 = vsel %vm239_vm0, %v1469_v17, 0.0  ;;  %v1540_v31 = vsel %vm239_vm0, %v1468_v25, 0.0  ;;  %v185_v40 = vmul.f32 %v5038_v57, %v4935_v21  ;;  %v1472_v45 = vmul.f32 %v183_v10, %v4904_v5  ;;  %v5132_v5 = vld [vmem:[%s7734_s0 + $0xd8] sm:$0xff] }
  0x20   :  { %4724 = vmatprep.subr.msk.bf16.mxu1 %vm4895_vm1, %v4722_v16  ;;  %v1470_v35 = vmul.f32 %v5094_v26, %v23_v44  ;;  %v1549_v39 = vsel %vm239_vm0, %v1471_v29, 0.0  ;;  %v1473_v43 = vmul.f32 %v184_v30, %v4909_v6  ;;  %v186_v44 = vmul.f32 %v5038_v57, %v4940_v22  ;;  %v5137_v6 = vld [vmem:[%s7734_s0 + $0xd0] sm:$0xff] }
  0x21   :  { %v4704_v52 = vpack.c.bf16 %v5120_v49, %v5127_v51  ;;  %v4728_v53 = vpack.c.bf16 %v5132_v5, %v5137_v6  ;;  %v188_v56 = vmul.f32 %v5038_v57, %v4975_v37  ;;  %v131_v59 = vcombine.high %v5021_v54, %v5021_v54  ;;  %v5168_v54 = vld [vmem:[%s7734_s0 + $0xa0] sm:$0xff] }
  0x22   :  { %1538 = vadd.xlane.f32.xlu1 %v1537_v19  ;;  %1532 = vadd.xlane.f32.xlu0 %v1531_v20  ;;  %v1546_v41 = vsel %vm239_vm0, %v1470_v35, 0.0  ;;  %v1552_v63 = vsel %vm239_vm0, %v1472_v45, 0.0  ;;  %v1475_v0 = vmul.f32 %v186_v44, %v4940_v22  ;;  %v1474_v4 = vmul.f32 %v185_v40, %v4935_v21 }
  0x23   :  { %v4710_v21 = vpack.c.bf16 %v5163_v9, %v5168_v54  ;;  %v133_v22 = vcombine.high %v5026_v55, %v5026_v55  ;;  %v190_v2 = vmul.f32 %v5038_v57, %v5012_v48 }
  0x24   :  { %4443 = vmatmul.mubr.msk.f32.vlgmr.msra.gmra.mrb[0].mxu0 %vm239_vm0, %v176_v61  ;;  %v1555_v61 = vsel %vm239_vm0, %v1473_v43, 0.0  ;;  %v1561_v55 = vsel %vm239_vm0, %v1475_v0, 0.0  ;;  %v1558_v14 = vsel %vm239_vm0, %v1474_v4, 0.0 }
  0x25   :  { %4445 = vmatprep.mubr.msk.f32.mxu0 %vm239_vm0, %v177_v58  ;;  %4703 = vmatpush3.bf16.xpose.msk.msra.mxu0 %vm4895_vm1, %v4698_v15  ;;  %v187_v58 = vmul.f32 %v5038_v57, %v4970_v36  ;;  %v189_v15 = vmul.f32 %v5038_v57, %v5007_v47  ;;  %v5210_v57 = vrot.slane %v133_v22, %v5016_v50  ;;  %v5318_v22 = vld [vmem:[%s7734_s0 + $0x148] sm:$0xff] }
  0x26   :  { %1544 = vadd.xlane.f32.xlu1 %v1543_v32  ;;  %1541 = vadd.xlane.f32.xlu0 %v1540_v31  ;;  %v1479_v17 = vmul.f32 %v190_v2, %v5012_v48  ;;  %v40_v48 = vld [vmem:[%s7734_s0 + $0xb8] sm:$0xff]  ;;  %v5252_v31 = vld [vmem:[%s7734_s0 + $0xf0] sm:$0xff] }
  0x27   :  { %4471 = vmatmul.mubr.msk.f32.vlgmr.msra.gmra.mrb[0].mxu1 %vm239_vm0, %v184_v30  ;;  %4706 = vmatprep.subr.msk.bf16.mxu0 %vm4895_vm1, %v4704_v52  ;;  %v1476_v10 = vmul.f32 %v187_v58, %v4970_v36  ;;  %v5198_v36 = vld [vmem:[%s7734_s0 + $0xe8] sm:$0xff]  ;;  %v1478_v25 = vmul.f32 %v189_v15, %v5007_v47  ;;  %v39_v30 = vld [vmem:[%s7734_s0 + $0xb0] sm:$0xff]  ;;  %v5247_v32 = vld [vmem:[%s7734_s0 + $0xf8] sm:$0xff] }
  0x28   :  { %4473 = vmatprep.mubr.msk.f32.mxu1 %vm239_vm0, %v185_v40  ;;  %4727 = vmatpush3.bf16.xpose.msk.msra.mxu1 %vm4895_vm1, %v4722_v16  ;;  %v146_v16 = vrot.slane %v131_v59, %v5016_v50  ;;  %v4716_v47 = vpack.c.bf16 %v40_v48, %v39_v30  ;;  %v1573_v35 = vsel %vm239_vm0, %v1479_v17, 0.0  ;;  %v4740_v40 = vpack.c.bf16 %v5247_v32, %v5252_v31  ;;  %v5362_v17 = vld [vmem:[%s7734_s0 + $0x1a8] sm:$0xff] }
  0x29   :  { %4446 = vmatmul.mubr.msk.f32.gmra.mrb[2].mxu0 %vm239_vm0, %v5042_v60  ;;  %4730 = vmatprep.subr.msk.bf16.mxu1 %vm4895_vm1, %v4728_v53  ;;  %v86_v60 = vcombine.high %v5002_v46, %v5002_v46  ;;  %v1564_v20 = vsel %vm239_vm0, %v1476_v10, 0.0  ;;  %v1570_v43 = vsel %vm239_vm0, %v1478_v25, 0.0  ;;  %v5369_v25 = vmul.f32 %v5210_v57, %v5132_v5 }
  0x2a   :  { %1550 = vadd.xlane.f32.xlu1 %v1549_v39  ;;  %1547 = vadd.xlane.f32.xlu0 %v1546_v41  ;;  %v191_v29 = vmul.f32 %v146_v16, %v5065_v1  ;;  %v5258_v39 = vmul.f32 %v146_v16, %v5120_v49  ;;  %v5299_v0 = vmul.f32 %v146_v16, %v39_v30 }
  0x2b   :  { %4474 = vmatmul.mubr.msk.f32.gmra.mrb[2].mxu1 %vm239_vm0, %v186_v44  ;;  %4448 = vmatprep.mubr.msk.f32.mxu0 %vm239_vm0, %v5052_v7  ;;  %v1477_v7 = vmul.f32 %v188_v56, %v4975_v37  ;;  %v5203_v37 = vld [vmem:[%s7734_s0 + $0xe0] sm:$0xff]  ;;  %v5219_v19 = vrot.slane %v86_v60, %v4988_v42 }
  0x2c   :  { %4476 = vmatprep.mubr.msk.f32.mxu1 %vm239_vm0, %v187_v58  ;;  %v4734_v46 = vpack.c.bf16 %v5198_v36, %v5203_v37  ;;  %v1480_v44 = vmul.f32 %v191_v29, %v5065_v1  ;;  %v1483_v1 = vmul.f32 %v5258_v39, %v5120_v49  ;;  %v5304_v49 = vld [vmem:[%s7734_s0 + $0x108] sm:$0xff]  ;;  %v5323_v60 = vld [vmem:[%s7734_s0 + $0x140] sm:$0xff] }
  0x2d   :  { %4449 = vmatmul.mubr.msk.f32.gmra.mrb[4].mxu0 %vm239_vm0, %v5045_v62  ;;  %v1567_v62 = vsel %vm239_vm0, %v1477_v7, 0.0  ;;  %v5264_v41 = vrot.slane %v5219_v19, %v4988_v42  ;;  %v102_v4 = vcombine.high %v5219_v19, %v5219_v19  ;;  %v1486_v19 = vmul.f32 %v5299_v0, %v39_v30 }
  0x2e   :  { %1556 = vadd.xlane.f32.xlu1 %v1555_v61  ;;  %1553 = vadd.xlane.f32.xlu0 %v1552_v63  ;;  %v1576_v59 = vsel %vm239_vm0, %v1480_v44, 0.0  ;;  %v5293_v63 = vmul.f32 %v146_v16, %v40_v48 }
  0x2f   :  { %4477 = vmatmul.mubr.msk.f32.gmra.mrb[4].mxu1 %vm239_vm0, %v188_v56  ;;  %4451 = vmatprep.mubr.msk.f32.mxu0 %vm239_vm0, %v5094_v26  ;;  %v5224_v26 = vmul.f32 %v146_v16, %v5057_v8  ;;  %v5287_v56 = vmul.f32 %v146_v16, %v5168_v54 }
  0x30   :  { %4709 = vmatpush3.bf16.xpose.msk.msra.mxu0 %vm4895_vm1, %v4704_v52  ;;  %4733 = vmatpush3.bf16.xpose.msk.msra.mxu1 %vm4895_vm1, %v4728_v53  ;;  %v5271_v52 = vmul.f32 %v146_v16, %v5127_v51  ;;  %v5276_v53 = vmul.f32 %v146_v16, %v5163_v9  ;;  %v1487_v16 = vmul.f32 %v5293_v63, %v40_v48  ;;  %v5377_v48 = vld [vmem:[%s7734_s0 + $0x1a0] sm:$0xff] }
  0x31   :  { %4452 = vmatmul.mubr.msk.f32.gmra.mrb[6].mxu0 %vm239_vm0, %v5084_v18  ;;  %4712 = vmatprep.subr.msk.bf16.mxu0 %vm4895_vm1, %v4710_v21  ;;  %v5242_v18 = vmul.f32 %v5210_v57, %v5075_v13  ;;  %v1481_v45 = vmul.f32 %v5224_v26, %v5057_v8  ;;  %v132_v8 = vcombine.high %v5264_v41, %v5264_v41 }
  0x32   :  { %1562 = vadd.xlane.f32.xlu1 %v1561_v55  ;;  %1559 = vadd.xlane.f32.xlu0 %v1558_v14  ;;  %v1482_v61 = vmul.f32 %v5271_v52, %v5127_v51  ;;  %v1485_v51 = vmul.f32 %v5276_v53, %v5163_v9  ;;  %v1484_v9 = vmul.f32 %v5287_v56, %v5168_v54  ;;  %v5340_v55 = vld [vmem:[%s7734_s0 + $0x180] sm:$0xff]  ;;  %v5345_v14 = vld [vmem:[%s7734_s0 + $0x198] sm:$0xff]  ;;  %v1585_v54 = vsel %vm239_vm0, %v1483_v1, 0.0 }
  0x33   :  { %4479 = vmatprep.mubr.msk.f32.mxu1 %vm239_vm0, %v189_v15  ;;  %4736 = vmatprep.subr.msk.bf16.mxu1 %vm4895_vm1, %v4734_v46  ;;  %v1579_v58 = vsel %vm239_vm0, %v1481_v45, 0.0  ;;  %v162_v7 = vrot.slane %v132_v8, %v5016_v50  ;;  %v5396_v45 = vld [vmem:[%s7734_s0 + $0x1b8] sm:$0xff]  ;;  %v1597_v27 = vsel %vm239_vm0, %v1487_v16, 0.0 }
  0x34   :  { %4480 = vmatmul.mubr.msk.f32.gmra.mrb[6].mxu1 %vm239_vm0, %v190_v2  ;;  %4498 = vmatprep.mubr.msk.f32.mxu0 %vm239_vm0, %v191_v29  ;;  %v5335_v2 = vld [vmem:[%s7734_s0 + $0x188] sm:$0xff]  ;;  %v1582_v15 = vsel %vm239_vm0, %v1482_v61, 0.0  ;;  %v5372_v29 = vrot.slane %v102_v4, %v4988_v42  ;;  %v5410_v1 = vld [vmem:[%s7734_s0 + $0x118] sm:$0xff] }
  0x35   :  { %4526 = vmatprep.mubr.msk.f32.mxu1 %vm239_vm0, %v5242_v18  ;;  %v5385_v30 = vmul.f32 %v162_v7, %v5335_v2  ;;  %v5391_v42 = vmul.f32 %v162_v7, %v5345_v14  ;;  %v5403_v44 = vmul.f32 %v162_v7, %v5362_v17  ;;  %v5425_v4 = vmul.f32 %v162_v7, %v5377_v48 }
  0x36   :  { %1568 = vadd.xlane.f32.xlu1 %v1567_v62  ;;  %1565 = vadd.xlane.f32.xlu0 %v1564_v20  ;;  %v5357_v62 = vld [vmem:[%s7734_s0 + $0x190] sm:$0xff]  ;;  %v200_v20 = vmul.f32 %v5210_v57, %v5070_v11  ;;  %v134_v8 = vcombine.high %v5372_v29, %v5372_v29  ;;  %v5461_v28 = vmul.f32 %v162_v7, %v5396_v45 }
  0x37   :  { %7816 = vst [vmem:[#allocation10_spill] sm:$0xff] %v5385_v30  ;;  %7817 = vst [vmem:[#allocation11_spill] sm:$0xff] %v5391_v42  ;;  %v5422_v61 = vmul.f32 %v5391_v42, %v5345_v14  ;;  %v5458_v33 = vmul.f32 %v5403_v44, %v5362_v17  ;;  %v5477_v23 = vmul.f32 %v5425_v4, %v5377_v48 }
  0x38   :  { %4715 = vmatpush3.bf16.xpose.msk.msra.mxu0 %vm4895_vm1, %v4710_v21  ;;  %4739 = vmatpush3.bf16.xpose.msk.msra.mxu1 %vm4895_vm1, %v4734_v46  ;;  %v5313_v21 = vld [vmem:[%s7734_s0 + $0x100] sm:$0xff]  ;;  %v5352_v46 = vpack.c.bf16 %v5318_v22, %v5323_v60  ;;  %7819 = vst [vmem:[#allocation13_spill] sm:$0xff] %v5403_v44  ;;  %7820 = vst [vmem:[#allocation14_spill] sm:$0xff] %v5425_v4  ;;  %v1594_v44 = vsel %vm239_vm0, %v1486_v19, 0.0  ;;  %v1489_v42 = vmul.f32 %v200_v20, %v5070_v11  ;;  %v5501_v11 = vld [vmem:[%s7734_s0 + $0x1d0] sm:$0xff] }
  0x39   :  { %4718 = vmatprep.subr.msk.bf16.mxu0 %vm4895_vm1, %v4716_v47  ;;  %4742 = vmatprep.subr.msk.bf16.mxu1 %vm4895_vm1, %v4740_v40  ;;  %v5330_v10 = vpack.c.bf16 %v5304_v49, %v5313_v21  ;;  %7821 = vst [vmem:[#allocation15_spill] sm:$0xff] %v5458_v33  ;;  %7822 = vst [vmem:[#allocation16_spill] sm:$0xff] %v5461_v28  ;;  %v5483_v16 = vmul.f32 %v5461_v28, %v5396_v45  ;;  %v5513_v4 = vld [vmem:[%s7734_s0 + $0x1d8] sm:$0xff] }
  0x3a   :  { %1574 = vadd.xlane.f32.xlu1 %v1573_v35  ;;  %1571 = vadd.xlane.f32.xlu0 %v1570_v43  ;;  %v1591_v35 = vsel %vm239_vm0, %v1485_v51, 0.0  ;;  %v5388_v43 = vmul.f32 %v162_v7, %v5340_v55  ;;  %v5430_v51 = vld [vmem:[%s7734_s0 + $0x1b0] sm:$0xff]  ;;  %7823 = vst [vmem:[#allocation17_spill] sm:$0xff] %v5477_v23  ;;  %v1488_v19 = vmul.f32 %v5242_v18, %v5075_v13  ;;  %v5523_v13 = vld [vmem:[%s7734_s0 + $0x1e8] sm:$0xff] }
  0x3b   :  { %7824 = vst [vmem:[#allocation18_spill] sm:$0xff] %v5483_v16  ;;  %v166_v28 = vrot.slane %v134_v8, %v5016_v50  ;;  %v5518_v16 = vld [vmem:[%s7734_s0 + $0x1e0] sm:$0xff]  ;;  %v1491_v18 = vmul.f32 %v5369_v25, %v5132_v5 }
  0x3e   :  { %1580 = vadd.xlane.f32.xlu1 %v1579_v58  ;;  %1577 = vadd.xlane.f32.xlu0 %v1576_v59  ;;  %v5414_v58 = vmul.f32 %v5385_v30, %v5335_v2  ;;  %v5418_v59 = vmul.f32 %v5388_v43, %v5340_v55  ;;  %v5491_v30 = vld [vmem:[%s7734_s0 + $0x1c8] sm:$0xff] }
  0x3f   :  { %v5539_v33 = vmul.f32 %v166_v28, %v5491_v30 }
  0x40   :  { %4721 = vmatpush3.bf16.xpose.msk.msra.mxu0 %vm4895_vm1, %v4716_v47  ;;  %4745 = vmatpush3.bf16.xpose.msk.msra.mxu1 %vm4895_vm1, %v4740_v40  ;;  %v1588_v47 = vsel %vm239_vm0, %v1484_v9, 0.0  ;;  %v5400_v40 = vmul.f32 %v162_v7, %v5357_v62  ;;  %v201_v9 = vmul.f32 %v5210_v57, %v5137_v6 }
  0x41   :  { %4748 = vmatprep.subr.msk.bf16.mxu0 %vm4895_vm1, %v5330_v10  ;;  %4772 = vmatprep.subr.msk.bf16.mxu1 %vm4895_vm1, %v5352_v46 }
  0x42   :  { %1586 = vadd.xlane.f32.xlu1 %v1585_v54  ;;  %1583 = vadd.xlane.f32.xlu0 %v1582_v15  ;;  %7818 = vst [vmem:[#allocation12_spill] sm:$0xff] %v5400_v40  ;;  %v5440_v54 = vld [vmem:[%s7734_s0 + $0x110] sm:$0xff]  ;;  %v5445_v15 = vld [vmem:[%s7734_s0 + $0x158] sm:$0xff]  ;;  %v5454_v34 = vmul.f32 %v5400_v40, %v5357_v62  ;;  %v5486_v40 = vmul.f32 %v162_v7, %v5430_v51 }
  0x43   :  { %v5469_v24 = vpack.c.bf16 %v5410_v1, %v5440_v54  ;;  %v5473_v12 = vpack.c.bf16 %v5445_v15, %v5450_v38  ;;  %v204_v7 = vmul.f32 %v5210_v57, %v5198_v36  ;;  %v1490_v8 = vmul.f32 %v201_v9, %v5137_v6 }
  0x44   :  { %7825 = vst [vmem:[#allocation19_spill] sm:$0xff] %v5486_v40  ;;  %v5533_v23 = vmul.f32 %v5486_v40, %v5430_v51  ;;  %v5545_v6 = vmul.f32 %v166_v28, %v5501_v11  ;;  %v5560_v40 = vld [vmem:[%s7734_s0 + $0x1f0] sm:$0xff] }
  0x46   :  { %1592 = vadd.xlane.f32.xlu1 %v1591_v35  ;;  %1589 = vadd.xlane.f32.xlu0 %v1588_v47  ;;  %v5496_v35 = vld [vmem:[%s7734_s0 + $0x1c0] sm:$0xff]  ;;  %v203_v47 = vmul.f32 %v5210_v57, %v5203_v37  ;;  %7826 = vst [vmem:[#allocation20_spill] sm:$0xff] %v5533_v23  ;;  %7827 = vst [vmem:[#allocation21_spill] sm:$0xff] %v5545_v6  ;;  %v1600_v23 = vsel %vm239_vm0, %v1488_v19, 0.0  ;;  %v5584_v19 = vld [vmem:[%s7734_s0 + $0x1f8] sm:$0xff] }
  0x47   :  { %4499 = vmatmul.mubr.msk.f32.vlgmr.msra.gmra.mrb[8].mxu0 %vm239_vm0, %v5224_v26  ;;  %4527 = vmatmul.mubr.msk.f32.vlgmr.msra.gmra.mrb[8].mxu1 %vm239_vm0, %v200_v20  ;;  %v5542_v5 = vmul.f32 %v166_v28, %v5496_v35  ;;  %v1603_v26 = vsel %vm239_vm0, %v1489_v42, 0.0  ;;  %v5549_v20 = vmul.f32 %v166_v28, %v5513_v4 }
  0x48   :  { %4501 = vmatprep.mubr.msk.f32.mxu0 %vm239_vm0, %v5271_v52  ;;  %4529 = vmatprep.mubr.msk.f32.mxu1 %vm239_vm0, %v201_v9  ;;  %v5552_v52 = vmul.f32 %v166_v28, %v5518_v16  ;;  %v5555_v9 = vmul.f32 %v166_v28, %v5523_v13 }
  0x49   :  { %v5569_v42 = vmul.f32 %v5542_v5, %v5496_v35  ;;  %4751 = vmatpush3.bf16.xpose.msk.msra.mxu0 %vm4895_vm1, %v5330_v10  ;;  %4775 = vmatpush3.bf16.xpose.msk.msra.mxu1 %vm4895_vm1, %v5352_v46  ;;  %v5592_v10 = vmul.f32 %v5549_v20, %v5513_v4  ;;  %v7840_v3 = vld [vmem:[#allocation12_spill] sm:$0xff] }
  0x4a   :  { %1598 = vadd.xlane.f32.xlu1 %v1597_v27  ;;  %1595 = vadd.xlane.f32.xlu0 %v1594_v44  ;;  %7828 = vst [vmem:[#allocation22_spill] sm:$0xff] %v5555_v9  ;;  %v5565_v27 = vmul.f32 %v5539_v33, %v5491_v30  ;;  %v5579_v44 = vmul.f32 %v5545_v6, %v5501_v11 }
  0x4b   :  { %4502 = vmatmul.mubr.msk.f32.gmra.mrb[10].mxu0 %vm239_vm0, %v5258_v39  ;;  %4530 = vmatmul.mubr.msk.f32.gmra.mrb[10].mxu1 %vm239_vm0, %v5369_v25  ;;  %v5596_v46 = vmul.f32 %v5552_v52, %v5518_v16  ;;  %v1493_v6 = vmul.f32 %v204_v7, %v5198_v36  ;;  %v5605_v39 = vrot.slane %v5264_v41, %v5016_v50  ;;  %v1609_v41 = vsel %vm239_vm0, %v1491_v18, 0.0 }
  0x4c   :  { %7829 = vst [vmem:[#allocation23_spill] sm:$0xff] %v5579_v44  ;;  %v5600_v44 = vmul.f32 %v5555_v9, %v5523_v13  ;;  %4504 = vmatprep.mubr.msk.f32.mxu0 %vm239_vm0, %v5287_v56  ;;  %4532 = vmatprep.mubr.msk.f32.mxu1 %vm239_vm0, %v203_v47  ;;  %v5611_v25 = vmul.f32 %v166_v28, %v5560_v40 }
  0x4d   :  { %7830 = vst [vmem:[#allocation24_spill] sm:$0xff] %v5596_v46  ;;  %v1492_v46 = vmul.f32 %v203_v47, %v5203_v37  ;;  %v206_v9 = vmul.f32 %v5210_v57, %v5247_v32  ;;  %v5617_v36 = vmul.f32 %v166_v28, %v5584_v19  ;;  %v205_v56 = vmul.f32 %v5210_v57, %v5252_v31  ;;  %v5645_v57 = vld [vmem:[%s7734_s0 + $0x168] sm:$0xff]  ;;  %v5650_v47 = vld [vmem:[%s7734_s0 + $0x160] sm:$0xff] }
  0x4e   :  { %7831 = vst [vmem:[#allocation25_spill] sm:$0xff] %v5600_v44  ;;  %1604 = vadd.xlane.f32.xlu1 %v1603_v26  ;;  %1601 = vadd.xlane.f32.xlu0 %v1600_v23  ;;  %v1606_v44 = vsel %vm239_vm0, %v1490_v8, 0.0  ;;  %v54_v26 = vld [vmem:[%s7734_s0 + $0x128] sm:$0xff]  ;;  %v5629_v23 = vld [vmem:[%s7734_s0 + $0x120] sm:$0xff]  ;;  %v5639_v28 = vmul.f32 %v5611_v25, %v5560_v40  ;;  %v5661_v8 = vrot.slane %v5372_v29, %v5016_v50 }
  0x4f   :  { %7832 = vst [vmem:[#allocation26_spill] sm:$0xff] %v5617_v36  ;;  %4754 = vmatprep.subr.msk.bf16.mxu0 %vm4895_vm1, %v5469_v24  ;;  %4778 = vmatprep.subr.msk.bf16.mxu1 %vm4895_vm1, %v5473_v12  ;;  %v4758_v37 = vpack.c.bf16 %v54_v26, %v5629_v23  ;;  %v5657_v18 = vmul.f32 %v5617_v36, %v5584_v19  ;;  %v1612_v36 = vsel %vm239_vm0, %v1492_v46, 0.0  ;;  %v5713_v46 = vld [vmem:[%s7734_s0 + $0x178] sm:$0xff] }
  0x50   :  { %7833 = vst [vmem:[#allocation27_spill] sm:$0xff] %v5639_v28  ;;  %4505 = vmatmul.mubr.msk.f32.gmra.mrb[12].mxu0 %vm239_vm0, %v5276_v53  ;;  %4533 = vmatmul.mubr.msk.f32.gmra.mrb[12].mxu1 %vm239_vm0, %v204_v7  ;;  %v4782_v28 = vpack.c.bf16 %v5645_v57, %v5650_v47  ;;  %v1615_v53 = vsel %vm239_vm0, %v1493_v6, 0.0  ;;  %v1495_v7 = vmul.f32 %v206_v9, %v5247_v32 }
  0x51   :  { %7834 = vst [vmem:[#allocation28_spill] sm:$0xff] %v5657_v18  ;;  %4507 = vmatprep.mubr.msk.f32.mxu0 %vm239_vm0, %v5299_v0  ;;  %4535 = vmatprep.mubr.msk.f32.mxu1 %vm239_vm0, %v205_v56  ;;  %v1494_v18 = vmul.f32 %v205_v56, %v5252_v31  ;;  %v5674_v50 = vmul.f32 %v5605_v39, %v5304_v49  ;;  %v56_v31 = vld [vmem:[%s7734_s0 + $0x138] sm:$0xff] }
  0x52   :  { %1610 = vadd.xlane.f32.xlu1 %v1609_v41  ;;  %1607 = vadd.xlane.f32.xlu0 %v1606_v44  ;;  %v207_v29 = vmul.f32 %v5605_v39, %v5313_v21  ;;  %v215_v32 = vmul.f32 %v5661_v8, %v5323_v60  ;;  %v55_v44 = vld [vmem:[%s7734_s0 + $0x130] sm:$0xff]  ;;  %v5725_v41 = vmul.f32 %v5605_v39, %v54_v26 }
  0x53   :  { %4757 = vmatpush3.bf16.xpose.msk.msra.mxu0 %vm4895_vm1, %v5469_v24  ;;  %4781 = vmatpush3.bf16.xpose.msk.msra.mxu1 %vm4895_vm1, %v5473_v12  ;;  %v1621_v24 = vsel %vm239_vm0, %v1495_v7, 0.0  ;;  %v5696_v12 = vmul.f32 %v5605_v39, %v5410_v1  ;;  %v1497_v0 = vmul.f32 %v5674_v50, %v5304_v49  ;;  %v4764_v49 = vpack.c.bf16 %v56_v31, %v55_v44 }
  0x54   :  { %4508 = vmatmul.mubr.msk.f32.gmra.mrb[14].mxu0 %vm239_vm0, %v5293_v63  ;;  %4760 = vmatprep.subr.msk.bf16.mxu0 %vm4895_vm1, %v4758_v37  ;;  %v1618_v63 = vsel %vm239_vm0, %v1494_v18, 0.0  ;;  %v1496_v6 = vmul.f32 %v207_v29, %v5313_v21  ;;  %v5729_v56 = vmul.f32 %v5605_v39, %v5629_v23 }
  0x55   :  { %4536 = vmatmul.mubr.msk.f32.gmra.mrb[14].mxu1 %vm239_vm0, %v206_v9  ;;  %4784 = vmatprep.subr.msk.bf16.mxu1 %vm4895_vm1, %v4782_v28  ;;  %v209_v9 = vmul.f32 %v5605_v39, %v5440_v54  ;;  %v1627_v18 = vsel %vm239_vm0, %v1497_v0, 0.0  ;;  %v1499_v7 = vmul.f32 %v5696_v12, %v5410_v1  ;;  %v5746_v1 = vmul.f32 %v5605_v39, %v56_v31 }
  0x56   :  { %1616 = vadd.xlane.f32.xlu1 %v1615_v53  ;;  %1613 = vadd.xlane.f32.xlu0 %v1612_v36  ;;  %v5718_v36 = vld [vmem:[%s7734_s0 + $0x170] sm:$0xff]  ;;  %v1624_v53 = vsel %vm239_vm0, %v1496_v6, 0.0  ;;  %v4794_v0 = vpack.c.bf16 %v5335_v2, %v5340_v55  ;;  %v4818_v6 = vpack.c.bf16 %v5491_v30, %v5496_v35  ;;  %v218_v55 = vmul.f32 %v5661_v8, %v5445_v15 }
  0x57   :  { %4554 = vmatprep.mubr.msk.f32.mxu0 %vm239_vm0, %v207_v29  ;;  %4582 = vmatprep.mubr.msk.f32.mxu1 %vm239_vm0, %v215_v32  ;;  %v4788_v21 = vpack.c.bf16 %v5713_v46, %v5718_v36  ;;  %v1498_v29 = vmul.f32 %v209_v9, %v5440_v54  ;;  %v1633_v54 = vsel %vm239_vm0, %v1499_v7, 0.0 }
  0x5a   :  { %1622 = vadd.xlane.f32.xlu1 %v1621_v24  ;;  %1619 = vadd.xlane.f32.xlu0 %v1618_v63  ;;  %v1501_v24 = vmul.f32 %v5725_v41, %v54_v26  ;;  %v213_v63 = vmul.f32 %v5605_v39, %v55_v44  ;;  %v1503_v26 = vmul.f32 %v5746_v1, %v56_v31 }
  0x5b   :  { %4763 = vmatpush3.bf16.xpose.msk.msra.mxu0 %vm4895_vm1, %v4758_v37  ;;  %4787 = vmatpush3.bf16.xpose.msk.msra.mxu1 %vm4895_vm1, %v4782_v28  ;;  %v1630_v37 = vsel %vm239_vm0, %v1498_v29, 0.0  ;;  %v1500_v28 = vmul.f32 %v5729_v56, %v5629_v23  ;;  %v216_v23 = vmul.f32 %v5661_v8, %v5318_v22  ;;  %v1504_v39 = vmul.f32 %v215_v32, %v5323_v60 }
  0x5c   :  { %4766 = vmatprep.subr.msk.bf16.mxu0 %vm4895_vm1, %v4764_v49  ;;  %4790 = vmatprep.subr.msk.bf16.mxu1 %vm4895_vm1, %v4788_v21  ;;  %v1502_v7 = vmul.f32 %v213_v63, %v55_v44  ;;  %v1645_v2 = vsel %vm239_vm0, %v1503_v26, 0.0  ;;  %v217_v31 = vmul.f32 %v5661_v8, %v5450_v38  ;;  %v220_v44 = vmul.f32 %v5661_v8, %v5645_v57  ;;  %v7847_v26 = vld [vmem:[#allocation13_spill] sm:$0xff] }
  0x5d   :  { %v1505_v35 = vmul.f32 %v216_v23, %v5318_v22  ;;  %v1648_v29 = vsel %vm239_vm0, %v1504_v39, 0.0  ;;  %v4800_v60 = vpack.c.bf16 %v5345_v14, %v5357_v62  ;;  %v4824_v32 = vpack.c.bf16 %v5513_v4, %v5501_v11 }
  0x5e   :  { %1628 = vadd.xlane.f32.xlu1 %v1627_v18  ;;  %1625 = vadd.xlane.f32.xlu0 %v1624_v53  ;;  %v1639_v18 = vsel %vm239_vm0, %v1501_v24, 0.0  ;;  %v1636_v53 = vsel %vm239_vm0, %v1500_v28, 0.0  ;;  %v1642_v30 = vsel %vm239_vm0, %v1502_v7, 0.0  ;;  %v1507_v24 = vmul.f32 %v218_v55, %v5445_v15  ;;  %v7843_v28 = vld [vmem:[#allocation11_spill] sm:$0xff]  ;;  %v7851_v7 = vld [vmem:[#allocation28_spill] sm:$0xff] }
  0x5f   :  { %v1506_v22 = vmul.f32 %v217_v31, %v5450_v38  ;;  %v1509_v38 = vmul.f32 %v220_v44, %v5645_v57  ;;  %v222_v15 = vmul.f32 %v5661_v8, %v5713_v46  ;;  %v221_v4 = vmul.f32 %v5661_v8, %v5718_v36 }
  0x60   :  { %v4806_v11 = vpack.c.bf16 %v5362_v17, %v5377_v48 }
  0x61   :  { %v1654_v14 = vsel %vm239_vm0, %v1506_v22, 0.0  ;;  %v1663_v57 = vsel %vm239_vm0, %v1509_v38, 0.0 }
  0x62   :  { %1634 = vadd.xlane.f32.xlu1 %v1633_v54  ;;  %1631 = vadd.xlane.f32.xlu0 %v1630_v37  ;;  %v7841_v54 = vld [vmem:[#allocation21_spill] sm:$0xff]  ;;  %v7842_v37 = vld [vmem:[#allocation23_spill] sm:$0xff] }
  0x63   :  { %4769 = vmatpush3.bf16.xpose.msk.msra.mxu0 %vm4895_vm1, %v4764_v49  ;;  %4793 = vmatpush3.bf16.xpose.msk.msra.mxu1 %vm4895_vm1, %v4788_v21  ;;  %v219_v49 = vmul.f32 %v5661_v8, %v5650_v47  ;;  %v1651_v21 = vsel %vm239_vm0, %v1505_v35, 0.0  ;;  %v1511_v8 = vmul.f32 %v222_v15, %v5713_v46  ;;  %v4812_v46 = vpack.c.bf16 %v5396_v45, %v5430_v51  ;;  %v7835_v45 = vld [vmem:[#allocation15_spill] sm:$0xff] }
  0x64   :  { %4796 = vmatprep.subr.msk.bf16.mxu0 %vm4895_vm1, %v4794_v0  ;;  %4820 = vmatprep.subr.msk.bf16.mxu1 %vm4895_vm1, %v4818_v6 }
  0x65   :  { %v1508_v62 = vmul.f32 %v219_v49, %v5650_v47  ;;  %v1669_v17 = vsel %vm239_vm0, %v1511_v8, 0.0 }
  0x66   :  { %1640 = vadd.xlane.f32.xlu1 %v1639_v18  ;;  %1637 = vadd.xlane.f32.xlu0 %v1636_v53  ;;  %v7848_v18 = vld [vmem:[#allocation22_spill] sm:$0xff] }
  0x67   :  { %v1660_v47 = vsel %vm239_vm0, %v1508_v62, 0.0 }
  0x6a   :  { %1646 = vadd.xlane.f32.xlu1 %v1645_v2  ;;  %1643 = vadd.xlane.f32.xlu0 %v1642_v30  ;;  %v7852_v2 = vld [vmem:[#allocation16_spill] sm:$0xff] }
  0x6b   :  { %4555 = vmatmul.mubr.msk.f32.vlgmr.msra.gmra.mrb[16].mxu0 %vm239_vm0, %v5674_v50  ;;  %4583 = vmatmul.mubr.msk.f32.vlgmr.msra.gmra.mrb[16].mxu1 %vm239_vm0, %v216_v23  ;;  %v1657_v50 = vsel %vm239_vm0, %v1507_v24, 0.0  ;;  %v1717_v23 = vsel %vm239_vm0, %v7851_v7, 0.0 }
  0x6c   :  { %4557 = vmatprep.mubr.msk.f32.mxu0 %vm239_vm0, %v209_v9  ;;  %4585 = vmatprep.mubr.msk.f32.mxu1 %vm239_vm0, %v217_v31  ;;  %v4830_v9 = vpack.c.bf16 %v5523_v13, %v5518_v16  ;;  %v1675_v16 = vsel %vm239_vm0, %v5414_v58, 0.0  ;;  %v1672_v13 = vsel %vm239_vm0, %v5418_v59, 0.0  ;;  %v1678_v58 = vsel %vm239_vm0, %v5454_v34, 0.0  ;;  %v7836_v59 = vld [vmem:[#allocation17_spill] sm:$0xff]  ;;  %v7837_v34 = vld [vmem:[#allocation18_spill] sm:$0xff] }
  0x6d   :  { %4799 = vmatpush3.bf16.xpose.msk.msra.mxu0 %vm4895_vm1, %v4794_v0  ;;  %4823 = vmatpush3.bf16.xpose.msk.msra.mxu1 %vm4895_vm1, %v4818_v6  ;;  %v1684_v51 = vsel %vm239_vm0, %v7836_v59, 0.0  ;;  %v7846_v6 = vld [vmem:[#allocation25_spill] sm:$0xff] }
  0x6e   :  { %1652 = vadd.xlane.f32.xlu1 %v1651_v21  ;;  %1649 = vadd.xlane.f32.xlu0 %v1648_v29 }
  0x6f   :  { %4558 = vmatmul.mubr.msk.f32.gmra.mrb[18].mxu0 %vm239_vm0, %v5696_v12  ;;  %4586 = vmatmul.mubr.msk.f32.gmra.mrb[18].mxu1 %vm239_vm0, %v218_v55  ;;  %v1510_v12 = vmul.f32 %v221_v4, %v5718_v36  ;;  %v4836_v36 = vpack.c.bf16 %v5584_v19, %v5560_v40  ;;  %v1687_v40 = vsel %vm239_vm0, %v7835_v45, 0.0  ;;  %v7853_v55 = vld [vmem:[#allocation26_spill] sm:$0xff] }
  0x70   :  { %4560 = vmatprep.mubr.msk.f32.mxu0 %vm239_vm0, %v5729_v56  ;;  %4588 = vmatprep.mubr.msk.f32.mxu1 %vm239_vm0, %v219_v49  ;;  %v1696_v56 = vsel %vm239_vm0, %v5569_v42, 0.0  ;;  %v1705_v42 = vsel %vm239_vm0, %v5592_v10, 0.0  ;;  %v1711_v10 = vsel %vm239_vm0, %v7846_v6, 0.0 }
  0x71   :  { %4802 = vmatprep.subr.msk.bf16.mxu0 %vm4895_vm1, %v4800_v60  ;;  %4826 = vmatprep.subr.msk.bf16.mxu1 %vm4895_vm1, %v4824_v32  ;;  %v1666_v48 = vsel %vm239_vm0, %v1510_v12, 0.0 }
  0x72   :  { %1658 = vadd.xlane.f32.xlu1 %v1657_v50  ;;  %1655 = vadd.xlane.f32.xlu0 %v1654_v14 }
  0x73   :  { %4561 = vmatmul.mubr.msk.f32.gmra.mrb[20].mxu0 %vm239_vm0, %v5725_v41  ;;  %4589 = vmatmul.mubr.msk.f32.gmra.mrb[20].mxu1 %vm239_vm0, %v220_v44  ;;  %v1699_v41 = vsel %vm239_vm0, %v5565_v27, 0.0  ;;  %v1702_v27 = vsel %vm239_vm0, %v7842_v37, 0.0 }
  0x74   :  { %4563 = vmatprep.mubr.msk.f32.mxu0 %vm239_vm0, %v213_v63  ;;  %4591 = vmatprep.mubr.msk.f32.mxu1 %vm239_vm0, %v221_v4  ;;  %v7845_v63 = vld [vmem:[#allocation24_spill] sm:$0xff] }
  0x75   :  { %4805 = vmatpush3.bf16.xpose.msk.msra.mxu0 %vm4895_vm1, %v4800_v60  ;;  %4829 = vmatpush3.bf16.xpose.msk.msra.mxu1 %vm4895_vm1, %v4824_v32  ;;  %v1708_v0 = vsel %vm239_vm0, %v7845_v63, 0.0 }
  0x76   :  { %1664 = vadd.xlane.f32.xlu1 %v1663_v57  ;;  %1661 = vadd.xlane.f32.xlu0 %v1660_v47 }
  0x77   :  { %4564 = vmatmul.mubr.msk.f32.gmra.mrb[22].mxu0 %vm239_vm0, %v5746_v1  ;;  %4808 = vmatprep.subr.msk.bf16.mxu0 %vm4895_vm1, %v4806_v11  ;;  %v7839_v1 = vld [vmem:[#allocation10_spill] sm:$0xff] }
  0x78   :  { %4592 = vmatmul.mubr.msk.f32.gmra.mrb[22].mxu1 %vm239_vm0, %v222_v15  ;;  %4832 = vmatprep.subr.msk.bf16.mxu1 %vm4895_vm1, %v4830_v9 }
  0x79   :  { %4610 = vmatprep.mubr.msk.f32.mxu0 %vm239_vm0, %v5388_v43  ;;  %4638 = vmatprep.mubr.msk.f32.mxu1 %vm239_vm0, %v5542_v5  ;;  %v1681_v43 = vsel %vm239_vm0, %v5422_v61, 0.0  ;;  %v1693_v61 = vsel %vm239_vm0, %v7837_v34, 0.0  ;;  %v7838_v5 = vld [vmem:[#allocation20_spill] sm:$0xff] }
  0x7a   :  { %1670 = vadd.xlane.f32.xlu1 %v1669_v17  ;;  %1667 = vadd.xlane.f32.xlu0 %v1666_v48  ;;  %v1690_v19 = vsel %vm239_vm0, %v7838_v5, 0.0 }
  0x7d   :  { %4811 = vmatpush3.bf16.xpose.msk.msra.mxu0 %vm4895_vm1, %v4806_v11  ;;  %4835 = vmatpush3.bf16.xpose.msk.msra.mxu1 %vm4895_vm1, %v4830_v9 }
  0x7e   :  { %1676 = vadd.xlane.f32.xlu1 %v1675_v16  ;;  %1673 = vadd.xlane.f32.xlu0 %v1672_v13 }
  0x7f   :  { %4814 = vmatprep.subr.msk.bf16.mxu0 %vm4895_vm1, %v4812_v46  ;;  %4838 = vmatprep.subr.msk.bf16.mxu1 %vm4895_vm1, %v4836_v36 }
  0x82   :  { %1682 = vadd.xlane.f32.xlu1 %v1681_v43  ;;  %1679 = vadd.xlane.f32.xlu0 %v1678_v58 }
  0x85   :  { %4817 = vmatpush3.bf16.xpose.msk.msra.mxu0 %vm4895_vm1, %v4812_v46  ;;  %4841 = vmatpush3.bf16.xpose.msk.msra.mxu1 %vm4895_vm1, %v4836_v36  ;;  %vm4144_vm1 = vcmask 7168  }
  0x86   :  { %1688 = vadd.xlane.f32.xlu1 %v1687_v40  ;;  %1685 = vadd.xlane.f32.xlu0 %v1684_v51  ;;  %v7854_v51 = vld [vmem:[#allocation3_spill] sm:$0xff] }
  0x8a   :  { %1694 = vadd.xlane.f32.xlu1 %v1693_v61  ;;  %1691 = vadd.xlane.f32.xlu0 %v1690_v19 }
  0x8c   :  { %4611 = vmatmul.mubr.msk.f32.vlgmr.msra.gmra.mrb[24].mxu0 %vm239_vm0, %v7839_v1  ;;  %4639 = vmatmul.mubr.msk.f32.vlgmr.msra.gmra.mrb[24].mxu1 %vm239_vm0, %v5539_v33  ;;  %v7844_v33 = vld [vmem:[#allocation14_spill] sm:$0xff] }
  0x8d   :  { %4613 = vmatprep.mubr.msk.f32.mxu0 %vm239_vm0, %v7840_v3  ;;  %4641 = vmatprep.mubr.msk.f32.mxu1 %vm239_vm0, %v7841_v54  ;;  %v7856_v54 = vld [vmem:[#allocation4_spill] sm:$0xff] }
  0x8e   :  { %1700 = vadd.xlane.f32.xlu1 %v1699_v41  ;;  %1697 = vadd.xlane.f32.xlu0 %v1696_v56  ;;  %v7855_v41 = vld [vmem:[#allocation2_spill] sm:$0xff] }
  0x90   :  { %4614 = vmatmul.mubr.msk.f32.gmra.mrb[26].mxu0 %vm239_vm0, %v7843_v28  ;;  %4642 = vmatmul.mubr.msk.f32.gmra.mrb[26].mxu1 %vm239_vm0, %v5549_v20  ;;  %v7849_v20 = vld [vmem:[#allocation19_spill] sm:$0xff] }
  0x91   :  { %4616 = vmatprep.mubr.msk.f32.mxu0 %vm239_vm0, %v7844_v33  ;;  %4644 = vmatprep.mubr.msk.f32.mxu1 %vm239_vm0, %v5552_v52  ;;  %v7850_v52 = vld [vmem:[#allocation27_spill] sm:$0xff]  ;;  %v7857_v33 = vld [vmem:[#allocation5_spill] sm:$0xff] }
  0x92   :  { %1703 = vadd.xlane.f32.xlu0 %v1702_v27  ;;  %1706 = vadd.xlane.f32.xlu1 %v1705_v42  ;;  %v1714_v53 = vsel %vm239_vm0, %v7850_v52, 0.0 }
  0x94   :  { %4617 = vmatmul.mubr.msk.f32.gmra.mrb[28].mxu0 %vm239_vm0, %v7847_v26  ;;  %4645 = vmatmul.mubr.msk.f32.gmra.mrb[28].mxu1 %vm239_vm0, %v7848_v18 }
  0x95   :  { %4619 = vmatprep.mubr.msk.f32.mxu0 %vm239_vm0, %v7849_v20  ;;  %4647 = vmatprep.mubr.msk.f32.mxu1 %vm239_vm0, %v5611_v25  ;;  %v7858_v20 = vld [vmem:[#allocation6_spill] sm:$0xff] }
  0x96   :  { %1709 = vadd.xlane.f32.xlu0 %v1708_v0  ;;  %1712 = vadd.xlane.f32.xlu1 %v1711_v10 }
  0x98   :  { %4620 = vmatmul.mubr.msk.f32.gmra.mrb[30].mxu0 %vm239_vm0, %v7852_v2  ;;  %4648 = vmatmul.mubr.msk.f32.gmra.mrb[30].mxu1 %vm239_vm0, %v7853_v55  ;;  %v4290_v55 = vld [vmem:[%s7736_s2 + $0x48] sm:$0xff] }
  0x9a   :  { %1715 = vadd.xlane.f32.xlu0 %v1714_v53  ;;  %1718 = vadd.xlane.f32.xlu1 %v1717_v23 }
  0xab   :  { %v1536_v30 = vpop.xlane.xlu1 %1535  ;;  %v1530_v35 = vpop.xlane.xlu0 %1529 }
  0xac   :  { %v2386_v59 = vmul.f32 %v1530_v35, %v1530_v35  ;;  %v2388_v61 = vmul.f32 %v1536_v30, %v1536_v30 }
  0xae   :  { %v2517_v56 = vrot.slane %v2386_v59, %v7855_v41  ;;  %v2526_v37 = vrot.slane %v2388_v61, %v7856_v54 }
  0xaf   :  { %v1539_v39 = vpop.xlane.xlu1 %1538  ;;  %v1533_v25 = vpop.xlane.xlu0 %1532 }
  0xb0   :  { %v2387_v58 = vmul.f32 %v1533_v25, %v1533_v25  ;;  %v2389_v1 = vmul.f32 %v1539_v39, %v1539_v39  ;;  %v7859_v25 = vld [vmem:[#allocation7_spill] sm:$0xff] }
  0xb2   :  { %v2521_v34 = vrot.slane %v2387_v58, %v7854_v51  ;;  %v2531_v63 = vrot.slane %v2389_v1, %v7857_v33 }
  0xb3   :  { %v1545_v31 = vpop.xlane.xlu1 %1544  ;;  %v1542_v44 = vpop.xlane.xlu0 %1541 }
  0xb4   :  { %v2522_v3 = vsel %vm2051_vm2, %v2521_v34, %v2517_v56  ;;  %v2390_v27 = vmul.f32 %v1542_v44, %v1542_v44  ;;  %v2391_v26 = vmul.f32 %v1545_v31, %v1545_v31  ;;  %v7860_v56 = vld [vmem:[#allocation8_spill] sm:$0xff] }
  0xb5   :  { %v2527_v0 = vsel %vm2058_vm3, %v2526_v37, %v2522_v3 }
  0xb6   :  { %v2536_v52 = vrot.slane %v2390_v27, %v7858_v20  ;;  %v2532_v23 = vsel %vm2065_vm4, %v2531_v63, %v2527_v0  ;;  %v2541_v31 = vrot.slane %v2391_v26, %v7859_v25 }
  0xb7   :  { %v5923_v49 = vpop.xlane.xlu1 %1550  ;;  %v1548_v21 = vpop.xlane.xlu0 %1547 }
  0xb8   :  { %v2392_v2 = vmul.f32 %v1548_v21, %v1548_v21  ;;  %v2537_v21 = vsel %vm2072_vm5, %v2536_v52, %v2532_v23  ;;  %v2393_v61 = vmul.f32 %v5923_v49, %v5923_v49 }
  0xba   :  { %v2546_v1 = vrot.slane %v2392_v2, %v7860_v56 }
  0xbb   :  { %v1557_v29 = vpop.xlane.xlu1 %1556  ;;  %v1554_v24 = vpop.xlane.xlu0 %1553 }
  0xbc   :  { %v2395_v6 = vmul.f32 %v1557_v29, %v1557_v29  ;;  %v2394_v10 = vmul.f32 %v1554_v24, %v1554_v24 }
  0xbe   :  { %v2560_v30 = vrot.slane %v2395_v6, %v7854_v51  ;;  %v2556_v35 = vrot.slane %v2394_v10, %v7855_v41  ;;  %v2542_v6 = vsel %vm2079_vm6, %v2541_v31, %v2537_v21 }
  0xbf   :  { %v1563_v22 = vpop.xlane.xlu1 %1562  ;;  %v1560_v60 = vpop.xlane.xlu0 %1559 }
  0xc0   :  { %v2396_v18 = vmul.f32 %v1560_v60, %v1560_v60  ;;  %v2397_v39 = vmul.f32 %v1563_v22, %v1563_v22 }
  0xc2   :  { %v2565_v44 = vrot.slane %v2396_v18, %v7856_v54  ;;  %v2570_v27 = vrot.slane %v2397_v39, %v7857_v33  ;;  %v2547_v39 = vsel %vm2086_vm7, %v2546_v1, %v2542_v6 }
  0xc3   :  { %v5925_v32 = vpop.xlane.xlu1 %1568  ;;  %v1566_v38 = vpop.xlane.xlu0 %1565 }
  0xc4   :  { %v2398_v60 = vmul.f32 %v1566_v38, %v1566_v38  ;;  %v2561_v38 = vsel %vm2051_vm2, %v2560_v30, %v2556_v35  ;;  %v2399_v63 = vmul.f32 %v5925_v32, %v5925_v32 }
  0xc5   :  { %v2566_v49 = vsel %vm2058_vm3, %v2565_v44, %v2561_v38 }
  0xc6   :  { %v2575_v23 = vrot.slane %v2398_v60, %v7858_v20  ;;  %v2580_v21 = vrot.slane %v2399_v63, %v7859_v25  ;;  %v2571_v60 = vsel %vm2065_vm4, %v2570_v27, %v2566_v49 }
  0xc7   :  { %v5927_v15 = vpop.xlane.xlu1 %1574  ;;  %v5929_v50 = vpop.xlane.xlu0 %1571 }
  0xc8   :  { %v2400_v31 = vmul.f32 %v5929_v50, %v5929_v50 }
  0xcb   :  { %v5931_v14 = vpop.xlane.xlu1 %1580  ;;  %v5933_v62 = vpop.xlane.xlu0 %1577 }
  0xcc   :  { %v2403_v10 = vmul.f32 %v5931_v14, %v5931_v14  ;;  %v2402_v26 = vmul.f32 %v5933_v62, %v5933_v62  ;;  %v7863_v62 = vld [vmem:[#allocation9_spill] sm:$0xff] }
  0xcd   :  { %v2551_v35 = vrot.slane %v2393_v61, %v7863_v62 }
  0xce   :  { %v2599_v61 = vrot.slane %v2403_v10, %v7854_v51  ;;  %v2595_v1 = vrot.slane %v2402_v26, %v7855_v41  ;;  %v2585_v10 = vrot.slane %v2400_v31, %v7860_v56 }
  0xcf   :  { %v5935_v4 = vpop.xlane.xlu1 %1586  ;;  %v5937_v11 = vpop.xlane.xlu0 %1583 }
  0xd0   :  { %v2404_v32 = vmul.f32 %v5937_v11, %v5937_v11  ;;  %v2405_v50 = vmul.f32 %v5935_v4, %v5935_v4 }
  0xd3   :  { %v5939_v57 = vpop.xlane.xlu1 %1592  ;;  %v5941_v47 = vpop.xlane.xlu0 %1589 }
  0xd4   :  { %v2406_v26 = vmul.f32 %v5941_v47, %v5941_v47 }
  0xd7   :  { %v5943_v8 = vpop.xlane.xlu1 %1598  ;;  %v5945_v12 = vpop.xlane.xlu0 %1595 }
  0xdb   :  { %v5947_v9 = vpop.xlane.xlu1 %1604  ;;  %v5949_v17 = vpop.xlane.xlu0 %1601 }
  0xdf   :  { %v5951_v48 = vpop.xlane.xlu1 %1610  ;;  %v5953_v16 = vpop.xlane.xlu0 %1607 }
  0xe0   :  { %v2412_v38 = vmul.f32 %v5953_v16, %v5953_v16  ;;  %v2401_v16 = vmul.f32 %v5927_v15, %v5927_v15  ;;  %v2413_v31 = vmul.f32 %v5951_v48, %v5951_v48 }
  0xe3   :  { %v5955_v13 = vpop.xlane.xlu1 %1616  ;;  %v5957_v46 = vpop.xlane.xlu0 %1613 }
  0xe7   :  { %v5959_v36 = vpop.xlane.xlu1 %1622  ;;  %v5961_v43 = vpop.xlane.xlu0 %1619 }
  0xeb   :  { %v5963_v45 = vpop.xlane.xlu1 %1628  ;;  %v5965_v40 = vpop.xlane.xlu0 %1625 }
  0xef   :  { %v5968_v5 = vpop.xlane.xlu1 %1634  ;;  %v5970_v19 = vpop.xlane.xlu0 %1631 }
  0xf3   :  { %v5975_v42 = vpop.xlane.xlu1 %1640  ;;  %v5977_v28 = vpop.xlane.xlu0 %1637 }
  0xf7   :  { %v5982_v53 = vpop.xlane.xlu1 %1646  ;;  %v5984_v7 = vpop.xlane.xlu0 %1643 }
  0xf8   :  { %v5994_v29 = vpop.f32.mrb[0].mxu0 }
  0xf9   :  { %v3502_v34 = vmul.f32 %v5994_v29, %v4290_v55  ;;  %v6008_v3 = vpop.f32.mrb[1].mxu0 }
  0xfa   :  { %v5996_v24 = vpop.f32.mrb[0].mxu1  ;;  %v1720_v14 = vmul.f32 %v6008_v3, %v6008_v3 }
  0xfb   :  { %v5999_v58 = vpop.xlane.xlu1 %1652  ;;  %v6001_v59 = vpop.xlane.xlu0 %1649  ;;  %v3510_v22 = vmul.f32 %v5996_v24, %v4290_v55  ;;  %v3568_v0 = vsel %vm239_vm0, %v3502_v34, 0.0  ;;  %v2411_v34 = vmul.f32 %v5947_v9, %v5947_v9  ;;  %v2576_v9 = vsel %vm2072_vm5, %v2575_v23, %v2571_v60  ;;  %v6078_v23 = vld [vmem:[%s7736_s2] sm:$0xff] }
  0xfc   :  { %v6010_v37 = vpop.f32.mrb[1].mxu1  ;;  %3569 = vadd.xlane.f32.xlu0 %v3568_v0  ;;  %v6023_v18 = vpop.f32.mrb[2].mxu0  ;;  %v2604_v0 = vrot.slane %v2404_v32, %v7856_v54  ;;  %v1784_v49 = vsel %vm239_vm0, %v1720_v14, 0.0  ;;  %v6085_v14 = vsel %vm2093_vm8, %v2551_v35, %v2547_v39  ;;  %v2581_v47 = vsel %vm2079_vm6, %v2580_v21, %v2576_v9 }
  0xfd   :  { %7861 = vst [vmem:[#allocation15_spill] sm:$0xff] %v6023_v18  ;;  %v3592_v30 = vsel %vm239_vm0, %v3510_v22, 0.0  ;;  %v6041_v44 = vpop.f32.mrb[3].mxu0  ;;  %v2410_v22 = vmul.f32 %v5949_v17, %v5949_v17  ;;  %v1728_v4 = vmul.f32 %v6010_v37, %v6010_v37  ;;  %v2638_v60 = vrot.slane %v2411_v34, %v7854_v51 }
  0xfe   :  { %v6025_v52 = vpop.f32.mrb[2].mxu1  ;;  %7864 = vst [vmem:[#allocation18_spill] sm:$0xff] %v6041_v44  ;;  %v2414_v39 = vmul.f32 %v5957_v46, %v5957_v46  ;;  %v2849_v21 = vmul.f32 %v6078_v23, %v6008_v3  ;;  %v2408_v9 = vmul.f32 %v5945_v12, %v5945_v12 }
  0xff   :  { %7862 = vst [vmem:[#allocation17_spill] sm:$0xff] %v6025_v52  ;;  %v6030_v2 = vpop.xlane.xlu1 %1658  ;;  %v6032_v55 = vpop.xlane.xlu0 %1655  ;;  %v2634_v15 = vrot.slane %v2410_v22, %v7855_v41  ;;  %v2643_v52 = vrot.slane %v2412_v38, %v7856_v54  ;;  %v1808_v48 = vsel %vm239_vm0, %v1728_v4, 0.0  ;;  %v2614_v38 = vrot.slane %v2406_v26, %v7858_v20 }
 0x100   :  { %v6043_v11 = vpop.f32.mrb[3].mxu1  ;;  %3593 = vadd.xlane.f32.xlu0 %v3592_v30  ;;  %v6057_v63 = vpop.f32.mrb[4].mxu0  ;;  %v2415_v4 = vmul.f32 %v5955_v13, %v5955_v13  ;;  %v2419_v26 = vmul.f32 %v5963_v45, %v5963_v45  ;;  %v2653_v12 = vrot.slane %v2414_v39, %v7858_v20  ;;  %v2624_v39 = vrot.slane %v2408_v9, %v7860_v56 }
 0x101   :  { %7865 = vst [vmem:[#allocation20_spill] sm:$0xff] %v6057_v63  ;;  %v6080_v32 = vpop.f32.mrb[5].mxu0  ;;  %v2609_v63 = vrot.slane %v2405_v50, %v7857_v33  ;;  %v2407_v50 = vmul.f32 %v5939_v57, %v5939_v57 }
 0x102   :  { %v6059_v27 = vpop.f32.mrb[4].mxu1  ;;  %7867 = vst [vmem:[#allocation12_spill] sm:$0xff] %v6080_v32 }
 0x103   :  { %7866 = vst [vmem:[#allocation10_spill] sm:$0xff] %v6059_v27  ;;  %v6063_v17 = vpop.xlane.xlu1 %1664  ;;  %v6065_v6 = vpop.xlane.xlu0 %1661  ;;  %v2600_v27 = vsel %vm2051_vm2, %v2599_v61, %v2595_v1  ;;  %v2590_v61 = vrot.slane %v2401_v16, %v7863_v62  ;;  %v2586_v1 = vsel %vm2086_vm7, %v2585_v10, %v2581_v47  ;;  %v2418_v47 = vmul.f32 %v5965_v40, %v5965_v40 }
 0x104   :  { %v6082_v30 = vpop.f32.mrb[5].mxu1  ;;  %1785 = vadd.xlane.f32.xlu0 %v1784_v49  ;;  %v6095_v18 = vpop.f32.mrb[6].mxu0  ;;  %v2605_v35 = vsel %vm2058_vm3, %v2604_v0, %v2600_v27  ;;  %v2639_v0 = vsel %vm2051_vm2, %v2638_v60, %v2634_v15  ;;  %v2648_v49 = vrot.slane %v2413_v31, %v7857_v33  ;;  %v2420_v60 = vmul.f32 %v5970_v19, %v5970_v19 }
 0x105   :  { %7868 = vst [vmem:[#allocation21_spill] sm:$0xff] %v6082_v30  ;;  %v6112_v27 = vpop.f32.mrb[7].mxu0  ;;  %v2610_v57 = vsel %vm2065_vm4, %v2609_v63, %v2605_v35  ;;  %v2644_v10 = vsel %vm2058_vm3, %v2643_v52, %v2639_v0  ;;  %v2913_v31 = vsel %vm239_vm0, %v2849_v21, 0.0  ;;  %v2857_v52 = vmul.f32 %v6078_v23, %v6010_v37 }
 0x106   :  { %7869 = vst [vmem:[#allocation23_spill] sm:$0xff] %v6112_v27  ;;  %v2591_v63 = vsel %vm2093_vm8, %v2590_v61, %v2586_v1  ;;  %v2619_v45 = vrot.slane %v2407_v50, %v7859_v25  ;;  %v2615_v40 = vsel %vm2072_vm5, %v2614_v38, %v2610_v57  ;;  %v2409_v35 = vmul.f32 %v5943_v8, %v5943_v8 }
 0x107   :  { %v6100_v34 = vpop.xlane.xlu1 %1670  ;;  %v6102_v22 = vpop.xlane.xlu0 %1667  ;;  %v2658_v19 = vrot.slane %v2415_v4, %v7859_v25  ;;  %v2416_v21 = vmul.f32 %v5961_v43, %v5961_v43  ;;  %v2417_v0 = vmul.f32 %v5959_v36, %v5959_v36  ;;  %v2677_v61 = vrot.slane %v2419_v26, %v7854_v51 }
 0x108   :  { %v6114_v46 = vpop.f32.mrb[6].mxu1  ;;  %1809 = vadd.xlane.f32.xlu0 %v1808_v48  ;;  %v2649_v48 = vsel %vm2065_vm4, %v2648_v49, %v2644_v10  ;;  %v2673_v1 = vrot.slane %v2418_v47, %v7855_v41  ;;  %v2421_v50 = vmul.f32 %v5968_v5, %v5968_v5  ;;  %v2682_v38 = vrot.slane %v2420_v60, %v7856_v54 }
 0x109   :  { %7870 = vst [vmem:[#allocation11_spill] sm:$0xff] %v6114_v46  ;;  %v6122_v16 = vpop.f32.mrb[7].mxu1  ;;  %v2654_v8 = vsel %vm2072_vm5, %v2653_v12, %v2649_v48  ;;  %v2937_v4 = vsel %vm239_vm0, %v2857_v52, 0.0  ;;  %v1722_v43 = vmul.f32 %v6041_v44, %v6041_v44  ;;  %v2620_v36 = vsel %vm2079_vm6, %v2619_v45, %v2615_v40 }
 0x10a   :  { %7871 = vst [vmem:[#allocation14_spill] sm:$0xff] %v6122_v16  ;;  %v2422_v57 = vmul.f32 %v5977_v28, %v5977_v28  ;;  %v2427_v5 = vmul.f32 %v5999_v58, %v5999_v58  ;;  %v2426_v10 = vmul.f32 %v6001_v59, %v6001_v59  ;;  %v2629_v26 = vrot.slane %v2409_v35, %v7863_v62 }
 0x10b   :  { %v1677_v13 = vpop.xlane.xlu1 %1676  ;;  %v1674_v15 = vpop.xlane.xlu0 %1673  ;;  %v2625_v47 = vsel %vm2086_vm7, %v2624_v39, %v2620_v36  ;;  %v2663_v12 = vrot.slane %v2416_v21, %v7860_v56  ;;  %v2428_v60 = vmul.f32 %v6032_v55, %v6032_v55  ;;  %v2659_v52 = vsel %vm2079_vm6, %v2658_v19, %v2654_v8 }
 0x10c   :  { %2914 = vadd.xlane.f32.xlu0 %v2913_v31  ;;  %v2668_v31 = vrot.slane %v2417_v0, %v7863_v62  ;;  %v2678_v28 = vsel %vm2051_vm2, %v2677_v61, %v2673_v1  ;;  %v2687_v58 = vrot.slane %v2421_v50, %v7857_v33  ;;  %v2423_v45 = vmul.f32 %v5975_v42, %v5975_v42  ;;  %v6187_v42 = vld [vmem:[%s7736_s2 + $0x10] sm:$0xff] }
 0x10d   :  { %v2683_v59 = vsel %vm2058_vm3, %v2682_v38, %v2678_v28  ;;  %v1790_v39 = vsel %vm239_vm0, %v1722_v43, 0.0  ;;  %v1730_v55 = vmul.f32 %v6043_v11, %v6043_v11  ;;  %v2692_v48 = vrot.slane %v2422_v57, %v7858_v20 }
 0x10e   :  { %v2716_v19 = vrot.slane %v2427_v5, %v7854_v51  ;;  %v2712_v21 = vrot.slane %v2426_v10, %v7855_v41  ;;  %v2429_v0 = vmul.f32 %v6030_v2, %v6030_v2  ;;  %v2664_v61 = vsel %vm2086_vm7, %v2663_v12, %v2659_v52 }
 0x10f   :  { %v1683_v9 = vpop.xlane.xlu1 %1682  ;;  %v1680_v49 = vpop.xlane.xlu0 %1679  ;;  %v2721_v1 = vrot.slane %v2428_v60, %v7856_v54  ;;  %v2435_v50 = vmul.f32 %v1677_v13, %v1677_v13  ;;  %v2434_v8 = vmul.f32 %v1674_v15, %v1674_v15  ;;  %v6193_v38 = vsel %vm2368_vm9, %v2591_v63, %v6085_v14 }
 0x110   :  { %2938 = vadd.xlane.f32.xlu0 %v2937_v4  ;;  %v6196_v4 = vsel %vm2093_vm8, %v2629_v26, %v2625_v47  ;;  %v2688_v2 = vsel %vm2065_vm4, %v2687_v58, %v2683_v59  ;;  %v2436_v43 = vmul.f32 %v1680_v49, %v1680_v49  ;;  %v2697_v36 = vrot.slane %v2423_v45, %v7859_v25 }
 0x111   :  { %v6202_v57 = vmul.f32 %v5984_v7, %v5984_v7  ;;  %v1814_v15 = vsel %vm239_vm0, %v1730_v55, 0.0  ;;  %v2851_v14 = vmul.f32 %v6187_v42, %v6041_v44  ;;  %v6210_v63 = vsel %vm2093_vm8, %v2668_v31, %v2664_v61 }
 0x112   :  { %v2693_v49 = vsel %vm2072_vm5, %v2692_v48, %v2688_v2  ;;  %v2717_v10 = vsel %vm2051_vm2, %v2716_v19, %v2712_v21  ;;  %v2726_v26 = vrot.slane %v2429_v0, %v7857_v33  ;;  %v2430_v47 = vmul.f32 %v6065_v6, %v6065_v6 }
 0x113   :  { %v1689_v40 = vpop.xlane.xlu1 %1688  ;;  %v1686_v35 = vpop.xlane.xlu0 %1685  ;;  %v2722_v7 = vsel %vm2058_vm3, %v2721_v1, %v2717_v10  ;;  %v2755_v12 = vrot.slane %v2435_v50, %v7854_v51  ;;  %v2751_v60 = vrot.slane %v2434_v8, %v7855_v41  ;;  %v6222_v52 = vmul.f32 %v5982_v53, %v5982_v53 }
 0x114   :  { %1791 = vadd.xlane.f32.xlu0 %v1790_v39  ;;  %v2437_v31 = vmul.f32 %v1683_v9, %v1683_v9  ;;  %v2760_v28 = vrot.slane %v2436_v43, %v7856_v54  ;;  %v2859_v58 = vmul.f32 %v6187_v42, %v6043_v11  ;;  %v6228_v59 = vsel %vm2079_vm6, %v2697_v36, %v2693_v49 }
 0x115   :  { %v2438_v45 = vmul.f32 %v1686_v35, %v1686_v35  ;;  %v2919_v48 = vsel %vm239_vm0, %v2851_v14, 0.0  ;;  %v2431_v53 = vmul.f32 %v6063_v17, %v6063_v17  ;;  %v2727_v9 = vsel %vm2065_vm4, %v2726_v26, %v2722_v7 }
 0x116   :  { %v2731_v1 = vrot.slane %v2430_v47, %v7858_v20  ;;  %v2432_v35 = vmul.f32 %v6102_v22, %v6102_v22  ;;  %v2756_v50 = vsel %vm2051_vm2, %v2755_v12, %v2751_v60  ;;  %v1724_v8 = vmul.f32 %v6080_v32, %v6080_v32 }
 0x117   :  { %v6204_v5 = vpop.xlane.xlu1 %1694  ;;  %v1692_v13 = vpop.xlane.xlu0 %1691  ;;  %v2765_v43 = vrot.slane %v2437_v31, %v7857_v33  ;;  %v2761_v36 = vsel %vm2058_vm3, %v2760_v28, %v2756_v50  ;;  %v2943_v14 = vsel %vm239_vm0, %v2859_v58, 0.0  ;;  %v2770_v22 = vrot.slane %v2438_v45, %v7858_v20 }
 0x118   :  { %1815 = vadd.xlane.f32.xlu0 %v1814_v15  ;;  %v2439_v15 = vmul.f32 %v1689_v40, %v1689_v40  ;;  %v2440_v49 = vmul.f32 %v1692_v13, %v1692_v13  ;;  %v2736_v12 = vrot.slane %v2431_v53, %v7859_v25  ;;  %v1732_v40 = vmul.f32 %v6082_v30, %v6082_v30 }
 0x119   :  { %v2732_v13 = vsel %vm2072_vm5, %v2731_v1, %v2727_v9  ;;  %v2433_v45 = vmul.f32 %v6100_v34, %v6100_v34  ;;  %v2441_v50 = vmul.f32 %v6204_v5, %v6204_v5  ;;  %v6280_v34 = vld [vmem:[%s7736_s2 + $0x20] sm:$0xff]  ;;  %v2707_v5 = vrot.slane %v6222_v52, %v7863_v62 }
 0x11a   :  { %v6236_v0 = vpop.f32.mrb[8].mxu0  ;;  %v6238_v61 = vpop.f32.mrb[8].mxu1  ;;  %v2853_v52 = vmul.f32 %v6280_v34, %v6080_v32 }
 0x11b   :  { %v1701_v39 = vpop.xlane.xlu1 %1700  ;;  %v1698_v55 = vpop.xlane.xlu0 %1697 }
 0x11c   :  { %v2443_v19 = vmul.f32 %v1701_v39, %v1701_v39  ;;  %v2442_v21 = vmul.f32 %v1698_v55, %v1698_v55  ;;  %v6246_v2 = vpop.f32.mrb[9].mxu0  ;;  %v6248_v17 = vpop.f32.mrb[9].mxu1  ;;  %2920 = vadd.xlane.f32.xlu0 %v2919_v48  ;;  %v2741_v39 = vrot.slane %v2432_v35, %v7860_v56  ;;  %v1796_v55 = vsel %vm239_vm0, %v1724_v8, 0.0 }
 0x11d   :  { %7872 = vst [vmem:[#allocation24_spill] sm:$0xff] %v6246_v2  ;;  %v2780_v35 = vrot.slane %v2440_v49, %v7860_v56 }
 0x11e   :  { %v2794_v10 = vrot.slane %v2443_v19, %v7854_v51  ;;  %v2790_v26 = vrot.slane %v2442_v21, %v7855_v41  ;;  %v6259_v28 = vpop.f32.mrb[10].mxu0  ;;  %v6261_v58 = vpop.f32.mrb[10].mxu1  ;;  %v2775_v19 = vrot.slane %v2439_v15, %v7859_v25  ;;  %v2766_v21 = vsel %vm2065_vm4, %v2765_v43, %v2761_v36 }
 0x11f   :  { %v1704_v7 = vpop.xlane.xlu0 %1703  ;;  %v1707_v47 = vpop.xlane.xlu1 %1706  ;;  %7873 = vst [vmem:[#allocation25_spill] sm:$0xff] %v6261_v58  ;;  %v2771_v1 = vsel %vm2072_vm5, %v2770_v22, %v2766_v21  ;;  %v7878_v22 = vrot.slane %v6202_v57, %v7860_v56 }
 0x120   :  { %v2444_v60 = vmul.f32 %v1704_v7, %v1704_v7  ;;  %v2445_v31 = vmul.f32 %v1707_v47, %v1707_v47  ;;  %v6268_v48 = vpop.f32.mrb[11].mxu0  ;;  %v6270_v53 = vpop.f32.mrb[11].mxu1  ;;  %2944 = vadd.xlane.f32.xlu0 %v2943_v14  ;;  %v2795_v8 = vsel %vm2051_vm2, %v2794_v10, %v2790_v26  ;;  %v2746_v10 = vrot.slane %v2433_v45, %v7863_v62 }
 0x121   :  { %7874 = vst [vmem:[#allocation13_spill] sm:$0xff] %v6268_v48  ;;  %7875 = vst [vmem:[#allocation22_spill] sm:$0xff] %v6270_v53  ;;  %v2703_v49 = vsel %vm2086_vm7, %v7878_v22, %v6228_v59  ;;  %v2737_v26 = vsel %vm2079_vm6, %v2736_v12, %v2732_v13  ;;  %v2776_v57 = vsel %vm2079_vm6, %v2775_v19, %v2771_v1 }
 0x122   :  { %v2799_v9 = vrot.slane %v2444_v60, %v7856_v54  ;;  %v2804_v15 = vrot.slane %v2445_v31, %v7857_v33  ;;  %v2781_v22 = vsel %vm2086_vm7, %v2780_v35, %v2776_v57 }
 0x123   :  { %v1710_v43 = vpop.xlane.xlu0 %1709  ;;  %v1713_v36 = vpop.xlane.xlu1 %1712 }
 0x124   :  { %v2800_v14 = vsel %vm2058_vm3, %v2799_v9, %v2795_v8  ;;  %v2446_v7 = vmul.f32 %v1710_v43, %v1710_v43  ;;  %v2447_v47 = vmul.f32 %v1713_v36, %v1713_v36  ;;  %v6289_v60 = vpop.f32.mrb[12].mxu0  ;;  %v6291_v6 = vpop.f32.mrb[12].mxu1  ;;  %v2742_v9 = vsel %vm2086_vm7, %v2741_v39, %v2737_v26  ;;  %1797 = vadd.xlane.f32.xlu0 %v1796_v55 }
 0x125   :  { %7876 = vst [vmem:[#allocation19_spill] sm:$0xff] %v6289_v60  ;;  %7877 = vst [vmem:[#allocation27_spill] sm:$0xff] %v6291_v6  ;;  %v6302_v31 = vpop.f32.mrb[13].mxu0  ;;  %v6304_v21 = vpop.f32.mrb[13].mxu1  ;;  %v2785_v8 = vrot.slane %v2441_v50, %v7863_v62  ;;  %v2805_v59 = vsel %vm2065_vm4, %v2804_v15, %v2800_v14  ;;  %v1820_v36 = vsel %vm239_vm0, %v1732_v40, 0.0  ;;  %v2708_v50 = vsel %vm2093_vm8, %v2707_v5, %v2703_v49 }
 0x126   :  { %7879 = vst [vmem:[#allocation28_spill] sm:$0xff] %v6302_v31  ;;  %7880 = vst [vmem:[#allocation16_spill] sm:$0xff] %v6304_v21  ;;  %v2809_v43 = vrot.slane %v2446_v7, %v7858_v20  ;;  %v2814_v12 = vrot.slane %v2447_v47, %v7859_v25  ;;  %v2747_v19 = vsel %vm2093_vm8, %v2746_v10, %v2742_v9  ;;  %v2925_v49 = vsel %vm239_vm0, %v2853_v52, 0.0 }
 0x127   :  { %v1716_v13 = vpop.xlane.xlu0 %1715  ;;  %v1719_v45 = vpop.xlane.xlu1 %1718  ;;  %v2827_v40 = vsel %vm2370_vm10, %v6196_v4, %v6193_v38  ;;  %v2786_v14 = vsel %vm2093_vm8, %v2785_v8, %v2781_v22  ;;  %v2861_v4 = vmul.f32 %v6280_v34, %v6082_v30  ;;  %v1734_v22 = vmul.f32 %v6122_v16, %v6122_v16 }
 0x128   :  { %v2810_v44 = vsel %vm2072_vm5, %v2809_v43, %v2805_v59  ;;  %v2448_v39 = vmul.f32 %v1716_v13, %v1716_v13  ;;  %v2449_v26 = vmul.f32 %v1719_v45, %v1719_v45  ;;  %v6316_v7 = vpop.f32.mrb[14].mxu0  ;;  %v6318_v55 = vpop.f32.mrb[14].mxu1  ;;  %1821 = vadd.xlane.f32.xlu0 %v1820_v36  ;;  %v2828_v47 = vsel %vm2372_vm11, %v6210_v63, %v2827_v40 }
 0x129   :  { %7881 = vst [vmem:[#allocation26_spill] sm:$0xff] %v6316_v7  ;;  %7882 = vst [vmem:[#allocation3_spill] sm:$0xff] %v6318_v55  ;;  %v6324_v1 = vpop.f32.mrb[15].mxu0  ;;  %v6326_v35 = vpop.f32.mrb[15].mxu1  ;;  %v2815_v10 = vsel %vm2079_vm6, %v2814_v12, %v2810_v44  ;;  %v2829_v38 = vsel %vm2374_vm12, %v2708_v50, %v2828_v47  ;;  %v2949_v44 = vsel %vm239_vm0, %v2861_v4, 0.0  ;;  %v1721_v59 = vmul.f32 %v5994_v29, %v5994_v29 }
 0x12a   :  { %7883 = vst [vmem:[#allocation2_spill] sm:$0xff] %v6326_v35  ;;  %v2819_v15 = vrot.slane %v2448_v39, %v7860_v56  ;;  %v2824_v5 = vrot.slane %v2449_v26, %v7863_v62  ;;  %v2830_v43 = vsel %vm2376_vm13, %v2747_v19, %v2829_v38  ;;  %v1726_v12 = vmul.f32 %v6112_v27, %v6112_v27  ;;  %v6358_v39 = vld [vmem:[%s7736_s2 + $0x30] sm:$0xff]  ;;  %v6363_v26 = vld [vmem:[%s7736_s2 + $0x8] sm:$0xff] }
 0x12b   :  { %v2831_v8 = vsel %vm2378_vm14, %v2786_v14, %v2830_v43  ;;  %v1787_v13 = vsel %vm239_vm0, %v1721_v59, 0.0  ;;  %v1729_v36 = vmul.f32 %v5996_v24, %v5996_v24  ;;  %v1826_v19 = vsel %vm239_vm0, %v1734_v22, 0.0 }
 0x12c   :  { %v2820_v9 = vsel %vm2086_vm7, %v2819_v15, %v2815_v10  ;;  %2926 = vadd.xlane.f32.xlu0 %v2925_v49  ;;  %v1802_v45 = vsel %vm239_vm0, %v1726_v12, 0.0  ;;  %v2850_v40 = vmul.f32 %v5994_v29, %v6363_v26  ;;  %v2855_v15 = vmul.f32 %v6358_v39, %v6112_v27  ;;  %v6380_v29 = vld [vmem:[%s7736_s2 + $0x40] sm:$0xff] }
 0x12d   :  { %v2825_v57 = vsel %vm2093_vm8, %v2824_v5, %v2820_v9  ;;  %v1811_v50 = vsel %vm239_vm0, %v1729_v36, 0.0  ;;  %v2863_v5 = vmul.f32 %v6358_v39, %v6122_v16  ;;  %v2858_v49 = vmul.f32 %v5996_v24, %v6363_v26  ;;  %7884 = vst [vmem:[#allocation4_spill] sm:$0xff] %v6380_v29 }
 0x12e   :  { %v2832_v63 = vsel %vm2380_vm15, %v2825_v57, %v2831_v8  ;;  %v2916_v14 = vsel %vm239_vm0, %v2850_v40, 0.0  ;;  %v2931_v47 = vsel %vm239_vm0, %v2855_v15, 0.0  ;;  %v1736_v43 = vmul.f32 %v6246_v2, %v6246_v2  ;;  %v7889_v15 = vld [vmem:[#allocation15_spill] sm:$0xff] }
 0x12f   :  { %v2834_v52 = vsel %vm239_vm0, %v2832_v63, 0.0  ;;  %v2940_v4 = vsel %vm239_vm0, %v2858_v49, 0.0  ;;  %v2955_v9 = vsel %vm239_vm0, %v2863_v5, 0.0  ;;  %v3501_v24 = vmul.f32 %v6380_v29, %v6008_v3 }
 0x130   :  { %2835 = vadd.xlane.f32.xlu1 %v2834_v52  ;;  %2950 = vadd.xlane.f32.xlu0 %v2949_v44  ;;  %v1744_v59 = vmul.f32 %v6248_v17, %v6248_v17  ;;  %v1832_v12 = vsel %vm239_vm0, %v1736_v43, 0.0  ;;  %v3509_v3 = vmul.f32 %v6380_v29, %v6010_v37  ;;  %v1723_v37 = vmul.f32 %v7889_v15, %v7889_v15  ;;  %v7892_v43 = vld [vmem:[#allocation17_spill] sm:$0xff] }
 0x131   :  { %v3565_v44 = vsel %vm239_vm0, %v3501_v24, 0.0  ;;  %v2873_v49 = vmul.f32 %v6078_v23, %v6248_v17  ;;  %v1731_v24 = vmul.f32 %v7892_v43, %v7892_v43  ;;  %v1746_v27 = vmul.f32 %v6270_v53, %v6270_v53 }
 0x132   :  { %v1856_v40 = vsel %vm239_vm0, %v1744_v59, 0.0 }
 0x134   :  { %1788 = vadd.xlane.f32.xlu1 %v1787_v13  ;;  %1803 = vadd.xlane.f32.xlu0 %v1802_v45 }
 0x138   :  { %1812 = vadd.xlane.f32.xlu1 %v1811_v50  ;;  %1827 = vadd.xlane.f32.xlu0 %v1826_v19  ;;  %v2865_v50 = vmul.f32 %v6078_v23, %v6246_v2  ;;  %v3589_v19 = vsel %vm239_vm0, %v3509_v3, 0.0 }
 0x13c   :  { %2917 = vadd.xlane.f32.xlu1 %v2916_v14  ;;  %2932 = vadd.xlane.f32.xlu0 %v2931_v47 }
 0x13e   :  { %v6382_v10 = vpop.f32.mrb[16].mxu0  ;;  %v6384_v38 = vpop.f32.mrb[16].mxu1 }
 0x13f   :  { %7885 = vst [vmem:[#allocation5_spill] sm:$0xff] %v6382_v10  ;;  %v6392_v57 = vpop.f32.mrb[17].mxu0  ;;  %v6394_v8 = vpop.f32.mrb[17].mxu1 }
 0x140   :  { %7886 = vst [vmem:[#allocation6_spill] sm:$0xff] %v6394_v8  ;;  %2941 = vadd.xlane.f32.xlu1 %v2940_v4  ;;  %2956 = vadd.xlane.f32.xlu0 %v2955_v9  ;;  %v1793_v4 = vsel %vm239_vm0, %v1723_v37, 0.0  ;;  %v2961_v9 = vsel %vm239_vm0, %v2865_v50, 0.0  ;;  %v2985_v50 = vsel %vm239_vm0, %v2873_v49, 0.0  ;;  %v2867_v49 = vmul.f32 %v6187_v42, %v6268_v48 }
 0x142   :  { %v6396_v63 = vpop.f32.mrb[18].mxu0  ;;  %v6398_v52 = vpop.f32.mrb[18].mxu1 }
 0x143   :  { %v6406_v13 = vpop.f32.mrb[19].mxu0  ;;  %v6408_v45 = vpop.f32.mrb[19].mxu1 }
 0x144   :  { %3566 = vadd.xlane.f32.xlu1 %v3565_v44  ;;  %1833 = vadd.xlane.f32.xlu0 %v1832_v12  ;;  %v6439_v12 = vld [vmem:[%s7736_s2 + $0x18] sm:$0xff] }
 0x145   :  { %v2852_v37 = vmul.f32 %v7889_v15, %v6439_v12 }
 0x146   :  { %v6410_v36 = vpop.f32.mrb[20].mxu0  ;;  %v6412_v22 = vpop.f32.mrb[20].mxu1 }
 0x147   :  { %7887 = vst [vmem:[#allocation7_spill] sm:$0xff] %v6410_v36  ;;  %7888 = vst [vmem:[#allocation8_spill] sm:$0xff] %v6412_v22  ;;  %v6420_v5 = vpop.f32.mrb[21].mxu0  ;;  %v6422_v14 = vpop.f32.mrb[21].mxu1 }
 0x148   :  { %7890 = vst [vmem:[#allocation29_spill] sm:$0xff] %v6420_v5  ;;  %7891 = vst [vmem:[#allocation30_spill] sm:$0xff] %v6422_v14  ;;  %3590 = vadd.xlane.f32.xlu1 %v3589_v19  ;;  %1857 = vadd.xlane.f32.xlu0 %v1856_v40  ;;  %v1817_v19 = vsel %vm239_vm0, %v1731_v24, 0.0  ;;  %v1738_v40 = vmul.f32 %v6268_v48, %v6268_v48 }
 0x14a   :  { %v6424_v47 = vpop.f32.mrb[22].mxu0  ;;  %v1838_v30 = vsel %vm239_vm0, %v1738_v40, 0.0  ;;  %v2875_v40 = vmul.f32 %v6187_v42, %v6270_v53 }
 0x14b   :  { %v6432_v44 = vpop.f32.mrb[23].mxu0  ;;  %v6434_v59 = vpop.f32.mrb[22].mxu1 }
 0x14c   :  { %7893 = vst [vmem:[#allocation17_spill] sm:$0xff] %v6432_v44  ;;  %1794 = vadd.xlane.f32.xlu1 %v1793_v4  ;;  %v6441_v3 = vpop.f32.mrb[23].mxu1  ;;  %2962 = vadd.xlane.f32.xlu0 %v2961_v9  ;;  %v2922_v4 = vsel %vm239_vm0, %v2852_v37, 0.0  ;;  %v2860_v9 = vmul.f32 %v7892_v43, %v6439_v12 }
 0x14d   :  { %7894 = vst [vmem:[#allocation31_spill] sm:$0xff] %v6441_v3 }
 0x14e   :  { %v2946_v24 = vsel %vm239_vm0, %v2860_v9, 0.0 }
 0x150   :  { %1818 = vadd.xlane.f32.xlu1 %v1817_v19  ;;  %2986 = vadd.xlane.f32.xlu0 %v2985_v50  ;;  %v1862_v19 = vsel %vm239_vm0, %v1746_v27, 0.0  ;;  %v7895_v50 = vld [vmem:[#allocation20_spill] sm:$0xff]  ;;  %v6470_v27 = vld [vmem:[%s7736_s2 + $0x28] sm:$0xff] }
 0x151   :  { %v1725_v37 = vmul.f32 %v7895_v50, %v7895_v50 }
 0x153   :  { %v1799_v15 = vsel %vm239_vm0, %v1725_v37, 0.0 }
 0x154   :  { %2923 = vadd.xlane.f32.xlu1 %v2922_v4  ;;  %1839 = vadd.xlane.f32.xlu0 %v1838_v30  ;;  %v2967_v4 = vsel %vm239_vm0, %v2867_v49, 0.0  ;;  %v7896_v30 = vld [vmem:[#allocation10_spill] sm:$0xff]  ;;  %v2854_v49 = vmul.f32 %v7895_v50, %v6470_v27 }
 0x155   :  { %v1733_v2 = vmul.f32 %v7896_v30, %v7896_v30  ;;  %v2862_v16 = vmul.f32 %v7896_v30, %v6470_v27  ;;  %v1727_v30 = vmul.f32 %v6095_v18, %v6095_v18 }
 0x157   :  { %v1823_v9 = vsel %vm239_vm0, %v1733_v2, 0.0  ;;  %v2928_v2 = vsel %vm239_vm0, %v2854_v49, 0.0  ;;  %v2952_v49 = vsel %vm239_vm0, %v2862_v16, 0.0  ;;  %v1805_v16 = vsel %vm239_vm0, %v1727_v30, 0.0 }
 0x158   :  { %2947 = vadd.xlane.f32.xlu1 %v2946_v24  ;;  %1863 = vadd.xlane.f32.xlu0 %v1862_v19  ;;  %v2991_v24 = vsel %vm239_vm0, %v2875_v40, 0.0  ;;  %v1740_v19 = vmul.f32 %v6302_v31, %v6302_v31  ;;  %v1748_v40 = vmul.f32 %v6304_v21, %v6304_v21 }
 0x15c   :  { %1800 = vadd.xlane.f32.xlu1 %v1799_v15  ;;  %2968 = vadd.xlane.f32.xlu0 %v2967_v4  ;;  %v1844_v4 = vsel %vm239_vm0, %v1740_v19, 0.0  ;;  %v1868_v19 = vsel %vm239_vm0, %v1748_v40, 0.0 }
 0x15f   :  { %v6478_v37 = vpop.f32.mrb[24].mxu0  ;;  %v6480_v53 = vpop.f32.mrb[24].mxu1 }
 0x160   :  { %7897 = vst [vmem:[#allocation32_spill] sm:$0xff] %v6478_v37  ;;  %7898 = vst [vmem:[#allocation33_spill] sm:$0xff] %v6480_v53  ;;  %1824 = vadd.xlane.f32.xlu1 %v1823_v9  ;;  %v6482_v15 = vpop.f32.mrb[25].mxu0  ;;  %v6484_v48 = vpop.f32.mrb[25].mxu1  ;;  %2992 = vadd.xlane.f32.xlu0 %v2991_v24  ;;  %v2869_v24 = vmul.f32 %v6280_v34, %v6302_v31  ;;  %v1735_v31 = vmul.f32 %v6114_v46, %v6114_v46 }
 0x161   :  { %7899 = vst [vmem:[#allocation34_spill] sm:$0xff] %v6482_v15 }
 0x162   :  { %v2973_v40 = vsel %vm239_vm0, %v2869_v24, 0.0  ;;  %v1829_v24 = vsel %vm239_vm0, %v1735_v31, 0.0  ;;  %v1737_v31 = vmul.f32 %v6236_v0, %v6236_v0 }
 0x163   :  { %v6492_v50 = vpop.f32.mrb[26].mxu0  ;;  %v6494_v62 = vpop.f32.mrb[26].mxu1 }
 0x164   :  { %7900 = vst [vmem:[#allocation35_spill] sm:$0xff] %v6492_v50  ;;  %7901 = vst [vmem:[#allocation36_spill] sm:$0xff] %v6494_v62  ;;  %2929 = vadd.xlane.f32.xlu1 %v2928_v2  ;;  %v6496_v9 = vpop.f32.mrb[27].mxu0  ;;  %v6498_v53 = vpop.f32.mrb[27].mxu1  ;;  %1845 = vadd.xlane.f32.xlu0 %v1844_v4  ;;  %v2877_v4 = vmul.f32 %v6280_v34, %v6304_v21 }
 0x167   :  { %v6506_v37 = vpop.f32.mrb[28].mxu0  ;;  %v6508_v50 = vpop.f32.mrb[28].mxu1 }
 0x168   :  { %7902 = vst [vmem:[#allocation37_spill] sm:$0xff] %v6506_v37  ;;  %7903 = vst [vmem:[#allocation38_spill] sm:$0xff] %v6508_v50  ;;  %2953 = vadd.xlane.f32.xlu1 %v2952_v49  ;;  %v6510_v2 = vpop.f32.mrb[29].mxu0  ;;  %v6512_v62 = vpop.f32.mrb[29].mxu1  ;;  %1869 = vadd.xlane.f32.xlu0 %v1868_v19  ;;  %v6527_v49 = vld [vmem:[%s7736_s2 + $0x38] sm:$0xff] }
 0x169   :  { %7904 = vst [vmem:[#allocation39_spill] sm:$0xff] %v6512_v62  ;;  %v2856_v30 = vmul.f32 %v6095_v18, %v6527_v49 }
 0x16b   :  { %v6520_v32 = vpop.f32.mrb[30].mxu0  ;;  %v6522_v37 = vpop.f32.mrb[30].mxu1  ;;  %v2934_v50 = vsel %vm239_vm0, %v2856_v30, 0.0  ;;  %v1745_v30 = vmul.f32 %v6238_v61, %v6238_v61 }
 0x16c   :  { %7905 = vst [vmem:[#allocation40_spill] sm:$0xff] %v6520_v32  ;;  %7906 = vst [vmem:[#allocation41_spill] sm:$0xff] %v6522_v37  ;;  %1806 = vadd.xlane.f32.xlu1 %v1805_v16  ;;  %v6529_v19 = vpop.f32.mrb[31].mxu0  ;;  %v6531_v21 = vpop.f32.mrb[31].mxu1  ;;  %2974 = vadd.xlane.f32.xlu0 %v2973_v40  ;;  %v2997_v32 = vsel %vm239_vm0, %v2877_v4, 0.0  ;;  %v1742_v37 = vmul.f32 %v6324_v1, %v6324_v1  ;;  %v2864_v16 = vmul.f32 %v6114_v46, %v6527_v49 }
 0x16d   :  { %7907 = vst [vmem:[#allocation42_spill] sm:$0xff] %v6531_v21  ;;  %v1750_v40 = vmul.f32 %v6326_v35, %v6326_v35  ;;  %v2871_v4 = vmul.f32 %v6358_v39, %v6324_v1  ;;  %v2866_v46 = vmul.f32 %v6236_v0, %v6363_v26 }
 0x16e   :  { %v1850_v29 = vsel %vm239_vm0, %v1742_v37, 0.0  ;;  %v2879_v37 = vmul.f32 %v6358_v39, %v6326_v35 }
 0x170   :  { %1830 = vadd.xlane.f32.xlu1 %v1829_v24  ;;  %2998 = vadd.xlane.f32.xlu0 %v2997_v32  ;;  %v2958_v32 = vsel %vm239_vm0, %v2864_v16, 0.0  ;;  %v1874_v24 = vsel %vm239_vm0, %v1750_v40, 0.0  ;;  %v1859_v16 = vsel %vm239_vm0, %v1745_v30, 0.0  ;;  %v3003_v40 = vsel %vm239_vm0, %v2879_v37, 0.0 }
 0x171   :  { %v1739_v30 = vmul.f32 %v6259_v28, %v6259_v28  ;;  %v2881_v37 = vmul.f32 %v6078_v23, %v6392_v57 }
 0x174   :  { %2935 = vadd.xlane.f32.xlu1 %v2934_v50  ;;  %1851 = vadd.xlane.f32.xlu0 %v1850_v29  ;;  %v1835_v29 = vsel %vm239_vm0, %v1737_v31, 0.0  ;;  %v2979_v50 = vsel %vm239_vm0, %v2871_v4, 0.0  ;;  %v2964_v31 = vsel %vm239_vm0, %v2866_v46, 0.0  ;;  %v1760_v4 = vmul.f32 %v6394_v8, %v6394_v8 }
 0x175   :  { %v1747_v46 = vmul.f32 %v6261_v58, %v6261_v58 }
 0x178   :  { %2959 = vadd.xlane.f32.xlu1 %v2958_v32  ;;  %1875 = vadd.xlane.f32.xlu0 %v1874_v24  ;;  %v1752_v32 = vmul.f32 %v6392_v57, %v6392_v57  ;;  %v2874_v24 = vmul.f32 %v6238_v61, %v6363_v26 }
 0x17c   :  { %1836 = vadd.xlane.f32.xlu1 %v1835_v29  ;;  %2980 = vadd.xlane.f32.xlu0 %v2979_v50  ;;  %v1880_v29 = vsel %vm239_vm0, %v1752_v32, 0.0  ;;  %v2988_v50 = vsel %vm239_vm0, %v2874_v24, 0.0  ;;  %v2868_v24 = vmul.f32 %v6259_v28, %v6439_v12 }
 0x180   :  { %1860 = vadd.xlane.f32.xlu1 %v1859_v16  ;;  %3004 = vadd.xlane.f32.xlu0 %v3003_v40  ;;  %v1904_v16 = vsel %vm239_vm0, %v1760_v4, 0.0  ;;  %v2889_v40 = vmul.f32 %v6078_v23, %v6394_v8  ;;  %v1754_v23 = vmul.f32 %v6406_v13, %v6406_v13 }
 0x182   :  { %v1886_v35 = vsel %vm239_vm0, %v1754_v23, 0.0 }
 0x184   :  { %2965 = vadd.xlane.f32.xlu1 %v2964_v31  ;;  %1881 = vadd.xlane.f32.xlu0 %v1880_v29  ;;  %v1841_v31 = vsel %vm239_vm0, %v1739_v30, 0.0  ;;  %v3009_v29 = vsel %vm239_vm0, %v2881_v37, 0.0  ;;  %v2876_v30 = vmul.f32 %v6261_v58, %v6439_v12 }
 0x188   :  { %2989 = vadd.xlane.f32.xlu1 %v2988_v50  ;;  %1905 = vadd.xlane.f32.xlu0 %v1904_v16  ;;  %v1865_v50 = vsel %vm239_vm0, %v1747_v46, 0.0  ;;  %v3033_v16 = vsel %vm239_vm0, %v2889_v40, 0.0  ;;  %v1741_v46 = vmul.f32 %v6289_v60, %v6289_v60  ;;  %v2883_v40 = vmul.f32 %v6187_v42, %v6406_v13 }
 0x189   :  { %v6579_v32 = vpop.xlane.xlu0 %3569 }
 0x18a   :  { %v3015_v58 = vsel %vm239_vm0, %v2883_v40, 0.0 }
 0x18c   :  { %1842 = vadd.xlane.f32.xlu1 %v1841_v31  ;;  %3010 = vadd.xlane.f32.xlu0 %v3009_v29  ;;  %v2970_v31 = vsel %vm239_vm0, %v2868_v24, 0.0  ;;  %v1762_v29 = vmul.f32 %v6408_v45, %v6408_v45  ;;  %v1749_v24 = vmul.f32 %v6291_v6, %v6291_v6 }
 0x18d   :  { %v6585_v4 = vpop.xlane.xlu0 %3593 }
 0x18e   :  { %v1910_v8 = vsel %vm239_vm0, %v1762_v29, 0.0 }
 0x190   :  { %1866 = vadd.xlane.f32.xlu1 %v1865_v50  ;;  %3034 = vadd.xlane.f32.xlu0 %v3033_v16  ;;  %v2994_v16 = vsel %vm239_vm0, %v2876_v30, 0.0  ;;  %v2870_v30 = vmul.f32 %v6289_v60, %v6470_v27 }
 0x191   :  { %v6593_v37 = vpop.xlane.xlu0 %1785 }
 0x194   :  { %2971 = vadd.xlane.f32.xlu1 %v2970_v31  ;;  %1887 = vadd.xlane.f32.xlu0 %v1886_v35  ;;  %v2891_v35 = vmul.f32 %v6187_v42, %v6408_v45  ;;  %v1847_v31 = vsel %vm239_vm0, %v1741_v46, 0.0  ;;  %v1756_v42 = vmul.f32 %v6420_v5, %v6420_v5  ;;  %v2878_v46 = vmul.f32 %v6291_v6, %v6470_v27 }
 0x195   :  { %v6603_v50 = vpop.xlane.xlu0 %1809 }
 0x196   :  { %v1892_v60 = vsel %vm239_vm0, %v1756_v42, 0.0 }
 0x198   :  { %2995 = vadd.xlane.f32.xlu1 %v2994_v16  ;;  %1911 = vadd.xlane.f32.xlu0 %v1910_v8  ;;  %v1871_v8 = vsel %vm239_vm0, %v1749_v24, 0.0  ;;  %v3039_v16 = vsel %vm239_vm0, %v2891_v35, 0.0  ;;  %v1743_v24 = vmul.f32 %v6316_v7, %v6316_v7  ;;  %v2885_v35 = vmul.f32 %v6280_v34, %v6420_v5 }
 0x199   :  { %v6611_v23 = vpop.xlane.xlu0 %2914 }
 0x19a   :  { %v3021_v5 = vsel %vm239_vm0, %v2885_v35, 0.0 }
 0x19c   :  { %1848 = vadd.xlane.f32.xlu1 %v1847_v31  ;;  %3016 = vadd.xlane.f32.xlu0 %v3015_v58  ;;  %v2976_v58 = vsel %vm239_vm0, %v2870_v30, 0.0  ;;  %v1764_v31 = vmul.f32 %v6422_v14, %v6422_v14  ;;  %v1751_v30 = vmul.f32 %v6318_v55, %v6318_v55 }
 0x19d   :  { %v6617_v29 = vpop.xlane.xlu0 %2938 }
 0x19e   :  { %v1916_v6 = vsel %vm239_vm0, %v1764_v31, 0.0 }
 0x1a0   :  { %1872 = vadd.xlane.f32.xlu1 %v1871_v8  ;;  %3040 = vadd.xlane.f32.xlu0 %v3039_v16  ;;  %v3000_v16 = vsel %vm239_vm0, %v2878_v46, 0.0  ;;  %v2872_v46 = vmul.f32 %v6316_v7, %v6527_v49 }
 0x1a1   :  { %v6625_v40 = vpop.xlane.xlu0 %1791 }
 0x1a4   :  { %2977 = vadd.xlane.f32.xlu1 %v2976_v58  ;;  %1893 = vadd.xlane.f32.xlu0 %v1892_v60  ;;  %v2893_v60 = vmul.f32 %v6280_v34, %v6422_v14  ;;  %v1853_v58 = vsel %vm239_vm0, %v1743_v24, 0.0  ;;  %v1758_v34 = vmul.f32 %v6432_v44, %v6432_v44  ;;  %v2880_v24 = vmul.f32 %v6318_v55, %v6527_v49 }
 0x1a5   :  { %v6635_v8 = vpop.xlane.xlu0 %1815 }
 0x1a6   :  { %v1898_v7 = vsel %vm239_vm0, %v1758_v34, 0.0 }
 0x1a8   :  { %3001 = vadd.xlane.f32.xlu1 %v3000_v16  ;;  %1917 = vadd.xlane.f32.xlu0 %v1916_v6  ;;  %v1877_v6 = vsel %vm239_vm0, %v1751_v30, 0.0  ;;  %v3045_v16 = vsel %vm239_vm0, %v2893_v60, 0.0  ;;  %v1753_v30 = vmul.f32 %v6382_v10, %v6382_v10  ;;  %v2887_v60 = vmul.f32 %v6358_v39, %v6432_v44 }
 0x1a9   :  { %v6643_v42 = vpop.xlane.xlu0 %2920 }
 0x1aa   :  { %v3027_v44 = vsel %vm239_vm0, %v2887_v60, 0.0 }
 0x1ac   :  { %1854 = vadd.xlane.f32.xlu1 %v1853_v58  ;;  %3022 = vadd.xlane.f32.xlu0 %v3021_v5  ;;  %v2982_v5 = vsel %vm239_vm0, %v2872_v46, 0.0  ;;  %v1766_v58 = vmul.f32 %v6441_v3, %v6441_v3  ;;  %v1761_v46 = vmul.f32 %v6384_v38, %v6384_v38 }
 0x1ad   :  { %v6649_v31 = vpop.xlane.xlu0 %2944 }
 0x1ae   :  { %v1922_v55 = vsel %vm239_vm0, %v1766_v58, 0.0  ;;  %v1907_v58 = vsel %vm239_vm0, %v1761_v46, 0.0 }
 0x1b0   :  { %1878 = vadd.xlane.f32.xlu1 %v1877_v6  ;;  %3046 = vadd.xlane.f32.xlu0 %v3045_v16  ;;  %v3006_v16 = vsel %vm239_vm0, %v2880_v24, 0.0  ;;  %v2882_v24 = vmul.f32 %v6382_v10, %v6363_v26  ;;  %v1755_v10 = vmul.f32 %v6396_v63, %v6396_v63 }
 0x1b1   :  { %v6657_v35 = vpop.xlane.xlu0 %1797 }
 0x1b4   :  { %2983 = vadd.xlane.f32.xlu1 %v2982_v5  ;;  %1899 = vadd.xlane.f32.xlu0 %v1898_v7  ;;  %v2895_v7 = vmul.f32 %v6358_v39, %v6441_v3  ;;  %v1883_v5 = vsel %vm239_vm0, %v1753_v30, 0.0  ;;  %v1768_v39 = vmul.f32 %v6482_v15, %v6482_v15  ;;  %v2057_v30 = vrot.slane %v6625_v40, %v7856_v54 }
 0x1b5   :  { %v6667_v6 = vpop.xlane.xlu0 %1821  ;;  %v2098_v15 = vrot.slane %v6603_v50, %v7855_v41  ;;  %v3181_v50 = vrot.slane %v6643_v42, %v7856_v54  ;;  %v1778_v42 = vmul.f32 %v6498_v53, %v6498_v53 }
 0x1b6   :  { %v1928_v3 = vsel %vm239_vm0, %v1768_v39, 0.0 }
 0x1b8   :  { %3007 = vadd.xlane.f32.xlu1 %v3006_v16  ;;  %1923 = vadd.xlane.f32.xlu0 %v1922_v55  ;;  %v3051_v16 = vsel %vm239_vm0, %v2895_v7, 0.0  ;;  %v3012_v7 = vsel %vm239_vm0, %v2882_v24, 0.0 }
 0x1b9   :  { %v6675_v34 = vpop.xlane.xlu0 %2926 }
 0x1bc   :  { %1884 = vadd.xlane.f32.xlu1 %v1883_v5  ;;  %3028 = vadd.xlane.f32.xlu0 %v3027_v44  ;;  %v2045_v44 = vrot.slane %v6593_v37, %v7855_v41  ;;  %v2107_v37 = vrot.slane %v6635_v8, %v7856_v54  ;;  %v1770_v8 = vmul.f32 %v6496_v9, %v6496_v9 }
 0x1bd   :  { %v6679_v14 = vpop.xlane.xlu1 %2835  ;;  %v6683_v55 = vpop.xlane.xlu0 %2950 }
 0x1be   :  { %7908 = vst [vmem:[#allocation43_spill] sm:$0xff] %v6679_v14  ;;  %v2890_v14 = vmul.f32 %v6384_v38, %v6363_v26 }
 0x1c0   :  { %1908 = vadd.xlane.f32.xlu1 %v1907_v58  ;;  %3052 = vadd.xlane.f32.xlu0 %v3051_v16  ;;  %v1776_v58 = vmul.f32 %v6484_v48, %v6484_v48 }
 0x1c1   :  { %v1789_v60 = vpop.xlane.xlu1 %1788  ;;  %v6696_v46 = vpop.xlane.xlu0 %1803 }
 0x1c2   :  { %v2050_v5 = vrot.slane %v1789_v60, %v7854_v51 }
 0x1c4   :  { %v2052_v40 = vsel %vm2051_vm2, %v2050_v5, %v2045_v44  ;;  %3013 = vadd.xlane.f32.xlu1 %v3012_v7  ;;  %1929 = vadd.xlane.f32.xlu0 %v1928_v3  ;;  %v3036_v44 = vsel %vm239_vm0, %v2890_v14, 0.0  ;;  %v1952_v5 = vsel %vm239_vm0, %v1776_v58, 0.0  ;;  %v1763_v58 = vmul.f32 %v6398_v52, %v6398_v52 }
 0x1c5   :  { %v1813_v60 = vpop.xlane.xlu1 %1812  ;;  %v6706_v16 = vsel %vm2058_vm3, %v2057_v30, %v2052_v40  ;;  %v6713_v39 = vpop.xlane.xlu0 %1827  ;;  %v3172_v40 = vrot.slane %v6611_v23, %v7855_v41  ;;  %v3220_v23 = vrot.slane %v6649_v31, %v7856_v54  ;;  %v1772_v31 = vmul.f32 %v6510_v2, %v6510_v2 }
 0x1c6   :  { %v2102_v24 = vrot.slane %v1813_v60, %v7854_v51 }
 0x1c8   :  { %v2103_v30 = vsel %vm2051_vm2, %v2102_v24, %v2098_v15  ;;  %3037 = vadd.xlane.f32.xlu1 %v3036_v44  ;;  %1953 = vadd.xlane.f32.xlu0 %v1952_v5  ;;  %v1889_v15 = vsel %vm239_vm0, %v1755_v10, 0.0  ;;  %v1934_v24 = vsel %vm239_vm0, %v1770_v8, 0.0 }
 0x1c9   :  { %v2918_v7 = vpop.xlane.xlu1 %2917  ;;  %v6723_v3 = vsel %vm2058_vm3, %v2107_v37, %v2103_v30  ;;  %v6730_v60 = vpop.xlane.xlu0 %2932  ;;  %v3211_v30 = vrot.slane %v6617_v29, %v7855_v41 }
 0x1ca   :  { %v3176_v14 = vrot.slane %v2918_v7, %v7854_v51  ;;  %v2884_v7 = vmul.f32 %v6396_v63, %v6439_v12 }
 0x1cc   :  { %v3177_v37 = vsel %vm2051_vm2, %v3176_v14, %v3172_v40  ;;  %1890 = vadd.xlane.f32.xlu1 %v1889_v15  ;;  %1935 = vadd.xlane.f32.xlu0 %v1934_v24  ;;  %v1913_v40 = vsel %vm239_vm0, %v1763_v58, 0.0  ;;  %v1958_v14 = vsel %vm239_vm0, %v1778_v42, 0.0  ;;  %v3828_v24 = vrot.slane %v6579_v32, %v7854_v51 }
 0x1cd   :  { %v2942_v44 = vpop.xlane.xlu1 %2941  ;;  %v6740_v5 = vsel %vm2058_vm3, %v3181_v50, %v3177_v37  ;;  %v6747_v8 = vpop.xlane.xlu0 %2956  ;;  %v2892_v58 = vmul.f32 %v6398_v52, %v6439_v12  ;;  %v1757_v12 = vmul.f32 %v6410_v36, %v6410_v36 }
 0x1ce   :  { %v3215_v10 = vrot.slane %v2942_v44, %v7854_v51  ;;  %v3018_v44 = vsel %vm239_vm0, %v2884_v7, 0.0 }
 0x1d0   :  { %v3216_v50 = vsel %vm2051_vm2, %v3215_v10, %v3211_v30  ;;  %1914 = vadd.xlane.f32.xlu1 %v1913_v40  ;;  %1959 = vadd.xlane.f32.xlu0 %v1958_v14  ;;  %v1780_v30 = vmul.f32 %v6512_v62, %v6512_v62  ;;  %v1940_v10 = vsel %vm239_vm0, %v1772_v31, 0.0  ;;  %v3867_v40 = vrot.slane %v6585_v4, %v7854_v51 }
 0x1d1   :  { %v3567_v15 = vpop.xlane.xlu1 %3566  ;;  %v6755_v29 = vsel %vm2058_vm3, %v3220_v23, %v3216_v50  ;;  %v6762_v42 = vpop.xlane.xlu0 %1833  ;;  %v3042_v50 = vsel %vm239_vm0, %v2892_v58, 0.0 }
 0x1d2   :  { %v3824_v37 = vrot.slane %v3567_v15, %v7855_v41  ;;  %v1964_v31 = vsel %vm239_vm0, %v1780_v30, 0.0  ;;  %v6783_v15 = vld [vmem:[%s7736_s2 + $0x50] sm:$0xff]  ;;  %v1765_v30 = vmul.f32 %v6412_v22, %v6412_v22 }
 0x1d3   :  { %v3511_v4 = vmul.f32 %v6783_v15, %v6043_v11 }
 0x1d4   :  { %v6769_v23 = vsel %vm2051_vm2, %v3828_v24, %v3824_v37  ;;  %3019 = vadd.xlane.f32.xlu1 %v3018_v44  ;;  %1941 = vadd.xlane.f32.xlu0 %v1940_v10  ;;  %v2071_v37 = vrot.slane %v6657_v35, %v7858_v20  ;;  %v2117_v35 = vrot.slane %v6667_v6, %v7858_v20  ;;  %v1919_v62 = vsel %vm239_vm0, %v1765_v30, 0.0 }
 0x1d5   :  { %7909 = vst [vmem:[#allocation44_spill] sm:$0xff] %v6769_v23  ;;  %v3591_v32 = vpop.xlane.xlu1 %3590  ;;  %v6776_v7 = vpop.xlane.xlu0 %1857  ;;  %v2894_v30 = vmul.f32 %v6412_v22, %v6470_v27 }
 0x1d6   :  { %v3863_v14 = vrot.slane %v3591_v32, %v7855_v41  ;;  %v1895_v32 = vsel %vm239_vm0, %v1757_v12, 0.0  ;;  %v2886_v12 = vmul.f32 %v6410_v36, %v6470_v27  ;;  %v3230_v27 = vrot.slane %v6683_v55, %v7858_v20 }
 0x1d8   :  { %v6786_v24 = vsel %vm2051_vm2, %v3867_v40, %v3863_v14  ;;  %3043 = vadd.xlane.f32.xlu1 %v3042_v50  ;;  %1965 = vadd.xlane.f32.xlu0 %v1964_v31  ;;  %v1774_v40 = vmul.f32 %v6529_v19, %v6529_v19  ;;  %v3595_v50 = vsel %vm239_vm0, %v3511_v4, 0.0 }
 0x1d9   :  { %7910 = vst [vmem:[#allocation45_spill] sm:$0xff] %v6786_v24  ;;  %v1795_v44 = vpop.xlane.xlu1 %1794  ;;  %v6795_v10 = vpop.xlane.xlu0 %2962 }
 0x1da   :  { %v2064_v58 = vrot.slane %v1795_v44, %v7857_v33  ;;  %v1946_v6 = vsel %vm239_vm0, %v1774_v40, 0.0  ;;  %v3024_v40 = vsel %vm239_vm0, %v2886_v12, 0.0 }
 0x1dc   :  { %v2066_v11 = vsel %vm2065_vm4, %v2064_v58, %v6706_v16  ;;  %1896 = vadd.xlane.f32.xlu1 %v1895_v32  ;;  %3596 = vadd.xlane.f32.xlu0 %v3595_v50  ;;  %v1782_v16 = vmul.f32 %v6531_v21, %v6531_v21 }
 0x1dd   :  { %v1819_v14 = vpop.xlane.xlu1 %1818  ;;  %v2073_v31 = vsel %vm2072_vm5, %v2071_v37, %v2066_v11  ;;  %v6809_v23 = vpop.xlane.xlu0 %2986  ;;  %v3191_v37 = vrot.slane %v6675_v34, %v7858_v20  ;;  %v6832_v34 = vld [vmem:[%s7736_s2 + $0x48] sm:$0xff] }
 0x1de   :  { %v2112_v44 = vrot.slane %v1819_v14, %v7857_v33  ;;  %v1970_v50 = vsel %vm239_vm0, %v1782_v16, 0.0 }
 0x1e0   :  { %v2113_v4 = vsel %vm2065_vm4, %v2112_v44, %v6723_v3  ;;  %1920 = vadd.xlane.f32.xlu1 %v1919_v62  ;;  %1947 = vadd.xlane.f32.xlu0 %v1946_v6  ;;  %v3518_v3 = vmul.f32 %v6832_v34, %v6236_v0  ;;  %v3048_v6 = vsel %vm239_vm0, %v2894_v30, 0.0  ;;  %v6848_v0 = vld [vmem:[%s7736_s2 + $0x58] sm:$0xff] }
 0x1e1   :  { %v2924_v58 = vpop.xlane.xlu1 %2923  ;;  %v2118_v32 = vsel %vm2072_vm5, %v2117_v35, %v2113_v4  ;;  %v6823_v14 = vpop.xlane.xlu0 %1839  ;;  %v3512_v4 = vmul.f32 %v7892_v43, %v6848_v0 }
 0x1e2   :  { %v3186_v11 = vrot.slane %v2924_v58, %v7857_v33 }
 0x1e4   :  { %v3187_v62 = vsel %vm2065_vm4, %v3186_v11, %v6740_v5  ;;  %3025 = vadd.xlane.f32.xlu1 %v3024_v40  ;;  %1971 = vadd.xlane.f32.xlu0 %v1970_v50  ;;  %v1759_v5 = vmul.f32 %v6424_v47, %v6424_v47  ;;  %v3616_v11 = vsel %vm239_vm0, %v3518_v3, 0.0  ;;  %v1767_v50 = vmul.f32 %v6434_v59, %v6434_v59  ;;  %v7911_v3 = vld [vmem:[#allocation4_spill] sm:$0xff] }
 0x1e5   :  { %v2948_v35 = vpop.xlane.xlu1 %2947  ;;  %v3192_v44 = vsel %vm2072_vm5, %v3191_v37, %v3187_v62  ;;  %v6842_v16 = vpop.xlane.xlu0 %1863  ;;  %v2085_v37 = vrot.slane %v6696_v46, %v7860_v56  ;;  %v6868_v46 = vld [vmem:[%s7736_s2 + $0x60] sm:$0xff] }
 0x1e6   :  { %v3225_v12 = vrot.slane %v2948_v35, %v7857_v33  ;;  %v2127_v35 = vrot.slane %v6713_v39, %v7860_v56 }
 0x1e8   :  { %v3226_v55 = vsel %vm2065_vm4, %v3225_v12, %v6755_v29  ;;  %3049 = vadd.xlane.f32.xlu1 %v3048_v6  ;;  %3617 = vadd.xlane.f32.xlu0 %v3616_v11  ;;  %v1901_v29 = vsel %vm239_vm0, %v1759_v5, 0.0  ;;  %v3598_v6 = vsel %vm239_vm0, %v3512_v4, 0.0  ;;  %v1925_v11 = vsel %vm239_vm0, %v1767_v50, 0.0 }
 0x1e9   :  { %v1801_v58 = vpop.xlane.xlu1 %1800  ;;  %v3231_v30 = vsel %vm2072_vm5, %v3230_v27, %v3226_v55  ;;  %v6861_v62 = vpop.xlane.xlu0 %2968  ;;  %v3525_v27 = vmul.f32 %v7911_v3, %v6248_v17 }
 0x1ea   :  { %v2078_v40 = vrot.slane %v1801_v58, %v7859_v25 }
 0x1ec   :  { %v2080_v43 = vsel %vm2079_vm6, %v2078_v40, %v2073_v31  ;;  %1902 = vadd.xlane.f32.xlu1 %v1901_v29  ;;  %3599 = vadd.xlane.f32.xlu0 %v3598_v6  ;;  %v2888_v31 = vmul.f32 %v6424_v47, %v6527_v49  ;;  %v7912_v40 = vld [vmem:[#allocation12_spill] sm:$0xff] }
 0x1ed   :  { %v1825_v12 = vpop.xlane.xlu1 %1824  ;;  %v2087_v55 = vsel %vm2086_vm7, %v2085_v37, %v2080_v43  ;;  %v6879_v58 = vpop.xlane.xlu0 %2992  ;;  %v3505_v17 = vmul.f32 %v6868_v46, %v7912_v40  ;;  %v7913_v29 = vld [vmem:[#allocation32_spill] sm:$0xff]  ;;  %v3201_v37 = vrot.slane %v6730_v60, %v7860_v56 }
 0x1ee   :  { %v2122_v5 = vrot.slane %v1825_v12, %v7859_v25  ;;  %v1769_v4 = vmul.f32 %v7913_v29, %v7913_v29  ;;  %v3637_v12 = vsel %vm239_vm0, %v3525_v27, 0.0  ;;  %v3030_v40 = vsel %vm239_vm0, %v2888_v31, 0.0 }
 0x1ef   :  { %v3577_v60 = vsel %vm239_vm0, %v3505_v17, 0.0 }
 0x1f0   :  { %v2123_v39 = vsel %vm2079_vm6, %v2122_v5, %v2118_v32  ;;  %1926 = vadd.xlane.f32.xlu1 %v1925_v11  ;;  %3638 = vadd.xlane.f32.xlu0 %v3637_v12  ;;  %v3520_v32 = vmul.f32 %v6259_v28, %v6848_v0  ;;  %v7914_v11 = vld [vmem:[#allocation33_spill] sm:$0xff] }
 0x1f1   :  { %v2930_v43 = vpop.xlane.xlu1 %2929  ;;  %v2128_v49 = vsel %vm2086_vm7, %v2127_v35, %v2123_v39  ;;  %v6892_v50 = vpop.xlane.xlu0 %1845  ;;  %v1777_v27 = vmul.f32 %v7914_v11, %v7914_v11  ;;  %v3240_v35 = vrot.slane %v6747_v8, %v7860_v56 }
 0x1f2   :  { %v3196_v6 = vrot.slane %v2930_v43, %v7859_v25  ;;  %v1931_v43 = vsel %vm239_vm0, %v1769_v4, 0.0  ;;  %v3622_v17 = vsel %vm239_vm0, %v3520_v32, 0.0 }
 0x1f3   :  { %v1955_v4 = vsel %vm239_vm0, %v1777_v27, 0.0 }
 0x1f4   :  { %v3197_v5 = vsel %vm2079_vm6, %v3196_v6, %v3192_v44  ;;  %3031 = vadd.xlane.f32.xlu1 %v3030_v40  ;;  %3578 = vadd.xlane.f32.xlu0 %v3577_v60  ;;  %v3533_v6 = vmul.f32 %v7911_v3, %v6392_v57  ;;  %v7915_v40 = vld [vmem:[#allocation35_spill] sm:$0xff] }
 0x1f5   :  { %v2954_v39 = vpop.xlane.xlu1 %2953  ;;  %v3202_v12 = vsel %vm2086_vm7, %v3201_v37, %v3197_v5  ;;  %v6906_v28 = vpop.xlane.xlu0 %1869  ;;  %v1771_v8 = vmul.f32 %v7915_v40, %v7915_v40  ;;  %v6919_v5 = vld [vmem:[%s7736_s2 + $0x68] sm:$0xff] }
 0x1f6   :  { %v3235_v31 = vrot.slane %v2954_v39, %v7859_v25  ;;  %v7917_v39 = vld [vmem:[#allocation20_spill] sm:$0xff] }
 0x1f7   :  { %v1937_v22 = vsel %vm239_vm0, %v1771_v8, 0.0 }
 0x1f8   :  { %v3236_v44 = vsel %vm2079_vm6, %v3235_v31, %v3231_v30  ;;  %1932 = vadd.xlane.f32.xlu1 %v1931_v43  ;;  %v7916_v30 = vld [vmem:[#allocation9_spill] sm:$0xff]  ;;  %3623 = vadd.xlane.f32.xlu0 %v3622_v17  ;;  %v3506_v43 = vmul.f32 %v7917_v39, %v6919_v5  ;;  %v7918_v31 = vld [vmem:[#allocation36_spill] sm:$0xff] }
 0x1f9   :  { %v1807_v21 = vpop.xlane.xlu1 %1806  ;;  %v3241_v37 = vsel %vm2086_vm7, %v3240_v35, %v3236_v44  ;;  %v6922_v32 = vpop.xlane.xlu0 %2974  ;;  %v1779_v27 = vmul.f32 %v7918_v31, %v7918_v31  ;;  %v3661_v44 = vsel %vm239_vm0, %v3533_v6, 0.0  ;;  %v7919_v17 = vld [vmem:[#allocation28_spill] sm:$0xff] }
 0x1fa   :  { %v2092_v60 = vrot.slane %v1807_v21, %v7916_v30  ;;  %v3580_v8 = vsel %vm239_vm0, %v3506_v43, 0.0 }
 0x1fc   :  { %v2094_v57 = vsel %vm2093_vm8, %v2092_v60, %v2087_v55  ;;  %1956 = vadd.xlane.f32.xlu1 %v1955_v4  ;;  %3662 = vadd.xlane.f32.xlu0 %v3661_v44  ;;  %v3521_v55 = vmul.f32 %v6868_v46, %v7919_v17  ;;  %v7920_v60 = vld [vmem:[#allocation37_spill] sm:$0xff] }
 0x1fd   :  { %v1831_v35 = vpop.xlane.xlu1 %1830  ;;  %v6932_v21 = vpop.xlane.xlu0 %2998  ;;  %v1773_v39 = vmul.f32 %v7920_v60, %v7920_v60 }
 0x1fe   :  { %v2132_v36 = vrot.slane %v1831_v35, %v7916_v30  ;;  %v1961_v35 = vsel %vm239_vm0, %v1779_v27, 0.0 }
 0x1ff   :  { %v1943_v43 = vsel %vm239_vm0, %v1773_v39, 0.0 }
 0x200   :  { %v2133_v4 = vsel %vm2093_vm8, %v2132_v36, %v2128_v49  ;;  %1938 = vadd.xlane.f32.xlu1 %v1937_v22  ;;  %3581 = vadd.xlane.f32.xlu0 %v3580_v8  ;;  %v3535_v36 = vmul.f32 %v6783_v15, %v6406_v13  ;;  %v7921_v49 = vld [vmem:[#allocation38_spill] sm:$0xff]  ;;  %v3542_v8 = vmul.f32 %v6832_v34, %v6384_v38 }
 0x201   :  { %v6940_v24 = vsel %vm2368_vm9, %v2133_v4, %v2094_v57  ;;  %v2936_v6 = vpop.xlane.xlu1 %2935  ;;  %v6945_v40 = vpop.xlane.xlu0 %1851  ;;  %v1781_v57 = vmul.f32 %v7921_v49, %v7921_v49  ;;  %v3625_v4 = vsel %vm239_vm0, %v3521_v55, 0.0  ;;  %v2146_v55 = vrot.slane %v6823_v14, %v7856_v54 }
 0x202   :  { %v3206_v44 = vrot.slane %v2936_v6, %v7916_v30  ;;  %v2137_v38 = vrot.slane %v6762_v42, %v7855_v41  ;;  %v3688_v14 = vsel %vm239_vm0, %v3542_v8, 0.0  ;;  %v6990_v8 = vld [vmem:[%s7736_s2 + $0x70] sm:$0xff] }
 0x204   :  { %v3207_v22 = vsel %vm2093_vm8, %v3206_v44, %v3202_v12  ;;  %1962 = vadd.xlane.f32.xlu1 %v1961_v35  ;;  %3626 = vadd.xlane.f32.xlu0 %v3625_v4  ;;  %v3667_v12 = vsel %vm239_vm0, %v3535_v36, 0.0  ;;  %v7922_v35 = vld [vmem:[#allocation40_spill] sm:$0xff]  ;;  %v1967_v4 = vsel %vm239_vm0, %v1781_v57, 0.0  ;;  %v2898_v36 = vmul.f32 %v7913_v29, %v6363_v26 }
 0x205   :  { %v2960_v17 = vpop.xlane.xlu1 %2959  ;;  %v6955_v6 = vpop.xlane.xlu0 %1875  ;;  %v1775_v44 = vmul.f32 %v7922_v35, %v7922_v35  ;;  %v2185_v57 = vrot.slane %v6842_v16, %v7856_v54  ;;  %v2176_v35 = vrot.slane %v6776_v7, %v7855_v41 }
 0x206   :  { %v3245_v27 = vrot.slane %v2960_v17, %v7916_v30 }
 0x208   :  { %v3246_v13 = vsel %vm2093_vm8, %v3245_v27, %v3241_v37  ;;  %1944 = vadd.xlane.f32.xlu1 %v1943_v43  ;;  %3668 = vadd.xlane.f32.xlu0 %v3667_v12 }
 0x209   :  { %v6966_v39 = vsel %vm2368_vm9, %v3246_v13, %v3207_v22  ;;  %v1837_v17 = vpop.xlane.xlu1 %1836  ;;  %v6972_v43 = vpop.xlane.xlu0 %2980  ;;  %v7923_v22 = vld [vmem:[#allocation41_spill] sm:$0xff] }
 0x20a   :  { %v2141_v37 = vrot.slane %v1837_v17, %v7854_v51  ;;  %v1783_v13 = vmul.f32 %v7923_v22, %v7923_v22  ;;  %v1949_v17 = vsel %vm239_vm0, %v1775_v44, 0.0 }
 0x20c   :  { %v2142_v27 = vsel %vm2051_vm2, %v2141_v37, %v2137_v38  ;;  %1968 = vadd.xlane.f32.xlu1 %v1967_v4  ;;  %3689 = vadd.xlane.f32.xlu0 %v3688_v14  ;;  %v7924_v38 = vld [vmem:[#allocation14_spill] sm:$0xff]  ;;  %v3060_v37 = vsel %vm239_vm0, %v2898_v36, 0.0 }
 0x20d   :  { %v1861_v42 = vpop.xlane.xlu1 %1860  ;;  %v2147_v12 = vsel %vm2058_vm3, %v2146_v55, %v2142_v27  ;;  %v6992_v4 = vpop.xlane.xlu0 %3004  ;;  %v3515_v16 = vmul.f32 %v6990_v8, %v7924_v38  ;;  %v3259_v55 = vrot.slane %v6861_v62, %v7856_v54  ;;  %v1973_v27 = vsel %vm239_vm0, %v1783_v13, 0.0  ;;  %v7925_v38 = vld [vmem:[#allocation18_spill] sm:$0xff] }
 0x20e   :  { %v2180_v26 = vrot.slane %v1861_v42, %v7854_v51  ;;  %v3250_v42 = vrot.slane %v6795_v10, %v7855_v41  ;;  %v3298_v13 = vrot.slane %v6879_v58, %v7856_v54 }
 0x20f   :  { %v3607_v10 = vsel %vm239_vm0, %v3515_v16, 0.0  ;;  %v3543_v16 = vmul.f32 %v6783_v15, %v6408_v45 }
 0x210   :  { %v2181_v44 = vsel %vm2051_vm2, %v2180_v26, %v2176_v35  ;;  %1950 = vadd.xlane.f32.xlu1 %v1949_v17  ;;  %3061 = vadd.xlane.f32.xlu0 %v3060_v37  ;;  %v3503_v35 = vmul.f32 %v6783_v15, %v7925_v38  ;;  %v7926_v26 = vld [vmem:[#allocation16_spill] sm:$0xff] }
 0x211   :  { %v2966_v7 = vpop.xlane.xlu1 %2965  ;;  %v2186_v14 = vsel %vm2058_vm3, %v2185_v57, %v2181_v44  ;;  %v7007_v17 = vpop.xlane.xlu0 %1881  ;;  %v3529_v36 = vmul.f32 %v6868_v46, %v7926_v26  ;;  %v7927_v38 = vld [vmem:[#allocation24_spill] sm:$0xff] }
 0x212   :  { %v3254_v22 = vrot.slane %v2966_v7, %v7854_v51  ;;  %v3289_v7 = vrot.slane %v6809_v23, %v7855_v41 }
 0x214   :  { %v3255_v62 = vsel %vm2051_vm2, %v3254_v22, %v3250_v42  ;;  %1974 = vadd.xlane.f32.xlu1 %v1973_v27  ;;  %3608 = vadd.xlane.f32.xlu0 %v3607_v10  ;;  %v3517_v22 = vmul.f32 %v7911_v3, %v7927_v38  ;;  %v3571_v42 = vsel %vm239_vm0, %v3503_v35, 0.0 }
 0x215   :  { %v2990_v57 = vpop.xlane.xlu1 %2989  ;;  %v3260_v44 = vsel %vm2058_vm3, %v3259_v55, %v3255_v62  ;;  %v7021_v27 = vpop.xlane.xlu0 %1905  ;;  %v2156_v55 = vrot.slane %v6892_v50, %v7858_v20  ;;  %v3649_v62 = vsel %vm239_vm0, %v3529_v36, 0.0  ;;  %v3550_v50 = vmul.f32 %v6832_v34, %v7913_v29 }
 0x216   :  { %v3293_v37 = vrot.slane %v2990_v57, %v7854_v51  ;;  %v7928_v57 = vld [vmem:[#allocation15_spill] sm:$0xff]  ;;  %v2195_v36 = vrot.slane %v6906_v28, %v7858_v20  ;;  %v7054_v28 = vld [vmem:[%s7736_s2] sm:$0xff] }
 0x217   :  { %v3504_v35 = vmul.f32 %v7928_v57, %v6848_v0 }
 0x218   :  { %v3294_v58 = vsel %vm2051_vm2, %v3293_v37, %v3289_v7  ;;  %3572 = vadd.xlane.f32.xlu1 %v3571_v42  ;;  %3650 = vadd.xlane.f32.xlu0 %v3649_v62  ;;  %v3613_v7 = vsel %vm239_vm0, %v3517_v22, 0.0  ;;  %v3691_v37 = vsel %vm239_vm0, %v3543_v16, 0.0  ;;  %v2905_v16 = vmul.f32 %v7054_v28, %v6484_v48 }
 0x219   :  { %v1843_v23 = vpop.xlane.xlu1 %1842  ;;  %v3299_v26 = vsel %vm2058_vm3, %v3298_v13, %v3294_v58  ;;  %v7034_v10 = vpop.xlane.xlu0 %3010  ;;  %v7929_v58 = vld [vmem:[#allocation13_spill] sm:$0xff] }
 0x21a   :  { %v2151_v3 = vrot.slane %v1843_v23, %v7857_v33  ;;  %v3519_v22 = vmul.f32 %v6783_v15, %v7929_v58 }
 0x21c   :  { %v2152_v45 = vsel %vm2065_vm4, %v2151_v3, %v2147_v12  ;;  %3614 = vadd.xlane.f32.xlu1 %v3613_v7  ;;  %3692 = vadd.xlane.f32.xlu0 %v3691_v37  ;;  %v3574_v12 = vsel %vm239_vm0, %v3504_v35, 0.0  ;;  %v3712_v3 = vsel %vm239_vm0, %v3550_v50, 0.0  ;;  %v3526_v7 = vmul.f32 %v6832_v34, %v6238_v61 }
 0x21d   :  { %v1867_v13 = vpop.xlane.xlu1 %1866  ;;  %v2157_v38 = vsel %vm2072_vm5, %v2156_v55, %v2152_v45  ;;  %v7047_v23 = vpop.xlane.xlu0 %3034  ;;  %v3269_v55 = vrot.slane %v6922_v32, %v7858_v20  ;;  %v3619_v32 = vsel %vm239_vm0, %v3519_v22, 0.0 }
 0x21e   :  { %v2190_v42 = vrot.slane %v1867_v13, %v7857_v33 }
 0x220   :  { %v2191_v29 = vsel %vm2065_vm4, %v2190_v42, %v2186_v14  ;;  %3575 = vadd.xlane.f32.xlu1 %v3574_v12  ;;  %v7065_v14 = vld [vmem:[%s7736_s2 + $0x78] sm:$0xff]  ;;  %3713 = vadd.xlane.f32.xlu0 %v3712_v3  ;;  %v3081_v42 = vsel %vm239_vm0, %v2905_v16, 0.0  ;;  %v2166_v16 = vrot.slane %v6945_v40, %v7860_v56 }
 0x221   :  { %v2972_v62 = vpop.xlane.xlu1 %2971  ;;  %v2196_v57 = vsel %vm2072_vm5, %v2195_v36, %v2191_v29  ;;  %v7070_v45 = vpop.xlane.xlu0 %1887  ;;  %v3508_v50 = vmul.f32 %v6095_v18, %v7065_v14  ;;  %v3308_v36 = vrot.slane %v6932_v21, %v7858_v20  ;;  %v7930_v12 = vld [vmem:[#allocation21_spill] sm:$0xff]  ;;  %v3523_v21 = vmul.f32 %v6990_v8, %v6324_v1 }
 0x222   :  { %v3264_v35 = vrot.slane %v2972_v62, %v7857_v33  ;;  %v3513_v22 = vmul.f32 %v6868_v46, %v7930_v12 }
 0x223   :  { %v3586_v62 = vsel %vm239_vm0, %v3508_v50, 0.0  ;;  %v2205_v50 = vrot.slane %v6955_v6, %v7860_v56  ;;  %v3551_v6 = vmul.f32 %v6783_v15, %v6496_v9 }
 0x224   :  { %v3265_v13 = vsel %vm2065_vm4, %v3264_v35, %v3260_v44  ;;  %3620 = vadd.xlane.f32.xlu1 %v3619_v32  ;;  %3082 = vadd.xlane.f32.xlu0 %v3081_v42  ;;  %v3640_v44 = vsel %vm239_vm0, %v3526_v7, 0.0  ;;  %v7931_v32 = vld [vmem:[#allocation22_spill] sm:$0xff]  ;;  %v3631_v42 = vsel %vm239_vm0, %v3523_v21, 0.0  ;;  %v3279_v21 = vrot.slane %v6972_v43, %v7860_v56 }
 0x225   :  { %v2996_v37 = vpop.xlane.xlu1 %2995  ;;  %v3270_v58 = vsel %vm2072_vm5, %v3269_v55, %v3265_v13  ;;  %v7083_v29 = vpop.xlane.xlu0 %1911  ;;  %v3527_v7 = vmul.f32 %v6783_v15, %v7931_v32  ;;  %v3558_v43 = vmul.f32 %v6832_v34, %v7914_v11 }
 0x226   :  { %v3303_v61 = vrot.slane %v2996_v37, %v7857_v33  ;;  %v7932_v37 = vld [vmem:[#allocation29_spill] sm:$0xff] }
 0x227   :  { %v3537_v40 = vmul.f32 %v6868_v46, %v7932_v37 }
 0x228   :  { %v3304_v18 = vsel %vm2065_vm4, %v3303_v61, %v3299_v26  ;;  %3641 = vadd.xlane.f32.xlu1 %v3640_v44  ;;  %3587 = vadd.xlane.f32.xlu0 %v3586_v62  ;;  %v3601_v26 = vsel %vm239_vm0, %v3513_v22, 0.0  ;;  %v7933_v44 = vld [vmem:[#allocation5_spill] sm:$0xff] }
 0x229   :  { %v1849_v55 = vpop.xlane.xlu1 %1848  ;;  %v3309_v3 = vsel %vm2072_vm5, %v3308_v36, %v3304_v18  ;;  %v7096_v13 = vpop.xlane.xlu0 %3016  ;;  %v3534_v22 = vmul.f32 %v6832_v34, %v7933_v44  ;;  %v3673_v62 = vsel %vm239_vm0, %v3537_v40, 0.0  ;;  %v3318_v40 = vrot.slane %v6992_v4, %v7860_v56  ;;  %v7935_v44 = vld [vmem:[#allocation25_spill] sm:$0xff]  ;;  %v7142_v4 = vld [vmem:[%s7736_s2 + $0x10] sm:$0xff] }
 0x22a   :  { %v2161_v35 = vrot.slane %v1849_v55, %v7859_v25 }
 0x22c   :  { %v2162_v1 = vsel %vm2079_vm6, %v2161_v35, %v2157_v38  ;;  %3602 = vadd.xlane.f32.xlu1 %v3601_v26  ;;  %3632 = vadd.xlane.f32.xlu0 %v3631_v42  ;;  %v3643_v38 = vsel %vm239_vm0, %v3527_v7, 0.0  ;;  %v7934_v26 = vld [vmem:[#allocation10_spill] sm:$0xff] }
 0x22d   :  { %v1873_v36 = vpop.xlane.xlu1 %1872  ;;  %v2167_v61 = vsel %vm2086_vm7, %v2166_v16, %v2162_v1  ;;  %v7109_v18 = vpop.xlane.xlu0 %3040  ;;  %v3514_v7 = vmul.f32 %v7934_v26, %v6919_v5 }
 0x22e   :  { %v2200_v12 = vrot.slane %v1873_v36, %v7859_v25  ;;  %v3715_v36 = vsel %vm239_vm0, %v3551_v6, 0.0 }
 0x230   :  { %v2201_v55 = vsel %vm2079_vm6, %v2200_v12, %v2196_v57  ;;  %3644 = vadd.xlane.f32.xlu1 %v3643_v38  ;;  %3674 = vadd.xlane.f32.xlu0 %v3673_v62  ;;  %v3664_v57 = vsel %vm239_vm0, %v3534_v22, 0.0  ;;  %v3528_v22 = vmul.f32 %v7935_v44, %v6848_v0 }
 0x231   :  { %v2978_v16 = vpop.xlane.xlu1 %2977  ;;  %v2206_v35 = vsel %vm2086_vm7, %v2205_v50, %v2201_v55  ;;  %v7122_v1 = vpop.xlane.xlu0 %1893  ;;  %v2907_v55 = vmul.f32 %v7142_v4, %v6498_v53 }
 0x232   :  { %v3274_v32 = vrot.slane %v2978_v16, %v7859_v25 }
 0x234   :  { %v3275_v37 = vsel %vm2079_vm6, %v3274_v32, %v3270_v58  ;;  %3665 = vadd.xlane.f32.xlu1 %v3664_v57  ;;  %3716 = vadd.xlane.f32.xlu0 %v3715_v36  ;;  %v3604_v58 = vsel %vm239_vm0, %v3514_v7, 0.0  ;;  %v7936_v32 = vld [vmem:[#allocation6_spill] sm:$0xff]  ;;  %v3646_v57 = vsel %vm239_vm0, %v3528_v22, 0.0 }
 0x235   :  { %v3002_v50 = vpop.xlane.xlu1 %3001  ;;  %v3280_v42 = vsel %vm2086_vm7, %v3279_v21, %v3275_v37  ;;  %v7135_v38 = vpop.xlane.xlu0 %1917  ;;  %v3736_v21 = vsel %vm239_vm0, %v3558_v43, 0.0  ;;  %v7937_v43 = vld [vmem:[#allocation2_spill] sm:$0xff] }
 0x236   :  { %v3313_v12 = vrot.slane %v3002_v50, %v7859_v25 }
 0x238   :  { %v3314_v34 = vsel %vm2079_vm6, %v3313_v12, %v3309_v3  ;;  %3605 = vadd.xlane.f32.xlu1 %v3604_v58  ;;  %3737 = vadd.xlane.f32.xlu0 %v3736_v21  ;;  %v7152_v3 = vld [vmem:[%s7736_s2 + $0x40] sm:$0xff]  ;;  %v3087_v12 = vsel %vm239_vm0, %v2907_v55, 0.0 }
 0x239   :  { %v1855_v6 = vpop.xlane.xlu1 %1854  ;;  %v3319_v16 = vsel %vm2086_vm7, %v3318_v40, %v3314_v34  ;;  %v3541_v26 = vmul.f32 %v7152_v3, %v7936_v32  ;;  %v7156_v7 = vpop.xlane.xlu0 %3022  ;;  %v3531_v40 = vmul.f32 %v6990_v8, %v7937_v43  ;;  %v7938_v58 = vld [vmem:[#allocation34_spill] sm:$0xff] }
 0x23a   :  { %v2171_v62 = vrot.slane %v1855_v6, %v7916_v30  ;;  %v2897_v34 = vmul.f32 %v7054_v28, %v7938_v58  ;;  %v7939_v21 = vld [vmem:[#allocation30_spill] sm:$0xff]  ;;  %v7940_v28 = vld [vmem:[#allocation23_spill] sm:$0xff] }
 0x23b   :  { %v3655_v32 = vsel %vm239_vm0, %v3531_v40, 0.0 }
 0x23c   :  { %v2172_v37 = vsel %vm2093_vm8, %v2171_v62, %v2167_v61  ;;  %3647 = vadd.xlane.f32.xlu1 %v3646_v57  ;;  %3088 = vadd.xlane.f32.xlu0 %v3087_v12  ;;  %v3685_v61 = vsel %vm239_vm0, %v3541_v26, 0.0  ;;  %v3545_v62 = vmul.f32 %v6868_v46, %v7939_v21 }
 0x23d   :  { %v2371_v50 = vsel %vm2370_vm10, %v2172_v37, %v6940_v24  ;;  %v1879_v36 = vpop.xlane.xlu1 %1878  ;;  %v7168_v6 = vpop.xlane.xlu0 %3046  ;;  %v3507_v37 = vmul.f32 %v6990_v8, %v7940_v28  ;;  %v3536_v28 = vmul.f32 %v6396_v63, %v6848_v0  ;;  %v2254_v63 = vrot.slane %v7021_v27, %v7855_v41 }
 0x23e   :  { %v2210_v44 = vrot.slane %v1879_v36, %v7916_v30  ;;  %v3697_v12 = vsel %vm239_vm0, %v3545_v62, 0.0 }
 0x240   :  { %v2211_v22 = vsel %vm2093_vm8, %v2210_v44, %v2206_v35  ;;  %3686 = vadd.xlane.f32.xlu1 %v3685_v61  ;;  %3656 = vadd.xlane.f32.xlu0 %v3655_v32  ;;  %v3057_v35 = vsel %vm239_vm0, %v2897_v34, 0.0  ;;  %v7941_v61 = vld [vmem:[#allocation19_spill] sm:$0xff] }
 0x241   :  { %v7175_v24 = vsel %vm2372_vm11, %v2211_v22, %v2371_v50  ;;  %v2984_v55 = vpop.xlane.xlu1 %2983  ;;  %v7181_v43 = vpop.xlane.xlu0 %1899  ;;  %v3559_v50 = vmul.f32 %v6783_v15, %v6498_v53  ;;  %v3522_v22 = vmul.f32 %v7941_v61, %v6919_v5  ;;  %v7200_v53 = vld [vmem:[%s7736_s2 + $0x18] sm:$0xff]  ;;  %v3549_v61 = vmul.f32 %v7152_v3, %v7938_v58 }
 0x242   :  { %v3284_v57 = vrot.slane %v2984_v55, %v7916_v30  ;;  %v2908_v15 = vmul.f32 %v7200_v53, %v7918_v31  ;;  %v3328_v58 = vrot.slane %v7034_v10, %v7855_v41  ;;  %v3376_v10 = vrot.slane %v7109_v18, %v7856_v54 }
 0x243   :  { %v3739_v32 = vsel %vm239_vm0, %v3559_v50, 0.0  ;;  %v2263_v50 = vrot.slane %v7083_v29, %v7856_v54 }
 0x244   :  { %v3285_v26 = vsel %vm2093_vm8, %v3284_v57, %v3280_v42  ;;  %3058 = vadd.xlane.f32.xlu1 %v3057_v35  ;;  %3698 = vadd.xlane.f32.xlu0 %v3697_v12  ;;  %v3583_v42 = vsel %vm239_vm0, %v3507_v37, 0.0  ;;  %v3628_v35 = vsel %vm239_vm0, %v3522_v22, 0.0 }
 0x245   :  { %v3482_v36 = vsel %vm2370_vm10, %v3285_v26, %v6966_v39  ;;  %v3008_v40 = vpop.xlane.xlu1 %3007  ;;  %v7193_v21 = vpop.xlane.xlu0 %1923  ;;  %v2224_v39 = vrot.slane %v7070_v45, %v7856_v54  ;;  %v7942_v26 = vld [vmem:[#allocation17_spill] sm:$0xff] }
 0x246   :  { %v3323_v44 = vrot.slane %v3008_v40, %v7916_v30  ;;  %v3090_v40 = vsel %vm239_vm0, %v2908_v15, 0.0  ;;  %v3337_v15 = vrot.slane %v7096_v13, %v7856_v54 }
 0x248   :  { %v3324_v34 = vsel %vm2093_vm8, %v3323_v44, %v3319_v16  ;;  %3584 = vadd.xlane.f32.xlu1 %v3583_v42  ;;  %v2215_v16 = vrot.slane %v7007_v17, %v7855_v41  ;;  %3740 = vadd.xlane.f32.xlu0 %v3739_v32  ;;  %v3670_v42 = vsel %vm239_vm0, %v3536_v28, 0.0  ;;  %v3709_v28 = vsel %vm239_vm0, %v3549_v61, 0.0 }
 0x249   :  { %v7207_v62 = vsel %vm2372_vm11, %v3324_v34, %v3482_v36  ;;  %v1885_v55 = vpop.xlane.xlu1 %1884  ;;  %v7215_v37 = vpop.xlane.xlu0 %3028  ;;  %v3539_v36 = vmul.f32 %v6990_v8, %v7942_v26  ;;  %v3553_v34 = vmul.f32 %v6868_v46, %v6510_v2  ;;  %v3540_v61 = vmul.f32 %v6424_v47, %v7065_v14 }
 0x24a   :  { %v2219_v57 = vrot.slane %v1885_v55, %v7854_v51  ;;  %v3554_v47 = vmul.f32 %v7920_v60, %v6919_v5 }
 0x24c   :  { %v2220_v45 = vsel %vm2051_vm2, %v2219_v57, %v2215_v16  ;;  %3629 = vadd.xlane.f32.xlu1 %v3628_v35  ;;  %3091 = vadd.xlane.f32.xlu0 %v3090_v40  ;;  %v2899_v16 = vmul.f32 %v7142_v4, %v6496_v9  ;;  %v4852_v35 = vld [vmem:[%s7736_s2 + $0x28] sm:$0xff]  ;;  %v3367_v4 = vrot.slane %v7047_v23, %v7855_v41 }
 0x24d   :  { %v1909_v17 = vpop.xlane.xlu1 %1908  ;;  %v2225_v12 = vsel %vm2058_vm3, %v2224_v39, %v2220_v45  ;;  %v7230_v22 = vpop.xlane.xlu0 %3052  ;;  %v3679_v39 = vsel %vm239_vm0, %v3539_v36, 0.0  ;;  %v2902_v45 = vmul.f32 %v4852_v35, %v7920_v60  ;;  %v3721_v36 = vsel %vm239_vm0, %v3553_v34, 0.0 }
 0x24e   :  { %v2258_v44 = vrot.slane %v1909_v17, %v7854_v51  ;;  %v4853_v17 = vld [vmem:[%s7736_s2 + $0x8] sm:$0xff]  ;;  %v3063_v18 = vsel %vm239_vm0, %v2899_v16, 0.0  ;;  %v3682_v16 = vsel %vm239_vm0, %v3540_v61, 0.0  ;;  %v2910_v61 = vmul.f32 %v4852_v35, %v7921_v49 }
 0x24f   :  { %v2906_v40 = vmul.f32 %v4853_v17, %v7914_v11  ;;  %v7943_v11 = vld [vmem:[#allocation11_spill] sm:$0xff]  ;;  %v3544_v17 = vmul.f32 %v6398_v52, %v6848_v0  ;;  %v3557_v52 = vmul.f32 %v7152_v3, %v6484_v48 }
 0x250   :  { %v2259_v29 = vsel %vm2051_vm2, %v2258_v44, %v2254_v63  ;;  %3671 = vadd.xlane.f32.xlu1 %v3670_v42  ;;  %3680 = vadd.xlane.f32.xlu0 %v3679_v39  ;;  %v3072_v42 = vsel %vm239_vm0, %v2902_v45, 0.0 }
 0x251   :  { %v3014_v27 = vpop.xlane.xlu1 %3013  ;;  %v7240_v55 = vsel %vm2058_vm3, %v2263_v50, %v2259_v29  ;;  %v7247_v57 = vpop.xlane.xlu0 %1929  ;;  %v3084_v39 = vsel %vm239_vm0, %v2906_v40, 0.0  ;;  %v3733_v3 = vsel %vm239_vm0, %v3557_v52, 0.0 }
 0x252   :  { %v3332_v32 = vrot.slane %v3014_v27, %v7854_v51 }
 0x254   :  { %v3333_v13 = vsel %vm2051_vm2, %v3332_v32, %v3328_v58  ;;  %3710 = vadd.xlane.f32.xlu1 %v3709_v28  ;;  %3722 = vadd.xlane.f32.xlu0 %v3721_v36  ;;  %v7944_v28 = vld [vmem:[#allocation27_spill] sm:$0xff] }
 0x255   :  { %v3038_v26 = vpop.xlane.xlu1 %3037  ;;  %v3338_v9 = vsel %vm2058_vm3, %v3337_v15, %v3333_v13  ;;  %v7266_v63 = vpop.xlane.xlu0 %1953  ;;  %v3516_v15 = vmul.f32 %v7943_v11, %v7065_v14  ;;  %v3530_v13 = vmul.f32 %v7944_v28, %v6919_v5  ;;  %v7945_v28 = vld [vmem:[#allocation35_spill] sm:$0xff] }
 0x256   :  { %v3371_v50 = vrot.slane %v3038_v26, %v7854_v51  ;;  %v3347_v26 = vrot.slane %v7156_v7, %v7858_v20  ;;  %v3386_v7 = vrot.slane %v7168_v6, %v7858_v20  ;;  %v3555_v6 = vmul.f32 %v6990_v8, %v6529_v19 }
 0x258   :  { %v3372_v44 = vsel %vm2051_vm2, %v3371_v50, %v3367_v4  ;;  %3064 = vadd.xlane.f32.xlu1 %v3063_v18  ;;  %3073 = vadd.xlane.f32.xlu0 %v3072_v42  ;;  %v3724_v4 = vsel %vm239_vm0, %v3554_v47, 0.0  ;;  %v3652_v18 = vsel %vm239_vm0, %v3530_v13, 0.0  ;;  %v3096_v47 = vsel %vm239_vm0, %v2910_v61, 0.0 }
 0x259   :  { %v1891_v23 = vpop.xlane.xlu1 %1890  ;;  %v3377_v29 = vsel %vm2058_vm3, %v3376_v10, %v3372_v44  ;;  %v7277_v27 = vpop.xlane.xlu0 %1935  ;;  %v3610_v10 = vsel %vm239_vm0, %v3516_v15, 0.0  ;;  %v2900_v13 = vmul.f32 %v7200_v53, %v7945_v28 }
 0x25a   :  { %v2229_v34 = vrot.slane %v1891_v23, %v7857_v33 }
 0x25c   :  { %v7281_v58 = vsel %vm2065_vm4, %v2229_v34, %v2225_v12  ;;  %3085 = vadd.xlane.f32.xlu1 %v3084_v39  ;;  %3683 = vadd.xlane.f32.xlu0 %v3682_v16  ;;  %v7296_v12 = vld [vmem:[%s7736_s2 + $0x38] sm:$0xff] }
 0x25d   :  { %v7285_v32 = vpop.xlane.xlu1 %1914  ;;  %v7290_v45 = vpop.xlane.xlu0 %1959  ;;  %v2896_v60 = vmul.f32 %v7296_v12, %v6434_v59 }
 0x25f   :  { %v3054_v42 = vsel %vm239_vm0, %v2896_v60, 0.0 }
 0x260   :  { %3611 = vadd.xlane.f32.xlu1 %v3610_v10  ;;  %3725 = vadd.xlane.f32.xlu0 %v3724_v4  ;;  %v7947_v4 = vld [vmem:[#allocation45_spill] sm:$0xff] }
 0x261   :  { %v3020_v36 = vpop.xlane.xlu1 %3019  ;;  %v7306_v40 = vpop.xlane.xlu0 %1941 }
 0x262   :  { %v3342_v50 = vrot.slane %v3020_v36, %v7857_v33  ;;  %v3727_v36 = vsel %vm239_vm0, %v3555_v6, 0.0 }
 0x264   :  { %v3343_v44 = vsel %vm2065_vm4, %v3342_v50, %v3338_v9  ;;  %3653 = vadd.xlane.f32.xlu1 %v3652_v18  ;;  %3055 = vadd.xlane.f32.xlu0 %v3054_v42  ;;  %v3694_v9 = vsel %vm239_vm0, %v3544_v17, 0.0  ;;  %v7948_v17 = vld [vmem:[#allocation26_spill] sm:$0xff] }
 0x265   :  { %v3044_v23 = vpop.xlane.xlu1 %3043  ;;  %v3348_v34 = vsel %vm2072_vm5, %v3347_v26, %v3343_v44  ;;  %v7318_v15 = vpop.xlane.xlu0 %1965  ;;  %v3524_v18 = vmul.f32 %v7948_v17, %v7065_v14  ;;  %v3066_v44 = vsel %vm239_vm0, %v2900_v13, 0.0 }
 0x266   :  { %v3381_v11 = vrot.slane %v3044_v23, %v7857_v33 }
 0x267   :  { %v3634_v6 = vsel %vm239_vm0, %v3524_v18, 0.0 }
 0x268   :  { %v3382_v35 = vsel %vm2065_vm4, %v3381_v11, %v3377_v29  ;;  %3695 = vadd.xlane.f32.xlu1 %v3694_v9  ;;  %3097 = vadd.xlane.f32.xlu0 %v3096_v47  ;;  %v7946_v29 = vld [vmem:[#allocation40_spill] sm:$0xff]  ;;  %v7949_v11 = vld [vmem:[#allocation7_spill] sm:$0xff]  ;;  %v2234_v9 = vrot.slane %v7122_v1, %v7858_v20  ;;  %v2268_v47 = vrot.slane %v7285_v32, %v7857_v33 }
 0x269   :  { %v1897_v39 = vpop.xlane.xlu1 %1896  ;;  %v3387_v16 = vsel %vm2072_vm5, %v3386_v7, %v3382_v35  ;;  %v3597_v48 = vpop.xlane.xlu0 %3596  ;;  %v2904_v60 = vmul.f32 %v7296_v12, %v7946_v29  ;;  %v3556_v61 = vmul.f32 %v7946_v29, %v7065_v14  ;;  %v3538_v52 = vmul.f32 %v7949_v11, %v6919_v5 }
 0x26a   :  { %v3872_v10 = vrot.slane %v3597_v48, %v7856_v54  ;;  %v2239_v13 = vrot.slane %v1897_v39, %v7859_v25  ;;  %v3552_v1 = vmul.f32 %v7945_v28, %v6848_v0  ;;  %v2273_v32 = vrot.slane %v7135_v38, %v7858_v20 }
 0x26b   :  { %v3078_v23 = vsel %vm239_vm0, %v2904_v60, 0.0  ;;  %v3730_v29 = vsel %vm239_vm0, %v3556_v61, 0.0  ;;  %v2244_v39 = vrot.slane %v7181_v43, %v7860_v56 }
 0x26c   :  { %3734 = vadd.xlane.f32.xlu1 %v3733_v3  ;;  %v3873_v50 = vsel %vm2058_vm3, %v3872_v10, %v7947_v4  ;;  %3728 = vadd.xlane.f32.xlu0 %v3727_v36  ;;  %v3396_v3 = vrot.slane %v7230_v22, %v7860_v56  ;;  %v3676_v22 = vsel %vm239_vm0, %v3538_v52, 0.0  ;;  %v2269_v4 = vsel %vm2065_vm4, %v2268_v47, %v7240_v55  ;;  %v7950_v47 = vld [vmem:[#allocation3_spill] sm:$0xff] }
 0x26d   :  { %v1921_v26 = vpop.xlane.xlu1 %1920  ;;  %v7337_v53 = vpop.xlane.xlu0 %1947  ;;  %v2283_v55 = vrot.slane %v7193_v21, %v7860_v56 }
 0x26e   :  { %v2278_v17 = vrot.slane %v1921_v26, %v7859_v25  ;;  %v2274_v26 = vsel %vm2072_vm5, %v2273_v32, %v2269_v4 }
 0x270   :  { %3067 = vadd.xlane.f32.xlu1 %v3066_v44  ;;  %3079 = vadd.xlane.f32.xlu0 %v3078_v23  ;;  %v3718_v23 = vsel %vm239_vm0, %v3552_v1, 0.0 }
 0x271   :  { %v3026_v7 = vpop.xlane.xlu1 %3025  ;;  %v7348_v35 = vpop.xlane.xlu0 %1971 }
 0x272   :  { %v3352_v42 = vrot.slane %v3026_v7, %v7859_v25 }
 0x274   :  { %v3353_v48 = vsel %vm2079_vm6, %v3352_v42, %v3348_v34  ;;  %3635 = vadd.xlane.f32.xlu1 %v3634_v6  ;;  %3731 = vadd.xlane.f32.xlu0 %v3730_v29  ;;  %v2235_v34 = vsel %vm2072_vm5, %v2234_v9, %v7281_v58  ;;  %v4855_v58 = vld [vmem:[%s7736_s2 + $0x20] sm:$0xff]  ;;  %v2279_v42 = vsel %vm2079_vm6, %v2278_v17, %v2274_v26 }
 0x275   :  { %v3050_v10 = vpop.xlane.xlu1 %3049  ;;  %v7367_v36 = vpop.xlane.xlu0 %3617  ;;  %v2240_v28 = vsel %vm2079_vm6, %v2239_v13, %v2235_v34  ;;  %v2901_v44 = vmul.f32 %v4855_v58, %v6510_v2  ;;  %v3532_v13 = vmul.f32 %v7950_v47, %v7065_v14  ;;  %v2332_v47 = vrot.slane %v7266_v63, %v7855_v41 }
 0x276   :  { %v3391_v60 = vrot.slane %v3050_v10, %v7859_v25  ;;  %v2284_v10 = vsel %vm2086_vm7, %v2283_v55, %v2279_v42  ;;  %v7952_v55 = vld [vmem:[#allocation39_spill] sm:$0xff]  ;;  %v2341_v63 = vrot.slane %v7290_v45, %v7856_v54  ;;  %v3548_v45 = vmul.f32 %v6434_v59, %v7065_v14 }
 0x277   :  { %v3069_v1 = vsel %vm239_vm0, %v2901_v44, 0.0  ;;  %v3658_v4 = vsel %vm239_vm0, %v3532_v13, 0.0  ;;  %v2909_v26 = vmul.f32 %v4855_v58, %v7952_v55  ;;  %v2302_v13 = vrot.slane %v7277_v27, %v7856_v54 }
 0x278   :  { %v3392_v18 = vsel %vm2079_vm6, %v3391_v60, %v3387_v16  ;;  %3677 = vadd.xlane.f32.xlu1 %v3676_v22  ;;  %v2245_v16 = vsel %vm2086_vm7, %v2244_v39, %v2240_v28  ;;  %v7951_v39 = vld [vmem:[#allocation8_spill] sm:$0xff] }
 0x279   :  { %v1903_v38 = vpop.xlane.xlu1 %1902  ;;  %v7376_v43 = vsel %vm2086_vm7, %v3396_v3, %v3392_v18  ;;  %v3600_v7 = vpop.xlane.xlu0 %3599  ;;  %v3357_v3 = vrot.slane %v7215_v37, %v7860_v56  ;;  %v3546_v34 = vmul.f32 %v7951_v39, %v6919_v5 }
 0x27a   :  { %v2249_v61 = vrot.slane %v1903_v38, %v7916_v30  ;;  %v3877_v52 = vrot.slane %v3600_v7, %v7857_v33  ;;  %v3560_v38 = vmul.f32 %v7918_v31, %v6848_v0  ;;  %v3093_v0 = vsel %vm239_vm0, %v2909_v26, 0.0 }
 0x27b   :  { %v3358_v37 = vsel %vm2086_vm7, %v3357_v3, %v3353_v48  ;;  %v2293_v31 = vrot.slane %v7247_v57, %v7855_v41 }
 0x27c   :  { %v2250_v11 = vsel %vm2093_vm8, %v2249_v61, %v2245_v16  ;;  %3719 = vadd.xlane.f32.xlu1 %v3718_v23  ;;  %v7394_v21 = vsel %vm2065_vm4, %v3877_v52, %v3873_v50  ;;  %v3700_v61 = vsel %vm239_vm0, %v3546_v34, 0.0  ;;  %v3742_v7 = vsel %vm239_vm0, %v3560_v38, 0.0 }
 0x27d   :  { %v2375_v2 = vsel %vm2374_vm12, %v2250_v11, %v7175_v24  ;;  %v1927_v9 = vpop.xlane.xlu1 %1926  ;;  %v7402_v29 = vpop.xlane.xlu0 %3638 }
 0x27e   :  { %v2288_v6 = vrot.slane %v1927_v9, %v7916_v30 }
 0x280   :  { %v2289_v24 = vsel %vm2093_vm8, %v2288_v6, %v2284_v10  ;;  %3070 = vadd.xlane.f32.xlu1 %v3069_v1 }
 0x281   :  { %v3032_v60 = vpop.xlane.xlu1 %3031  ;;  %v7407_v50 = vsel %vm2376_vm13, %v2289_v24, %v2375_v2  ;;  %v7413_v22 = vpop.xlane.xlu0 %3578  ;;  %v3561_v2 = vmul.f32 %v6868_v46, %v7952_v55  ;;  %v4856_v46 = vld [vmem:[%s7736_s2 + $0x30] sm:$0xff] }
 0x282   :  { %v3362_v32 = vrot.slane %v3032_v60, %v7916_v30  ;;  %v2903_v24 = vmul.f32 %v4856_v46, %v6529_v19 }
 0x283   :  { %v3745_v27 = vsel %vm239_vm0, %v3561_v2, 0.0 }
 0x284   :  { %v3363_v28 = vsel %vm2093_vm8, %v3362_v32, %v3358_v37  ;;  %3659 = vadd.xlane.f32.xlu1 %v3658_v4  ;;  %v2312_v32 = vrot.slane %v7306_v40, %v7858_v20 }
 0x285   :  { %v7419_v17 = vsel %vm2374_vm12, %v3363_v28, %v7207_v62  ;;  %v1933_v18 = vpop.xlane.xlu1 %1932  ;;  %v7423_v44 = vpop.xlane.xlu0 %3623  ;;  %v7953_v62 = vld [vmem:[#allocation31_spill] sm:$0xff] }
 0x286   :  { %v3547_v42 = vmul.f32 %v6990_v8, %v7953_v62  ;;  %v2297_v52 = vrot.slane %v1933_v18, %v7854_v51  ;;  %v2351_v18 = vrot.slane %v7318_v15, %v7858_v20  ;;  %v3562_v62 = vmul.f32 %v7921_v49, %v6919_v5  ;;  %v7954_v5 = vld [vmem:[#allocation42_spill] sm:$0xff] }
 0x287   :  { %v2911_v49 = vmul.f32 %v4856_v46, %v7954_v5 }
 0x288   :  { %3701 = vadd.xlane.f32.xlu1 %v3700_v61  ;;  %v3703_v6 = vsel %vm239_vm0, %v3547_v42, 0.0  ;;  %v2298_v57 = vsel %vm2051_vm2, %v2297_v52, %v2293_v31  ;;  %v3075_v61 = vsel %vm239_vm0, %v2903_v24, 0.0  ;;  %v2361_v42 = vrot.slane %v7348_v35, %v7860_v56 }
 0x289   :  { %v1957_v48 = vpop.xlane.xlu1 %1956  ;;  %v7427_v16 = vpop.xlane.xlu0 %3662  ;;  %v2303_v34 = vsel %vm2058_vm3, %v2302_v13, %v2298_v57  ;;  %v3706_v31 = vsel %vm239_vm0, %v3548_v45, 0.0  ;;  %v3748_v35 = vsel %vm239_vm0, %v3562_v62, 0.0 }
 0x28a   :  { %v2336_v3 = vrot.slane %v1957_v48, %v7854_v51  ;;  %v2322_v48 = vrot.slane %v7337_v53, %v7860_v56 }
 0x28c   :  { %3743 = vadd.xlane.f32.xlu1 %v3742_v7  ;;  %v2337_v39 = vsel %vm2051_vm2, %v2336_v3, %v2332_v47 }
 0x28d   :  { %v1939_v23 = vpop.xlane.xlu1 %1938  ;;  %v7432_v11 = vpop.xlane.xlu0 %3581  ;;  %v2342_v40 = vsel %vm2058_vm3, %v2341_v63, %v2337_v39  ;;  %v7955_v63 = vld [vmem:[#allocation41_spill] sm:$0xff]  ;;  %v3563_v39 = vmul.f32 %v6990_v8, %v7954_v5 }
 0x28e   :  { %v2307_v10 = vrot.slane %v1939_v23, %v7857_v33  ;;  %v3564_v8 = vmul.f32 %v7955_v63, %v7065_v14  ;;  %v3848_v14 = vrot.slane %v7432_v11, %v7859_v25 }
 0x290   :  { %3094 = vadd.xlane.f32.xlu1 %v3093_v0  ;;  %v2308_v4 = vsel %vm2065_vm4, %v2307_v10, %v2303_v34 }
 0x291   :  { %v1963_v58 = vpop.xlane.xlu1 %1962  ;;  %v7440_v9 = vpop.xlane.xlu0 %3626  ;;  %v2313_v26 = vsel %vm2072_vm5, %v2312_v32, %v2308_v4  ;;  %v7956_v4 = vld [vmem:[#allocation44_spill] sm:$0xff] }
 0x292   :  { %v2346_v37 = vrot.slane %v1963_v58, %v7857_v33 }
 0x294   :  { %3704 = vadd.xlane.f32.xlu1 %v3703_v6  ;;  %v2347_v55 = vsel %vm2065_vm4, %v2346_v37, %v2342_v40  ;;  %v3099_v37 = vsel %vm239_vm0, %v2911_v49, 0.0  ;;  %v3751_v40 = vsel %vm239_vm0, %v3563_v39, 0.0 }
 0x295   :  { %v1945_v1 = vpop.xlane.xlu1 %1944  ;;  %v7456_v60 = vpop.xlane.xlu0 %3668  ;;  %v2352_v53 = vsel %vm2072_vm5, %v2351_v18, %v2347_v55 }
 0x296   :  { %v2317_v19 = vrot.slane %v1945_v1, %v7859_v25 }
 0x298   :  { %3746 = vadd.xlane.f32.xlu1 %v3745_v27  ;;  %v2318_v59 = vsel %vm2079_vm6, %v2317_v19, %v2313_v26  ;;  %v2912_v27 = vmul.f32 %v7296_v12, %v7955_v63  ;;  %v3906_v12 = vrot.slane %v7367_v36, %v7854_v51  ;;  %v3843_v36 = vrot.slane %v7413_v22, %v7858_v20 }
 0x299   :  { %v1969_v28 = vpop.xlane.xlu1 %1968  ;;  %v7471_v38 = vpop.xlane.xlu0 %3689  ;;  %v2323_v58 = vsel %vm2086_vm7, %v2322_v48, %v2318_v59  ;;  %v3916_v22 = vrot.slane %v7423_v44, %v7857_v33  ;;  %v3980_v63 = vrot.slane %v7427_v16, %v7855_v41 }
 0x29a   :  { %v2356_v7 = vrot.slane %v1969_v28, %v7859_v25  ;;  %v3102_v45 = vsel %vm239_vm0, %v2912_v27, 0.0 }
 0x29c   :  { %3076 = vadd.xlane.f32.xlu1 %v3075_v61  ;;  %v2357_v52 = vsel %vm2079_vm6, %v2356_v7, %v2352_v53  ;;  %v3754_v7 = vsel %vm239_vm0, %v3564_v8, 0.0 }
 0x29d   :  { %v1951_v23 = vpop.xlane.xlu1 %1950  ;;  %v7486_v0 = vpop.xlane.xlu0 %3061  ;;  %v2362_v3 = vsel %vm2086_vm7, %v2361_v42, %v2357_v52 }
 0x29e   :  { %v2327_v15 = vrot.slane %v1951_v23, %v7916_v30 }
 0x2a0   :  { %3707 = vadd.xlane.f32.xlu1 %v3706_v31  ;;  %v2328_v2 = vsel %vm2093_vm8, %v2327_v15, %v2323_v58  ;;  %v3921_v31 = vrot.slane %v7440_v9, %v7858_v20 }
 0x2a1   :  { %v1975_v6 = vpop.xlane.xlu1 %1974  ;;  %v7494_v13 = vpop.xlane.xlu0 %3608  ;;  %v2379_v10 = vsel %vm2378_vm14, %v2328_v2, %v7407_v50  ;;  %v3941_v2 = vrot.slane %v7402_v29, %v7855_v41 }
 0x2a2   :  { %v2366_v47 = vrot.slane %v1975_v6, %v7916_v30 }
 0x2a4   :  { %3749 = vadd.xlane.f32.xlu1 %v3748_v35  ;;  %v2367_v57 = vsel %vm2093_vm8, %v2366_v47, %v2362_v3 }
 0x2a5   :  { %v3573_v1 = vpop.xlane.xlu1 %3572  ;;  %v2381_v24 = vsel %vm2380_vm15, %v2367_v57, %v2379_v10  ;;  %v7508_v34 = vpop.xlane.xlu0 %3650 }
 0x2a6   :  { %v3833_v46 = vrot.slane %v3573_v1, %v7856_v54  ;;  %v2383_v32 = vsel %vm239_vm0, %v2381_v24, 0.0 }
 0x2a7   :  { %2384 = vadd.xlane.f32.xlu0 %v2383_v32 }
 0x2a8   :  { %v3834_v50 = vsel %vm2058_vm3, %v3833_v46, %v7956_v4  ;;  %3100 = vadd.xlane.f32.xlu1 %v3099_v37  ;;  %v3989_v46 = vrot.slane %v7456_v60, %v7856_v54 }
 0x2a9   :  { %v3615_v19 = vpop.xlane.xlu1 %3614  ;;  %v7519_v18 = vpop.xlane.xlu0 %3692 }
 0x2aa   :  { %v3902_v28 = vrot.slane %v3615_v19, %v7855_v41 }
 0x2ab   :  { %3103 = vadd.xlane.f32.xlu0 %v3102_v45  ;;  %v3960_v45 = vrot.slane %v7508_v34, %v7858_v20 }
 0x2ac   :  { %v3907_v61 = vsel %vm2051_vm2, %v3906_v12, %v3902_v28  ;;  %3752 = vadd.xlane.f32.xlu1 %v3751_v40 }
 0x2ad   :  { %v3576_v48 = vpop.xlane.xlu1 %3575  ;;  %v7526_v26 = vpop.xlane.xlu0 %3713 }
 0x2ae   :  { %v3838_v55 = vrot.slane %v3576_v48, %v7857_v33 }
 0x2b0   :  { %v3839_v59 = vsel %vm2065_vm4, %v3838_v55, %v3834_v50  ;;  %3755 = vadd.xlane.f32.xlu1 %v3754_v7  ;;  %v3892_v50 = vrot.slane %v7494_v13, %v7860_v56  ;;  %v4023_v13 = vrot.slane %v7471_v38, %v7854_v51 }
 0x2b1   :  { %v3844_v23 = vsel %vm2072_vm5, %v3843_v36, %v3839_v59  ;;  %v3621_v15 = vpop.xlane.xlu1 %3620  ;;  %v7537_v53 = vpop.xlane.xlu0 %3082  ;;  %v4028_v36 = vrot.slane %v7519_v18, %v7856_v54 }
 0x2b2   :  { %v3911_v62 = vrot.slane %v3621_v15, %v7856_v54  ;;  %v3849_v42 = vsel %vm2079_vm6, %v3848_v14, %v3844_v23  ;;  %v3410_v23 = vrot.slane %v7486_v0, %v7854_v51 }
 0x2b4   :  { %v3912_v11 = vsel %vm2058_vm3, %v3911_v62, %v3907_v61 }
 0x2b5   :  { %v3917_v52 = vsel %vm2065_vm4, %v3916_v22, %v3912_v11  ;;  %v3642_v58 = vpop.xlane.xlu1 %3641  ;;  %v3588_v5 = vpop.xlane.xlu0 %3587 }
 0x2b6   :  { %v3945_v6 = vrot.slane %v3642_v58, %v7854_v51  ;;  %v3922_v47 = vsel %vm2072_vm5, %v3921_v31, %v3917_v52  ;;  %v3858_v18 = vrot.slane %v3588_v5, %v7916_v30 }
 0x2b8   :  { %v3946_v44 = vsel %vm2051_vm2, %v3945_v6, %v3941_v2 }
 0x2b9   :  { %v3603_v49 = vpop.xlane.xlu1 %3602  ;;  %v3633_v3 = vpop.xlane.xlu0 %3632 }
 0x2ba   :  { %v3882_v35 = vrot.slane %v3603_v49, %v7858_v20  ;;  %v3931_v6 = vrot.slane %v3633_v3, %v7860_v56  ;;  %v4062_v3 = vrot.slane %v7526_v26, %v7854_v51  ;;  %v3445_v26 = vrot.slane %v7537_v53, %v7855_v41 }
 0x2bc   :  { %v3883_v9 = vsel %vm2072_vm5, %v3882_v35, %v7394_v21 }
 0x2bd   :  { %v3645_v57 = vpop.xlane.xlu1 %3644  ;;  %v3675_v1 = vpop.xlane.xlu0 %3674 }
 0x2be   :  { %v3950_v10 = vrot.slane %v3645_v57, %v7856_v54  ;;  %v3999_v57 = vrot.slane %v3675_v1, %v7858_v20 }
 0x2c0   :  { %v3951_v29 = vsel %vm2058_vm3, %v3950_v10, %v3946_v44 }
 0x2c1   :  { %v3666_v24 = vpop.xlane.xlu1 %3665  ;;  %v3717_v32 = vpop.xlane.xlu0 %3716 }
 0x2c2   :  { %v3984_v27 = vrot.slane %v3666_v24, %v7854_v51 }
 0x2c4   :  { %v3985_v39 = vsel %vm2051_vm2, %v3984_v27, %v3980_v63 }
 0x2c5   :  { %v3606_v37 = vpop.xlane.xlu1 %3605  ;;  %v3990_v21 = vsel %vm2058_vm3, %v3989_v46, %v3985_v39  ;;  %v7563_v19 = vpop.xlane.xlu0 %3737 }
 0x2c6   :  { %v3887_v4 = vrot.slane %v3606_v37, %v7859_v25 }
 0x2c8   :  { %v3888_v16 = vsel %vm2079_vm6, %v3887_v4, %v3883_v9 }
 0x2c9   :  { %v3648_v12 = vpop.xlane.xlu1 %3647  ;;  %v3893_v28 = vsel %vm2086_vm7, %v3892_v50, %v3888_v16  ;;  %v7570_v8 = vpop.xlane.xlu0 %3088 }
 0x2ca   :  { %v3955_v60 = vrot.slane %v3648_v12, %v7857_v33 }
 0x2cc   :  { %v3956_v40 = vsel %vm2065_vm4, %v3955_v60, %v3951_v29 }
 0x2cd   :  { %v3687_v61 = vpop.xlane.xlu1 %3686  ;;  %v3961_v48 = vsel %vm2072_vm5, %v3960_v45, %v3956_v40  ;;  %v7579_v7 = vpop.xlane.xlu0 %3656 }
 0x2ce   :  { %v4019_v55 = vrot.slane %v3687_v61, %v7855_v41 }
 0x2d0   :  { %v4024_v14 = vsel %vm2051_vm2, %v4023_v13, %v4019_v55 }
 0x2d1   :  { %v3059_v34 = vpop.xlane.xlu1 %3058  ;;  %v4029_v59 = vsel %vm2058_vm3, %v4028_v36, %v4024_v14  ;;  %v7586_v62 = vpop.xlane.xlu0 %3698 }
 0x2d2   :  { %v3406_v15 = vrot.slane %v3059_v34, %v7855_v41 }
 0x2d4   :  { %v3411_v38 = vsel %vm2051_vm2, %v3410_v23, %v3406_v15 }
 0x2d5   :  { %v3585_v22 = vpop.xlane.xlu1 %3584  ;;  %v7591_v11 = vpop.xlane.xlu0 %3740 }
 0x2d6   :  { %v3853_v31 = vrot.slane %v3585_v22, %v7860_v56 }
 0x2d8   :  { %v3854_v52 = vsel %vm2086_vm7, %v3853_v31, %v3849_v42 }
 0x2d9   :  { %v3859_v58 = vsel %vm2093_vm8, %v3858_v18, %v3854_v52  ;;  %v3630_v2 = vpop.xlane.xlu1 %3629  ;;  %v7597_v44 = vpop.xlane.xlu0 %3091 }
 0x2da   :  { %v3926_v0 = vrot.slane %v3630_v2, %v7859_v25 }
 0x2dc   :  { %v3927_v49 = vsel %vm2079_vm6, %v3926_v0, %v3922_v47  ;;  %v4067_v47 = vrot.slane %v3717_v32, %v7856_v54 }
 0x2dd   :  { %v3672_v35 = vpop.xlane.xlu1 %3671  ;;  %v3932_v9 = vsel %vm2086_vm7, %v3931_v6, %v3927_v49  ;;  %v3681_v10 = vpop.xlane.xlu0 %3680 }
 0x2de   :  { %v3994_v5 = vrot.slane %v3672_v35, %v7857_v33 }
 0x2e0   :  { %v3995_v42 = vsel %vm2065_vm4, %v3994_v5, %v3990_v21 }
 0x2e1   :  { %v3711_v29 = vpop.xlane.xlu1 %3710  ;;  %v4000_v24 = vsel %vm2072_vm5, %v3999_v57, %v3995_v42  ;;  %v7609_v27 = vpop.xlane.xlu0 %3722 }
 0x2e2   :  { %v4058_v63 = vrot.slane %v3711_v29, %v7855_v41 }
 0x2e4   :  { %v4063_v46 = vsel %vm2051_vm2, %v4062_v3, %v4058_v63 }
 0x2e5   :  { %v3065_v39 = vpop.xlane.xlu1 %3064  ;;  %v4068_v1 = vsel %vm2058_vm3, %v4067_v47, %v4063_v46  ;;  %v7614_v21 = vpop.xlane.xlu0 %3073 }
 0x2e6   :  { %v3415_v37 = vrot.slane %v3065_v39, %v7856_v54 }
 0x2e8   :  { %v3416_v4 = vsel %vm2058_vm3, %v3415_v37, %v3411_v38 }
 0x2e9   :  { %v3086_v50 = vpop.xlane.xlu1 %3085  ;;  %v3684_v32 = vpop.xlane.xlu0 %3683 }
 0x2ea   :  { %v3449_v16 = vrot.slane %v3086_v50, %v7854_v51 }
 0x2ec   :  { %v7621_v12 = vsel %vm2051_vm2, %v3449_v16, %v3445_v26 }
 0x2ed   :  { %v3612_v60 = vpop.xlane.xlu1 %3611  ;;  %v3726_v40 = vpop.xlane.xlu0 %3725 }
 0x2ee   :  { %v3897_v45 = vrot.slane %v3612_v60, %v7916_v30 }
 0x2f0   :  { %v3898_v61 = vsel %vm2093_vm8, %v3897_v45, %v3893_v28 }
 0x2f1   :  { %v4133_v13 = vsel %vm2368_vm9, %v3898_v61, %v3859_v58  ;;  %v3654_v55 = vpop.xlane.xlu1 %3653  ;;  %v3056_v14 = vpop.xlane.xlu0 %3055  ;;  %v4077_v61 = vrot.slane %v7609_v27, %v7858_v20 }
 0x2f2   :  { %v3965_v36 = vrot.slane %v3654_v55, %v7859_v25  ;;  %v3401_v34 = vrot.slane %v3056_v14, %v7916_v30 }
 0x2f4   :  { %v3966_v53 = vsel %vm2079_vm6, %v3965_v36, %v3961_v48  ;;  %v3402_v15 = vsel %vm2093_vm8, %v3401_v34, %v7376_v43  ;;  %v4082_v34 = vrot.slane %v3726_v40, %v7859_v25 }
 0x2f5   :  { %v3696_v23 = vpop.xlane.xlu1 %3695  ;;  %v3485_v22 = vsel %vm2376_vm13, %v3402_v15, %v7419_v17  ;;  %v4009_v17 = vrot.slane %v3681_v10, %v7860_v56 }
 0x2f6   :  { %v4033_v38 = vrot.slane %v3696_v23, %v7857_v33 }
 0x2f8   :  { %v4034_v28 = vsel %vm2065_vm4, %v4033_v38, %v4029_v59  ;;  %v3970_v59 = vrot.slane %v7579_v7, %v7860_v56  ;;  %v3098_v7 = vpop.xlane.xlu0 %3097 }
 0x2f9   :  { %v7635_v31 = vpop.xlane.xlu1 %3734 }
 0x2fa   :  { %v3971_v29 = vsel %vm2086_vm7, %v3970_v59, %v3966_v53  ;;  %v3430_v53 = vrot.slane %v7614_v21, %v7859_v25  ;;  %v3454_v59 = vrot.slane %v7570_v8, %v7856_v54  ;;  %v4097_v8 = vrot.slane %v7635_v31, %v7855_v41 }
 0x2fb   :  { %v4106_v41 = vrot.slane %v7591_v11, %v7856_v54 }
 0x2fc   :  { %v3729_v37 = vpop.xlane.xlu0 %3728 }
 0x2fd   :  { %v3068_v18 = vpop.xlane.xlu1 %3067  ;;  %v4087_v21 = vrot.slane %v3729_v37, %v7860_v56 }
 0x2fe   :  { %v3420_v16 = vrot.slane %v3068_v18, %v7857_v33 }
 0x300   :  { %v3421_v55 = vsel %vm2065_vm4, %v3420_v16, %v3416_v4 }
 0x301   :  { %v3636_v52 = vpop.xlane.xlu1 %3635 }
 0x302   :  { %v3936_v58 = vrot.slane %v3636_v52, %v7916_v30 }
 0x304   :  { %v3937_v48 = vsel %vm2093_vm8, %v3936_v58, %v3932_v9  ;;  %v4014_v9 = vrot.slane %v3684_v32, %v7916_v30 }
 0x305   :  { %v4134_v2 = vsel %vm2370_vm10, %v3937_v48, %v4133_v13  ;;  %v3678_v0 = vpop.xlane.xlu1 %3677  ;;  %v3080_v13 = vpop.xlane.xlu0 %3079 }
 0x306   :  { %v4004_v43 = vrot.slane %v3678_v0, %v7859_v25  ;;  %v3440_v38 = vrot.slane %v3080_v13, %v7916_v30 }
 0x308   :  { %v4005_v35 = vsel %vm2079_vm6, %v4004_v43, %v4000_v24 }
 0x309   :  { %v3720_v6 = vpop.xlane.xlu1 %3719  ;;  %v4010_v57 = vsel %vm2086_vm7, %v4009_v17, %v4005_v35  ;;  %v3732_v58 = vpop.xlane.xlu0 %3731 }
 0x30a   :  { %v4015_v63 = vsel %vm2093_vm8, %v4014_v9, %v4010_v57  ;;  %v4072_v50 = vrot.slane %v3720_v6, %v7857_v33  ;;  %v4092_v35 = vrot.slane %v3732_v58, %v7916_v30  ;;  %v3455_v9 = vsel %vm2058_vm3, %v3454_v59, %v7621_v12 }
 0x30c   :  { %v4073_v60 = vsel %vm2065_vm4, %v4072_v50, %v4068_v1  ;;  %v4038_v1 = vrot.slane %v7586_v62, %v7858_v20 }
 0x30d   :  { %v3071_v49 = vpop.xlane.xlu1 %3070  ;;  %v4078_v36 = vsel %vm2072_vm5, %v4077_v61, %v4073_v60 }
 0x30e   :  { %v3425_v32 = vrot.slane %v3071_v49, %v7858_v20  ;;  %v4083_v4 = vsel %vm2079_vm6, %v4082_v34, %v4078_v36  ;;  %v4039_v48 = vsel %vm2072_vm5, %v4038_v1, %v4034_v28 }
 0x30f   :  { %v4088_v49 = vsel %vm2086_vm7, %v4087_v21, %v4083_v4 }
 0x310   :  { %v3426_v14 = vsel %vm2072_vm5, %v3425_v32, %v3421_v55  ;;  %v4093_v57 = vsel %vm2093_vm8, %v4092_v35, %v4088_v49 }
 0x311   :  { %v3660_v5 = vpop.xlane.xlu1 %3659  ;;  %v3431_v52 = vsel %vm2079_vm6, %v3430_v53, %v3426_v14  ;;  %v7957_v53 = vld [vmem:[#allocation43_spill] sm:$0xff] }
 0x312   :  { %v3975_v42 = vrot.slane %v3660_v5, %v7916_v30 }
 0x314   :  { %v3976_v3 = vsel %vm2093_vm8, %v3975_v42, %v3971_v29 }
 0x315   :  { %v4135_v24 = vsel %vm2372_vm11, %v3976_v3, %v4134_v2  ;;  %v3702_v47 = vpop.xlane.xlu1 %3701  ;;  %v3459_v3 = vrot.slane %v7597_v44, %v7857_v33 }
 0x316   :  { %v4136_v10 = vsel %vm2374_vm12, %v4015_v63, %v4135_v24  ;;  %v4043_v15 = vrot.slane %v3702_v47, %v7859_v25 }
 0x317   :  { %v3460_v24 = vsel %vm2065_vm4, %v3459_v3, %v3455_v9 }
 0x318   :  { %v4044_v0 = vsel %vm2079_vm6, %v4043_v15, %v4039_v48 }
 0x319   :  { %v7653_v46 = vpop.xlane.xlu1 %3743 }
 0x31a   :  { %v4111_v44 = vrot.slane %v7653_v46, %v7857_v33 }
 0x31d   :  { %v3095_v39 = vpop.xlane.xlu1 %3094 }
 0x321   :  { %v3705_v26 = vpop.xlane.xlu1 %3704 }
 0x322   :  { %v4048_v18 = vrot.slane %v3705_v26, %v7860_v56 }
 0x324   :  { %v4049_v17 = vsel %vm2086_vm7, %v4048_v18, %v4044_v0 }
 0x325   :  { %v3747_v45 = vpop.xlane.xlu1 %3746 }
 0x326   :  { %v4116_v31 = vrot.slane %v3747_v45, %v7858_v20 }
 0x329   :  { %v3077_v23 = vpop.xlane.xlu1 %3076 }
 0x32a   :  { %v3435_v27 = vrot.slane %v3077_v23, %v7860_v56 }
 0x32c   :  { %v3436_v40 = vsel %vm2086_vm7, %v3435_v27, %v3431_v52 }
 0x32d   :  { %v3708_v62 = vpop.xlane.xlu1 %3707  ;;  %v3441_v2 = vsel %vm2093_vm8, %v3440_v38, %v3436_v40 }
 0x32e   :  { %v4053_v6 = vrot.slane %v3708_v62, %v7916_v30  ;;  %v3486_v43 = vsel %vm2378_vm14, %v3441_v2, %v3485_v22  ;;  %v3464_v22 = vrot.slane %v3095_v39, %v7858_v20  ;;  %v3469_v39 = vrot.slane %v3098_v7, %v7859_v25 }
 0x330   :  { %v4054_v28 = vsel %vm2093_vm8, %v4053_v6, %v4049_v17  ;;  %v3465_v37 = vsel %vm2072_vm5, %v3464_v22, %v3460_v24 }
 0x331   :  { %v3750_v5 = vpop.xlane.xlu1 %3749  ;;  %v4137_v42 = vsel %vm2376_vm13, %v4054_v28, %v4136_v10  ;;  %v4101_v10 = vrot.slane %v7563_v19, %v7854_v51  ;;  %v3470_v16 = vsel %vm2079_vm6, %v3469_v39, %v3465_v37 }
 0x332   :  { %v4138_v29 = vsel %vm2378_vm14, %v4093_v57, %v4137_v42  ;;  %v4121_v32 = vrot.slane %v3750_v5, %v7859_v25 }
 0x333   :  { %v4102_v50 = vsel %vm2051_vm2, %v4101_v10, %v4097_v8  ;;  %vm4155_vm2 = vcmask 15360  }
 0x334   :  { %v2385_v63 = vpop.xlane.xlu0 %2384  ;;  %v4107_v60 = vsel %vm2058_vm3, %v4106_v41, %v4102_v50 }
 0x335   :  { %v3101_v47 = vpop.xlane.xlu1 %3100  ;;  %v4112_v46 = vsel %vm2065_vm4, %v4111_v44, %v4107_v60  ;;  %v2837_v34 = vadd.f32 %v7957_v53, %v2385_v63 }
 0x336   :  { %v3474_v12 = vrot.slane %v3101_v47, %v7860_v56  ;;  %v4117_v20 = vsel %vm2072_vm5, %v4116_v31, %v4112_v46 }
 0x337   :  { %v4122_v13 = vsel %vm2079_vm6, %v4121_v32, %v4117_v20  ;;  %v2838_v23 = vmul.f32 0.5, %v2837_v34 }
 0x338   :  { %v3104_v26 = vpop.xlane.xlu0 %3103  ;;  %v3475_v7 = vsel %vm2086_vm7, %v3474_v12, %v3470_v16 }
 0x339   :  { %v3479_v51 = vrot.slane %v3104_v26, %v7916_v30  ;;  %v3753_v19 = vpop.xlane.xlu1 %3752  ;;  %v2839_v1 = vmax.f32 %v2838_v23, 1e-24 }
 0x33a   :  { %v4126_v61 = vrot.slane %v3753_v19, %v7860_v56 }
 0x33b   :  { %v3480_v33 = vsel %vm2093_vm8, %v3479_v51, %v3475_v7  ;;  %4845 = vrsqrt.f32 %v2839_v1 }
 0x33c   :  { %v3487_v54 = vsel %vm2380_vm15, %v3480_v33, %v3486_v43  ;;  %v4127_v55 = vsel %vm2086_vm7, %v4126_v61, %v4122_v13 }
 0x33d   :  { %v3756_v11 = vpop.xlane.xlu1 %3755  ;;  %v3489_v45 = vsel %vm239_vm0, %v3487_v54, 0.0 }
 0x33e   :  { %v4131_v25 = vrot.slane %v3756_v11, %v7916_v30  ;;  %3490 = vadd.xlane.f32.xlu0 %v3489_v45  ;;  %v4297_v30 = vld [vmem:[%s7737_s3] ss:$0 sm:$0xff] }
 0x340   :  { %v4132_v56 = vsel %vm2093_vm8, %v4131_v25, %v4127_v55 }
 0x341   :  { %v4139_v36 = vsel %vm2380_vm15, %v4132_v56, %v4138_v29 }
 0x342   :  { %v4141_v14 = vsel %vm239_vm0, %v4139_v36, 0.0 }
 0x343   :  { %4142 = vadd.xlane.f32.xlu1 %v4141_v14 }
 0x345   :  { %v4846_v38 = vpop.eup %4845 }
 0x3cb   :  { %v3491_v15 = vpop.xlane.xlu0 %3490 }
 0x3d0   :  { %v4143_v27 = vpop.xlane.xlu1 %4142 }
 0x3d1   :  { %v4145_v4 = vsel %vm4144_vm1, %v3491_v15, %v4143_v27 }
 0x3d2   :  { %v4146_v18 = vmul.f32 %v4846_v38, %v4145_v4 }
 0x3d4   :  { %v4154_v52 = vadd.f32 %v4297_v30, %v4146_v18 }
 0x3d6   :  { %4156 = vst.msk [vmem:[%s7738_s4] sm:$0xff] %vm4155_vm2, %v4154_v52 }

</bundles_post_ra>
